<compile_context>
chip_gen: v7x
topology: tpu7x:2x2x1
jax: 0.10.0
libtpu: 0.0.40
codegen_flags: <defaults>
</compile_context>

<pallas_src>
import math

import numpy as np
import jax
import jax.numpy as jnp
from jax.experimental import pallas as pl
from jax.experimental.pallas import tpu as pltpu

N_HEADS = 4      # TransformerEncoderLayer(nhead=4)
HEAD_PAD = 16    # head dim padded 10 -> 16 (d_model 40 -> 64)
LANE = 128       # slab / IO lane width


def _gelu_exact(v):
    # PyTorch activation='gelu' default: exact erf formulation.
    return 0.5 * v * (1.0 + jax.lax.erf(v * (1.0 / math.sqrt(2.0))))


# --------------------------------------------------------------------------
# Host-side parameter packing (runs ONCE): one 128-lane f32 slab + one
# 192-lane fused-QKV slab.  Every block starts on an 8-row boundary.
# --------------------------------------------------------------------------
def pack_params(params, *, input_dim, latent_dim, n_timepoints, time_emb_dim):
    D, L, T, TE = input_dim, latent_dim, n_timepoints, time_emb_dim
    E = 32 + TE                    # real d_model (40)
    H = N_HEADS
    hd = E // H                    # real head dim (10)
    HDP = HEAD_PAD
    EP = H * HDP                   # padded d_model (64)

    p = {k: np.asarray(v, np.float32) for k, v in params.items()}
    entries = {}

    # VAE part (weights stored transposed: (in, out))
    entries['enc_w'] = p['enc_w'].T                                  # (D, 32)
    entries['enc_b'] = p['enc_b'][None, :]
    entries['muvar_w'] = np.concatenate([p['mu_w'].T, p['var_w'].T], axis=1)
    entries['muvar_b'] = np.concatenate([p['mu_b'], p['var_b']])[None, :]
    entries['dec1_w'] = p['dec1_w'].T                                # (L, 32)
    entries['dec1_b'] = p['dec1_b'][None, :]
    entries['dec2_w'] = p['dec2_w'].T                                # (32, D)
    entries['dec2_b'] = p['dec2_b'][None, :]
    entries['proj_w'] = p['proj_w'].T                                # (D, 32)
    entries['proj_b'] = p['proj_b'][None, :]

    # time embedding pre-padded TE -> 32 lanes (so the src build is a
    # 32-lane-aligned store, review item 5).
    emb = np.zeros((T, 32), np.float32)
    emb[:, :TE] = p['emb_w']
    entries['emb_w'] = emb

    # out_proj: per-head-padded input rows, model-padded output cols.
    wo = np.zeros((EP, EP), np.float32)
    wot = p['out_proj_w'].T
    for h in range(H):
        wo[h * HDP:h * HDP + hd, :E] = wot[h * hd:(h + 1) * hd, :]
    bo = np.zeros((1, EP), np.float32)
    bo[0, :E] = p['out_proj_b']
    entries['wo'], entries['bo'] = wo, bo

    # feed-forward (dim_feedforward = 32)
    w1 = np.zeros((EP, 32), np.float32); w1[:E, :] = p['lin1_w'].T
    entries['lin1_w'] = w1
    entries['lin1_b'] = p['lin1_b'][None, :]
    w2 = np.zeros((32, EP), np.float32); w2[:, :E] = p['lin2_w'].T
    entries['lin2_w'] = w2
    b2 = np.zeros((1, EP), np.float32); b2[0, :E] = p['lin2_b']
    entries['lin2_b'] = b2

    # layer norms: zero-pad affine params so padded lanes stay exactly zero.
    for nm in ('n1', 'n2'):
        wv = np.zeros((1, EP), np.float32); wv[0, :E] = p[f'{nm}_w']
        bv = np.zeros((1, EP), np.float32); bv[0, :E] = p[f'{nm}_b']
        entries[f'{nm}_w'], entries[f'{nm}_b'] = wv, bv

    # fc_out
    wf = np.zeros((EP, 1), np.float32); wf[:E, 0] = p['fco_w'][0, :]
    entries['fco_w'] = wf
    entries['fco_b'] = p['fco_b'].reshape(1, 1)

    # host-precomputed masks (review item 6).
    causal = np.zeros((T, T), np.float32)
    causal[np.triu_indices(T, k=1)] = -1e30
    entries['causal'] = causal
    lane_mask = np.zeros((1, EP), np.float32)
    lane_mask[0, :E] = 1.0
    entries['lane_mask'] = lane_mask

    # ---- fused QKV (dedicated 192-lane slab) -> ONE MXU push in-kernel ----
    # rows [0:EP]  : weight (input rows E..EP are zero, matching zero src lanes)
    # row  [EP]    : bias
    # output lanes: [0:EP]=Q, [EP:2EP]=K, [2EP:3EP]=V, each per-head 16-padded.
    wqkv = np.zeros((EP + 8, 3 * EP), np.float32)
    ipw, ipb = p['in_proj_w'], p['in_proj_b']
    for i in range(3):                      # q, k, v (PyTorch in_proj order)
        wt = ipw[i * E:(i + 1) * E, :].T    # (E_in, E_out)
        bt = ipb[i * E:(i + 1) * E]
        for h in range(H):
            c0 = i * EP + h * HDP
            wqkv[:E, c0:c0 + hd] = wt[:, h * hd:(h + 1) * hd]
            wqkv[EP, c0:c0 + hd] = bt[h * hd:(h + 1) * hd]

    # Padded-lane zero invariants the kernel relies on (LN/FFN keep lanes
    # E..EP exactly 0).  Fail loudly if anyone breaks the packing.
    assert not wqkv[E:EP, :].any()
    for i in range(3):
        for h in range(H):
            assert not wqkv[:, i * EP + h * HDP + hd:i * EP + (h + 1) * HDP].any()
    assert not entries['wo'][:, E:].any() and not entries['bo'][0, E:].any()
    assert not entries['lin2_w'][:, E:].any() and not entries['lin2_b'][0, E:].any()
    assert not entries['n1_w'][0, E:].any() and not entries['n2_w'][0, E:].any()
    assert not entries['n1_b'][0, E:].any() and not entries['n2_b'][0, E:].any()
    assert not entries['emb_w'][:, TE:].any()

    # Concatenate into one 128-lane slab; every block starts on an 8-row
    # boundary so all in-kernel slices are sublane-aligned.
    offsets, blocks, row = {}, [], 0
    for name, arr in entries.items():
        r, c = arr.shape
        rp = -(-r // 8) * 8
        blk = np.zeros((rp, LANE), np.float32)
        blk[:r, :c] = arr
        offsets[name] = (row, r, c)
        blocks.append(blk)
        row += rp
    slab = np.concatenate(blocks, axis=0)
    return jnp.asarray(slab), jnp.asarray(wqkv), offsets


# --------------------------------------------------------------------------
# Kernel factory (offsets / shapes are baked in as static constants).
# --------------------------------------------------------------------------
def build_forward(offsets, *, batch, input_dim, latent_dim, n_timepoints,
                  time_emb_dim):
    B, D, L, T, TE = batch, input_dim, latent_dim, n_timepoints, time_emb_dim
    E = 32 + TE
    H = N_HEADS
    hd = E // H
    HDP = HEAD_PAD
    EP = H * HDP
    BT = B * T
    scale = 1.0 / math.sqrt(hd)          # PyTorch scales by real head dim (10)
    f32 = jnp.float32

    def kernel(data_ref, slab_ref, wqkv_ref, out_ref, src_sc, ctx_sc):
        def blk(name):
            o, r, c = offsets[name]
            return slab_ref[o:o + r, :c]

        def lin(v, wn, bn):
            return jnp.dot(v, blk(wn), preferred_element_type=f32) + blk(bn)

        x = data_ref[:, :D]                                   # (B, D)
        eps = data_ref[:, D:D + L]                            # (B, L)

        # ---- VAE encode / reparameterize / decode (dropout = identity) ----
        x1 = jnp.maximum(lin(x, 'enc_w', 'enc_b'), 0.0)       # (B, 32)
        muvar = lin(x1, 'muvar_w', 'muvar_b')                 # (B, 2L)
        mu = muvar[:, :L]
        logvar = muvar[:, L:2 * L]
        z = mu + eps * jnp.exp(0.5 * logvar)
        d1 = jnp.maximum(lin(z, 'dec1_w', 'dec1_b'), 0.0)     # (B, 32)
        x_hat = lin(d1, 'dec2_w', 'dec2_b')                   # (B, D)

        # ---- transformer input: two 32-lane aligned stores, no lane concat ----
        h = lin(x_hat, 'proj_w', 'proj_b')                    # (B, 32)
        te = blk('emb_w')                                     # (T, 32), lanes TE..32 = 0
        src_sc[:, 0:32] = jnp.broadcast_to(
            h[:, None, :], (B, T, 32)).reshape(BT, 32)
        src_sc[:, 32:EP] = jnp.broadcast_to(
            te[None, :, :], (B, T, 32)).reshape(BT, 32)
        src = src_sc[...]                                     # (BT, EP), lanes E..EP = 0

        # ---- fused QKV projection: ONE MXU push over a 192-lane RHS ----
        qkv = (jnp.dot(src, wqkv_ref[0:EP, :], preferred_element_type=f32)
               + wqkv_ref[EP:EP + 1, :])                      # (BT, 3*EP)
        q = qkv[:, 0:EP].reshape(B, T, EP)
        k = qkv[:, EP:2 * EP].reshape(B, T, EP)
        v = qkv[:, 2 * EP:3 * EP].reshape(B, T, EP)

        causal = blk('causal')[None, :, :]                    # (1, T, T), host-built

        # Static H=4 per-head loop (proven Mosaic lowering).  A head-batched
        # 4-D contraction was avoided on purpose: the lane-splitting reshape
        # (BT,EP)->(B,T,H,HDP) is a risky relayout with no MXU-op saving at
        # these tiny sizes.  Each head's context is written straight into a
        # VMEM scratch at its static 16-lane offset (no lane concatenate).
        for hi in range(H):
            sl = slice(hi * HDP, (hi + 1) * HDP)              # 16-aligned
            qh, kh, vh = q[:, :, sl], k[:, :, sl], v[:, :, sl]
            s = jnp.einsum('bqd,bkd->bqk', qh, kh,
                           preferred_element_type=f32) * scale + causal
            m = jnp.max(s, axis=-1, keepdims=True)
            e = jnp.exp(s - m)
            # approx reciprocal (EUP slot): rows sum to 1 within ~1e-4 rel.
            attn = e * pl.reciprocal(jnp.sum(e, axis=-1, keepdims=True),
                                     approx=True)
            ctxh = jnp.einsum('bqk,bkd->bqd', attn, vh,
                              preferred_element_type=f32)
            ctx_sc[:, sl] = ctxh.reshape(BT, HDP)

        attn_out = lin(ctx_sc[...], 'wo', 'bo')               # (BT, EP)

        # ---- post-norm encoder layer; LN statistics over the E real lanes ----
        lane_mask = blk('lane_mask')                          # (1, EP), host-built

        def layer_norm(val, wn, bn):
            # padded lanes of `val` are zero, so sum over EP == sum over E
            mean = jnp.sum(val, axis=-1, keepdims=True) * (1.0 / E)
            c = (val - mean) * lane_mask
            var = jnp.sum(c * c, axis=-1, keepdims=True) * (1.0 / E)
            return c * jax.lax.rsqrt(var + 1e-5) * blk(wn) + blk(bn)

        h1 = layer_norm(src + attn_out, 'n1_w', 'n1_b')
        ffn = lin(_gelu_exact(lin(h1, 'lin1_w', 'lin1_b')), 'lin2_w', 'lin2_b')
        h2 = layer_norm(h1 + ffn, 'n2_w', 'n2_b')

        # ---- fc_out -> y_hat (B, T) ----
        y = (jnp.dot(h2, blk('fco_w'), preferred_element_type=f32)
             + blk('fco_b')).reshape(B, T)

        # ---- single lane-dense output slab, segments at 32-lane offsets ----
        out_ref[...] = jnp.zeros((B, LANE), f32)
        out_ref[:, 0:D] = x_hat
        out_ref[:, 32:32 + T] = y
        out_ref[:, 64:64 + L] = mu
        out_ref[:, 96:96 + L] = logvar

    vmem = pl.BlockSpec(memory_space=pltpu.MemorySpace.VMEM)
    return pl.pallas_call(
        kernel,
        out_shape=jax.ShapeDtypeStruct((B, LANE), jnp.float32),
        in_specs=[vmem, vmem, vmem],
        out_specs=vmem,
        scratch_shapes=[pltpu.VMEM((BT, EP), jnp.float32),   # src scratch
                        pltpu.VMEM((BT, EP), jnp.float32)],  # ctx scratch
    )


# --------------------------------------------------------------------------
# Public API: pack + build ONCE, return a jit'ed forward(x, eps).
# --------------------------------------------------------------------------
def make_time_aware_reg_vae_forward(params, *, input_dim, latent_dim,
                                    n_timepoints, time_emb_dim):
    D, L, T, TE = input_dim, latent_dim, n_timepoints, time_emb_dim
    assert (32 + TE) % N_HEADS == 0 and (32 + TE) // N_HEADS <= HEAD_PAD
    assert TE <= 32 and D <= 32 and T <= 32 and L <= 32 and D + L <= LANE

    slab, wqkv, offsets = pack_params(params, input_dim=D, latent_dim=L,
                                      n_timepoints=T, time_emb_dim=TE)

    calls = {}   # batch size -> pallas_call (built once, at trace time)

    def get_call(batch):
        if batch not in calls:
            calls[batch] = build_forward(offsets, batch=batch, input_dim=D,
                                         latent_dim=L, n_timepoints=T,
                                         time_emb_dim=TE)
        return calls[batch]

    @jax.jit
    def forward(x, eps):
        B = x.shape[0]
        data = jnp.zeros((B, LANE), jnp.float32)
        data = data.at[:, :D].set(x.astype(jnp.float32))
        data = data.at[:, D:D + L].set(eps.astype(jnp.float32))
        out = get_call(B)(data, slab, wqkv)
        x_hat = out[:, :D]
        y_hat = out[:, 32:32 + T]
        mu = out[:, 64:64 + L]
        logvar = out[:, 96:96 + L]
        return x_hat, y_hat, mu, logvar

    return forward


# --------------------------------------------------------------------------
# Parameter init (same layout as the PyTorch module's state_dict).
# --------------------------------------------------------------------------
def init_params(key, input_dim, latent_dim, n_timepoints, time_emb_dim=8):
    d = 32 + time_emb_dim
    shapes = {
        'enc_w': (32, input_dim), 'enc_b': (32,),
        'mu_w': (latent_dim, 32), 'mu_b': (latent_dim,),
        'var_w': (latent_dim, 32), 'var_b': (latent_dim,),
        'dec1_w': (32, latent_dim), 'dec1_b': (32,),
        'dec2_w': (input_dim, 32), 'dec2_b': (input_dim,),
        'emb_w': (n_timepoints, time_emb_dim),
        'proj_w': (32, input_dim), 'proj_b': (32,),
        'in_proj_w': (3 * d, d), 'in_proj_b': (3 * d,),
        'out_proj_w': (d, d), 'out_proj_b': (d,),
        'lin1_w': (32, d), 'lin1_b': (32,),
        'lin2_w': (d, 32), 'lin2_b': (d,),
        'n1_w': (d,), 'n1_b': (d,),
        'n2_w': (d,), 'n2_b': (d,),
        'fco_w': (1, d), 'fco_b': (1,),
    }
    params = {}
    for i, (name, shp) in enumerate(sorted(shapes.items())):
        sub = jax.random.fold_in(key, i)
        params[name] = jax.random.uniform(
            sub, shp, jnp.float32, minval=-0.2, maxval=0.2)
    params['n1_w'] = jnp.ones((d,), jnp.float32)
    params['n1_b'] = jnp.zeros((d,), jnp.float32)
    params['n2_w'] = jnp.ones((d,), jnp.float32)
    params['n2_b'] = jnp.zeros((d,), jnp.float32)
    return params


# --------------------------------------------------------------------------
# Pure-JAX reference of TimeAwareRegVAE.forward (eval mode) for validation.
# --------------------------------------------------------------------------
def reference_forward(x, eps, params, *, n_timepoints, time_emb_dim):
    p = {k: jnp.asarray(v, jnp.float32) for k, v in params.items()}
    T = n_timepoints
    E = 32 + time_emb_dim
    H = N_HEADS
    hd = E // H
    B = x.shape[0]

    x1 = jax.nn.relu(x @ p['enc_w'].T + p['enc_b'])
    mu = x1 @ p['mu_w'].T + p['mu_b']
    logvar = x1 @ p['var_w'].T + p['var_b']
    z = mu + eps * jnp.exp(0.5 * logvar)
    d1 = jax.nn.relu(z @ p['dec1_w'].T + p['dec1_b'])
    x_hat = d1 @ p['dec2_w'].T + p['dec2_b']

    h = x_hat @ p['proj_w'].T + p['proj_b']                       # (B, 32)
    te = p['emb_w']                                               # (T, TE)
    src = jnp.concatenate([jnp.repeat(h[:, None, :], T, axis=1),
                           jnp.repeat(te[None, :, :], B, axis=0)], axis=-1)

    qkv = src @ p['in_proj_w'].T + p['in_proj_b']                 # (B, T, 3E)
    q, k, v = jnp.split(qkv, 3, axis=-1)

    def split_heads(a):
        return a.reshape(B, T, H, hd).transpose(0, 2, 1, 3)

    qh, kh, vh = split_heads(q), split_heads(k), split_heads(v)
    mask = jnp.where(jnp.triu(jnp.ones((T, T), jnp.float32), k=1) > 0,
                     -jnp.inf, 0.0)
    s = jnp.einsum('bhqd,bhkd->bhqk', qh, kh) / math.sqrt(hd) + mask
    a = jax.nn.softmax(s, axis=-1)
    ctx = jnp.einsum('bhqk,bhkd->bhqd', a, vh).transpose(0, 2, 1, 3).reshape(B, T, E)
    attn_out = ctx @ p['out_proj_w'].T + p['out_proj_b']

    def ln(val, w, b):
        m = val.mean(-1, keepdims=True)
        var = ((val - m) ** 2).mean(-1, keepdims=True)
        return (val - m) / jnp.sqrt(var + 1e-5) * w + b

    h1 = ln(src + attn_out, p['n1_w'], p['n1_b'])
    ffn = (jax.nn.gelu(h1 @ p['lin1_w'].T + p['lin1_b'], approximate=False)
           @ p['lin2_w'].T + p['lin2_b'])
    h2 = ln(h1 + ffn, p['n2_w'], p['n2_b'])
    y_hat = (h2 @ p['fco_w'].T + p['fco_b']).squeeze(-1)          # (B, T)
    return x_hat, y_hat, mu, logvar


if __name__ == "__main__":
    # Full-f32 matmuls everywhere so the XLA reference matches the MXU kernel.
    jax.config.update("jax_default_matmul_precision", "highest")

    # Shapes consistent with the module: k = 5 latent, n_timepoints = 4.
    B = 8
    INPUT_DIM = 16
    LATENT_DIM = 5
    N_TIMEPOINTS = 4
    TIME_EMB_DIM = 8

    key = jax.random.PRNGKey(0)
    kx, keps, kparams = jax.random.split(key, 3)

    x = jax.random.normal(kx, (B, INPUT_DIM), dtype=jnp.float32)
    # TODO(synk): torch.randn_like inside reparameterize has no in-kernel
    # equivalent matching torch's RNG stream; eps is supplied from the host.
    eps = jax.random.normal(keps, (B, LATENT_DIM), dtype=jnp.float32)
    params = init_params(kparams, INPUT_DIM, LATENT_DIM, N_TIMEPOINTS,
                         TIME_EMB_DIM)

    # Pack + compile ONCE; subsequent calls are pure jit-cache hits.
    forward = make_time_aware_reg_vae_forward(
        params, input_dim=INPUT_DIM, latent_dim=LATENT_DIM,
        n_timepoints=N_TIMEPOINTS, time_emb_dim=TIME_EMB_DIM)

    x_hat, y_hat, mu, logvar = forward(x, eps)
    jax.block_until_ready((x_hat, y_hat, mu, logvar))
    # Second call: no repacking, no retrace, no recompile.
    x_hat, y_hat, mu, logvar = jax.block_until_ready(forward(x, eps))

    assert x_hat.shape == (B, INPUT_DIM)
    assert y_hat.shape == (B, N_TIMEPOINTS)
    assert mu.shape == (B, LATENT_DIM)
    assert logvar.shape == (B, LATENT_DIM)

    # Validate against the pure-JAX reference of the PyTorch forward().
    r_x_hat, r_y_hat, r_mu, r_logvar = reference_forward(
        x, eps, params, n_timepoints=N_TIMEPOINTS, time_emb_dim=TIME_EMB_DIM)
    for got, want, name in ((x_hat, r_x_hat, 'x_hat'),
                            (y_hat, r_y_hat, 'y_hat'),
                            (mu, r_mu, 'mu'),
                            (logvar, r_logvar, 'logvar')):
        err = float(jnp.max(jnp.abs(got - want)))
        assert err < 5e-3, f"{name} mismatch vs reference: max abs err {err}"

    print("KERNEL_OK")
</pallas_src>

<mosaic_0001>
module attributes {stable_mosaic.version = 11 : i64} {
  func.func @kernel(%arg0: memref<8x128xf32, #tpu.memory_space<vmem>>, %arg1: memref<456x128xf32, #tpu.memory_space<vmem>>, %arg2: memref<72x192xf32, #tpu.memory_space<vmem>>, %arg3: memref<8x128xf32, #tpu.memory_space<vmem>>, %arg4: memref<32x64xf32, #tpu.memory_space<vmem>>, %arg5: memref<32x64xf32, #tpu.memory_space<vmem>>) attributes {dimension_semantics = [], scalar_prefetch = 0 : i64, scratch_operands = 2 : i64, tpu.core_type = #tpu.core_type<tc>} {
    %c0 = arith.constant 0 : index
    %c0_0 = arith.constant 0 : index
    %0 = vector.load %arg0[%c0, %c0_0] : memref<8x128xf32, #tpu.memory_space<vmem>>, vector<8x16xf32>
    %c0_1 = arith.constant 0 : index
    %c16 = arith.constant 16 : index
    %1 = vector.load %arg0[%c0_1, %c16] : memref<8x128xf32, #tpu.memory_space<vmem>>, vector<8x5xf32>
    %c0_2 = arith.constant 0 : index
    %c0_3 = arith.constant 0 : index
    %2 = vector.load %arg1[%c0_2, %c0_3] : memref<456x128xf32, #tpu.memory_space<vmem>>, vector<16x32xf32>
    %cst = arith.constant dense<0.000000e+00> : vector<8x32xf32>
    %3 = tpu.matmul %0, %2, %cst {dimension_numbers = #tpu.dot_dimension_numbers<[1], [0], [0], [1], [0, 0, 1, 1], [], []>, precision = #tpu.contract_precision<fp32>} : vector<8x16xf32>, vector<16x32xf32>, vector<8x32xf32> -> vector<8x32xf32>
    %c16_4 = arith.constant 16 : index
    %c0_5 = arith.constant 0 : index
    %4 = vector.load %arg1[%c16_4, %c0_5] : memref<456x128xf32, #tpu.memory_space<vmem>>, vector<1x32xf32>
    %5 = vector.broadcast %4 : vector<1x32xf32> to vector<8x32xf32>
    %6 = arith.addf %3, %5 : vector<8x32xf32>
    %cst_6 = arith.constant 0.000000e+00 : f32
    %7 = vector.broadcast %cst_6 : f32 to vector<8x32xf32>
    %8 = arith.maximumf %6, %7 : vector<8x32xf32>
    %c24 = arith.constant 24 : index
    %c0_7 = arith.constant 0 : index
    %9 = vector.load %arg1[%c24, %c0_7] : memref<456x128xf32, #tpu.memory_space<vmem>>, vector<32x10xf32>
    %cst_8 = arith.constant dense<0.000000e+00> : vector<8x10xf32>
    %10 = tpu.matmul %8, %9, %cst_8 {dimension_numbers = #tpu.dot_dimension_numbers<[1], [0], [0], [1], [0, 0, 1, 1], [], []>, precision = #tpu.contract_precision<fp32>} : vector<8x32xf32>, vector<32x10xf32>, vector<8x10xf32> -> vector<8x10xf32>
    %c56 = arith.constant 56 : index
    %c0_9 = arith.constant 0 : index
    %11 = vector.load %arg1[%c56, %c0_9] : memref<456x128xf32, #tpu.memory_space<vmem>>, vector<1x10xf32>
    %12 = vector.broadcast %11 : vector<1x10xf32> to vector<8x10xf32>
    %13 = arith.addf %10, %12 : vector<8x10xf32>
    %14 = vector.extract_strided_slice %13 {offsets = [0, 0], sizes = [8, 5], strides = [1, 1]} : vector<8x10xf32> to vector<8x5xf32>
    %15 = vector.extract_strided_slice %13 {offsets = [0, 5], sizes = [8, 5], strides = [1, 1]} : vector<8x10xf32> to vector<8x5xf32>
    %cst_10 = arith.constant 5.000000e-01 : f32
    %16 = vector.broadcast %cst_10 : f32 to vector<8x5xf32>
    %17 = arith.mulf %16, %15 : vector<8x5xf32>
    %18 = math.exp %17 : vector<8x5xf32>
    %19 = arith.mulf %1, %18 : vector<8x5xf32>
    %20 = arith.addf %14, %19 : vector<8x5xf32>
    %c64 = arith.constant 64 : index
    %c0_11 = arith.constant 0 : index
    %21 = vector.load %arg1[%c64, %c0_11] : memref<456x128xf32, #tpu.memory_space<vmem>>, vector<5x32xf32>
    %cst_12 = arith.constant dense<0.000000e+00> : vector<8x32xf32>
    %22 = tpu.matmul %20, %21, %cst_12 {dimension_numbers = #tpu.dot_dimension_numbers<[1], [0], [0], [1], [0, 0, 1, 1], [], []>, precision = #tpu.contract_precision<fp32>} : vector<8x5xf32>, vector<5x32xf32>, vector<8x32xf32> -> vector<8x32xf32>
    %c72 = arith.constant 72 : index
    %c0_13 = arith.constant 0 : index
    %23 = vector.load %arg1[%c72, %c0_13] : memref<456x128xf32, #tpu.memory_space<vmem>>, vector<1x32xf32>
    %24 = vector.broadcast %23 : vector<1x32xf32> to vector<8x32xf32>
    %25 = arith.addf %22, %24 : vector<8x32xf32>
    %cst_14 = arith.constant 0.000000e+00 : f32
    %26 = vector.broadcast %cst_14 : f32 to vector<8x32xf32>
    %27 = arith.maximumf %25, %26 : vector<8x32xf32>
    %c80 = arith.constant 80 : index
    %c0_15 = arith.constant 0 : index
    %28 = vector.load %arg1[%c80, %c0_15] : memref<456x128xf32, #tpu.memory_space<vmem>>, vector<32x16xf32>
    %cst_16 = arith.constant dense<0.000000e+00> : vector<8x16xf32>
    %29 = tpu.matmul %27, %28, %cst_16 {dimension_numbers = #tpu.dot_dimension_numbers<[1], [0], [0], [1], [0, 0, 1, 1], [], []>, precision = #tpu.contract_precision<fp32>} : vector<8x32xf32>, vector<32x16xf32>, vector<8x16xf32> -> vector<8x16xf32>
    %c112 = arith.constant 112 : index
    %c0_17 = arith.constant 0 : index
    %30 = vector.load %arg1[%c112, %c0_17] : memref<456x128xf32, #tpu.memory_space<vmem>>, vector<1x16xf32>
    %31 = vector.broadcast %30 : vector<1x16xf32> to vector<8x16xf32>
    %32 = arith.addf %29, %31 : vector<8x16xf32>
    %c120 = arith.constant 120 : index
    %c0_18 = arith.constant 0 : index
    %33 = vector.load %arg1[%c120, %c0_18] : memref<456x128xf32, #tpu.memory_space<vmem>>, vector<16x32xf32>
    %cst_19 = arith.constant dense<0.000000e+00> : vector<8x32xf32>
    %34 = tpu.matmul %32, %33, %cst_19 {dimension_numbers = #tpu.dot_dimension_numbers<[1], [0], [0], [1], [0, 0, 1, 1], [], []>, precision = #tpu.contract_precision<fp32>} : vector<8x16xf32>, vector<16x32xf32>, vector<8x32xf32> -> vector<8x32xf32>
    %c136 = arith.constant 136 : index
    %c0_20 = arith.constant 0 : index
    %35 = vector.load %arg1[%c136, %c0_20] : memref<456x128xf32, #tpu.memory_space<vmem>>, vector<1x32xf32>
    %36 = vector.broadcast %35 : vector<1x32xf32> to vector<8x32xf32>
    %37 = arith.addf %34, %36 : vector<8x32xf32>
    %c144 = arith.constant 144 : index
    %c0_21 = arith.constant 0 : index
    %38 = vector.load %arg1[%c144, %c0_21] : memref<456x128xf32, #tpu.memory_space<vmem>>, vector<4x32xf32>
    %39 = vector.shape_cast %37 : vector<8x32xf32> to vector<8x1x32xf32>
    %40 = vector.shape_cast %39 : vector<8x1x32xf32> to vector<8x1x32xf32>
    %41 = vector.broadcast %40 : vector<8x1x32xf32> to vector<8x4x32xf32>
    %42 = vector.shape_cast %41 : vector<8x4x32xf32> to vector<32x32xf32>
    %c0_22 = arith.constant 0 : index
    %c0_23 = arith.constant 0 : index
    %43 = vector.load %arg4[%c0_22, %c0_23] : memref<32x64xf32, #tpu.memory_space<vmem>>, vector<32x32xf32>
    tpu.vector_store %arg4[%c0_22, %c0_23], %42 {strides = array<i32>} : memref<32x64xf32, #tpu.memory_space<vmem>>, vector<32x32xf32>,
    %44 = vector.shape_cast %38 : vector<4x32xf32> to vector<1x4x32xf32>
    %45 = vector.shape_cast %44 : vector<1x4x32xf32> to vector<1x4x32xf32>
    %46 = vector.broadcast %45 : vector<1x4x32xf32> to vector<8x4x32xf32>
    %47 = vector.shape_cast %46 : vector<8x4x32xf32> to vector<32x32xf32>
    %c0_24 = arith.constant 0 : index
    %c32 = arith.constant 32 : index
    %48 = vector.load %arg4[%c0_24, %c32] : memref<32x64xf32, #tpu.memory_space<vmem>>, vector<32x32xf32>
    tpu.vector_store %arg4[%c0_24, %c32], %47 {strides = array<i32>} : memref<32x64xf32, #tpu.memory_space<vmem>>, vector<32x32xf32>,
    %c0_25 = arith.constant 0 : index
    %c0_26 = arith.constant 0 : index
    %49 = vector.load %arg4[%c0_25, %c0_26] : memref<32x64xf32, #tpu.memory_space<vmem>>, vector<32x64xf32>
    %c0_27 = arith.constant 0 : index
    %c0_28 = arith.constant 0 : index
    %50 = vector.load %arg2[%c0_27, %c0_28] : memref<72x192xf32, #tpu.memory_space<vmem>>, vector<64x192xf32>
    %cst_29 = arith.constant dense<0.000000e+00> : vector<32x192xf32>
    %51 = tpu.matmul %49, %50, %cst_29 {dimension_numbers = #tpu.dot_dimension_numbers<[1], [0], [0], [1], [0, 0, 1, 1], [], []>, precision = #tpu.contract_precision<fp32>} : vector<32x64xf32>, vector<64x192xf32>, vector<32x192xf32> -> vector<32x192xf32>
    %c64_30 = arith.constant 64 : index
    %c0_31 = arith.constant 0 : index
    %52 = vector.load %arg2[%c64_30, %c0_31] : memref<72x192xf32, #tpu.memory_space<vmem>>, vector<1x192xf32>
    %53 = vector.broadcast %52 : vector<1x192xf32> to vector<32x192xf32>
    %54 = arith.addf %51, %53 : vector<32x192xf32>
    %55 = vector.extract_strided_slice %54 {offsets = [0, 0], sizes = [32, 64], strides = [1, 1]} : vector<32x192xf32> to vector<32x64xf32>
    %56 = vector.shape_cast %55 : vector<32x64xf32> to vector<8x4x64xf32>
    %57 = vector.extract_strided_slice %54 {offsets = [0, 64], sizes = [32, 64], strides = [1, 1]} : vector<32x192xf32> to vector<32x64xf32>
    %58 = vector.shape_cast %57 : vector<32x64xf32> to vector<8x4x64xf32>
    %59 = vector.extract_strided_slice %54 {offsets = [0, 128], sizes = [32, 64], strides = [1, 1]} : vector<32x192xf32> to vector<32x64xf32>
    %60 = vector.shape_cast %59 : vector<32x64xf32> to vector<8x4x64xf32>
    %c440 = arith.constant 440 : index
    %c0_32 = arith.constant 0 : index
    %61 = vector.load %arg1[%c440, %c0_32] : memref<456x128xf32, #tpu.memory_space<vmem>>, vector<4x4xf32>
    %62 = vector.shape_cast %61 : vector<4x4xf32> to vector<1x4x4xf32>
    %63 = vector.extract_strided_slice %56 {offsets = [0, 0, 0], sizes = [8, 4, 16], strides = [1, 1, 1]} : vector<8x4x64xf32> to vector<8x4x16xf32>
    %64 = vector.extract_strided_slice %58 {offsets = [0, 0, 0], sizes = [8, 4, 16], strides = [1, 1, 1]} : vector<8x4x64xf32> to vector<8x4x16xf32>
    %65 = vector.extract_strided_slice %60 {offsets = [0, 0, 0], sizes = [8, 4, 16], strides = [1, 1, 1]} : vector<8x4x64xf32> to vector<8x4x16xf32>
    "tpu.trace_start"() <{level = 10 : i32, message = "bqd,bkd->bqk"}> : () -> ()
    %cst_33 = arith.constant dense<0.000000e+00> : vector<8x4x4xf32>
    %66 = tpu.matmul %63, %64, %cst_33 {dimension_numbers = #tpu.dot_dimension_numbers<[2], [2], [1], [1], [0, 0, 0, 1, 1, 1], [0], [0]>, precision = #tpu.contract_precision<fp32>} : vector<8x4x16xf32>, vector<8x4x16xf32>, vector<8x4x4xf32> -> vector<8x4x4xf32>
    "tpu.trace_stop"() : () -> ()
    %cst_34 = arith.constant 0.316227764 : f32
    %67 = vector.broadcast %cst_34 : f32 to vector<8x4x4xf32>
    %68 = arith.mulf %66, %67 : vector<8x4x4xf32>
    %69 = vector.broadcast %62 : vector<1x4x4xf32> to vector<8x4x4xf32>
    %70 = arith.addf %68, %69 : vector<8x4x4xf32>
    %cst_35 = arith.constant dense<0xFF800000> : vector<8x4xf32>
    %71 = vector.multi_reduction <maximumf>, %70, %cst_35 [2] : vector<8x4x4xf32> to vector<8x4xf32>
    %72 = vector.shape_cast %71 : vector<8x4xf32> to vector<8x4x1xf32>
    %73 = vector.broadcast %72 : vector<8x4x1xf32> to vector<8x4x4xf32>
    %74 = arith.subf %70, %73 : vector<8x4x4xf32>
    %75 = math.exp %74 : vector<8x4x4xf32>
    %cst_36 = arith.constant dense<0.000000e+00> : vector<8x4xf32>
    %76 = vector.multi_reduction <add>, %75, %cst_36 [2] : vector<8x4x4xf32> to vector<8x4xf32>
    %77 = vector.shape_cast %76 : vector<8x4xf32> to vector<8x4x1xf32>
    %78 = tpu.reciprocal %77 {approx = true} : vector<8x4x1xf32> -> vector<8x4x1xf32>
    %79 = vector.broadcast %78 : vector<8x4x1xf32> to vector<8x4x4xf32>
    %80 = arith.mulf %75, %79 : vector<8x4x4xf32>
    "tpu.trace_start"() <{level = 10 : i32, message = "bqk,bkd->bqd"}> : () -> ()
    %cst_37 = arith.constant dense<0.000000e+00> : vector<8x4x16xf32>
    %81 = tpu.matmul %80, %65, %cst_37 {dimension_numbers = #tpu.dot_dimension_numbers<[2], [1], [1], [2], [0, 0, 0, 1, 1, 2], [0], [0]>, precision = #tpu.contract_precision<fp32>} : vector<8x4x4xf32>, vector<8x4x16xf32>, vector<8x4x16xf32> -> vector<8x4x16xf32>
    "tpu.trace_stop"() : () -> ()
    %82 = vector.shape_cast %81 : vector<8x4x16xf32> to vector<32x16xf32>
    %c0_38 = arith.constant 0 : index
    %c0_39 = arith.constant 0 : index
    %83 = vector.load %arg5[%c0_38, %c0_39] : memref<32x64xf32, #tpu.memory_space<vmem>>, vector<32x16xf32>
    tpu.vector_store %arg5[%c0_38, %c0_39], %82 {strides = array<i32>} : memref<32x64xf32, #tpu.memory_space<vmem>>, vector<32x16xf32>,
    %84 = vector.extract_strided_slice %56 {offsets = [0, 0, 16], sizes = [8, 4, 16], strides = [1, 1, 1]} : vector<8x4x64xf32> to vector<8x4x16xf32>
    %85 = vector.extract_strided_slice %58 {offsets = [0, 0, 16], sizes = [8, 4, 16], strides = [1, 1, 1]} : vector<8x4x64xf32> to vector<8x4x16xf32>
    %86 = vector.extract_strided_slice %60 {offsets = [0, 0, 16], sizes = [8, 4, 16], strides = [1, 1, 1]} : vector<8x4x64xf32> to vector<8x4x16xf32>
    "tpu.trace_start"() <{level = 10 : i32, message = "bqd,bkd->bqk"}> : () -> ()
    %cst_40 = arith.constant dense<0.000000e+00> : vector<8x4x4xf32>
    %87 = tpu.matmul %84, %85, %cst_40 {dimension_numbers = #tpu.dot_dimension_numbers<[2], [2], [1], [1], [0, 0, 0, 1, 1, 1], [0], [0]>, precision = #tpu.contract_precision<fp32>} : vector<8x4x16xf32>, vector<8x4x16xf32>, vector<8x4x4xf32> -> vector<8x4x4xf32>
    "tpu.trace_stop"() : () -> ()
    %cst_41 = arith.constant 0.316227764 : f32
    %88 = vector.broadcast %cst_41 : f32 to vector<8x4x4xf32>
    %89 = arith.mulf %87, %88 : vector<8x4x4xf32>
    %90 = vector.broadcast %62 : vector<1x4x4xf32> to vector<8x4x4xf32>
    %91 = arith.addf %89, %90 : vector<8x4x4xf32>
    %cst_42 = arith.constant dense<0xFF800000> : vector<8x4xf32>
    %92 = vector.multi_reduction <maximumf>, %91, %cst_42 [2] : vector<8x4x4xf32> to vector<8x4xf32>
    %93 = vector.shape_cast %92 : vector<8x4xf32> to vector<8x4x1xf32>
    %94 = vector.broadcast %93 : vector<8x4x1xf32> to vector<8x4x4xf32>
    %95 = arith.subf %91, %94 : vector<8x4x4xf32>
    %96 = math.exp %95 : vector<8x4x4xf32>
    %cst_43 = arith.constant dense<0.000000e+00> : vector<8x4xf32>
    %97 = vector.multi_reduction <add>, %96, %cst_43 [2] : vector<8x4x4xf32> to vector<8x4xf32>
    %98 = vector.shape_cast %97 : vector<8x4xf32> to vector<8x4x1xf32>
    %99 = tpu.reciprocal %98 {approx = true} : vector<8x4x1xf32> -> vector<8x4x1xf32>
    %100 = vector.broadcast %99 : vector<8x4x1xf32> to vector<8x4x4xf32>
    %101 = arith.mulf %96, %100 : vector<8x4x4xf32>
    "tpu.trace_start"() <{level = 10 : i32, message = "bqk,bkd->bqd"}> : () -> ()
    %cst_44 = arith.constant dense<0.000000e+00> : vector<8x4x16xf32>
    %102 = tpu.matmul %101, %86, %cst_44 {dimension_numbers = #tpu.dot_dimension_numbers<[2], [1], [1], [2], [0, 0, 0, 1, 1, 2], [0], [0]>, precision = #tpu.contract_precision<fp32>} : vector<8x4x4xf32>, vector<8x4x16xf32>, vector<8x4x16xf32> -> vector<8x4x16xf32>
    "tpu.trace_stop"() : () -> ()
    %103 = vector.shape_cast %102 : vector<8x4x16xf32> to vector<32x16xf32>
    %c0_45 = arith.constant 0 : index
    %c16_46 = arith.constant 16 : index
    %104 = vector.load %arg5[%c0_45, %c16_46] : memref<32x64xf32, #tpu.memory_space<vmem>>, vector<32x16xf32>
    tpu.vector_store %arg5[%c0_45, %c16_46], %103 {strides = array<i32>} : memref<32x64xf32, #tpu.memory_space<vmem>>, vector<32x16xf32>,
    %105 = vector.extract_strided_slice %56 {offsets = [0, 0, 32], sizes = [8, 4, 16], strides = [1, 1, 1]} : vector<8x4x64xf32> to vector<8x4x16xf32>
    %106 = vector.extract_strided_slice %58 {offsets = [0, 0, 32], sizes = [8, 4, 16], strides = [1, 1, 1]} : vector<8x4x64xf32> to vector<8x4x16xf32>
    %107 = vector.extract_strided_slice %60 {offsets = [0, 0, 32], sizes = [8, 4, 16], strides = [1, 1, 1]} : vector<8x4x64xf32> to vector<8x4x16xf32>
    "tpu.trace_start"() <{level = 10 : i32, message = "bqd,bkd->bqk"}> : () -> ()
    %cst_47 = arith.constant dense<0.000000e+00> : vector<8x4x4xf32>
    %108 = tpu.matmul %105, %106, %cst_47 {dimension_numbers = #tpu.dot_dimension_numbers<[2], [2], [1], [1], [0, 0, 0, 1, 1, 1], [0], [0]>, precision = #tpu.contract_precision<fp32>} : vector<8x4x16xf32>, vector<8x4x16xf32>, vector<8x4x4xf32> -> vector<8x4x4xf32>
    "tpu.trace_stop"() : () -> ()
    %cst_48 = arith.constant 0.316227764 : f32
    %109 = vector.broadcast %cst_48 : f32 to vector<8x4x4xf32>
    %110 = arith.mulf %108, %109 : vector<8x4x4xf32>
    %111 = vector.broadcast %62 : vector<1x4x4xf32> to vector<8x4x4xf32>
    %112 = arith.addf %110, %111 : vector<8x4x4xf32>
    %cst_49 = arith.constant dense<0xFF800000> : vector<8x4xf32>
    %113 = vector.multi_reduction <maximumf>, %112, %cst_49 [2] : vector<8x4x4xf32> to vector<8x4xf32>
    %114 = vector.shape_cast %113 : vector<8x4xf32> to vector<8x4x1xf32>
    %115 = vector.broadcast %114 : vector<8x4x1xf32> to vector<8x4x4xf32>
    %116 = arith.subf %112, %115 : vector<8x4x4xf32>
    %117 = math.exp %116 : vector<8x4x4xf32>
    %cst_50 = arith.constant dense<0.000000e+00> : vector<8x4xf32>
    %118 = vector.multi_reduction <add>, %117, %cst_50 [2] : vector<8x4x4xf32> to vector<8x4xf32>
    %119 = vector.shape_cast %118 : vector<8x4xf32> to vector<8x4x1xf32>
    %120 = tpu.reciprocal %119 {approx = true} : vector<8x4x1xf32> -> vector<8x4x1xf32>
    %121 = vector.broadcast %120 : vector<8x4x1xf32> to vector<8x4x4xf32>
    %122 = arith.mulf %117, %121 : vector<8x4x4xf32>
    "tpu.trace_start"() <{level = 10 : i32, message = "bqk,bkd->bqd"}> : () -> ()
    %cst_51 = arith.constant dense<0.000000e+00> : vector<8x4x16xf32>
    %123 = tpu.matmul %122, %107, %cst_51 {dimension_numbers = #tpu.dot_dimension_numbers<[2], [1], [1], [2], [0, 0, 0, 1, 1, 2], [0], [0]>, precision = #tpu.contract_precision<fp32>} : vector<8x4x4xf32>, vector<8x4x16xf32>, vector<8x4x16xf32> -> vector<8x4x16xf32>
    "tpu.trace_stop"() : () -> ()
    %124 = vector.shape_cast %123 : vector<8x4x16xf32> to vector<32x16xf32>
    %c0_52 = arith.constant 0 : index
    %c32_53 = arith.constant 32 : index
    %125 = vector.load %arg5[%c0_52, %c32_53] : memref<32x64xf32, #tpu.memory_space<vmem>>, vector<32x16xf32>
    tpu.vector_store %arg5[%c0_52, %c32_53], %124 {strides = array<i32>} : memref<32x64xf32, #tpu.memory_space<vmem>>, vector<32x16xf32>,
    %126 = vector.extract_strided_slice %56 {offsets = [0, 0, 48], sizes = [8, 4, 16], strides = [1, 1, 1]} : vector<8x4x64xf32> to vector<8x4x16xf32>
    %127 = vector.extract_strided_slice %58 {offsets = [0, 0, 48], sizes = [8, 4, 16], strides = [1, 1, 1]} : vector<8x4x64xf32> to vector<8x4x16xf32>
    %128 = vector.extract_strided_slice %60 {offsets = [0, 0, 48], sizes = [8, 4, 16], strides = [1, 1, 1]} : vector<8x4x64xf32> to vector<8x4x16xf32>
    "tpu.trace_start"() <{level = 10 : i32, message = "bqd,bkd->bqk"}> : () -> ()
    %cst_54 = arith.constant dense<0.000000e+00> : vector<8x4x4xf32>
    %129 = tpu.matmul %126, %127, %cst_54 {dimension_numbers = #tpu.dot_dimension_numbers<[2], [2], [1], [1], [0, 0, 0, 1, 1, 1], [0], [0]>, precision = #tpu.contract_precision<fp32>} : vector<8x4x16xf32>, vector<8x4x16xf32>, vector<8x4x4xf32> -> vector<8x4x4xf32>
    "tpu.trace_stop"() : () -> ()
    %cst_55 = arith.constant 0.316227764 : f32
    %130 = vector.broadcast %cst_55 : f32 to vector<8x4x4xf32>
    %131 = arith.mulf %129, %130 : vector<8x4x4xf32>
    %132 = vector.broadcast %62 : vector<1x4x4xf32> to vector<8x4x4xf32>
    %133 = arith.addf %131, %132 : vector<8x4x4xf32>
    %cst_56 = arith.constant dense<0xFF800000> : vector<8x4xf32>
    %134 = vector.multi_reduction <maximumf>, %133, %cst_56 [2] : vector<8x4x4xf32> to vector<8x4xf32>
    %135 = vector.shape_cast %134 : vector<8x4xf32> to vector<8x4x1xf32>
    %136 = vector.broadcast %135 : vector<8x4x1xf32> to vector<8x4x4xf32>
    %137 = arith.subf %133, %136 : vector<8x4x4xf32>
    %138 = math.exp %137 : vector<8x4x4xf32>
    %cst_57 = arith.constant dense<0.000000e+00> : vector<8x4xf32>
    %139 = vector.multi_reduction <add>, %138, %cst_57 [2] : vector<8x4x4xf32> to vector<8x4xf32>
    %140 = vector.shape_cast %139 : vector<8x4xf32> to vector<8x4x1xf32>
    %141 = tpu.reciprocal %140 {approx = true} : vector<8x4x1xf32> -> vector<8x4x1xf32>
    %142 = vector.broadcast %141 : vector<8x4x1xf32> to vector<8x4x4xf32>
    %143 = arith.mulf %138, %142 : vector<8x4x4xf32>
    "tpu.trace_start"() <{level = 10 : i32, message = "bqk,bkd->bqd"}> : () -> ()
    %cst_58 = arith.constant dense<0.000000e+00> : vector<8x4x16xf32>
    %144 = tpu.matmul %143, %128, %cst_58 {dimension_numbers = #tpu.dot_dimension_numbers<[2], [1], [1], [2], [0, 0, 0, 1, 1, 2], [0], [0]>, precision = #tpu.contract_precision<fp32>} : vector<8x4x4xf32>, vector<8x4x16xf32>, vector<8x4x16xf32> -> vector<8x4x16xf32>
    "tpu.trace_stop"() : () -> ()
    %145 = vector.shape_cast %144 : vector<8x4x16xf32> to vector<32x16xf32>
    %c0_59 = arith.constant 0 : index
    %c48 = arith.constant 48 : index
    %146 = vector.load %arg5[%c0_59, %c48] : memref<32x64xf32, #tpu.memory_space<vmem>>, vector<32x16xf32>
    tpu.vector_store %arg5[%c0_59, %c48], %145 {strides = array<i32>} : memref<32x64xf32, #tpu.memory_space<vmem>>, vector<32x16xf32>,
    %c0_60 = arith.constant 0 : index
    %c0_61 = arith.constant 0 : index
    %147 = vector.load %arg5[%c0_60, %c0_61] : memref<32x64xf32, #tpu.memory_space<vmem>>, vector<32x64xf32>
    %c152 = arith.constant 152 : index
    %c0_62 = arith.constant 0 : index
    %148 = vector.load %arg1[%c152, %c0_62] : memref<456x128xf32, #tpu.memory_space<vmem>>, vector<64x64xf32>
    %cst_63 = arith.constant dense<0.000000e+00> : vector<32x64xf32>
    %149 = tpu.matmul %147, %148, %cst_63 {dimension_numbers = #tpu.dot_dimension_numbers<[1], [0], [0], [1], [0, 0, 1, 1], [], []>, precision = #tpu.contract_precision<fp32>} : vector<32x64xf32>, vector<64x64xf32>, vector<32x64xf32> -> vector<32x64xf32>
    %c216 = arith.constant 216 : index
    %c0_64 = arith.constant 0 : index
    %150 = vector.load %arg1[%c216, %c0_64] : memref<456x128xf32, #tpu.memory_space<vmem>>, vector<1x64xf32>
    %151 = vector.broadcast %150 : vector<1x64xf32> to vector<32x64xf32>
    %152 = arith.addf %149, %151 : vector<32x64xf32>
    %c448 = arith.constant 448 : index
    %c0_65 = arith.constant 0 : index
    %153 = vector.load %arg1[%c448, %c0_65] : memref<456x128xf32, #tpu.memory_space<vmem>>, vector<1x64xf32>
    %154 = arith.addf %49, %152 : vector<32x64xf32>
    %cst_66 = arith.constant dense<0.000000e+00> : vector<32xf32>
    %155 = vector.multi_reduction <add>, %154, %cst_66 [1] : vector<32x64xf32> to vector<32xf32>
    %156 = vector.shape_cast %155 : vector<32xf32> to vector<32x1xf32>
    %cst_67 = arith.constant 2.500000e-02 : f32
    %157 = vector.broadcast %cst_67 : f32 to vector<32x1xf32>
    %158 = arith.mulf %156, %157 : vector<32x1xf32>
    %159 = vector.broadcast %158 : vector<32x1xf32> to vector<32x64xf32>
    %160 = arith.subf %154, %159 : vector<32x64xf32>
    %161 = vector.broadcast %153 : vector<1x64xf32> to vector<32x64xf32>
    %162 = arith.mulf %160, %161 : vector<32x64xf32>
    %163 = arith.mulf %162, %162 : vector<32x64xf32>
    %cst_68 = arith.constant dense<0.000000e+00> : vector<32xf32>
    %164 = vector.multi_reduction <add>, %163, %cst_68 [1] : vector<32x64xf32> to vector<32xf32>
    %165 = vector.shape_cast %164 : vector<32xf32> to vector<32x1xf32>
    %cst_69 = arith.constant 2.500000e-02 : f32
    %166 = vector.broadcast %cst_69 : f32 to vector<32x1xf32>
    %167 = arith.mulf %165, %166 : vector<32x1xf32>
    %cst_70 = arith.constant 9.99999974E-6 : f32
    %168 = vector.broadcast %cst_70 : f32 to vector<32x1xf32>
    %169 = arith.addf %167, %168 : vector<32x1xf32>
    %170 = math.rsqrt %169 : vector<32x1xf32>
    %171 = vector.broadcast %170 : vector<32x1xf32> to vector<32x64xf32>
    %172 = arith.mulf %162, %171 : vector<32x64xf32>
    %c336 = arith.constant 336 : index
    %c0_71 = arith.constant 0 : index
    %173 = vector.load %arg1[%c336, %c0_71] : memref<456x128xf32, #tpu.memory_space<vmem>>, vector<1x64xf32>
    %174 = vector.broadcast %173 : vector<1x64xf32> to vector<32x64xf32>
    %175 = arith.mulf %172, %174 : vector<32x64xf32>
    %c344 = arith.constant 344 : index
    %c0_72 = arith.constant 0 : index
    %176 = vector.load %arg1[%c344, %c0_72] : memref<456x128xf32, #tpu.memory_space<vmem>>, vector<1x64xf32>
    %177 = vector.broadcast %176 : vector<1x64xf32> to vector<32x64xf32>
    %178 = arith.addf %175, %177 : vector<32x64xf32>
    %c224 = arith.constant 224 : index
    %c0_73 = arith.constant 0 : index
    %179 = vector.load %arg1[%c224, %c0_73] : memref<456x128xf32, #tpu.memory_space<vmem>>, vector<64x32xf32>
    %cst_74 = arith.constant dense<0.000000e+00> : vector<32x32xf32>
    %180 = tpu.matmul %178, %179, %cst_74 {dimension_numbers = #tpu.dot_dimension_numbers<[1], [0], [0], [1], [0, 0, 1, 1], [], []>, precision = #tpu.contract_precision<fp32>} : vector<32x64xf32>, vector<64x32xf32>, vector<32x32xf32> -> vector<32x32xf32>
    %c288 = arith.constant 288 : index
    %c0_75 = arith.constant 0 : index
    %181 = vector.load %arg1[%c288, %c0_75] : memref<456x128xf32, #tpu.memory_space<vmem>>, vector<1x32xf32>
    %182 = vector.broadcast %181 : vector<1x32xf32> to vector<32x32xf32>
    %183 = arith.addf %180, %182 : vector<32x32xf32>
    %cst_76 = arith.constant 5.000000e-01 : f32
    %184 = vector.broadcast %cst_76 : f32 to vector<32x32xf32>
    %185 = arith.mulf %184, %183 : vector<32x32xf32>
    %cst_77 = arith.constant 0.707106769 : f32
    %186 = vector.broadcast %cst_77 : f32 to vector<32x32xf32>
    %187 = arith.mulf %183, %186 : vector<32x32xf32>
    %188 = math.erf %187 : vector<32x32xf32>
    %cst_78 = arith.constant 1.000000e+00 : f32
    %189 = vector.broadcast %cst_78 : f32 to vector<32x32xf32>
    %190 = arith.addf %189, %188 : vector<32x32xf32>
    %191 = arith.mulf %185, %190 : vector<32x32xf32>
    %c296 = arith.constant 296 : index
    %c0_79 = arith.constant 0 : index
    %192 = vector.load %arg1[%c296, %c0_79] : memref<456x128xf32, #tpu.memory_space<vmem>>, vector<32x64xf32>
    %cst_80 = arith.constant dense<0.000000e+00> : vector<32x64xf32>
    %193 = tpu.matmul %191, %192, %cst_80 {dimension_numbers = #tpu.dot_dimension_numbers<[1], [0], [0], [1], [0, 0, 1, 1], [], []>, precision = #tpu.contract_precision<fp32>} : vector<32x32xf32>, vector<32x64xf32>, vector<32x64xf32> -> vector<32x64xf32>
    %c328 = arith.constant 328 : index
    %c0_81 = arith.constant 0 : index
    %194 = vector.load %arg1[%c328, %c0_81] : memref<456x128xf32, #tpu.memory_space<vmem>>, vector<1x64xf32>
    %195 = vector.broadcast %194 : vector<1x64xf32> to vector<32x64xf32>
    %196 = arith.addf %193, %195 : vector<32x64xf32>
    %197 = arith.addf %178, %196 : vector<32x64xf32>
    %cst_82 = arith.constant dense<0.000000e+00> : vector<32xf32>
    %198 = vector.multi_reduction <add>, %197, %cst_82 [1] : vector<32x64xf32> to vector<32xf32>
    %199 = vector.shape_cast %198 : vector<32xf32> to vector<32x1xf32>
    %cst_83 = arith.constant 2.500000e-02 : f32
    %200 = vector.broadcast %cst_83 : f32 to vector<32x1xf32>
    %201 = arith.mulf %199, %200 : vector<32x1xf32>
    %202 = vector.broadcast %201 : vector<32x1xf32> to vector<32x64xf32>
    %203 = arith.subf %197, %202 : vector<32x64xf32>
    %204 = vector.broadcast %153 : vector<1x64xf32> to vector<32x64xf32>
    %205 = arith.mulf %203, %204 : vector<32x64xf32>
    %206 = arith.mulf %205, %205 : vector<32x64xf32>
    %cst_84 = arith.constant dense<0.000000e+00> : vector<32xf32>
    %207 = vector.multi_reduction <add>, %206, %cst_84 [1] : vector<32x64xf32> to vector<32xf32>
    %208 = vector.shape_cast %207 : vector<32xf32> to vector<32x1xf32>
    %cst_85 = arith.constant 2.500000e-02 : f32
    %209 = vector.broadcast %cst_85 : f32 to vector<32x1xf32>
    %210 = arith.mulf %208, %209 : vector<32x1xf32>
    %cst_86 = arith.constant 9.99999974E-6 : f32
    %211 = vector.broadcast %cst_86 : f32 to vector<32x1xf32>
    %212 = arith.addf %210, %211 : vector<32x1xf32>
    %213 = math.rsqrt %212 : vector<32x1xf32>
    %214 = vector.broadcast %213 : vector<32x1xf32> to vector<32x64xf32>
    %215 = arith.mulf %205, %214 : vector<32x64xf32>
    %c352 = arith.constant 352 : index
    %c0_87 = arith.constant 0 : index
    %216 = vector.load %arg1[%c352, %c0_87] : memref<456x128xf32, #tpu.memory_space<vmem>>, vector<1x64xf32>
    %217 = vector.broadcast %216 : vector<1x64xf32> to vector<32x64xf32>
    %218 = arith.mulf %215, %217 : vector<32x64xf32>
    %c360 = arith.constant 360 : index
    %c0_88 = arith.constant 0 : index
    %219 = vector.load %arg1[%c360, %c0_88] : memref<456x128xf32, #tpu.memory_space<vmem>>, vector<1x64xf32>
    %220 = vector.broadcast %219 : vector<1x64xf32> to vector<32x64xf32>
    %221 = arith.addf %218, %220 : vector<32x64xf32>
    %c368 = arith.constant 368 : index
    %c0_89 = arith.constant 0 : index
    %222 = vector.load %arg1[%c368, %c0_89] : memref<456x128xf32, #tpu.memory_space<vmem>>, vector<64x1xf32>
    %cst_90 = arith.constant dense<0.000000e+00> : vector<32x1xf32>
    %223 = tpu.matmul %221, %222, %cst_90 {dimension_numbers = #tpu.dot_dimension_numbers<[1], [0], [0], [1], [0, 0, 1, 1], [], []>, precision = #tpu.contract_precision<fp32>} : vector<32x64xf32>, vector<64x1xf32>, vector<32x1xf32> -> vector<32x1xf32>
    %c432 = arith.constant 432 : index
    %c0_91 = arith.constant 0 : index
    %224 = vector.load %arg1[%c432, %c0_91] : memref<456x128xf32, #tpu.memory_space<vmem>>, vector<1x1xf32>
    %225 = vector.broadcast %224 : vector<1x1xf32> to vector<32x1xf32>
    %226 = arith.addf %223, %225 : vector<32x1xf32>
    %227 = vector.shape_cast %226 : vector<32x1xf32> to vector<8x4xf32>
    %cst_92 = arith.constant 0.000000e+00 : f32
    %228 = vector.broadcast %cst_92 : f32 to vector<8x128xf32>
    %c0_93 = arith.constant 0 : index
    %c0_94 = arith.constant 0 : index
    %229 = vector.load %arg3[%c0_93, %c0_94] : memref<8x128xf32, #tpu.memory_space<vmem>>, vector<8x128xf32>
    tpu.vector_store %arg3[%c0_93, %c0_94], %228 {strides = array<i32>} : memref<8x128xf32, #tpu.memory_space<vmem>>, vector<8x128xf32>,
    %c0_95 = arith.constant 0 : index
    %c0_96 = arith.constant 0 : index
    %230 = vector.load %arg3[%c0_95, %c0_96] : memref<8x128xf32, #tpu.memory_space<vmem>>, vector<8x16xf32>
    tpu.vector_store %arg3[%c0_95, %c0_96], %32 {strides = array<i32>} : memref<8x128xf32, #tpu.memory_space<vmem>>, vector<8x16xf32>,
    %c0_97 = arith.constant 0 : index
    %c32_98 = arith.constant 32 : index
    %231 = vector.load %arg3[%c0_97, %c32_98] : memref<8x128xf32, #tpu.memory_space<vmem>>, vector<8x4xf32>
    tpu.vector_store %arg3[%c0_97, %c32_98], %227 {strides = array<i32>} : memref<8x128xf32, #tpu.memory_space<vmem>>, vector<8x4xf32>,
    %c0_99 = arith.constant 0 : index
    %c64_100 = arith.constant 64 : index
    %232 = vector.load %arg3[%c0_99, %c64_100] : memref<8x128xf32, #tpu.memory_space<vmem>>, vector<8x5xf32>
    tpu.vector_store %arg3[%c0_99, %c64_100], %14 {strides = array<i32>} : memref<8x128xf32, #tpu.memory_space<vmem>>, vector<8x5xf32>,
    %c0_101 = arith.constant 0 : index
    %c96 = arith.constant 96 : index
    %233 = vector.load %arg3[%c0_101, %c96] : memref<8x128xf32, #tpu.memory_space<vmem>>, vector<8x5xf32>
    tpu.vector_store %arg3[%c0_101, %c96], %15 {strides = array<i32>} : memref<8x128xf32, #tpu.memory_space<vmem>>, vector<8x5xf32>,
    return
  }
}

</mosaic_0001>

<bundles_post_ra>
// kernel: forward.1
= control target key start
LH: loop header
LB: loop body
LE: loop exit
PB: predicated region body
PF: predicated region fallthrough
CT: control target
= control target key end

     0   :  { %8 = vsyncpa [#allocation5], 0  ;;  %s45067_s0 = inlined_call_operand.vmem [shape: f32[8,128], index: 0, kind: input, shape index: {}]   ;;  %s45068_s1 = inlined_call_operand.hbm [shape: f32[456,128], index: 1, kind: input, shape index: {}]   ;;  %s45069_s2 = inlined_call_operand.hbm [shape: f32[72,192], index: 2, kind: input, shape index: {}]   ;;  %s45070_s3 = inlined_call_operand.vmem [shape: f32[8,128], index: 3, kind: output, shape index: {}]  }
   0x1   :  { %9 = vsyncpa [#allocation7], 0  ;;  %s41338_s12 = smov [#allocation4]   ;;  %s41290_s16 = scalar_lea.hbm %s45068_s1, 7296 }
   0x2   :  { %s17_s13 = sshll.u32 %s41338_s12, 4  ;;  %p41291_p0 = scmp.ne.s32.totalorder %s45068_s1, %s41290_s16  ;;  %s18_s13 = int_to_ptr.vmem [resolvable:$true] %s17_s13 }
   0x3   :  { %p41294_p1 = scmp.lt.u32.totalorder %s41290_s16, %s45068_s1 }
   0x5   :  { %p41296_p2 = pnand %p41294_p1, %p41291_p0 }
   0x7   :  { %41299 = shalt.err (!%p41296_p2)
}
   0x8   :  { %s41300_s21 = scalar_lea.vmem %s18_s13, 7296  ;;  %p41305_p4 = scmp.lt.s32.totalorder %s18_s13, %s18_s13 }
   0x9   :  { %p41301_p3 = scmp.ne.s32.totalorder %s18_s13, %s41300_s21  ;;  %p41306_p5 = scmp.lt.s32.totalorder %s41300_s21, %s41300_s21 }
   0xb   :  { %p41307_p6 = por %p41306_p5, %p41305_p4 }
   0xd   :  { %p41308_p7 = pnand %p41307_p6, %p41301_p3 }
   0xf   :  { %41311 = shalt.err (!%p41308_p7)
}
  0x10   :  { %s41339_s22 = smov 128   ;;  %s41340_s23 = smov 8  }
  0x11   :  { %23 = dma.hbm_to_vmem [thread:$0]  %s45068_s1, 7296, %s18_s13, [#allocation5], %s41339_s22, %s41339_s22, %s41340_s23  }
  0x12   :  { %s41341_s26 = smov [#allocation6]   ;;  %s41312_s30 = scalar_lea.hbm %s45069_s2, 2304 }
  0x13   :  { %s29_s27 = sshll.u32 %s41341_s26, 4  ;;  %p41313_p8 = scmp.ne.s32.totalorder %s45069_s2, %s41312_s30  ;;  %s30_s27 = int_to_ptr.vmem [resolvable:$true] %s29_s27 }
  0x14   :  { %p41316_p9 = scmp.lt.u32.totalorder %s41312_s30, %s45069_s2 }
  0x16   :  { %p41318_p10 = pnand %p41316_p9, %p41313_p8 }
  0x18   :  { %41321 = shalt.err (!%p41318_p10)
}
  0x19   :  { %s41322_s8 = scalar_lea.vmem %s30_s27, 2304  ;;  %p41327_p12 = scmp.lt.s32.totalorder %s30_s27, %s30_s27 }
  0x1a   :  { %p41323_p11 = scmp.ne.s32.totalorder %s30_s27, %s41322_s8  ;;  %p41328_p13 = scmp.lt.s32.totalorder %s41322_s8, %s41322_s8 }
  0x1c   :  { %p41329_p0 = por %p41328_p13, %p41327_p12 }
  0x1e   :  { %p41330_p1 = pnand %p41329_p0, %p41323_p11 }
  0x20   :  { %41333 = shalt.err (!%p41330_p1)
}
  0x21   :  { %s41342_s1 = smov 256   ;;  %s41343_s9 = smov 16  }
  0x22   :  { %35 = dma.hbm_to_vmem [thread:$0]  %s45069_s2, 2304, %s30_s27, [#allocation7], %s41342_s1, %s41342_s1, %s41343_s9  }
  0x23   :  { %41334 = dma.done.wait [#allocation5], 7296  }
  0x24   :  { %41335 = vsyncadd [#allocation5], 4294960000 }
  0x25   :  { %41336 = dma.done.wait [#allocation7], 2304  }
  0x26   :  { %41337 = vsyncadd [#allocation7], 4294964992  ;;  %v41344_v0 = vmov 0.0|0.0   ;;  %vm41345_vm0 = vmmov 0   ;;  %v41346_v1 = vmov 0.0   ;;  %vm50_vm1 = vcmask 130048  }
  0x27   :  { %39728 = vmatprep.subr.bf16.mxu0 %v41344_v0  ;;  %37086 = vmatprep.mubr.msk.f32.mxu0 %vm41345_vm0, %v41346_v1  ;;  %35833 = vst [vmem:[%s45070_s3] sm:$0xff] %v41346_v1  ;;  %v43_v2 = vld [vmem:[#allocation4] sm:$0xff]  ;;  %v44_v3 = vld [vmem:[#allocation4 + $0x8] sm:$0xff]  ;;  %v514_v25 = vld [vmem:[#allocation4 + $0x18] sm:$0xff]  ;;  %vm523_vm2 = vcmask 261120   ;;  %vm1035_vm3 = vcmask 1044480   ;;  %s41348_s15 = smov 112  }
  0x28   :  { %39746 = vmatprep.subr.bf16.mxu1 %v41344_v0  ;;  %37132 = vmatprep.mubr.msk.f32.mxu1 %vm41345_vm0, %v41346_v1  ;;  %v41415_v4 = vld [vmem:[%s45067_s0] sm:$0xff]  ;;  %v55_v5 = vand.u32 4294901760, %v43_v2  ;;  %v58_v6 = vand.u32 4294901760, %v44_v3  ;;  %v528_v27 = vand.u32 4294901760, %v514_v25  ;;  %v516_v32 = vld [vmem:[#allocation4 + $0x28] sm:$0xff]  ;;  %v517_v33 = vld [vmem:[#allocation4 + $0x30] sm:$0xff] }
  0x29   :  { %v52_v7 = vsel %vm50_vm1, %v41415_v4, 0  ;;  %v515_v26 = vld [vmem:[#allocation4 + $0x20] sm:$0xff]  ;;  %v534_v34 = vand.u32 4294901760, %v516_v32  ;;  %v537_v35 = vand.u32 4294901760, %v517_v33  ;;  %v35928_v57 = vld [vmem:[#allocation4 + $0x10] ss:$0 sm:$0xff] }
  0x2a   :  { %v121_v8 = vand.u32 4294901760, %v52_v7  ;;  %v39729_v9 = vpack.c.bf16 %v58_v6, %v55_v5  ;;  %v133_v10 = vsub.f32 %v43_v2, %v55_v5  ;;  %v140_v11 = vsub.f32 %v44_v3, %v58_v6  ;;  %s41347_s0 = smov 11   ;;  %s41349_s16 = smov 32  }
  0x2b   :  { %v531_v28 = vand.u32 4294901760, %v515_v26  ;;  %v608_v30 = vsub.f32 %v514_v25, %v528_v27  ;;  %v39750_v38 = vpack.c.bf16 %v537_v35, %v534_v34  ;;  %v622_v39 = vsub.f32 %v516_v32, %v534_v34  ;;  %s41351_s19 = smov 64   ;;  %s41352_s20 = smov 48  }
  0x2c   :  { %v122_v12 = vsub.f32 %v52_v7, %v121_v8  ;;  %39730 = vmatpush3.bf16.msra.mxu0 %v39729_v9  ;;  %v134_v13 = vand.u32 4294901760, %v133_v10  ;;  %v141_v14 = vand.u32 4294901760, %v140_v11  ;;  %v39735_v23 = vpack.c.bf16 %v140_v11, %v133_v10  ;;  %v35929_v7 = vld [vmem:[#allocation4 + $0x38] ss:$0 sm:$0xff]  ;;  %s41353_s21 = smov 96   ;;  %s41354_s22 = smov 80  }
  0x2d   :  { %39731 = vmatprep.subr.bf16.mxu0 %v41344_v0  ;;  %v41437_v29 = vpack.c.bf16 %v531_v28, %v528_v27  ;;  %v615_v31 = vsub.f32 %v515_v26, %v531_v28  ;;  %v609_v36 = vand.u32 4294901760, %v608_v30  ;;  %v629_v40 = vsub.f32 %v517_v33, %v537_v35  ;;  %s41356_s23 = smov 91  }
  0x2e   :  { %v123_v15 = vand.u32 4294901760, %v122_v12  ;;  %v135_v16 = vsub.f32 %v133_v10, %v134_v13  ;;  %v142_v17 = vsub.f32 %v140_v11, %v141_v14  ;;  %v39741_v24 = vpack.c.bf16 %v141_v14, %v134_v13  ;;  %v1025_v14 = vld [vmem:[#allocation4 + $0x40] sm:$0x1f] }
  0x2f   :  { %39748 = vmatpush3.bf16.msra.mxu1 %v41437_v29  ;;  %v616_v37 = vand.u32 4294901760, %v615_v31  ;;  %v610_v41 = vsub.f32 %v608_v30, %v609_v36  ;;  %v623_v44 = vand.u32 4294901760, %v622_v39  ;;  %v630_v45 = vand.u32 4294901760, %v629_v40 }
  0x30   :  { %v124_v18 = vsub.f32 %v122_v12, %v123_v15  ;;  %v136_v19 = vand.u32 4294901760, %v135_v16  ;;  %v143_v20 = vand.u32 4294901760, %v142_v17  ;;  %39749 = vmatprep.subr.bf16.mxu1 %v41344_v0  ;;  %v39759_v53 = vpack.c.bf16 %v615_v31, %v608_v30  ;;  %v1486_v30 = vld [vmem:[#allocation4 + $0x50] sm:$0xff] }
  0x31   :  { %v617_v42 = vsub.f32 %v615_v31, %v616_v37  ;;  %v611_v43 = vand.u32 4294901760, %v610_v41  ;;  %v624_v47 = vsub.f32 %v622_v39, %v623_v44  ;;  %v631_v48 = vsub.f32 %v629_v40, %v630_v45  ;;  %v1487_v31 = vld [vmem:[#allocation4 + $0x58] sm:$0xff] }
  0x32   :  { %v125_v21 = vand.u32 4294901760, %v124_v18  ;;  %v39732_v22 = vpack.c.bf16 %v143_v20, %v136_v19  ;;  %v39762_v54 = vpack.c.bf16 %v629_v40, %v622_v39  ;;  %v39771_v55 = vpack.c.bf16 %v616_v37, %v609_v36  ;;  %v1488_v37 = vld [vmem:[#allocation4 + $0x60] sm:$0xff] }
  0x33   :  { %39751 = vmatpush3.bf16.msra.mxu1 %v39750_v38  ;;  %v618_v46 = vand.u32 4294901760, %v617_v42  ;;  %v625_v50 = vand.u32 4294901760, %v624_v47  ;;  %v632_v51 = vand.u32 4294901760, %v631_v48  ;;  %v39774_v56 = vpack.c.bf16 %v630_v45, %v623_v44 }
  0x34   :  { %37087 = vmatmul.mubr.f32.vlgmr.msra.gmra.mrb[0].mxu0 %v125_v21  ;;  %39752 = vmatprep.subr.bf16.mxu1 %v41344_v0  ;;  %vm1031_vm4 = vcmask 39936   ;;  %v1499_v32 = vand.u32 4294901760, %v1486_v30  ;;  %v1502_v33 = vand.u32 4294901760, %v1487_v31  ;;  %v1505_v39 = vand.u32 4294901760, %v1488_v37 }
  0x35   :  { %39733 = vmatpush3.bf16.msra.mxu0 %v39732_v22  ;;  %37093 = vmatprep.mubr.msk.f32.mxu0 %vm41345_vm0, %v41346_v1  ;;  %v39753_v49 = vpack.c.bf16 %v618_v46, %v611_v43  ;;  %v39756_v52 = vpack.c.bf16 %v632_v51, %v625_v50  ;;  %vm2552_vm5 = vcmask 523520   ;;  %vm2590_vm6 = vcmask 523264  }
  0x36   :  { %39734 = vmatprep.subr.bf16.mxu0 %v41344_v0  ;;  %v41491_v34 = vpack.c.bf16 %v1502_v33, %v1499_v32  ;;  %v1579_v35 = vsub.f32 %v1486_v30, %v1499_v32  ;;  %v1586_v36 = vsub.f32 %v1487_v31, %v1502_v33  ;;  %v1593_v44 = vsub.f32 %v1488_v37, %v1505_v39 }
  0x37   :  { %vm7139_vm7 = vcmask 1043456   ;;  %vm7046_vm8 = vcmask 27648   ;;  %vm7135_vm9 = vcmask 31744   ;;  %vm18149_vm10 = vcmask 261248  }
  0x38   :  { %v1580_v41 = vand.u32 4294901760, %v1579_v35  ;;  %v1587_v42 = vand.u32 4294901760, %v1586_v36  ;;  %vm25538_vm11 = vcmask 392448   ;;  %vm32927_vm12 = vcmask 523648  }
  0x39   :  { %vm35894_vm13 = vcmask 1041409   ;;  %vm35896_vm14 = vcmask 1042434   ;;  %vm35898_vm15 = vcmask 1043459  }
  0x3a   :  { %v1581_v46 = vsub.f32 %v1579_v35, %v1580_v41  ;;  %v1588_v47 = vsub.f32 %v1586_v36, %v1587_v42 }
  0x3c   :  { %37094 = vmatmul.mubr.f32.vlgmr.msra.gmra.mrb[0].mxu0 %v121_v8  ;;  %v1582_v48 = vand.u32 4294901760, %v1581_v46  ;;  %v1589_v51 = vand.u32 4294901760, %v1588_v47 }
  0x3d   :  { %39736 = vmatpush3.bf16.msra.mxu0 %v39735_v23  ;;  %37100 = vmatprep.mubr.msk.f32.mxu0 %vm41345_vm0, %v41346_v1 }
  0x3e   :  { %39737 = vmatprep.subr.bf16.mxu0 %v41344_v0 }
  0x44   :  { %37101 = vmatmul.mubr.f32.vlgmr.msra.gmra.mrb[0].mxu0 %v122_v12 }
  0x45   :  { %39739 = vmatpush3.bf16.msra.mxu0 %v39729_v9  ;;  %37107 = vmatprep.mubr.msk.f32.mxu0 %vm41345_vm0, %v41346_v1 }
  0x46   :  { %39740 = vmatprep.subr.bf16.mxu0 %v41344_v0 }
  0x4c   :  { %37108 = vmatmul.mubr.f32.vlgmr.msra.gmra.mrb[0].mxu0 %v123_v15  ;;  %v1037_v15 = vsel %vm1035_vm3, %v1025_v14, 0  ;;  %v1984_v14 = vld [vmem:[#allocation4 + $0x80] sm:$0xff]  ;;  %vm35906_vm3 = vcmask 1047559  }
  0x4d   :  { %39742 = vmatpush3.bf16.msra.mxu0 %v39741_v24  ;;  %37114 = vmatprep.mubr.msk.f32.mxu0 %vm41345_vm0, %v41346_v1  ;;  %v1040_v16 = vand.u32 4294901760, %v1037_v15 }
  0x4e   :  { %39743 = vmatprep.subr.bf16.mxu0 %v41344_v0 }
  0x4f   :  { %v1117_v19 = vsub.f32 %v1037_v15, %v1040_v16 }
  0x51   :  { %v1118_v23 = vand.u32 4294901760, %v1117_v19 }
  0x53   :  { %v1119_v26 = vsub.f32 %v1117_v19, %v1118_v23 }
  0x54   :  { %37115 = vmatmul.mubr.f32.vlgmr.msra.gmra.mrb[0].mxu0 %v121_v8 }
  0x55   :  { %39745 = vmatpush3.bf16.msra.mxu0 %v39729_v9  ;;  %37121 = vmatprep.mubr.msk.f32.mxu0 %vm41345_vm0, %v41346_v1 }
  0x56   :  { %37190 = vmatprep.subr.mxu0 %v41346_v1 }
  0x5c   :  { %37122 = vmatmul.mubr.f32.vlgmr.msra.gmra.mrb[0].mxu0 %v121_v8 }
  0x5d   :  { %37192 = vmatprep.mubr.msk.f32.mxu0 %vm41345_vm0, %v41346_v1  ;;  %37191 = vmatpush3.msra.mxu0 %v1040_v16 }
  0x5e   :  { %37195 = vmatprep.subr.mxu0 %v41346_v1 }
 0x12f   :  { %v509_v58 = vpop.f32.mrb[0].mxu0 }
 0x130   :  { %v40268_v59 = vadd.f32 %v35928_v57, %v509_v58  ;;  %v37123_v60 = vpop.f32.mrb[1].mxu0  ;;  %v39795_v58 = vpack.c.bf16 %v1586_v36, %v1579_v35 }
 0x131   :  { %v39807_v60 = vpack.c.bf16 %v1587_v42, %v1580_v41 }
 0x132   :  { %v513_v61 = vmax.f32 %v40268_v59, 0.0 }
 0x134   :  { %v525_v62 = vsel %vm523_vm2, %v513_v61, 0 }
 0x135   :  { %v596_v63 = vand.u32 4294901760, %v525_v62 }
 0x137   :  { %v597_v2 = vsub.f32 %v525_v62, %v596_v63  ;;  %v35930_v62 = vld [vmem:[#allocation4 + $0x48] ss:$0 sm:$0xff] }
 0x139   :  { %v598_v3 = vand.u32 4294901760, %v597_v2 }
 0x13b   :  { %v599_v5 = vsub.f32 %v597_v2, %v598_v3 }
 0x13d   :  { %v600_v6 = vand.u32 4294901760, %v599_v5 }
 0x13f   :  { %37133 = vmatmul.mubr.f32.vlgmr.msra.gmra.mrb[0].mxu1 %v600_v6 }
 0x140   :  { %39754 = vmatpush3.bf16.msra.mxu1 %v39753_v49  ;;  %37143 = vmatprep.mubr.msk.f32.mxu1 %vm41345_vm0, %v41346_v1  ;;  %v1594_v49 = vand.u32 4294901760, %v1593_v44 }
 0x141   :  { %39755 = vmatprep.subr.bf16.mxu1 %v41344_v0 }
 0x144   :  { %39757 = vmatpush3.bf16.msra.mxu1 %v39756_v52  ;;  %v1595_v52 = vsub.f32 %v1593_v44, %v1594_v49 }
 0x145   :  { %39758 = vmatprep.subr.bf16.mxu1 %v41344_v0 }
 0x147   :  { %37144 = vmatmul.mubr.f32.vlgmr.msra.gmra.mrb[0].mxu1 %v596_v63 }
 0x148   :  { %39760 = vmatpush3.bf16.msra.mxu1 %v39759_v53  ;;  %37154 = vmatprep.mubr.msk.f32.mxu1 %vm41345_vm0, %v41346_v1 }
 0x149   :  { %39761 = vmatprep.subr.bf16.mxu1 %v41344_v0 }
 0x14c   :  { %39763 = vmatpush3.bf16.msra.mxu1 %v39762_v54  ;;  %v39789_v54 = vpack.c.bf16 %v1589_v51, %v1582_v48 }
 0x14d   :  { %39764 = vmatprep.subr.bf16.mxu1 %v41344_v0 }
 0x14f   :  { %37155 = vmatmul.mubr.f32.vlgmr.msra.gmra.mrb[0].mxu1 %v597_v2 }
 0x150   :  { %39766 = vmatpush3.bf16.msra.mxu1 %v41437_v29  ;;  %37165 = vmatprep.mubr.msk.f32.mxu1 %vm41345_vm0, %v41346_v1 }
 0x151   :  { %39767 = vmatprep.subr.bf16.mxu1 %v41344_v0 }
 0x154   :  { %39769 = vmatpush3.bf16.msra.mxu1 %v39750_v38 }
 0x155   :  { %39770 = vmatprep.subr.bf16.mxu1 %v41344_v0 }
 0x157   :  { %37166 = vmatmul.mubr.f32.vlgmr.msra.gmra.mrb[0].mxu1 %v598_v3 }
 0x158   :  { %39772 = vmatpush3.bf16.msra.mxu1 %v39771_v55  ;;  %37176 = vmatprep.mubr.msk.f32.mxu1 %vm41345_vm0, %v41346_v1  ;;  %v1596_v55 = vand.u32 4294901760, %v1595_v52 }
 0x159   :  { %39773 = vmatprep.subr.bf16.mxu1 %v41344_v0 }
 0x15c   :  { %39775 = vmatpush3.bf16.msra.mxu1 %v39774_v56 }
 0x15d   :  { %39776 = vmatprep.subr.bf16.mxu1 %v41344_v0 }
 0x15f   :  { %37177 = vmatmul.mubr.f32.vlgmr.msra.gmra.mrb[0].mxu1 %v596_v63 }
 0x160   :  { %39778 = vmatpush3.bf16.msra.mxu1 %v41437_v29  ;;  %37187 = vmatprep.mubr.msk.f32.mxu1 %vm41345_vm0, %v41346_v1  ;;  %v1120_v29 = vand.u32 4294901760, %v1119_v26 }
 0x161   :  { %39779 = vmatprep.subr.bf16.mxu1 %v41344_v0 }
 0x164   :  { %39781 = vmatpush3.bf16.msra.mxu1 %v39750_v38  ;;  %v1489_v38 = vld [vmem:[#allocation4 + $0x68] sm:$0xff] }
 0x165   :  { %39818 = vmatprep.subr.bf16.mxu1 %v41344_v0  ;;  %v1508_v40 = vand.u32 4294901760, %v1489_v38 }
 0x167   :  { %37188 = vmatmul.mubr.f32.vlgmr.msra.gmra.mrb[0].mxu1 %v596_v63  ;;  %v39786_v43 = vpack.c.bf16 %v1508_v40, %v1505_v39  ;;  %v1600_v45 = vsub.f32 %v1489_v38, %v1508_v40  ;;  %v2562_v39 = vld [vmem:[#allocation6 + $0x8] sm:$0xff]  ;;  %v2564_v40 = vld [vmem:[#allocation6 + $0x18] sm:$0xff] }
 0x168   :  { %37290 = vmatprep.mubr.msk.f32.mxu1 %vm41345_vm0, %v41346_v1  ;;  %v2603_v41 = vand.u32 4294901760, %v2562_v39  ;;  %v2607_v42 = vand.u32 4294901760, %v2564_v40 }
 0x169   :  { %v1601_v50 = vand.u32 4294901760, %v1600_v45  ;;  %v39798_v59 = vpack.c.bf16 %v1600_v45, %v1593_v44  ;;  %v2563_v44 = vld [vmem:[#allocation6 + $0x10] sm:$0xff] }
 0x16a   :  { %v2609_v46 = vand.u32 4294901760, %v2563_v44  ;;  %v41543_v47 = vpack.c.bf16 %v2607_v42, %v2603_v41 }
 0x16b   :  { %v1602_v53 = vsub.f32 %v1600_v45, %v1601_v50  ;;  %v39810_v61 = vpack.c.bf16 %v1601_v50, %v1594_v49  ;;  %v2568_v49 = vld [vmem:[#allocation6 + $0x38] sm:$0xff]  ;;  %v41548_v50 = vsub.f32 %v2562_v39, %v2603_v41 }
 0x16c   :  { %v41552_v52 = vsub.f32 %v2563_v44, %v2609_v46 }
 0x16d   :  { %v1603_v56 = vand.u32 4294901760, %v1602_v53  ;;  %v2565_v53 = vld [vmem:[#allocation6 + $0x20] sm:$0xff] }
 0x16f   :  { %v39792_v57 = vpack.c.bf16 %v1603_v56, %v1596_v55  ;;  %v2570_v55 = vld [vmem:[#allocation6 + $0x48] sm:$0xff] }
 0x23a   :  { %v1008_v8 = vpop.f32.mrb[0].mxu1 }
 0x23b   :  { %v41467_v9 = vadd.f32 %v35929_v7, %v1008_v8  ;;  %v37189_v10 = vpop.f32.mrb[1].mxu1 }
 0x23d   :  { %v1012_v11 = vmul.f32 0.5, %v41467_v9 }
 0x23f   :  { %v1013_v12 = vmul.f32 1.442695, %v1012_v11 }
 0x241   :  { %41129 = vpow2.f32 %v1013_v12 }
 0x24b   :  { %v41130_v13 = vpop.eup %41129 }
 0x24c   :  { %1016 = vrot.lane.b32.xlu0 %v41130_v13, %s41347_s0  ;;  %v1983_v13 = vld [vmem:[#allocation4 + $0x78] sm:$0xff] }
 0x24d   :  { %v1994_v15 = vand.u32 4294901760, %v1983_v13 }
 0x2be   :  { %v1017_v17 = vpop.permute.xlu0 %1016 }
 0x2bf   :  { %v1019_v18 = vmul.f32 %v1017_v17, %v41415_v4 }
 0x2c1   :  { %1021 = vrot.lane.b32.xlu0 %v1019_v18, %s41348_s15  ;;  %v2072_v18 = vsub.f32 %v1983_v13, %v1994_v15  ;;  %v2573_v13 = vld [vmem:[#allocation6 + $0x60] sm:$0xff] }
 0x333   :  { %v1022_v20 = vpop.permute.xlu0 %1021 }
 0x334   :  { %v1024_v21 = vadd.f32 %v41467_v9, %v1022_v20  ;;  %v2073_v20 = vand.u32 4294901760, %v2072_v18 }
 0x336   :  { %v1033_v22 = vsel %vm1031_vm4, %v1024_v21, 0  ;;  %vm35909_vm4 = vcmask 294144  }
 0x337   :  { %v1105_v24 = vand.u32 4294901760, %v1033_v22 }
 0x339   :  { %v1106_v25 = vsub.f32 %v1033_v22, %v1105_v24  ;;  %v2074_v22 = vsub.f32 %v2072_v18, %v2073_v20 }
 0x33b   :  { %v1107_v27 = vand.u32 4294901760, %v1106_v25 }
 0x33d   :  { %v1108_v28 = vsub.f32 %v1106_v25, %v1107_v27 }
 0x33f   :  { %v1109_v4 = vand.u32 4294901760, %v1108_v28 }
 0x341   :  { %37193 = vmatmul.mubr.f32.vlgmr.msra.gmra.mrb[2].mxu0 %v1109_v4  ;;  %v35931_v4 = vld [vmem:[#allocation4 + $0x70] ss:$0 sm:$0xff] }
 0x342   :  { %37196 = vmatpush3.msra.mxu0 %v1120_v29  ;;  %37197 = vmatprep.mubr.msk.f32.mxu0 %vm41345_vm0, %v41346_v1  ;;  %v41128_v29 = vld [vmem:[#allocation4 + $0x90] ss:$0 sps:$4 sm:$0xff]  }
 0x343   :  { %37200 = vmatprep.subr.mxu0 %v41346_v1  ;;  %2549 = vrot.lane.b32.xlu1 %v41128_v29, %s41349_s16 }
 0x349   :  { %37198 = vmatmul.mubr.f32.vlgmr.msra.gmra.mrb[2].mxu0 %v1105_v24 }
 0x34a   :  { %37201 = vmatpush3.msra.mxu0 %v1117_v19  ;;  %37202 = vmatprep.mubr.msk.f32.mxu0 %vm41345_vm0, %v41346_v1 }
 0x34b   :  { %37205 = vmatprep.subr.mxu0 %v41346_v1 }
 0x351   :  { %37203 = vmatmul.mubr.f32.vlgmr.msra.gmra.mrb[2].mxu0 %v1106_v25 }
 0x352   :  { %37206 = vmatpush3.msra.mxu0 %v1040_v16  ;;  %37207 = vmatprep.mubr.msk.f32.mxu0 %vm41345_vm0, %v41346_v1 }
 0x353   :  { %37210 = vmatprep.subr.mxu0 %v41346_v1 }
 0x359   :  { %37208 = vmatmul.mubr.f32.vlgmr.msra.gmra.mrb[2].mxu0 %v1107_v27 }
 0x35a   :  { %37211 = vmatpush3.msra.mxu0 %v1118_v23  ;;  %37212 = vmatprep.mubr.msk.f32.mxu0 %vm41345_vm0, %v41346_v1 }
 0x35b   :  { %37215 = vmatprep.subr.mxu0 %v41346_v1 }
 0x361   :  { %37213 = vmatmul.mubr.f32.vlgmr.msra.gmra.mrb[2].mxu0 %v1105_v24 }
 0x362   :  { %37216 = vmatpush3.msra.mxu0 %v1040_v16  ;;  %37217 = vmatprep.mubr.msk.f32.mxu0 %vm41345_vm0, %v41346_v1  ;;  %v1997_v16 = vand.u32 4294901760, %v1984_v14 }
 0x363   :  { %39782 = vmatprep.subr.bf16.mxu0 %v41344_v0 }
 0x364   :  { %v39819_v17 = vpack.c.bf16 %v1997_v16, %v1994_v15  ;;  %v2079_v19 = vsub.f32 %v1984_v14, %v1997_v16  ;;  %v2575_v14 = vld [vmem:[#allocation6 + $0x70] sm:$0xff] }
 0x366   :  { %39820 = vmatpush3.bf16.msra.mxu1 %v39819_v17  ;;  %v2080_v21 = vand.u32 4294901760, %v2079_v19  ;;  %v39825_v27 = vpack.c.bf16 %v2079_v19, %v2072_v18 }
 0x367   :  { %39821 = vmatprep.subr.bf16.mxu1 %v41344_v0 }
 0x368   :  { %v2081_v23 = vsub.f32 %v2079_v19, %v2080_v21  ;;  %v39831_v28 = vpack.c.bf16 %v2080_v21, %v2073_v20 }
 0x369   :  { %37218 = vmatmul.mubr.f32.vlgmr.msra.gmra.mrb[2].mxu0 %v1105_v24  ;;  %v2075_v24 = vand.u32 4294901760, %v2074_v22 }
 0x36a   :  { %37228 = vmatprep.mubr.msk.f32.mxu0 %vm41345_vm0, %v41346_v1  ;;  %39784 = vmatpush3.bf16.msra.mxu0 %v41491_v34  ;;  %v2082_v25 = vand.u32 4294901760, %v2081_v23 }
 0x36b   :  { %39785 = vmatprep.subr.bf16.mxu0 %v41344_v0 }
 0x36c   :  { %v39822_v26 = vpack.c.bf16 %v2082_v25, %v2075_v24  ;;  %v2629_v24 = vand.u32 4294901760, %v2573_v13  ;;  %v2633_v25 = vand.u32 4294901760, %v2575_v14 }
 0x36e   :  { %39787 = vmatpush3.bf16.msra.mxu0 %v39786_v43 }
 0x36f   :  { %39788 = vmatprep.subr.bf16.mxu0 %v41344_v0 }
 0x43c   :  { %v1481_v63 = vpop.f32.mrb[2].mxu0 }
 0x43d   :  { %v40270_v2 = vadd.f32 %v35930_v62, %v1481_v63  ;;  %v37219_v3 = vpop.f32.mrb[3].mxu0  ;;  %v41555_v62 = vsub.f32 %v2564_v40, %v2607_v42  ;;  %v2619_v63 = vand.u32 4294901760, %v2570_v55 }
 0x43e   :  { %v2571_v3 = vld [vmem:[#allocation6 + $0x50] sm:$0xff] }
 0x43f   :  { %v1485_v5 = vmax.f32 %v40270_v2, 0.0  ;;  %v41571_v18 = vsub.f32 %v2570_v55, %v2619_v63  ;;  %v2625_v20 = vand.u32 4294901760, %v2571_v3 }
 0x441   :  { %v1496_v6 = vsel %vm523_vm2, %v1485_v5, 0 }
 0x442   :  { %v1567_v7 = vand.u32 4294901760, %v1496_v6 }
 0x444   :  { %v1568_v8 = vsub.f32 %v1496_v6, %v1567_v7  ;;  %v2574_v6 = vld [vmem:[#allocation6 + $0x68] sm:$0xff] }
 0x445   :  { %v2627_v22 = vand.u32 4294901760, %v2574_v6 }
 0x446   :  { %v1569_v10 = vand.u32 4294901760, %v1568_v8 }
 0x448   :  { %v1570_v11 = vsub.f32 %v1568_v8, %v1569_v10 }
 0x44a   :  { %v1571_v12 = vand.u32 4294901760, %v1570_v11 }
 0x44c   :  { %37229 = vmatmul.mubr.f32.vlgmr.msra.gmra.mrb[4].mxu0 %v1571_v12  ;;  %v2576_v12 = vld [vmem:[#allocation6 + $0x78] sm:$0xff] }
 0x44d   :  { %39790 = vmatpush3.bf16.msra.mxu0 %v39789_v54  ;;  %37239 = vmatprep.mubr.msk.f32.mxu0 %vm41345_vm0, %v41346_v1  ;;  %v2567_v54 = vld [vmem:[#allocation6 + $0x30] sm:$0xff]  ;;  %v2631_v23 = vand.u32 4294901760, %v2576_v12 }
 0x44e   :  { %39791 = vmatprep.subr.bf16.mxu0 %v41344_v0 }
 0x44f   :  { %v41586_v29 = vpack.c.bf16 %v2631_v23, %v2627_v22 }
 0x451   :  { %39793 = vmatpush3.bf16.msra.mxu0 %v39792_v57  ;;  %v2615_v57 = vand.u32 4294901760, %v2568_v49 }
 0x452   :  { %39794 = vmatprep.subr.bf16.mxu0 %v41344_v0 }
 0x454   :  { %37240 = vmatmul.mubr.f32.vlgmr.msra.gmra.mrb[4].mxu0 %v1567_v7 }
 0x455   :  { %39796 = vmatpush3.bf16.msra.mxu0 %v39795_v58  ;;  %37250 = vmatprep.mubr.msk.f32.mxu0 %vm41345_vm0, %v41346_v1  ;;  %v2613_v58 = vand.u32 4294901760, %v2565_v53 }
 0x456   :  { %39797 = vmatprep.subr.bf16.mxu0 %v41344_v0 }
 0x457   :  { %v41565_v15 = vsub.f32 %v2565_v53, %v2613_v58 }
 0x459   :  { %39799 = vmatpush3.bf16.msra.mxu0 %v39798_v59  ;;  %v2617_v59 = vand.u32 4294901760, %v2567_v54 }
 0x45a   :  { %39800 = vmatprep.subr.bf16.mxu0 %v41344_v0 }
 0x45b   :  { %v41563_v11 = vpack.c.bf16 %v2617_v59, %v2613_v58  ;;  %v41567_v16 = vsub.f32 %v2567_v54, %v2617_v59 }
 0x45c   :  { %37251 = vmatmul.mubr.f32.vlgmr.msra.gmra.mrb[4].mxu0 %v1568_v8 }
 0x45d   :  { %39802 = vmatpush3.bf16.msra.mxu0 %v41491_v34  ;;  %37261 = vmatprep.mubr.msk.f32.mxu0 %vm41345_vm0, %v41346_v1  ;;  %v2772_v54 = vand.u32 4294901760, %v41567_v16 }
 0x45e   :  { %39803 = vmatprep.subr.bf16.mxu0 %v41344_v0 }
 0x461   :  { %39805 = vmatpush3.bf16.msra.mxu0 %v39786_v43 }
 0x462   :  { %39806 = vmatprep.subr.bf16.mxu0 %v41344_v0 }
 0x464   :  { %37262 = vmatmul.mubr.f32.vlgmr.msra.gmra.mrb[4].mxu0 %v1569_v10  ;;  %v41561_v10 = vsub.f32 %v2568_v49, %v2615_v57 }
 0x465   :  { %39808 = vmatpush3.bf16.msra.mxu0 %v39807_v60  ;;  %37272 = vmatprep.mubr.msk.f32.mxu0 %vm41345_vm0, %v41346_v1  ;;  %v2572_v60 = vld [vmem:[#allocation6 + $0x58] sm:$0xff] }
 0x466   :  { %39809 = vmatprep.subr.bf16.mxu0 %v41344_v0  ;;  %v2623_v2 = vand.u32 4294901760, %v2572_v60  ;;  %v2766_v42 = vand.u32 4294901760, %v41561_v10 }
 0x468   :  { %v41574_v19 = vsub.f32 %v2572_v60, %v2623_v2  ;;  %v2767_v53 = vsub.f32 %v41561_v10, %v2766_v42  ;;  %v2773_v60 = vsub.f32 %v41567_v16, %v2772_v54 }
 0x469   :  { %39811 = vmatpush3.bf16.msra.mxu0 %v39810_v61  ;;  %v2569_v61 = vld [vmem:[#allocation6 + $0x40] sm:$0xff] }
 0x46a   :  { %39812 = vmatprep.subr.bf16.mxu0 %v41344_v0  ;;  %v2621_v5 = vand.u32 4294901760, %v2569_v61  ;;  %v2768_v59 = vand.u32 4294901760, %v2767_v53 }
 0x46c   :  { %37273 = vmatmul.mubr.f32.vlgmr.msra.gmra.mrb[4].mxu0 %v1567_v7  ;;  %v41576_v21 = vsub.f32 %v2569_v61, %v2621_v5 }
 0x46d   :  { %39814 = vmatpush3.bf16.msra.mxu0 %v41491_v34  ;;  %37283 = vmatprep.mubr.msk.f32.mxu0 %vm41345_vm0, %v41346_v1 }
 0x46e   :  { %39815 = vmatprep.subr.bf16.mxu0 %v41344_v0 }
 0x471   :  { %39817 = vmatpush3.bf16.msra.mxu0 %v39786_v43  ;;  %v2561_v43 = vld [vmem:[#allocation6] sm:$0xff] }
 0x472   :  { %37328 = vmatprep.subr.mxu0 %v41346_v1  ;;  %v2605_v45 = vand.u32 4294901760, %v2561_v43 }
 0x474   :  { %37284 = vmatmul.mubr.f32.vlgmr.msra.gmra.mrb[4].mxu0 %v1567_v7  ;;  %v41545_v48 = vpack.c.bf16 %v2609_v46, %v2605_v45  ;;  %v41550_v51 = vsub.f32 %v2561_v43, %v2605_v45  ;;  %v2760_v46 = vand.u32 4294901760, %v41565_v15 }
 0x475   :  { %37330 = vmatprep.mubr.msk.f32.mxu0 %vm41345_vm0, %v41346_v1 }
 0x547   :  { %v1979_v30 = vpop.f32.mrb[4].mxu0 }
 0x548   :  { %v40271_v31 = vadd.f32 %v35931_v4, %v1979_v30  ;;  %v37285_v32 = vpop.f32.mrb[5].mxu0  ;;  %v41588_v4 = vsub.f32 %v2576_v12, %v2631_v23  ;;  %v41590_v30 = vsub.f32 %v2573_v13, %v2629_v24 }
 0x549   :  { %v2730_v32 = vand.u32 4294901760, %v41548_v50 }
 0x54a   :  { %v1991_v33 = vsel %vm50_vm1, %v40271_v31, 0  ;;  %35834 = vst.msk [vmem:[%s45070_s3] sm:$0xff] %vm50_vm1, %v40271_v31  ;;  %v41592_v31 = vsub.f32 %v2575_v14, %v2633_v25 }
 0x54b   :  { %v2060_v34 = vand.u32 4294901760, %v1991_v33 }
 0x54d   :  { %v2061_v35 = vsub.f32 %v1991_v33, %v2060_v34  ;;  %v2742_v33 = vand.u32 4294901760, %v41555_v62 }
 0x54f   :  { %v2062_v36 = vand.u32 4294901760, %v2061_v35 }
 0x551   :  { %v2063_v37 = vsub.f32 %v2061_v35, %v2062_v36 }
 0x553   :  { %v2064_v38 = vand.u32 4294901760, %v2063_v37  ;;  %v2731_v37 = vsub.f32 %v41548_v50, %v2730_v32 }
 0x555   :  { %37291 = vmatmul.mubr.f32.vlgmr.msra.gmra.mrb[2].mxu1 %v2064_v38  ;;  %v2743_v38 = vsub.f32 %v41555_v62, %v2742_v33  ;;  %v2732_v43 = vand.u32 4294901760, %v2731_v37 }
 0x556   :  { %39823 = vmatpush3.bf16.msra.mxu1 %v39822_v26  ;;  %37297 = vmatprep.mubr.msk.f32.mxu1 %vm41345_vm0, %v41346_v1  ;;  %v41580_v26 = vpack.c.bf16 %v2625_v20, %v2621_v5 }
 0x557   :  { %39824 = vmatprep.subr.bf16.mxu1 %v41344_v0  ;;  %v2744_v44 = vand.u32 4294901760, %v2743_v38 }
 0x559   :  { %v39852_v55 = vpack.c.bf16 %v2744_v44, %v2732_v43 }
 0x55d   :  { %37298 = vmatmul.mubr.f32.vlgmr.msra.gmra.mrb[2].mxu1 %v2060_v34 }
 0x55e   :  { %39826 = vmatpush3.bf16.msra.mxu1 %v39825_v27  ;;  %37304 = vmatprep.mubr.msk.f32.mxu1 %vm41345_vm0, %v41346_v1  ;;  %v41582_v27 = vsub.f32 %v2571_v3, %v2625_v20  ;;  %v2784_v3 = vand.u32 4294901760, %v41576_v21 }
 0x55f   :  { %39827 = vmatprep.subr.bf16.mxu1 %v41344_v0 }
 0x560   :  { %v2796_v12 = vand.u32 4294901760, %v41582_v27  ;;  %v2785_v20 = vsub.f32 %v41576_v21, %v2784_v3 }
 0x562   :  { %v2797_v23 = vsub.f32 %v41582_v27, %v2796_v12 }
 0x564   :  { %v2798_v43 = vand.u32 4294901760, %v2797_v23 }
 0x565   :  { %37305 = vmatmul.mubr.f32.vlgmr.msra.gmra.mrb[2].mxu1 %v2061_v35  ;;  %v41598_v35 = vpack.c.bf16 %v2633_v25, %v2629_v24  ;;  %v2814_v25 = vand.u32 4294901760, %v41588_v4 }
 0x566   :  { %39829 = vmatpush3.bf16.msra.mxu1 %v39819_v17  ;;  %37311 = vmatprep.mubr.msk.f32.mxu1 %vm41345_vm0, %v41346_v1 }
 0x567   :  { %39830 = vmatprep.subr.bf16.mxu1 %v41344_v0 }
 0x56d   :  { %37312 = vmatmul.mubr.f32.vlgmr.msra.gmra.mrb[2].mxu1 %v2062_v36  ;;  %v2748_v36 = vand.u32 4294901760, %v41552_v52 }
 0x56e   :  { %39832 = vmatpush3.bf16.msra.mxu1 %v39831_v28  ;;  %37318 = vmatprep.mubr.msk.f32.mxu1 %vm41345_vm0, %v41346_v1  ;;  %v41584_v28 = vsub.f32 %v2574_v6, %v2627_v22  ;;  %v2774_v6 = vand.u32 4294901760, %v2773_v60 }
 0x56f   :  { %39833 = vmatprep.subr.bf16.mxu1 %v41344_v0  ;;  %v2566_v0 = vld [vmem:[#allocation6 + $0x28] sm:$0xff]  ;;  %v2749_v40 = vsub.f32 %v41552_v52, %v2748_v36 }
 0x570   :  { %v2611_v56 = vand.u32 4294901760, %v2566_v0  ;;  %v2802_v24 = vand.u32 4294901760, %v41584_v28 }
 0x572   :  { %v41557_v7 = vpack.c.bf16 %v2615_v57, %v2611_v56  ;;  %v41559_v8 = vsub.f32 %v2566_v0, %v2611_v56  ;;  %v2750_v0 = vand.u32 4294901760, %v2749_v40  ;;  %v2761_v56 = vsub.f32 %v41565_v15, %v2760_v46 }
 0x573   :  { %v2808_v40 = vand.u32 4294901760, %v41590_v30  ;;  %v2803_v44 = vsub.f32 %v41584_v28, %v2802_v24 }
 0x574   :  { %v2754_v41 = vand.u32 4294901760, %v41559_v8  ;;  %v2762_v61 = vand.u32 4294901760, %v2761_v56 }
 0x575   :  { %37319 = vmatmul.mubr.f32.vlgmr.msra.gmra.mrb[2].mxu1 %v2060_v34  ;;  %v2809_v53 = vsub.f32 %v41590_v30, %v2808_v40  ;;  %v2804_v56 = vand.u32 4294901760, %v2803_v44 }
 0x576   :  { %39835 = vmatpush3.bf16.msra.mxu1 %v39819_v17  ;;  %37325 = vmatprep.mubr.msk.f32.mxu1 %vm41345_vm0, %v41346_v1  ;;  %v41569_v17 = vpack.c.bf16 %v2623_v2, %v2619_v63  ;;  %v2755_v49 = vsub.f32 %v41559_v8, %v2754_v41  ;;  %v2778_v63 = vand.u32 4294901760, %v41571_v18  ;;  %v2790_v2 = vand.u32 4294901760, %v41574_v19 }
 0x577   :  { %39837 = vmatprep.subr.bf16.mxu1 %v41543_v47  ;;  %v41634_v22 = vpack.c.bf16 %v2774_v6, %v2762_v61  ;;  %v2810_v60 = vand.u32 4294901760, %v2809_v53 }
 0x578   :  { %v2756_v58 = vand.u32 4294901760, %v2755_v49  ;;  %v2779_v13 = vsub.f32 %v41571_v18, %v2778_v63  ;;  %v2791_v14 = vsub.f32 %v41574_v19, %v2790_v2 }
 0x57a   :  { %v41628_v5 = vpack.c.bf16 %v2768_v59, %v2756_v58  ;;  %v2780_v37 = vand.u32 4294901760, %v2779_v13  ;;  %v2792_v38 = vand.u32 4294901760, %v2791_v14  ;;  %v39868_v14 = vpack.c.bf16 %v41555_v62, %v41548_v50 }
 0x57b   :  { %v45074_v50 = vpack.c.bf16 %v41574_v19, %v41571_v18  ;;  %v45077_v62 = vpack.c.bf16 %v41592_v31, %v41590_v30 }
 0x57c   :  { %v41643_v49 = vpack.c.bf16 %v2792_v38, %v2780_v37 }
 0x57d   :  { %37326 = vmatmul.mubr.f32.vlgmr.msra.gmra.mrb[2].mxu1 %v2060_v34  ;;  %v2736_v34 = vand.u32 4294901760, %v41550_v51 }
 0x57e   :  { %2683 = vmatprep.mubr.f32.mxu1 %v41346_v1  ;;  %39839 = vmatpush1.bf16.msra.mxu1 %v41545_v48 }
 0x57f   :  { %39841 = vmatprep.subr.bf16.mxu1 %v41557_v7  ;;  %v2737_v39 = vsub.f32 %v41550_v51, %v2736_v34  ;;  %v41679_v53 = vpack.c.bf16 %v2748_v36, %v2736_v34  ;;  %v35932_v34 = vld [vmem:[#allocation4 + $0x88] ss:$0 sm:$0xff] }
 0x581   :  { %v2738_v45 = vand.u32 4294901760, %v2737_v39  ;;  %v2786_v39 = vand.u32 4294901760, %v2785_v20  ;;  %v39870_v20 = vpack.c.bf16 %v41552_v52, %v41550_v51  ;;  %v45075_v51 = vpack.c.bf16 %v41582_v27, %v41576_v21 }
 0x582   :  { %39843 = vmatpush1.bf16.msra.mxu1 %v41563_v11  ;;  %v45076_v52 = vpack.c.bf16 %v41588_v4, %v41584_v28 }
 0x583   :  { %39845 = vmatprep.subr.bf16.mxu1 %v41569_v17  ;;  %v41622_v57 = vpack.c.bf16 %v2750_v0, %v2738_v45  ;;  %v2815_v45 = vsub.f32 %v41588_v4, %v2814_v25  ;;  %v2820_v0 = vand.u32 4294901760, %v41592_v31 }
 0x585   :  { %v2816_v58 = vand.u32 4294901760, %v2815_v45  ;;  %v2821_v59 = vsub.f32 %v41592_v31, %v2820_v0  ;;  %v41673_v45 = vpack.c.bf16 %v2742_v33, %v2730_v32  ;;  %v41691_v44 = vpack.c.bf16 %v2820_v0, %v2808_v40 }
 0x586   :  { %39847 = vmatpush1.bf16.msra.mxu1 %v41580_v26  ;;  %v41350_v32 = vmov 1966171168  }
 0x587   :  { %39849 = vmatprep.subr.bf16.mxu1 %v41586_v29  ;;  %v41649_v61 = vpack.c.bf16 %v2816_v58, %v2804_v56  ;;  %v2822_v6 = vand.u32 4294901760, %v2821_v59  ;;  %v41681_v56 = vpack.c.bf16 %v2766_v42, %v2754_v41  ;;  %v41683_v58 = vpack.c.bf16 %v2772_v54, %v2760_v46 }
 0x588   :  { %v41685_v59 = vpack.c.bf16 %v2790_v2, %v2778_v63  ;;  %v2456_v33 = vunpack.c.l.s4 %v41350_v32 }
 0x589   :  { %v41651_v13 = vpack.c.bf16 %v2822_v6, %v2810_v60  ;;  %v41687_v60 = vpack.c.bf16 %v2796_v12, %v2784_v3  ;;  %v41689_v6 = vpack.c.bf16 %v2814_v25, %v2802_v24 }
 0x58a   :  { %39851 = vmatpush1.bf16.msra.mxu1 %v41598_v35 }
 0x58b   :  { %39853 = vmatprep.subr.bf16.mxu1 %v39852_v55  ;;  %v41646_v55 = vpack.c.bf16 %v2798_v43, %v2786_v39  ;;  %v45071_v43 = vlaneseq  ;;  %v2457_v39 = vunpack.c.0.s8 %v2456_v33 }
 0x58d   :  { %v41694_v38 = vshrl.u32 %v45071_v43, 7 }
 0x58f   :  { %v2460_v36 = vsub.s32 %v2457_v39, %v41694_v38  ;;  %v41698_v24 = vsub.s32 0, %v41694_v38 }
 0x650   :  { %v2448_v41 = vpop.f32.mrb[2].mxu1 }
 0x651   :  { %v40272_v42 = vadd.f32 %v35932_v34, %v2448_v41  ;;  %v37327_v46 = vpop.f32.mrb[3].mxu1 }
 0x653   :  { %v2454_v54 = vcombine.high %v40272_v42, %v40272_v42  ;;  %v2461_v63 = vrot.slane %v40272_v42, %v2460_v36 }
 0x655   :  { %v2468_v2 = vrot.slane %v2454_v54, %v2460_v36  ;;  %v2469_v3 = vcombine.high %v2461_v63, %v2461_v63  ;;  %v2477_v12 = vrot.slane %v2461_v63, %v2460_v36 }
 0x657   :  { %v2470_v25 = vcombine.high %v2468_v2, %v2468_v2  ;;  %v2484_v40 = vrot.slane %v2468_v2, %v2460_v36  ;;  %v2491_v0 = vrot.slane %v2469_v3, %v2460_v36  ;;  %v2499_v32 = vcombine.high %v2477_v12, %v2477_v12  ;;  %v2550_v2 = vpop.permute.xlu1 %2549 }
 0x658   :  { %v2506_v34 = vrot.slane %v2477_v12, %v41698_v24 }
 0x659   :  { %v2498_v33 = vrot.slane %v2470_v25, %v2460_v36  ;;  %v2500_v43 = vcombine.high %v2484_v40, %v2484_v40  ;;  %v2501_v37 = vcombine.high %v2491_v0, %v2491_v0  ;;  %v2510_v39 = vrot.slane %v2491_v0, %v41698_v24 }
 0x65a   :  { %v2514_v41 = vrot.slane %v2499_v32, %v41698_v24  ;;  %v2522_v54 = vrot.slane %v2484_v40, %v41698_v24 }
 0x65b   :  { %v2502_v42 = vcombine.high %v2498_v33, %v2498_v33  ;;  %v2518_v46 = vrot.slane %v2501_v37, %v41698_v24  ;;  %v2526_v63 = vrot.slane %v2498_v33, %v41698_v24  ;;  %v2535_v23 = vcombine.low %v2506_v34, %v2510_v39 }
 0x65c   :  { %v2530_v36 = vrot.slane %v2500_v43, %v41698_v24 }
 0x65d   :  { %v2534_v3 = vrot.slane %v2502_v42, %v41698_v24  ;;  %v2536_v25 = vcombine.low %v2514_v41, %v2518_v46  ;;  %v2537_v0 = vcombine.low %v2522_v54, %v2526_v63  ;;  %2543 = vst.msk [vmem:[#allocation2] sm:$0xff] %vm523_vm2, %v2535_v23 }
 0x65e   :  { %2553 = vst.msk [vmem:[#allocation2] sm:$0xff] %vm2552_vm5, %v2550_v2 }
 0x65f   :  { %v2538_v12 = vcombine.low %v2530_v36, %v2534_v3  ;;  %2544 = vst.msk [vmem:[#allocation2 + $0x8] sm:$0xff] %vm523_vm2, %v2536_v25  ;;  %2545 = vst.msk [vmem:[#allocation2 + $0x10] sm:$0xff] %vm523_vm2, %v2537_v0 }
 0x660   :  { %2554 = vst.msk [vmem:[#allocation2 + $0x8] sm:$0xff] %vm2552_vm5, %v2550_v2  ;;  %2555 = vst.msk [vmem:[#allocation2 + $0x10] sm:$0xff] %vm2552_vm5, %v2550_v2 }
 0x661   :  { %2546 = vst.msk [vmem:[#allocation2 + $0x18] sm:$0xff] %vm523_vm2, %v2538_v12 }
 0x662   :  { %2556 = vst.msk [vmem:[#allocation2 + $0x18] sm:$0xff] %vm2552_vm5, %v2550_v2  ;;  %vm35915_vm5 = vcmask 564736  }
 0x665   :  { %v2557_v37 = vld [vmem:[#allocation2] sm:$0xff] }
 0x666   :  { %v2592_v43 = vsel %vm2590_vm6, %v2557_v37, 0 }
 0x667   :  { %v2558_v40 = vld [vmem:[#allocation2 + $0x8] sm:$0xff]  ;;  %v2559_v32 = vld [vmem:[#allocation2 + $0x10] sm:$0xff]  ;;  %v41713_v33 = vand.u32 4294901760, %v2592_v43 }
 0x668   :  { %v2595_v23 = vsel %vm2590_vm6, %v2558_v40, 0  ;;  %v2598_v39 = vsel %vm2590_vm6, %v2559_v32, 0 }
 0x669   :  { %v41717_v34 = vand.u32 4294901760, %v2595_v23  ;;  %v41719_v41 = vand.u32 4294901760, %v2598_v39  ;;  %v2560_v42 = vld [vmem:[#allocation2 + $0x18] sm:$0xff]  ;;  %v41722_v46 = vsub.f32 %v2592_v43, %v41713_v33 }
 0x66a   :  { %v2601_v54 = vsel %vm2590_vm6, %v2560_v42, 0 }
 0x66b   :  { %v41726_v63 = vsub.f32 %v2595_v23, %v41717_v34  ;;  %v2686_v2 = vand.u32 4294901760, %v41722_v46  ;;  %v41730_v36 = vsub.f32 %v2598_v39, %v41719_v41  ;;  %v41732_v3 = vand.u32 4294901760, %v2601_v54 }
 0x66d   :  { %v2697_v25 = vand.u32 4294901760, %v41726_v63  ;;  %v2687_v0 = vsub.f32 %v41722_v46, %v2686_v2  ;;  %v2708_v43 = vand.u32 4294901760, %v41730_v36  ;;  %v41741_v40 = vsub.f32 %v2601_v54, %v41732_v3 }
 0x66f   :  { %v2688_v12 = vand.u32 4294901760, %v2687_v0  ;;  %v2698_v37 = vsub.f32 %v41726_v63, %v2697_v25  ;;  %v2709_v23 = vsub.f32 %v41730_v36, %v2708_v43  ;;  %v2719_v39 = vand.u32 4294901760, %v41741_v40 }
 0x671   :  { %2689 = vmatmul.mubr.f32.vlgmr.msra.gmra.mrb[4].mxu1 %v2688_v12  ;;  %v2699_v32 = vand.u32 4294901760, %v2698_v37  ;;  %v2710_v42 = vand.u32 4294901760, %v2709_v23 }
 0x672   :  { %39855 = vmatpush1.bf16.msra.mxu1 %v41622_v57  ;;  %2694 = vmatprep.mubr.f32.mxu1 %v41346_v1  ;;  %v2720_v57 = vsub.f32 %v41741_v40, %v2719_v39 }
 0x673   :  { %39857 = vmatprep.subr.bf16.mxu1 %v41628_v5 }
 0x674   :  { %v2721_v5 = vand.u32 4294901760, %v2720_v57 }
 0x675   :  { %2700 = vmatmul.mubr.f32.gmra.mrb[6].mxu1 %v2699_v32 }
 0x676   :  { %39859 = vmatpush1.bf16.msra.mxu1 %v41634_v22  ;;  %2705 = vmatprep.mubr.f32.mxu1 %v41346_v1  ;;  %v45072_v22 = vpack.c.bf16 %v41561_v10, %v41559_v8  ;;  %v2586_v8 = vsub.s32 1, %v41694_v38 }
 0x677   :  { %39861 = vmatprep.subr.bf16.mxu1 %v41643_v49  ;;  %v45073_v49 = vpack.c.bf16 %v41567_v16, %v41565_v15 }
 0x679   :  { %2711 = vmatmul.mubr.f32.gmra.mrb[8].mxu1 %v2710_v42 }
 0x67a   :  { %39863 = vmatpush1.bf16.msra.mxu1 %v41646_v55  ;;  %2716 = vmatprep.mubr.f32.mxu1 %v41346_v1 }
 0x67b   :  { %39865 = vmatprep.subr.bf16.mxu1 %v41649_v61 }
 0x67d   :  { %2722 = vmatmul.mubr.f32.gmra.mrb[10].mxu1 %v2721_v5 }
 0x67e   :  { %39867 = vmatpush1.bf16.msra.mxu1 %v41651_v13  ;;  %2872 = vmatprep.mubr.f32.mxu1 %v41346_v1 }
 0x67f   :  { %39869 = vmatprep.subr.bf16.mxu1 %v39868_v14 }
 0x681   :  { %2874 = vmatmul.mubr.f32.vlgmr.msra.gmra.mrb[4].mxu1 %v41713_v33 }
 0x682   :  { %39871 = vmatpush1.bf16.msra.mxu1 %v39870_v20  ;;  %2879 = vmatprep.mubr.f32.mxu1 %v41346_v1 }
 0x683   :  { %39873 = vmatprep.subr.bf16.mxu1 %v45072_v22 }
 0x685   :  { %2881 = vmatmul.mubr.f32.gmra.mrb[6].mxu1 %v41717_v34 }
 0x686   :  { %39875 = vmatpush1.bf16.msra.mxu1 %v45073_v49  ;;  %2886 = vmatprep.mubr.f32.mxu1 %v41346_v1 }
 0x687   :  { %39877 = vmatprep.subr.bf16.mxu1 %v45074_v50 }
 0x689   :  { %2888 = vmatmul.mubr.f32.gmra.mrb[8].mxu1 %v41719_v41 }
 0x68a   :  { %39879 = vmatpush1.bf16.msra.mxu1 %v45075_v51  ;;  %2893 = vmatprep.mubr.f32.mxu1 %v41346_v1 }
 0x68b   :  { %39881 = vmatprep.subr.bf16.mxu1 %v45076_v52 }
 0x68d   :  { %2895 = vmatmul.mubr.f32.gmra.mrb[10].mxu1 %v41732_v3 }
 0x68e   :  { %39883 = vmatpush1.bf16.msra.mxu1 %v45077_v62  ;;  %2997 = vmatprep.mubr.f32.mxu1 %v41346_v1 }
 0x68f   :  { %39885 = vmatprep.subr.bf16.mxu1 %v41543_v47 }
 0x691   :  { %3000 = vmatmul.mubr.f32.vlgmr.msra.gmra.mrb[4].mxu1 %v41722_v46 }
 0x692   :  { %39887 = vmatpush1.bf16.msra.mxu1 %v41545_v48  ;;  %3005 = vmatprep.mubr.f32.mxu1 %v41346_v1 }
 0x693   :  { %39889 = vmatprep.subr.bf16.mxu1 %v41557_v7 }
 0x695   :  { %3008 = vmatmul.mubr.f32.gmra.mrb[6].mxu1 %v41726_v63 }
 0x696   :  { %39891 = vmatpush1.bf16.msra.mxu1 %v41563_v11  ;;  %3013 = vmatprep.mubr.f32.mxu1 %v41346_v1 }
 0x697   :  { %39893 = vmatprep.subr.bf16.mxu1 %v41569_v17 }
 0x699   :  { %3016 = vmatmul.mubr.f32.gmra.mrb[8].mxu1 %v41730_v36 }
 0x69a   :  { %39895 = vmatpush1.bf16.msra.mxu1 %v41580_v26  ;;  %3021 = vmatprep.mubr.f32.mxu1 %v41346_v1 }
 0x69b   :  { %39897 = vmatprep.subr.bf16.mxu1 %v41586_v29 }
 0x69d   :  { %3024 = vmatmul.mubr.f32.gmra.mrb[10].mxu1 %v41741_v40 }
 0x69e   :  { %39899 = vmatpush1.bf16.msra.mxu1 %v41598_v35  ;;  %3110 = vmatprep.mubr.f32.mxu1 %v41346_v1 }
 0x69f   :  { %39901 = vmatprep.subr.bf16.mxu1 %v41673_v45 }
 0x6a1   :  { %3114 = vmatmul.mubr.f32.vlgmr.msra.gmra.mrb[4].mxu1 %v2686_v2 }
 0x6a2   :  { %39903 = vmatpush1.bf16.msra.mxu1 %v41679_v53  ;;  %3119 = vmatprep.mubr.f32.mxu1 %v41346_v1 }
 0x6a3   :  { %39905 = vmatprep.subr.bf16.mxu1 %v41681_v56 }
 0x6a5   :  { %3123 = vmatmul.mubr.f32.gmra.mrb[6].mxu1 %v2697_v25 }
 0x6a6   :  { %39907 = vmatpush1.bf16.msra.mxu1 %v41683_v58  ;;  %3128 = vmatprep.mubr.f32.mxu1 %v41346_v1 }
 0x6a7   :  { %39909 = vmatprep.subr.bf16.mxu1 %v41685_v59 }
 0x6a9   :  { %3132 = vmatmul.mubr.f32.gmra.mrb[8].mxu1 %v2708_v43 }
 0x6aa   :  { %39911 = vmatpush1.bf16.msra.mxu1 %v41687_v60  ;;  %3137 = vmatprep.mubr.f32.mxu1 %v41346_v1 }
 0x6ab   :  { %39913 = vmatprep.subr.bf16.mxu1 %v41689_v6 }
 0x6ad   :  { %3141 = vmatmul.mubr.f32.gmra.mrb[10].mxu1 %v2719_v39 }
 0x6ae   :  { %39915 = vmatpush1.bf16.msra.mxu1 %v41691_v44  ;;  %3259 = vmatprep.mubr.f32.mxu1 %v41346_v1 }
 0x6af   :  { %39917 = vmatprep.subr.bf16.mxu1 %v41543_v47  ;;  %v2578_v47 = vld [vmem:[#allocation6 + $0x80] ss:$8 sm:$0x3] }
 0x6b0   :  { %v41861_v16 = vrot.slane %v2578_v47, %v2586_v8 }
 0x6b1   :  { %3261 = vmatmul.mubr.f32.vlgmr.msra.gmra.mrb[4].mxu1 %v41713_v33 }
 0x6b2   :  { %39919 = vmatpush1.bf16.msra.mxu1 %v41545_v48  ;;  %3266 = vmatprep.mubr.f32.mxu1 %v41346_v1  ;;  %v2583_v48 = vrot.slane %v2578_v47, %v41698_v24 }
 0x6b3   :  { %39921 = vmatprep.subr.bf16.mxu1 %v41557_v7 }
 0x6b5   :  { %3268 = vmatmul.mubr.f32.gmra.mrb[6].mxu1 %v41717_v34 }
 0x6b6   :  { %39923 = vmatpush1.bf16.msra.mxu1 %v41563_v11  ;;  %3273 = vmatprep.mubr.f32.mxu1 %v41346_v1 }
 0x6b7   :  { %39925 = vmatprep.subr.bf16.mxu1 %v41569_v17 }
 0x6b9   :  { %3275 = vmatmul.mubr.f32.gmra.mrb[8].mxu1 %v41719_v41 }
 0x6ba   :  { %39927 = vmatpush1.bf16.msra.mxu1 %v41580_v26  ;;  %3280 = vmatprep.mubr.f32.mxu1 %v41346_v1 }
 0x6bb   :  { %39929 = vmatprep.subr.bf16.mxu1 %v41586_v29 }
 0x6bd   :  { %3282 = vmatmul.mubr.f32.gmra.mrb[10].mxu1 %v41732_v3 }
 0x6be   :  { %39931 = vmatpush1.bf16.msra.mxu1 %v41598_v35  ;;  %3368 = vmatprep.mubr.f32.mxu1 %v41346_v1 }
 0x6bf   :  { %37448 = vmatprep.subr.mxu1 %v41346_v1 }
 0x6c1   :  { %3370 = vmatmul.mubr.f32.vlgmr.msra.gmra.mrb[4].mxu1 %v41713_v33 }
 0x6c2   :  { %3375 = vmatprep.mubr.f32.mxu1 %v41346_v1 }
 0x6c5   :  { %3377 = vmatmul.mubr.f32.gmra.mrb[6].mxu1 %v41717_v34 }
 0x6c6   :  { %3382 = vmatprep.mubr.f32.mxu1 %v41346_v1 }
 0x6c9   :  { %3384 = vmatmul.mubr.f32.gmra.mrb[8].mxu1 %v41719_v41 }
 0x6ca   :  { %3389 = vmatprep.mubr.f32.mxu1 %v41346_v1 }
 0x6cd   :  { %3391 = vmatmul.mubr.f32.gmra.mrb[10].mxu1 %v41732_v3 }
 0x6ce   :  { %37450 = vmatprep.mubr.msk.f32.mxu1 %vm41345_vm0, %v41346_v1 }
 0x794   :  { %v3371_v7 = vpop.f32.mrb[4].mxu1 }
 0x795   :  { %v41851_v10 = vadd.f32 %v3371_v7, %v2583_v48  ;;  %v41853_v11 = vpop.f32.mrb[5].mxu1 }
 0x797   :  { %3414 = vrot.lane.b32.xlu1 %v41851_v10, %s41351_s19  ;;  %v41859_v15 = vcombine.high %v41851_v10, %v41851_v10  ;;  %v3416_v14 = vsel %vm50_vm1, %v41851_v10, 0 }
 0x798   :  { %v3378_v17 = vpop.f32.mrb[6].mxu1  ;;  %v41906_v20 = vand.u32 4294901760, %v3416_v14 }
 0x799   :  { %v41863_v18 = vadd.f32 %v3378_v17, %v2583_v48  ;;  %v3380_v19 = vpop.f32.mrb[7].mxu1  ;;  %3866 = vrot.lane.b32.xlu0 %v41859_v15, %s41351_s19  ;;  %v3868_v39 = vsel %vm50_vm1, %v41859_v15, 0 }
 0x79a   :  { %v41868_v21 = vadd.f32 %v3380_v19, %v41861_v16  ;;  %v3487_v44 = vsub.f32 %v3416_v14, %v41906_v20  ;;  %v41945_v57 = vand.u32 4294901760, %v3868_v39 }
 0x79b   :  { %4318 = vrot.lane.b32.xlu1 %v41863_v18, %s41351_s19  ;;  %v41874_v26 = vcombine.high %v41863_v18, %v41863_v18 }
 0x79c   :  { %v3385_v27 = vpop.f32.mrb[8].mxu1  ;;  %v3488_v53 = vand.u32 4294901760, %v3487_v44  ;;  %v41951_v49 = vsub.f32 %v3868_v39, %v41945_v57 }
 0x79d   :  { %v41876_v28 = vadd.f32 %v3385_v27, %v2583_v48  ;;  %v3387_v29 = vpop.f32.mrb[9].mxu1  ;;  %4770 = vrot.lane.b32.xlu0 %v41874_v26, %s41351_s19 }
 0x79e   :  { %v41881_v4 = vadd.f32 %v3387_v29, %v41861_v16  ;;  %v3489_v60 = vsub.f32 %v3487_v44, %v3488_v53 }
 0x79f   :  { %5222 = vrot.lane.b32.xlu1 %v41876_v28, %s41351_s19  ;;  %v41887_v30 = vcombine.high %v41876_v28, %v41876_v28  ;;  %v5224_v45 = vsel %vm50_vm1, %v41876_v28, 0 }
 0x7a0   :  { %v3392_v31 = vpop.f32.mrb[10].mxu1  ;;  %v41911_v56 = vand.u32 4294901760, %v5224_v45  ;;  %v3490_v41 = vand.u32 4294901760, %v3489_v60 }
 0x7a1   :  { %v41889_v35 = vadd.f32 %v3392_v31, %v2583_v48  ;;  %v3394_v55 = vpop.f32.mrb[11].mxu1  ;;  %5674 = vrot.lane.b32.xlu0 %v41887_v30, %s41351_s19  ;;  %v3940_v48 = vand.u32 4294901760, %v41951_v49 }
 0x7a2   :  { %v41894_v61 = vadd.f32 %v3394_v55, %v41861_v16  ;;  %v5295_v6 = vsub.f32 %v5224_v45, %v41911_v56 }
 0x7a3   :  { %6126 = vrot.lane.b32.xlu1 %v41889_v35, %s41351_s19  ;;  %v41900_v13 = vcombine.high %v41889_v35, %v41889_v35  ;;  %v6128_v50 = vsel %vm50_vm1, %v41889_v35, 0  ;;  %v3941_v19 = vsub.f32 %v41951_v49, %v3940_v48 }
 0x7a4   :  { %v5296_v46 = vand.u32 4294901760, %v5295_v6  ;;  %v41962_v62 = vand.u32 4294901760, %v6128_v50 }
 0x7a5   :  { %6578 = vrot.lane.b32.xlu0 %v41900_v13, %s41351_s19  ;;  %v3942_v55 = vand.u32 4294901760, %v3941_v19 }
 0x7a6   :  { %v5297_v3 = vsub.f32 %v5295_v6, %v5296_v46  ;;  %v6199_v8 = vsub.f32 %v6128_v50, %v41962_v62 }
 0x7a8   :  { %v5298_v37 = vand.u32 4294901760, %v5297_v3  ;;  %v6200_v29 = vand.u32 4294901760, %v6199_v8  ;;  %v4772_v3 = vsel %vm50_vm1, %v41874_v26, 0 }
 0x809   :  { %v3415_v58 = vpop.permute.xlu1 %3414 }
 0x80a   :  { %v3418_v59 = vsel %vm50_vm1, %v3415_v58, 0 }
 0x80b   :  { %v3421_v24 = vand.u32 4294901760, %v3418_v59  ;;  %v3867_v23 = vpop.permute.xlu0 %3866 }
 0x80c   :  { %v3870_v42 = vsel %vm50_vm1, %v3867_v23, 0 }
 0x80d   :  { %v3498_v33 = vsub.f32 %v3418_v59, %v3421_v24  ;;  %37329 = vmatpush3.xpose.msra.mxu0 %v3421_v24  ;;  %v41915_v34 = vpop.permute.xlu1 %4318  ;;  %v41947_v5 = vand.u32 4294901760, %v3870_v42 }
 0x80e   :  { %37333 = vmatprep.subr.mxu0 %v41346_v1  ;;  %v4322_v58 = vsel %vm50_vm1, %v41915_v34, 0 }
 0x80f   :  { %v3499_v54 = vand.u32 4294901760, %v3498_v33  ;;  %v41956_v51 = vsub.f32 %v3870_v42, %v41947_v5  ;;  %v4325_v60 = vand.u32 4294901760, %v4322_v58 }
 0x810   :  { %37331 = vmatmul.mubr.f32.vlgmr.msra.gmra.mrb[6].mxu0 %v3490_v41 }
 0x811   :  { %v3500_v63 = vsub.f32 %v3498_v33, %v3499_v54  ;;  %v5223_v2 = vpop.permute.xlu1 %5222  ;;  %37335 = vmatprep.mubr.msk.f32.mxu0 %vm41345_vm0, %v41346_v1  ;;  %v3951_v7 = vand.u32 4294901760, %v41956_v51 }
 0x812   :  { %v5226_v36 = vsel %vm50_vm1, %v5223_v2, 0 }
 0x813   :  { %v5229_v25 = vand.u32 4294901760, %v5226_v36  ;;  %v3501_v0 = vand.u32 4294901760, %v3500_v63  ;;  %v3952_v27 = vsub.f32 %v41956_v51, %v3951_v7 }
 0x815   :  { %v5306_v12 = vsub.f32 %v5226_v36, %v5229_v25  ;;  %37449 = vmatpush3.xpose.msra.mxu1 %v5229_v25  ;;  %37334 = vmatpush3.xpose.msra.mxu0 %v3501_v0  ;;  %v6127_v22 = vpop.permute.xlu1 %6126  ;;  %v3953_v14 = vand.u32 4294901760, %v3952_v27  ;;  %v4771_v36 = vpop.permute.xlu0 %4770  ;;  %v4842_v0 = vand.u32 4294901760, %v4772_v3 }
 0x816   :  { %37453 = vmatprep.subr.mxu1 %v41346_v1  ;;  %37338 = vmatprep.subr.mxu0 %v41346_v1  ;;  %v6130_v52 = vsel %vm50_vm1, %v6127_v22, 0  ;;  %v5676_v22 = vsel %vm50_vm1, %v41887_v30, 0 }
 0x817   :  { %v5307_v43 = vand.u32 4294901760, %v5306_v12  ;;  %v41964_v47 = vand.u32 4294901760, %v6130_v52  ;;  %v5746_v50 = vand.u32 4294901760, %v5676_v22 }
 0x818   :  { %37451 = vmatmul.mubr.f32.vlgmr.msra.gmra.mrb[12].mxu1 %v5298_v37  ;;  %37336 = vmatmul.mubr.f32.vlgmr.msra.gmra.mrb[6].mxu0 %v41906_v20  ;;  %v4843_v37 = vsub.f32 %v4772_v3, %v4842_v0 }
 0x819   :  { %v5308_v40 = vsub.f32 %v5306_v12, %v5307_v43  ;;  %37455 = vmatprep.mubr.msk.f32.mxu1 %vm41345_vm0, %v41346_v1  ;;  %37339 = vmatpush3.xpose.msra.mxu0 %v3498_v33  ;;  %v6210_v17 = vsub.f32 %v6130_v52, %v41964_v47  ;;  %v5747_v52 = vsub.f32 %v5676_v22, %v5746_v50 }
 0x81a   :  { %37340 = vmatprep.mubr.msk.f32.mxu0 %vm41345_vm0, %v41346_v1  ;;  %37343 = vmatprep.subr.mxu0 %v41346_v1 }
 0x81b   :  { %v5309_v32 = vand.u32 4294901760, %v5308_v40  ;;  %v6211_v31 = vand.u32 4294901760, %v6210_v17  ;;  %v4844_v40 = vand.u32 4294901760, %v4843_v37 }
 0x81d   :  { %37454 = vmatpush3.xpose.msra.mxu1 %v5309_v32  ;;  %v4845_v23 = vsub.f32 %v4843_v37, %v4844_v40 }
 0x81e   :  { %37458 = vmatprep.subr.mxu1 %v41346_v1 }
 0x81f   :  { %v4846_v42 = vand.u32 4294901760, %v4845_v23 }
 0x820   :  { %37456 = vmatmul.mubr.f32.vlgmr.msra.gmra.mrb[12].mxu1 %v41911_v56  ;;  %37341 = vmatmul.mubr.f32.vlgmr.msra.gmra.mrb[6].mxu0 %v3487_v44  ;;  %v6212_v44 = vsub.f32 %v6210_v17, %v6211_v31 }
 0x821   :  { %37459 = vmatpush3.xpose.msra.mxu1 %v5306_v12  ;;  %37344 = vmatpush3.xpose.msra.mxu0 %v3421_v24 }
 0x822   :  { %37345 = vmatprep.mubr.msk.f32.mxu0 %vm41345_vm0, %v41346_v1  ;;  %37348 = vmatprep.subr.mxu0 %v41346_v1 }
 0x823   :  { %37460 = vmatprep.mubr.msk.f32.mxu1 %vm41345_vm0, %v41346_v1  ;;  %37463 = vmatprep.subr.mxu1 %v41346_v1 }
 0x828   :  { %37461 = vmatmul.mubr.f32.vlgmr.msra.gmra.mrb[12].mxu1 %v5295_v6  ;;  %37346 = vmatmul.mubr.f32.vlgmr.msra.gmra.mrb[6].mxu0 %v3488_v53  ;;  %v6213_v53 = vand.u32 4294901760, %v6212_v44 }
 0x829   :  { %37464 = vmatpush3.xpose.msra.mxu1 %v5229_v25  ;;  %37349 = vmatpush3.xpose.msra.mxu0 %v3499_v54 }
 0x82a   :  { %37350 = vmatprep.mubr.msk.f32.mxu0 %vm41345_vm0, %v41346_v1  ;;  %37353 = vmatprep.subr.mxu0 %v41346_v1 }
 0x82b   :  { %37465 = vmatprep.mubr.msk.f32.mxu1 %vm41345_vm0, %v41346_v1  ;;  %37468 = vmatprep.subr.mxu1 %v41346_v1 }
 0x830   :  { %37466 = vmatmul.mubr.f32.vlgmr.msra.gmra.mrb[12].mxu1 %v5296_v46  ;;  %37351 = vmatmul.mubr.f32.vlgmr.msra.gmra.mrb[6].mxu0 %v41906_v20  ;;  %v42034_v46 = vadd.f32 %v41853_v11, %v41861_v16 }
 0x831   :  { %37469 = vmatpush3.xpose.msra.mxu1 %v5307_v43  ;;  %37354 = vmatpush3.xpose.msra.mxu0 %v3421_v24  ;;  %v4402_v24 = vsub.f32 %v4322_v58, %v4325_v60 }
 0x832   :  { %37355 = vmatprep.mubr.msk.f32.mxu0 %vm41345_vm0, %v41346_v1  ;;  %37358 = vmatprep.subr.mxu0 %v41346_v1  ;;  %v42047_v16 = vsel %vm7139_vm7, %v42034_v46, 0 }
 0x833   :  { %37470 = vmatprep.mubr.msk.f32.mxu1 %vm41345_vm0, %v41346_v1  ;;  %37473 = vmatprep.subr.mxu1 %v41346_v1  ;;  %v4403_v34 = vand.u32 4294901760, %v4402_v24  ;;  %v42052_v2 = vand.u32 4294901760, %v42047_v16 }
 0x835   :  { %v4404_v54 = vsub.f32 %v4402_v24, %v4403_v34 }
 0x837   :  { %v4405_v11 = vand.u32 4294901760, %v4404_v54 }
 0x838   :  { %37471 = vmatmul.mubr.f32.vlgmr.msra.gmra.mrb[12].mxu1 %v41911_v56  ;;  %37356 = vmatmul.mubr.f32.vlgmr.msra.gmra.mrb[6].mxu0 %v41906_v20  ;;  %v6201_v20 = vsub.f32 %v6199_v8, %v6200_v29 }
 0x839   :  { %37474 = vmatpush3.xpose.msra.mxu1 %v5229_v25  ;;  %37359 = vmatpush3.xpose.msra.mxu0 %v41947_v5  ;;  %v4774_v25 = vsel %vm50_vm1, %v4771_v36, 0 }
 0x83a   :  { %37360 = vmatprep.mubr.msk.f32.mxu0 %vm41345_vm0, %v41346_v1  ;;  %37363 = vmatprep.subr.mxu0 %v41346_v1  ;;  %v6202_v45 = vand.u32 4294901760, %v6201_v20  ;;  %v4777_v12 = vand.u32 4294901760, %v4774_v25 }
 0x83b   :  { %37475 = vmatprep.mubr.msk.f32.mxu1 %vm41345_vm0, %v41346_v1  ;;  %37508 = vmatprep.subr.mxu1 %v41346_v1 }
 0x83c   :  { %37361 = vmatmul.mubr.f32.vlgmr.msra.gmra.mrb[8].mxu0 %v3942_v55  ;;  %v4854_v43 = vsub.f32 %v4774_v25, %v4777_v12 }
 0x83d   :  { %37364 = vmatpush3.xpose.msra.mxu0 %v3953_v14  ;;  %37365 = vmatprep.mubr.msk.f32.mxu0 %vm41345_vm0, %v41346_v1 }
 0x83e   :  { %37368 = vmatprep.subr.mxu0 %v41346_v1  ;;  %v4855_v32 = vand.u32 4294901760, %v4854_v43 }
 0x840   :  { %37476 = vmatmul.mubr.f32.vlgmr.msra.gmra.mrb[12].mxu1 %v41911_v56  ;;  %v4320_v56 = vsel %vm50_vm1, %v41863_v18, 0  ;;  %v4856_v39 = vsub.f32 %v4854_v43, %v4855_v32 }
 0x841   :  { %37509 = vmatpush3.xpose.msra.mxu1 %v41964_v47  ;;  %37510 = vmatprep.mubr.msk.f32.mxu1 %vm41345_vm0, %v41346_v1  ;;  %v42020_v59 = vand.u32 4294901760, %v4320_v56 }
 0x842   :  { %37513 = vmatprep.subr.mxu1 %v41346_v1 }
 0x843   :  { %v4391_v6 = vsub.f32 %v4320_v56, %v42020_v59 }
 0x844   :  { %37511 = vmatmul.mubr.f32.vlgmr.msra.gmra.mrb[14].mxu1 %v6202_v45  ;;  %37366 = vmatmul.mubr.f32.vlgmr.msra.gmra.mrb[8].mxu0 %v41945_v57 }
 0x845   :  { %37514 = vmatpush3.xpose.msra.mxu1 %v6213_v53  ;;  %37369 = vmatpush3.xpose.msra.mxu0 %v41956_v51  ;;  %v4392_v33 = vand.u32 4294901760, %v4391_v6 }
 0x846   :  { %37370 = vmatprep.mubr.msk.f32.mxu0 %vm41345_vm0, %v41346_v1  ;;  %37373 = vmatprep.subr.mxu0 %v41346_v1 }
 0x847   :  { %37515 = vmatprep.mubr.msk.f32.mxu1 %vm41345_vm0, %v41346_v1  ;;  %37518 = vmatprep.subr.mxu1 %v41346_v1  ;;  %v4393_v41 = vsub.f32 %v4391_v6, %v4392_v33 }
 0x849   :  { %v4394_v63 = vand.u32 4294901760, %v4393_v41 }
 0x84c   :  { %37516 = vmatmul.mubr.f32.vlgmr.msra.gmra.mrb[14].mxu1 %v41962_v62  ;;  %37371 = vmatmul.mubr.f32.vlgmr.msra.gmra.mrb[8].mxu0 %v41951_v49 }
 0x84d   :  { %37519 = vmatpush3.xpose.msra.mxu1 %v6210_v17  ;;  %37374 = vmatpush3.xpose.msra.mxu0 %v41947_v5 }
 0x84e   :  { %37375 = vmatprep.mubr.msk.f32.mxu0 %vm41345_vm0, %v41346_v1  ;;  %37378 = vmatprep.subr.mxu0 %v41346_v1 }
 0x84f   :  { %37520 = vmatprep.mubr.msk.f32.mxu1 %vm41345_vm0, %v41346_v1  ;;  %37523 = vmatprep.subr.mxu1 %v41346_v1 }
 0x854   :  { %37521 = vmatmul.mubr.f32.vlgmr.msra.gmra.mrb[14].mxu1 %v6199_v8  ;;  %37376 = vmatmul.mubr.f32.vlgmr.msra.gmra.mrb[8].mxu0 %v3940_v48 }
 0x855   :  { %37524 = vmatpush3.xpose.msra.mxu1 %v41964_v47  ;;  %37379 = vmatpush3.xpose.msra.mxu0 %v3951_v7 }
 0x856   :  { %37380 = vmatprep.mubr.msk.f32.mxu0 %vm41345_vm0, %v41346_v1  ;;  %37383 = vmatprep.subr.mxu0 %v41346_v1 }
 0x857   :  { %37525 = vmatprep.mubr.msk.f32.mxu1 %vm41345_vm0, %v41346_v1  ;;  %37528 = vmatprep.subr.mxu1 %v41346_v1 }
 0x85c   :  { %37526 = vmatmul.mubr.f32.vlgmr.msra.gmra.mrb[14].mxu1 %v6200_v29  ;;  %37381 = vmatmul.mubr.f32.vlgmr.msra.gmra.mrb[8].mxu0 %v41945_v57  ;;  %v6580_v29 = vsel %vm50_vm1, %v41900_v13, 0 }
 0x85d   :  { %37529 = vmatpush3.xpose.msra.mxu1 %v6211_v31  ;;  %37384 = vmatpush3.xpose.msra.mxu0 %v41947_v5  ;;  %v5675_v5 = vpop.permute.xlu0 %5674  ;;  %v6650_v55 = vand.u32 4294901760, %v6580_v29 }
 0x85e   :  { %37385 = vmatprep.mubr.msk.f32.mxu0 %vm41345_vm0, %v41346_v1  ;;  %37388 = vmatprep.subr.mxu0 %v41346_v1  ;;  %v5678_v49 = vsel %vm50_vm1, %v5675_v5, 0 }
 0x85f   :  { %37530 = vmatprep.mubr.msk.f32.mxu1 %vm41345_vm0, %v41346_v1  ;;  %37533 = vmatprep.subr.mxu1 %v41346_v1  ;;  %v5681_v51 = vand.u32 4294901760, %v5678_v49  ;;  %v6651_v20 = vsub.f32 %v6580_v29, %v6650_v55 }
 0x861   :  { %v6579_v27 = vpop.permute.xlu0 %6578  ;;  %v6652_v45 = vand.u32 4294901760, %v6651_v20 }
 0x862   :  { %v6582_v31 = vsel %vm50_vm1, %v6579_v27, 0 }
 0x863   :  { %v6585_v14 = vand.u32 4294901760, %v6582_v31  ;;  %v6653_v56 = vsub.f32 %v6651_v20, %v6652_v45 }
 0x864   :  { %37531 = vmatmul.mubr.f32.vlgmr.msra.gmra.mrb[14].mxu1 %v41962_v62  ;;  %37386 = vmatmul.mubr.f32.vlgmr.msra.gmra.mrb[8].mxu0 %v41945_v57  ;;  %v4857_v57 = vand.u32 4294901760, %v4856_v39 }
 0x865   :  { %37534 = vmatpush3.xpose.msra.mxu1 %v41964_v47  ;;  %37389 = vmatpush3.xpose.msra.mxu0 %v4325_v60  ;;  %v5748_v47 = vand.u32 4294901760, %v5747_v52  ;;  %v6662_v44 = vsub.f32 %v6582_v31, %v6585_v14 }
 0x866   :  { %37390 = vmatprep.mubr.msk.f32.mxu0 %vm41345_vm0, %v41346_v1  ;;  %37393 = vmatprep.subr.mxu0 %v41346_v1 }
 0x867   :  { %37535 = vmatprep.mubr.msk.f32.mxu1 %vm41345_vm0, %v41346_v1  ;;  %37568 = vmatprep.subr.mxu1 %v41346_v1  ;;  %v5749_v7 = vsub.f32 %v5747_v52, %v5748_v47  ;;  %v6663_v53 = vand.u32 4294901760, %v6662_v44 }
 0x868   :  { %37391 = vmatmul.mubr.f32.vlgmr.msra.gmra.mrb[10].mxu0 %v4394_v63 }
 0x869   :  { %37394 = vmatpush3.xpose.msra.mxu0 %v4405_v11  ;;  %37395 = vmatprep.mubr.msk.f32.mxu0 %vm41345_vm0, %v41346_v1  ;;  %v5750_v17 = vand.u32 4294901760, %v5749_v7  ;;  %v6664_v58 = vsub.f32 %v6662_v44, %v6663_v53 }
 0x86a   :  { %37398 = vmatprep.subr.mxu0 %v41346_v1 }
 0x86c   :  { %37536 = vmatmul.mubr.f32.vlgmr.msra.gmra.mrb[14].mxu1 %v41962_v62  ;;  %v5758_v62 = vsub.f32 %v5678_v49, %v5681_v51 }
 0x86d   :  { %37569 = vmatpush3.msra.mxu1 %v42052_v2  ;;  %37570 = vmatprep.mubr.msk.f32.mxu1 %vm41345_vm0, %v41346_v1 }
 0x86e   :  { %37573 = vmatprep.subr.mxu1 %v41346_v1  ;;  %v5759_v48 = vand.u32 4294901760, %v5758_v62 }
 0x870   :  { %37396 = vmatmul.mubr.f32.vlgmr.msra.gmra.mrb[10].mxu0 %v42020_v59  ;;  %v5760_v8 = vsub.f32 %v5758_v62, %v5759_v48 }
 0x871   :  { %37399 = vmatpush3.xpose.msra.mxu0 %v4402_v24  ;;  %37400 = vmatprep.mubr.msk.f32.mxu0 %vm41345_vm0, %v41346_v1  ;;  %v42135_v24 = vld [vmem:[#allocation4 + $0x1b8] sm:$0xf] }
 0x872   :  { %37403 = vmatprep.subr.mxu0 %v41346_v1  ;;  %v5761_v19 = vand.u32 4294901760, %v5760_v8 }
 0x878   :  { %37401 = vmatmul.mubr.f32.vlgmr.msra.gmra.mrb[10].mxu0 %v4391_v6 }
 0x879   :  { %37404 = vmatpush3.xpose.msra.mxu0 %v4325_v60  ;;  %37405 = vmatprep.mubr.msk.f32.mxu0 %vm41345_vm0, %v41346_v1 }
 0x87a   :  { %37408 = vmatprep.subr.mxu0 %v41346_v1 }
 0x880   :  { %37406 = vmatmul.mubr.f32.vlgmr.msra.gmra.mrb[10].mxu0 %v4392_v33  ;;  %v42139_v33 = vcombine.high %v42034_v46, %v42034_v46 }
 0x881   :  { %37409 = vmatpush3.xpose.msra.mxu0 %v4403_v34  ;;  %37410 = vmatprep.mubr.msk.f32.mxu0 %vm41345_vm0, %v41346_v1 }
 0x882   :  { %37413 = vmatprep.subr.mxu0 %v41346_v1  ;;  %v42148_v11 = vsel %vm7139_vm7, %v42139_v33, 0 }
 0x883   :  { %v42151_v25 = vand.u32 4294901760, %v42148_v11 }
 0x888   :  { %37411 = vmatmul.mubr.f32.vlgmr.msra.gmra.mrb[10].mxu0 %v42020_v59 }
 0x889   :  { %37414 = vmatpush3.xpose.msra.mxu0 %v4325_v60  ;;  %37415 = vmatprep.mubr.msk.f32.mxu0 %vm41345_vm0, %v41346_v1  ;;  %v6665_v60 = vand.u32 4294901760, %v6664_v58 }
 0x88a   :  { %37418 = vmatprep.subr.mxu0 %v41346_v1 }
 0x890   :  { %37416 = vmatmul.mubr.f32.vlgmr.msra.gmra.mrb[10].mxu0 %v42020_v59  ;;  %v6654_v59 = vand.u32 4294901760, %v6653_v56 }
 0x891   :  { %37419 = vmatpush3.xpose.msra.mxu0 %v4777_v12  ;;  %37420 = vmatprep.mubr.msk.f32.mxu0 %vm41345_vm0, %v41346_v1 }
 0x892   :  { %37423 = vmatprep.subr.mxu0 %v41346_v1 }
 0x894   :  { %37421 = vmatmul.mubr.f32.vlgmr.msra.gmra.mrb[12].mxu0 %v4846_v42 }
 0x895   :  { %37424 = vmatpush3.xpose.msra.mxu0 %v4857_v57  ;;  %37425 = vmatprep.mubr.msk.f32.mxu0 %vm41345_vm0, %v41346_v1 }
 0x896   :  { %37428 = vmatprep.subr.mxu0 %v41346_v1 }
 0x89c   :  { %37426 = vmatmul.mubr.f32.vlgmr.msra.gmra.mrb[12].mxu0 %v4842_v0 }
 0x89d   :  { %37429 = vmatpush3.xpose.msra.mxu0 %v4854_v43  ;;  %37430 = vmatprep.mubr.msk.f32.mxu0 %vm41345_vm0, %v41346_v1 }
 0x89e   :  { %37433 = vmatprep.subr.mxu0 %v41346_v1 }
 0x8a4   :  { %37431 = vmatmul.mubr.f32.vlgmr.msra.gmra.mrb[12].mxu0 %v4843_v37 }
 0x8a5   :  { %37434 = vmatpush3.xpose.msra.mxu0 %v4777_v12  ;;  %37435 = vmatprep.mubr.msk.f32.mxu0 %vm41345_vm0, %v41346_v1 }
 0x8a6   :  { %37438 = vmatprep.subr.mxu0 %v41346_v1 }
 0x8ac   :  { %37436 = vmatmul.mubr.f32.vlgmr.msra.gmra.mrb[12].mxu0 %v4844_v40 }
 0x8ad   :  { %37439 = vmatpush3.xpose.msra.mxu0 %v4855_v32  ;;  %37440 = vmatprep.mubr.msk.f32.mxu0 %vm41345_vm0, %v41346_v1 }
 0x8ae   :  { %37443 = vmatprep.subr.mxu0 %v41346_v1 }
 0x8b4   :  { %37441 = vmatmul.mubr.f32.vlgmr.msra.gmra.mrb[12].mxu0 %v4842_v0 }
 0x8b5   :  { %37444 = vmatpush3.xpose.msra.mxu0 %v4777_v12  ;;  %37445 = vmatprep.mubr.msk.f32.mxu0 %vm41345_vm0, %v41346_v1 }
 0x8b6   :  { %37478 = vmatprep.subr.mxu0 %v41346_v1 }
 0x8bc   :  { %37446 = vmatmul.mubr.f32.vlgmr.msra.gmra.mrb[12].mxu0 %v4842_v0 }
 0x8bd   :  { %37479 = vmatpush3.xpose.msra.mxu0 %v5681_v51  ;;  %37480 = vmatprep.mubr.msk.f32.mxu0 %vm41345_vm0, %v41346_v1 }
 0x8be   :  { %37483 = vmatprep.subr.mxu0 %v41346_v1 }
 0x8c0   :  { %37481 = vmatmul.mubr.f32.vlgmr.msra.gmra.mrb[14].mxu0 %v5750_v17 }
 0x8c1   :  { %37484 = vmatpush3.xpose.msra.mxu0 %v5761_v19  ;;  %37485 = vmatprep.mubr.msk.f32.mxu0 %vm41345_vm0, %v41346_v1 }
 0x8c2   :  { %37488 = vmatprep.subr.mxu0 %v41346_v1 }
 0x8c8   :  { %37486 = vmatmul.mubr.f32.vlgmr.msra.gmra.mrb[14].mxu0 %v5746_v50 }
 0x8c9   :  { %37489 = vmatpush3.xpose.msra.mxu0 %v5758_v62  ;;  %37490 = vmatprep.mubr.msk.f32.mxu0 %vm41345_vm0, %v41346_v1 }
 0x8ca   :  { %37493 = vmatprep.subr.mxu0 %v41346_v1 }
 0x8d0   :  { %37491 = vmatmul.mubr.f32.vlgmr.msra.gmra.mrb[14].mxu0 %v5747_v52 }
 0x8d1   :  { %37494 = vmatpush3.xpose.msra.mxu0 %v5681_v51  ;;  %37495 = vmatprep.mubr.msk.f32.mxu0 %vm41345_vm0, %v41346_v1 }
 0x8d2   :  { %37498 = vmatprep.subr.mxu0 %v41346_v1 }
 0x8d8   :  { %37496 = vmatmul.mubr.f32.vlgmr.msra.gmra.mrb[14].mxu0 %v5748_v47 }
 0x8d9   :  { %37499 = vmatpush3.xpose.msra.mxu0 %v5759_v48  ;;  %37500 = vmatprep.mubr.msk.f32.mxu0 %vm41345_vm0, %v41346_v1 }
 0x8da   :  { %37503 = vmatprep.subr.mxu0 %v41346_v1 }
 0x8e0   :  { %37501 = vmatmul.mubr.f32.vlgmr.msra.gmra.mrb[14].mxu0 %v5746_v50 }
 0x8e1   :  { %37504 = vmatpush3.xpose.msra.mxu0 %v5681_v51  ;;  %37505 = vmatprep.mubr.msk.f32.mxu0 %vm41345_vm0, %v41346_v1 }
 0x8e2   :  { %37538 = vmatprep.subr.mxu0 %v41346_v1 }
 0x8e8   :  { %37506 = vmatmul.mubr.f32.vlgmr.msra.gmra.mrb[14].mxu0 %v5746_v50 }
 0x8e9   :  { %37539 = vmatpush3.xpose.msra.mxu0 %v6585_v14  ;;  %37540 = vmatprep.mubr.msk.f32.mxu0 %vm41345_vm0, %v41346_v1 }
 0x8ea   :  { %37543 = vmatprep.subr.mxu0 %v41346_v1 }
 0x8ec   :  { %37541 = vmatmul.mubr.f32.vlgmr.msra.gmra.mrb[16].mxu0 %v6654_v59 }
 0x8ed   :  { %37544 = vmatpush3.xpose.msra.mxu0 %v6665_v60  ;;  %37545 = vmatprep.mubr.msk.f32.mxu0 %vm41345_vm0, %v41346_v1 }
 0x8ee   :  { %37548 = vmatprep.subr.mxu0 %v41346_v1 }
 0x8f4   :  { %37546 = vmatmul.mubr.f32.vlgmr.msra.gmra.mrb[16].mxu0 %v6650_v55 }
 0x8f5   :  { %37549 = vmatpush3.xpose.msra.mxu0 %v6662_v44  ;;  %37550 = vmatprep.mubr.msk.f32.mxu0 %vm41345_vm0, %v41346_v1 }
 0x8f6   :  { %37553 = vmatprep.subr.mxu0 %v41346_v1 }
 0x8fc   :  { %37551 = vmatmul.mubr.f32.vlgmr.msra.gmra.mrb[16].mxu0 %v6651_v20 }
 0x8fd   :  { %37554 = vmatpush3.xpose.msra.mxu0 %v6585_v14  ;;  %37555 = vmatprep.mubr.msk.f32.mxu0 %vm41345_vm0, %v41346_v1 }
 0x8fe   :  { %37558 = vmatprep.subr.mxu0 %v41346_v1 }
 0x904   :  { %37556 = vmatmul.mubr.f32.vlgmr.msra.gmra.mrb[16].mxu0 %v6652_v45 }
 0x905   :  { %37559 = vmatpush3.xpose.msra.mxu0 %v6663_v53  ;;  %37560 = vmatprep.mubr.msk.f32.mxu0 %vm41345_vm0, %v41346_v1 }
 0x906   :  { %37563 = vmatprep.subr.mxu0 %v41346_v1 }
 0x90b   :  { %v3862_v6 = vpop.f32.mrb[6].mxu0 }
 0x90c   :  { %v7030_v34 = vmul.f32 0.31622776, %v3862_v6  ;;  %v37357_v41 = vpop.f32.mrb[7].mxu0  ;;  %37561 = vmatmul.mubr.f32.vlgmr.msra.gmra.mrb[16].mxu0 %v6650_v55 }
 0x90d   :  { %37564 = vmatpush3.xpose.msra.mxu0 %v6585_v14  ;;  %37565 = vmatprep.mubr.msk.f32.mxu0 %vm41345_vm0, %v41346_v1 }
 0x90e   :  { %v7038_v54 = vadd.f32 %v7030_v34, %v42135_v24  ;;  %37598 = vmatprep.subr.mxu0 %v41346_v1 }
 0x910   :  { %v7047_v63 = vsel %vm7046_vm8, %v7038_v54, -inf }
 0x911   :  { %7048 = vmax.xlane.f32.xlu1 %v7047_v63 }
 0x913   :  { %v5670_v36 = vpop.f32.mrb[12].mxu1 }
 0x914   :  { %v37477_v3 = vpop.f32.mrb[13].mxu1  ;;  %37566 = vmatmul.mubr.f32.vlgmr.msra.gmra.mrb[16].mxu0 %v6650_v55  ;;  %v7034_v42 = vmul.f32 0.31622776, %v5670_v36 }
 0x915   :  { %37599 = vmatpush3.msra.mxu0 %v42151_v25  ;;  %37600 = vmatprep.mubr.msk.f32.mxu0 %vm41345_vm0, %v41346_v1 }
 0x916   :  { %37603 = vmatprep.subr.mxu0 %v41346_v1  ;;  %v7042_v50 = vadd.f32 %v7034_v42, %v42135_v24 }
 0x918   :  { %v7059_v51 = vsel %vm7046_vm8, %v7042_v50, -inf }
 0x937   :  { %v4314_v0 = vpop.f32.mrb[8].mxu0 }
 0x938   :  { %v7031_v12 = vmul.f32 0.31622776, %v4314_v0  ;;  %v37387_v37 = vpop.f32.mrb[9].mxu0 }
 0x93a   :  { %v7039_v43 = vadd.f32 %v7031_v12, %v42135_v24 }
 0x93c   :  { %v7050_v40 = vsel %vm7046_vm8, %v7039_v43, -inf }
 0x93d   :  { %7051 = vmax.xlane.f32.xlu0 %v7050_v40 }
 0x93f   :  { %v6574_v32 = vpop.f32.mrb[14].mxu1 }
 0x940   :  { %v37537_v23 = vpop.f32.mrb[15].mxu1  ;;  %v7036_v27 = vmul.f32 0.31622776, %v6574_v32 }
 0x942   :  { %v7044_v55 = vadd.f32 %v7036_v27, %v42135_v24 }
 0x944   :  { %v7065_v14 = vsel %vm7046_vm8, %v7044_v55, -inf }
 0x963   :  { %v4766_v39 = vpop.f32.mrb[10].mxu0 }
 0x964   :  { %v7032_v57 = vmul.f32 0.31622776, %v4766_v39  ;;  %v37417_v5 = vpop.f32.mrb[11].mxu0 }
 0x966   :  { %v7040_v22 = vadd.f32 %v7032_v57, %v42135_v24 }
 0x968   :  { %v7053_v49 = vsel %vm7046_vm8, %v7040_v22, -inf }
 0x969   :  { %7054 = vmax.xlane.f32.xlu0 %v7053_v49 }
 0x96d   :  { %7060 = vmax.xlane.f32.xlu0 %v7059_v51 }
 0x98f   :  { %v5218_v52 = vpop.f32.mrb[12].mxu0 }
 0x990   :  { %v7033_v62 = vmul.f32 0.31622776, %v5218_v52  ;;  %v37447_v47 = vpop.f32.mrb[13].mxu0 }
 0x992   :  { %v7041_v48 = vadd.f32 %v7033_v62, %v42135_v24 }
 0x994   :  { %v7056_v7 = vsel %vm7046_vm8, %v7041_v48, -inf }
 0x995   :  { %7057 = vmax.xlane.f32.xlu1 %v7056_v7 }
 0x99e   :  { %v7049_v8 = vpop.xlane.xlu1 %7048 }
 0x99f   :  { %v7071_v17 = vsub.f32 %v7038_v54, %v7049_v8  ;;  %v7220_v8 = vsub.f32 %v42047_v16, %v42052_v2 }
 0x9a1   :  { %v7079_v19 = vmul.f32 1.442695, %v7071_v17  ;;  %v7221_v27 = vand.u32 4294901760, %v7220_v8 }
 0x9a3   :  { %41131 = vpow2.f32 %v7079_v19 }
 0x9ad   :  { %v41132_v29 = vpop.eup %41131 }
 0x9ae   :  { %v7095_v31 = vsel %vm7046_vm8, %v41132_v29, 0.0 }
 0x9af   :  { %7096 = vadd.xlane.f32.xlu0 %v7095_v31 }
 0x9b3   :  { %7066 = vmax.xlane.f32.xlu0 %v7065_v14 }
 0x9bb   :  { %v6122_v20 = vpop.f32.mrb[14].mxu0 }
 0x9bc   :  { %v7035_v44 = vmul.f32 0.31622776, %v6122_v20  ;;  %v37507_v45 = vpop.f32.mrb[15].mxu0 }
 0x9be   :  { %v7043_v53 = vadd.f32 %v7035_v44, %v42135_v24 }
 0x9c0   :  { %v7062_v56 = vsel %vm7046_vm8, %v7043_v53, -inf }
 0x9c1   :  { %7063 = vmax.xlane.f32.xlu1 %v7062_v56  ;;  %v7222_v56 = vsub.f32 %v7220_v8, %v7221_v27 }
 0x9ca   :  { %v7052_v58 = vpop.xlane.xlu0 %7051 }
 0x9cb   :  { %v7072_v59 = vsub.f32 %v7039_v43, %v7052_v58 }
 0x9cd   :  { %v7081_v60 = vmul.f32 1.442695, %v7072_v59 }
 0x9cf   :  { %41133 = vpow2.f32 %v7081_v60 }
 0x9d9   :  { %v42170_v6 = vpop.eup %41133 }
 0x9da   :  { %v7098_v34 = vsel %vm7046_vm8, %v42170_v6, 0.0 }
 0x9db   :  { %7099 = vadd.xlane.f32.xlu1 %v7098_v34 }
 0x9e7   :  { %v7026_v41 = vpop.f32.mrb[16].mxu0 }
 0x9e8   :  { %v7037_v54 = vmul.f32 0.31622776, %v7026_v41  ;;  %v37567_v63 = vpop.f32.mrb[17].mxu0 }
 0x9ea   :  { %v42175_v36 = vadd.f32 %v7037_v54, %v42135_v24  ;;  %v7671_v54 = vsub.f32 %v42148_v11, %v42151_v25  ;;  %v8042_v11 = vsel %vm7139_vm7, %v41868_v21, 0 }
 0x9ec   :  { %v7068_v3 = vsel %vm7046_vm8, %v42175_v36, -inf }
 0x9ed   :  { %7069 = vmax.xlane.f32.xlu1 %v7068_v3 }
 0x9f6   :  { %v7055_v0 = vpop.xlane.xlu0 %7054 }
 0x9f7   :  { %v7073_v12 = vsub.f32 %v7040_v22, %v7055_v0 }
 0x9f9   :  { %v7083_v37 = vmul.f32 1.442695, %v7073_v12  ;;  %v7672_v12 = vand.u32 4294901760, %v7671_v54 }
 0x9fa   :  { %v7061_v43 = vpop.xlane.xlu0 %7060 }
 0x9fb   :  { %41135 = vpow2.f32 %v7083_v37  ;;  %v7075_v40 = vsub.f32 %v7042_v50, %v7061_v43 }
 0x9fd   :  { %v7087_v32 = vmul.f32 1.442695, %v7075_v40  ;;  %v42238_v40 = vand.u32 4294901760, %v8042_v11 }
 0x9ff   :  { %41137 = vpow2.f32 %v7087_v32  ;;  %v7673_v32 = vsub.f32 %v7671_v54, %v7672_v12 }
 0xa05   :  { %v42179_v23 = vpop.eup %41135 }
 0xa06   :  { %v7101_v39 = vsel %vm7046_vm8, %v42179_v23, 0.0 }
 0xa07   :  { %7102 = vadd.xlane.f32.xlu0 %v7101_v39 }
 0xa09   :  { %v42183_v24 = vpop.eup %41137 }
 0xa0a   :  { %v7107_v42 = vsel %vm7046_vm8, %v42183_v24, 0.0 }
 0xa0b   :  { %7108 = vadd.xlane.f32.xlu0 %v7107_v42 }
 0xa22   :  { %v7058_v57 = vpop.xlane.xlu1 %7057 }
 0xa23   :  { %v7074_v5 = vsub.f32 %v7041_v48, %v7058_v57  ;;  %v7674_v57 = vand.u32 4294901760, %v7673_v32 }
 0xa25   :  { %v7085_v22 = vmul.f32 1.442695, %v7074_v5 }
 0xa27   :  { %41139 = vpow2.f32 %v7085_v22 }
 0xa31   :  { %v42187_v49 = vpop.eup %41139 }
 0xa32   :  { %v7104_v50 = vsel %vm7046_vm8, %v42187_v49, 0.0 }
 0xa33   :  { %7105 = vadd.xlane.f32.xlu1 %v7104_v50 }
 0xa3c   :  { %v7097_v51 = vpop.xlane.xlu0 %7096 }
 0xa3d   :  { %41141 = vrcp.f32 %v7097_v51 }
 0xa40   :  { %v7067_v52 = vpop.xlane.xlu0 %7066 }
 0xa41   :  { %v7077_v62 = vsub.f32 %v7044_v55, %v7067_v52  ;;  %v8122_v52 = vsub.f32 %v8042_v11, %v42238_v40 }
 0xa43   :  { %v7091_v47 = vmul.f32 1.442695, %v7077_v62 }
 0xa45   :  { %41143 = vpow2.f32 %v7091_v47  ;;  %v42273_v47 = vcombine.high %v41868_v21, %v41868_v21 }
 0xa47   :  { %v41142_v7 = vpop.eup %41141 }
 0xa48   :  { %v7127_v48 = vmul.f32 %v41142_v7, %v41132_v29  ;;  %v7223_v29 = vand.u32 4294901760, %v7222_v56 }
 0xa4a   :  { %v7137_v17 = vsel %vm7135_vm9, %v7127_v48, 0  ;;  %v8493_v48 = vsel %vm7139_vm7, %v42273_v47, 0 }
 0xa4b   :  { %v7208_v19 = vand.u32 4294901760, %v7137_v17 }
 0xa4d   :  { %v7209_v31 = vsub.f32 %v7137_v17, %v7208_v19 }
 0xa4e   :  { %v7064_v14 = vpop.xlane.xlu1 %7063 }
 0xa4f   :  { %v42194_v20 = vpop.eup %41143  ;;  %v7076_v44 = vsub.f32 %v7043_v53, %v7064_v14  ;;  %v7210_v45 = vand.u32 4294901760, %v7209_v31 }
 0xa50   :  { %v7113_v55 = vsel %vm7046_vm8, %v42194_v20, 0.0 }
 0xa51   :  { %v7089_v58 = vmul.f32 1.442695, %v7076_v44  ;;  %7114 = vadd.xlane.f32.xlu0 %v7113_v55  ;;  %v7211_v59 = vsub.f32 %v7209_v31, %v7210_v45 }
 0xa53   :  { %41145 = vpow2.f32 %v7089_v58  ;;  %v7212_v16 = vand.u32 4294901760, %v7211_v59 }
 0xa55   :  { %37571 = vmatmul.mubr.f32.vlgmr.msra.gmra.mrb[16].mxu1 %v7212_v16  ;;  %v8944_v16 = vsel %vm7139_vm7, %v41881_v4, 0 }
 0xa56   :  { %37574 = vmatpush3.msra.mxu1 %v7223_v29  ;;  %37575 = vmatprep.mubr.msk.f32.mxu1 %vm41345_vm0, %v41346_v1 }
 0xa57   :  { %37578 = vmatprep.subr.mxu1 %v41346_v1 }
 0xa5d   :  { %v42201_v60 = vpop.eup %41145  ;;  %37576 = vmatmul.mubr.f32.vlgmr.msra.gmra.mrb[16].mxu1 %v7208_v19 }
 0xa5e   :  { %37579 = vmatpush3.msra.mxu1 %v7220_v8  ;;  %v7110_v53 = vsel %vm7046_vm8, %v42201_v60, 0.0  ;;  %37580 = vmatprep.mubr.msk.f32.mxu1 %vm41345_vm0, %v41346_v1 }
 0xa5f   :  { %7111 = vadd.xlane.f32.xlu1 %v7110_v53  ;;  %37583 = vmatprep.subr.mxu1 %v41346_v1  ;;  %v42323_v53 = vand.u32 4294901760, %v8944_v16 }
 0xa65   :  { %37581 = vmatmul.mubr.f32.vlgmr.msra.gmra.mrb[16].mxu1 %v7209_v31 }
 0xa66   :  { %37584 = vmatpush3.msra.mxu1 %v42052_v2  ;;  %37585 = vmatprep.mubr.msk.f32.mxu1 %vm41345_vm0, %v41346_v1 }
 0xa67   :  { %10765 = vrot.lane.b32.xlu0 %v41851_v10, %s41348_s15  ;;  %37588 = vmatprep.subr.mxu1 %v41346_v1 }
 0xa68   :  { %v7100_v34 = vpop.xlane.xlu1 %7099 }
 0xa69   :  { %41147 = vrcp.f32 %v7100_v34 }
 0xa6b   :  { %11221 = vrot.lane.b32.xlu0 %v41859_v15, %s41352_s20 }
 0xa6d   :  { %37586 = vmatmul.mubr.f32.vlgmr.msra.gmra.mrb[16].mxu1 %v7210_v45 }
 0xa6e   :  { %37589 = vmatpush3.msra.mxu1 %v7221_v27  ;;  %37590 = vmatprep.mubr.msk.f32.mxu1 %vm41345_vm0, %v41346_v1 }
 0xa6f   :  { %12127 = vrot.lane.b32.xlu0 %v41874_v26, %s41348_s15  ;;  %37593 = vmatprep.subr.mxu1 %v41346_v1 }
 0xa73   :  { %v41148_v41 = vpop.eup %41147  ;;  %12129 = vrot.lane.b32.xlu0 %v41874_v26, %s41352_s20 }
 0xa74   :  { %v7128_v63 = vmul.f32 %v41148_v41, %v42170_v6 }
 0xa75   :  { %37591 = vmatmul.mubr.f32.vlgmr.msra.gmra.mrb[16].mxu1 %v7208_v19 }
 0xa76   :  { %37594 = vmatpush3.msra.mxu1 %v42052_v2  ;;  %37595 = vmatprep.mubr.msk.f32.mxu1 %vm41345_vm0, %v41346_v1  ;;  %v7589_v3 = vsel %vm7135_vm9, %v7128_v63, 0  ;;  %v9024_v63 = vsub.f32 %v8944_v16, %v42323_v53 }
 0xa77   :  { %13035 = vrot.lane.b32.xlu0 %v41887_v30, %s41348_s15  ;;  %37628 = vmatprep.subr.mxu1 %v41346_v1  ;;  %v7659_v0 = vand.u32 4294901760, %v7589_v3 }
 0xa79   :  { %v7660_v37 = vsub.f32 %v7589_v3, %v7659_v0 }
 0xa7a   :  { %v7070_v6 = vpop.xlane.xlu1 %7069 }
 0xa7b   :  { %v7078_v43 = vsub.f32 %v42175_v36, %v7070_v6  ;;  %13037 = vrot.lane.b32.xlu0 %v41887_v30, %s41352_s20  ;;  %v7661_v2 = vand.u32 4294901760, %v7660_v37 }
 0xa7d   :  { %v7093_v39 = vmul.f32 1.442695, %v7078_v43  ;;  %37596 = vmatmul.mubr.f32.vlgmr.msra.gmra.mrb[16].mxu1 %v7208_v19  ;;  %v7662_v42 = vsub.f32 %v7660_v37, %v7661_v2 }
 0xa7e   :  { %37629 = vmatpush3.msra.mxu1 %v42238_v40  ;;  %37630 = vmatprep.mubr.msk.f32.mxu1 %vm41345_vm0, %v41346_v1 }
 0xa7f   :  { %41149 = vpow2.f32 %v7093_v39  ;;  %13943 = vrot.lane.b32.xlu0 %v41900_v13, %s41348_s15  ;;  %v7663_v36 = vand.u32 4294901760, %v7662_v42  ;;  %37633 = vmatprep.subr.mxu1 %v41346_v1 }
 0xa81   :  { %37601 = vmatmul.mubr.f32.vlgmr.msra.gmra.mrb[18].mxu0 %v7663_v36 }
 0xa82   :  { %37604 = vmatpush3.msra.mxu0 %v7674_v57  ;;  %37605 = vmatprep.mubr.msk.f32.mxu0 %vm41345_vm0, %v41346_v1 }
 0xa83   :  { %13945 = vrot.lane.b32.xlu0 %v41900_v13, %s41352_s20  ;;  %37608 = vmatprep.subr.mxu0 %v41346_v1 }
 0xa89   :  { %v42251_v5 = vpop.eup %41149  ;;  %37606 = vmatmul.mubr.f32.vlgmr.msra.gmra.mrb[18].mxu0 %v7659_v0 }
 0xa8a   :  { %37609 = vmatpush3.msra.mxu0 %v7671_v54  ;;  %v7116_v22 = vsel %vm7046_vm8, %v42251_v5, 0.0  ;;  %37610 = vmatprep.mubr.msk.f32.mxu0 %vm41345_vm0, %v41346_v1 }
 0xa8b   :  { %7117 = vadd.xlane.f32.xlu1 %v7116_v22  ;;  %37613 = vmatprep.subr.mxu0 %v41346_v1 }
 0xa91   :  { %37611 = vmatmul.mubr.f32.vlgmr.msra.gmra.mrb[18].mxu0 %v7660_v37  ;;  %v9025_v37 = vand.u32 4294901760, %v9024_v63 }
 0xa92   :  { %37614 = vmatpush3.msra.mxu0 %v42151_v25  ;;  %37615 = vmatprep.mubr.msk.f32.mxu0 %vm41345_vm0, %v41346_v1 }
 0xa93   :  { %37618 = vmatprep.subr.mxu0 %v41346_v1  ;;  %v9026_v32 = vsub.f32 %v9024_v63, %v9025_v37 }
 0xa94   :  { %v7103_v50 = vpop.xlane.xlu0 %7102 }
 0xa95   :  { %41151 = vrcp.f32 %v7103_v50  ;;  %v9027_v57 = vand.u32 4294901760, %v9026_v32 }
 0xa98   :  { %v7109_v45 = vpop.xlane.xlu0 %7108 }
 0xa99   :  { %37616 = vmatmul.mubr.f32.vlgmr.msra.gmra.mrb[18].mxu0 %v7661_v2  ;;  %41153 = vrcp.f32 %v7109_v45 }
 0xa9a   :  { %37619 = vmatpush3.msra.mxu0 %v7672_v12  ;;  %37620 = vmatprep.mubr.msk.f32.mxu0 %vm41345_vm0, %v41346_v1 }
 0xa9b   :  { %37623 = vmatprep.subr.mxu0 %v41346_v1 }
 0xa9c   :  { %11219 = vrot.lane.b32.xlu1 %v41859_v15, %s41348_s15 }
 0xa9f   :  { %v41152_v51 = vpop.eup %41151 }
 0xaa0   :  { %v7129_v62 = vmul.f32 %v41152_v51, %v42179_v23  ;;  %10767 = vrot.lane.b32.xlu1 %v41851_v10, %s41352_s20  ;;  %v8123_v23 = vand.u32 4294901760, %v8122_v52 }
 0xaa1   :  { %37621 = vmatmul.mubr.f32.vlgmr.msra.gmra.mrb[18].mxu0 %v7659_v0 }
 0xaa2   :  { %37624 = vmatpush3.msra.mxu0 %v42151_v25  ;;  %37625 = vmatprep.mubr.msk.f32.mxu0 %vm41345_vm0, %v41346_v1  ;;  %v8040_v7 = vsel %vm7135_vm9, %v7129_v62, 0  ;;  %v42289_v25 = vand.u32 4294901760, %v8493_v48  ;;  %v8124_v27 = vsub.f32 %v8122_v52, %v8123_v23  ;;  %v42368_v62 = vcombine.high %v41881_v4, %v41881_v4 }
 0xaa3   :  { %37658 = vmatprep.subr.mxu0 %v41346_v1  ;;  %v42280_v8 = vand.u32 4294901760, %v8040_v7  ;;  %v41154_v55 = vpop.eup %41153 }
 0xaa4   :  { %11673 = vrot.lane.b32.xlu1 %v41863_v18, %s41348_s15  ;;  %v8125_v44 = vand.u32 4294901760, %v8124_v27  ;;  %v7131_v56 = vmul.f32 %v41154_v55, %v42183_v24  ;;  %v8573_v41 = vsub.f32 %v8493_v48, %v42289_v25 }
 0xaa5   :  { %v8111_v17 = vsub.f32 %v8040_v7, %v42280_v8 }
 0xaa6   :  { %v8942_v59 = vsel %vm7135_vm9, %v7131_v56, 0  ;;  %v8574_v11 = vand.u32 4294901760, %v8573_v41 }
 0xaa7   :  { %v8112_v19 = vand.u32 4294901760, %v8111_v17  ;;  %v42321_v29 = vand.u32 4294901760, %v8942_v59 }
 0xaa8   :  { %11675 = vrot.lane.b32.xlu1 %v41863_v18, %s41352_s20  ;;  %v8575_v2 = vsub.f32 %v8573_v41, %v8574_v11 }
 0xaa9   :  { %37626 = vmatmul.mubr.f32.vlgmr.msra.gmra.mrb[18].mxu0 %v7659_v0  ;;  %v8113_v31 = vsub.f32 %v8111_v17, %v8112_v19  ;;  %v9013_v24 = vsub.f32 %v8942_v59, %v42321_v29 }
 0xaaa   :  { %37659 = vmatpush3.msra.mxu0 %v42289_v25  ;;  %37660 = vmatprep.mubr.msk.f32.mxu0 %vm41345_vm0, %v41346_v1  ;;  %v8576_v36 = vand.u32 4294901760, %v8575_v2 }
 0xaab   :  { %v8114_v14 = vand.u32 4294901760, %v8113_v31  ;;  %37663 = vmatprep.subr.mxu0 %v41346_v1  ;;  %v9014_v12 = vand.u32 4294901760, %v9013_v24 }
 0xaac   :  { %12581 = vrot.lane.b32.xlu1 %v41876_v28, %s41348_s15 }
 0xaad   :  { %37631 = vmatmul.mubr.f32.vlgmr.msra.gmra.mrb[18].mxu1 %v8114_v14  ;;  %v9015_v43 = vsub.f32 %v9013_v24, %v9014_v12 }
 0xaae   :  { %37634 = vmatpush3.msra.mxu1 %v8125_v44  ;;  %37635 = vmatprep.mubr.msk.f32.mxu1 %vm41345_vm0, %v41346_v1 }
 0xaaf   :  { %37638 = vmatprep.subr.mxu1 %v41346_v1  ;;  %v9016_v42 = vand.u32 4294901760, %v9015_v43 }
 0xab0   :  { %12583 = vrot.lane.b32.xlu1 %v41876_v28, %s41352_s20 }
 0xab4   :  { %13489 = vrot.lane.b32.xlu1 %v41889_v35, %s41348_s15 }
 0xab5   :  { %37636 = vmatmul.mubr.f32.vlgmr.msra.gmra.mrb[18].mxu1 %v42280_v8 }
 0xab6   :  { %37639 = vmatpush3.msra.mxu1 %v8122_v52  ;;  %37640 = vmatprep.mubr.msk.f32.mxu1 %vm41345_vm0, %v41346_v1 }
 0xab7   :  { %37643 = vmatprep.subr.mxu1 %v41346_v1 }
 0xab8   :  { %13491 = vrot.lane.b32.xlu1 %v41889_v35, %s41352_s20 }
 0xabd   :  { %37641 = vmatmul.mubr.f32.vlgmr.msra.gmra.mrb[18].mxu1 %v8111_v17 }
 0xabe   :  { %37644 = vmatpush3.msra.mxu1 %v42238_v40  ;;  %37645 = vmatprep.mubr.msk.f32.mxu1 %vm41345_vm0, %v41346_v1 }
 0xabf   :  { %37648 = vmatprep.subr.mxu1 %v41346_v1 }
 0xac0   :  { %v7106_v58 = vpop.xlane.xlu1 %7105 }
 0xac1   :  { %41155 = vrcp.f32 %v7106_v58 }
 0xac5   :  { %37646 = vmatmul.mubr.f32.vlgmr.msra.gmra.mrb[18].mxu1 %v8112_v19 }
 0xac6   :  { %37649 = vmatpush3.msra.mxu1 %v8123_v23  ;;  %37650 = vmatprep.mubr.msk.f32.mxu1 %vm41345_vm0, %v41346_v1 }
 0xac7   :  { %37653 = vmatprep.subr.mxu1 %v41346_v1 }
 0xacb   :  { %v41156_v34 = vpop.eup %41155 }
 0xacc   :  { %v7130_v54 = vmul.f32 %v41156_v34, %v42187_v49 }
 0xacd   :  { %37651 = vmatmul.mubr.f32.vlgmr.msra.gmra.mrb[18].mxu1 %v42280_v8 }
 0xace   :  { %37654 = vmatpush3.msra.mxu1 %v42238_v40  ;;  %37655 = vmatprep.mubr.msk.f32.mxu1 %vm41345_vm0, %v41346_v1  ;;  %v8491_v3 = vsel %vm7135_vm9, %v7130_v54, 0 }
 0xacf   :  { %37688 = vmatprep.subr.mxu1 %v41346_v1  ;;  %v42335_v0 = vand.u32 4294901760, %v8491_v3 }
 0xad1   :  { %v8562_v49 = vsub.f32 %v8491_v3, %v42335_v0 }
 0xad3   :  { %v8563_v6 = vand.u32 4294901760, %v8562_v49 }
 0xad5   :  { %37656 = vmatmul.mubr.f32.vlgmr.msra.gmra.mrb[18].mxu1 %v42280_v8  ;;  %v8564_v40 = vsub.f32 %v8562_v49, %v8563_v6  ;;  %v9395_v8 = vsel %vm7139_vm7, %v42368_v62, 0 }
 0xad6   :  { %37689 = vmatpush3.msra.mxu1 %v42323_v53  ;;  %37690 = vmatprep.mubr.msk.f32.mxu1 %vm41345_vm0, %v41346_v1  ;;  %v42383_v48 = vand.u32 4294901760, %v9395_v8 }
 0xad7   :  { %37693 = vmatprep.subr.mxu1 %v41346_v1  ;;  %v8565_v39 = vand.u32 4294901760, %v8564_v40 }
 0xad8   :  { %v42392_v14 = vsub.f32 %v9395_v8, %v42383_v48 }
 0xad9   :  { %37661 = vmatmul.mubr.f32.vlgmr.msra.gmra.mrb[20].mxu0 %v8565_v39  ;;  %37691 = vmatmul.mubr.f32.vlgmr.msra.gmra.mrb[20].mxu1 %v9016_v42 }
 0xada   :  { %37664 = vmatpush3.msra.mxu0 %v8576_v36  ;;  %37694 = vmatpush3.msra.mxu1 %v9027_v57 }
 0xadb   :  { %37665 = vmatprep.mubr.msk.f32.mxu0 %vm41345_vm0, %v41346_v1  ;;  %37668 = vmatprep.subr.mxu0 %v41346_v1 }
 0xadc   :  { %37695 = vmatprep.mubr.msk.f32.mxu1 %vm41345_vm0, %v41346_v1  ;;  %37698 = vmatprep.subr.mxu1 %v41346_v1 }
 0xade   :  { %v7115_v22 = vpop.xlane.xlu0 %7114 }
 0xadf   :  { %41157 = vrcp.f32 %v7115_v22 }
 0xae1   :  { %37666 = vmatmul.mubr.f32.vlgmr.msra.gmra.mrb[20].mxu0 %v42335_v0  ;;  %37696 = vmatmul.mubr.f32.vlgmr.msra.gmra.mrb[20].mxu1 %v42321_v29 }
 0xae2   :  { %37669 = vmatpush3.msra.mxu0 %v8573_v41  ;;  %37699 = vmatpush3.msra.mxu1 %v9024_v63 }
 0xae3   :  { %37670 = vmatprep.mubr.msk.f32.mxu0 %vm41345_vm0, %v41346_v1  ;;  %37673 = vmatprep.subr.mxu0 %v41346_v1 }
 0xae4   :  { %37700 = vmatprep.mubr.msk.f32.mxu1 %vm41345_vm0, %v41346_v1  ;;  %37703 = vmatprep.subr.mxu1 %v41346_v1 }
 0xae9   :  { %v41158_v50 = vpop.eup %41157  ;;  %37671 = vmatmul.mubr.f32.vlgmr.msra.gmra.mrb[20].mxu0 %v8562_v49  ;;  %37701 = vmatmul.mubr.f32.vlgmr.msra.gmra.mrb[20].mxu1 %v9013_v24 }
 0xaea   :  { %37674 = vmatpush3.msra.mxu0 %v42289_v25  ;;  %37704 = vmatpush3.msra.mxu1 %v42323_v53  ;;  %v7133_v51 = vmul.f32 %v41158_v50, %v42194_v20  ;;  %v9846_v20 = vsel %vm7139_vm7, %v41894_v61, 0 }
 0xaeb   :  { %37675 = vmatprep.mubr.msk.f32.mxu0 %vm41345_vm0, %v41346_v1  ;;  %37678 = vmatprep.subr.mxu0 %v41346_v1  ;;  %v42385_v17 = vand.u32 4294901760, %v9846_v20 }
 0xaec   :  { %v7112_v52 = vpop.xlane.xlu1 %7111  ;;  %37705 = vmatprep.mubr.msk.f32.mxu1 %vm41345_vm0, %v41346_v1  ;;  %37708 = vmatprep.subr.mxu1 %v41346_v1  ;;  %v9844_v7 = vsel %vm7135_vm9, %v7133_v51, 0 }
 0xaed   :  { %41159 = vrcp.f32 %v7112_v52  ;;  %v42378_v23 = vand.u32 4294901760, %v9844_v7  ;;  %v42395_v44 = vsub.f32 %v9846_v20, %v42385_v17 }
 0xaef   :  { %v42388_v27 = vsub.f32 %v9844_v7, %v42378_v23  ;;  %v9927_v56 = vand.u32 4294901760, %v42395_v44 }
 0xaf1   :  { %37676 = vmatmul.mubr.f32.vlgmr.msra.gmra.mrb[20].mxu0 %v8563_v6  ;;  %37706 = vmatmul.mubr.f32.vlgmr.msra.gmra.mrb[20].mxu1 %v9014_v12  ;;  %v9916_v55 = vand.u32 4294901760, %v42388_v27  ;;  %v9928_v34 = vsub.f32 %v42395_v44, %v9927_v56  ;;  %v10766_v12 = vpop.permute.xlu0 %10765 }
 0xaf2   :  { %37679 = vmatpush3.msra.mxu0 %v8574_v11  ;;  %37709 = vmatpush3.msra.mxu1 %v9025_v37  ;;  %v10769_v11 = vsel %vm50_vm1, %v10766_v12, 0 }
 0xaf3   :  { %37680 = vmatprep.mubr.msk.f32.mxu0 %vm41345_vm0, %v41346_v1  ;;  %37683 = vmatprep.subr.mxu0 %v41346_v1  ;;  %v9917_v16 = vsub.f32 %v42388_v27, %v9916_v55  ;;  %v9929_v3 = vand.u32 4294901760, %v9928_v34  ;;  %v42461_v6 = vand.u32 4294901760, %v10769_v11 }
 0xaf4   :  { %37710 = vmatprep.mubr.msk.f32.mxu1 %vm41345_vm0, %v41346_v1  ;;  %37713 = vmatprep.subr.mxu1 %v41346_v1 }
 0xaf5   :  { %v9918_v54 = vand.u32 4294901760, %v9917_v16  ;;  %v42475_v42 = vsub.f32 %v10769_v11, %v42461_v6 }
 0xaf7   :  { %v41160_v19 = vpop.eup %41159  ;;  %v10841_v51 = vand.u32 4294901760, %v42475_v42 }
 0xaf8   :  { %v7132_v31 = vmul.f32 %v41160_v19, %v42201_v60 }
 0xaf9   :  { %37681 = vmatmul.mubr.f32.vlgmr.msra.gmra.mrb[20].mxu0 %v42335_v0  ;;  %37711 = vmatmul.mubr.f32.vlgmr.msra.gmra.mrb[20].mxu1 %v42321_v29  ;;  %v10842_v20 = vsub.f32 %v42475_v42, %v10841_v51 }
 0xafa   :  { %37684 = vmatpush3.msra.mxu0 %v42289_v25  ;;  %37714 = vmatpush3.msra.mxu1 %v42323_v53  ;;  %v9393_v45 = vsel %vm7135_vm9, %v7132_v31, 0  ;;  %v9476_v25 = vand.u32 4294901760, %v42392_v14 }
 0xafb   :  { %37685 = vmatprep.mubr.msk.f32.mxu0 %vm41345_vm0, %v41346_v1  ;;  %37715 = vmatprep.mubr.msk.f32.mxu1 %vm41345_vm0, %v41346_v1  ;;  %v42406_v60 = vand.u32 4294901760, %v9393_v45 }
 0xafc   :  { %37718 = vmatprep.subr.mxu0 %v41346_v1  ;;  %37748 = vmatprep.subr.mxu1 %v41346_v1  ;;  %v9477_v53 = vsub.f32 %v42392_v14, %v9476_v25 }
 0xafd   :  { %v9464_v58 = vsub.f32 %v9393_v45, %v42406_v60 }
 0xafe   :  { %v9478_v63 = vand.u32 4294901760, %v9477_v53 }
 0xaff   :  { %v9465_v59 = vand.u32 4294901760, %v9464_v58 }
 0xb01   :  { %37686 = vmatmul.mubr.f32.vlgmr.msra.gmra.mrb[20].mxu0 %v42335_v0  ;;  %37716 = vmatmul.mubr.f32.vlgmr.msra.gmra.mrb[20].mxu1 %v42321_v29  ;;  %v9466_v24 = vsub.f32 %v9464_v58, %v9465_v59  ;;  %v42454_v0 = vcombine.high %v41894_v61, %v41894_v61 }
 0xb02   :  { %37719 = vmatpush3.msra.mxu0 %v42383_v48  ;;  %37749 = vmatpush3.msra.mxu1 %v42385_v17 }
 0xb03   :  { %37720 = vmatprep.mubr.msk.f32.mxu0 %vm41345_vm0, %v41346_v1  ;;  %37723 = vmatprep.subr.mxu0 %v41346_v1  ;;  %v9467_v41 = vand.u32 4294901760, %v9466_v24  ;;  %v10297_v49 = vsel %vm7139_vm7, %v42454_v0, 0 }
 0xb04   :  { %37750 = vmatprep.mubr.msk.f32.mxu1 %vm41345_vm0, %v41346_v1  ;;  %37753 = vmatprep.subr.mxu1 %v41346_v1  ;;  %v42469_v2 = vand.u32 4294901760, %v10297_v49 }
 0xb05   :  { %37721 = vmatmul.mubr.f32.vlgmr.msra.gmra.mrb[22].mxu0 %v9467_v41  ;;  %37751 = vmatmul.mubr.f32.vlgmr.msra.gmra.mrb[22].mxu1 %v9918_v54 }
 0xb06   :  { %37724 = vmatpush3.msra.mxu0 %v9478_v63  ;;  %37754 = vmatpush3.msra.mxu1 %v9929_v3  ;;  %v42482_v22 = vsub.f32 %v10297_v49, %v42469_v2 }
 0xb07   :  { %37725 = vmatprep.mubr.msk.f32.mxu0 %vm41345_vm0, %v41346_v1  ;;  %37728 = vmatprep.subr.mxu0 %v41346_v1 }
 0xb08   :  { %37755 = vmatprep.mubr.msk.f32.mxu1 %vm41345_vm0, %v41346_v1  ;;  %37758 = vmatprep.subr.mxu1 %v41346_v1  ;;  %v10378_v7 = vand.u32 4294901760, %v42482_v22 }
 0xb0a   :  { %v10379_v19 = vsub.f32 %v42482_v22, %v10378_v7 }
 0xb0d   :  { %37726 = vmatmul.mubr.f32.vlgmr.msra.gmra.mrb[22].mxu0 %v42406_v60  ;;  %37756 = vmatmul.mubr.f32.vlgmr.msra.gmra.mrb[22].mxu1 %v42378_v23 }
 0xb0e   :  { %37729 = vmatpush3.msra.mxu0 %v42392_v14  ;;  %37759 = vmatpush3.msra.mxu1 %v42395_v44  ;;  %v10843_v14 = vand.u32 4294901760, %v10842_v20  ;;  %v10380_v44 = vand.u32 4294901760, %v10379_v19 }
 0xb0f   :  { %37730 = vmatprep.mubr.msk.f32.mxu0 %vm41345_vm0, %v41346_v1  ;;  %37733 = vmatprep.subr.mxu0 %v41346_v1 }
 0xb10   :  { %37760 = vmatprep.mubr.msk.f32.mxu1 %vm41345_vm0, %v41346_v1  ;;  %37763 = vmatprep.subr.mxu1 %v41346_v1 }
 0xb15   :  { %37731 = vmatmul.mubr.f32.vlgmr.msra.gmra.mrb[22].mxu0 %v9464_v58  ;;  %37761 = vmatmul.mubr.f32.vlgmr.msra.gmra.mrb[22].mxu1 %v42388_v27 }
 0xb16   :  { %37734 = vmatpush3.msra.mxu0 %v42383_v48  ;;  %37764 = vmatpush3.msra.mxu1 %v42385_v17 }
 0xb17   :  { %37735 = vmatprep.mubr.msk.f32.mxu0 %vm41345_vm0, %v41346_v1  ;;  %37738 = vmatprep.subr.mxu0 %v41346_v1 }
 0xb18   :  { %v7118_v29 = vpop.xlane.xlu1 %7117  ;;  %37765 = vmatprep.mubr.msk.f32.mxu1 %vm41345_vm0, %v41346_v1  ;;  %37768 = vmatprep.subr.mxu1 %v41346_v1 }
 0xb19   :  { %41161 = vrcp.f32 %v7118_v29 }
 0xb1c   :  { %v42457_v37 = vpop.permute.xlu1 %11219 }
 0xb1d   :  { %37736 = vmatmul.mubr.f32.vlgmr.msra.gmra.mrb[22].mxu0 %v9465_v59  ;;  %37766 = vmatmul.mubr.f32.vlgmr.msra.gmra.mrb[22].mxu1 %v9916_v55 }
 0xb1e   :  { %37739 = vmatpush3.msra.mxu0 %v9476_v25  ;;  %37769 = vmatpush3.msra.mxu1 %v9927_v56  ;;  %v11223_v25 = vsel %vm50_vm1, %v42457_v37, 0 }
 0xb1f   :  { %37740 = vmatprep.mubr.msk.f32.mxu0 %vm41345_vm0, %v41346_v1  ;;  %37743 = vmatprep.subr.mxu0 %v41346_v1  ;;  %v42544_v16 = vand.u32 4294901760, %v11223_v25 }
 0xb20   :  { %v10768_v43 = vpop.permute.xlu1 %10767  ;;  %37770 = vmatprep.mubr.msk.f32.mxu1 %vm41345_vm0, %v41346_v1  ;;  %37773 = vmatprep.subr.mxu1 %v41346_v1 }
 0xb21   :  { %v10771_v32 = vsel %vm50_vm1, %v10768_v43, 0  ;;  %v42559_v41 = vsub.f32 %v11223_v25, %v42544_v16 }
 0xb22   :  { %v42472_v40 = vand.u32 4294901760, %v10771_v32 }
 0xb23   :  { %v41162_v39 = vpop.eup %41161  ;;  %v11295_v11 = vand.u32 4294901760, %v42559_v41 }
 0xb24   :  { %v7134_v36 = vmul.f32 %v41162_v39, %v42251_v5  ;;  %v42479_v57 = vsub.f32 %v10771_v32, %v42472_v40 }
 0xb25   :  { %37741 = vmatmul.mubr.f32.vlgmr.msra.gmra.mrb[22].mxu0 %v42406_v60  ;;  %37771 = vmatmul.mubr.f32.vlgmr.msra.gmra.mrb[22].mxu1 %v42378_v23 }
 0xb26   :  { %37744 = vmatpush3.msra.mxu0 %v42383_v48  ;;  %37774 = vmatpush3.msra.mxu1 %v42385_v17  ;;  %v10295_v50 = vsel %vm7135_vm9, %v7134_v36, 0  ;;  %v10852_v52 = vand.u32 4294901760, %v42479_v57 }
 0xb27   :  { %37745 = vmatprep.mubr.msk.f32.mxu0 %vm41345_vm0, %v41346_v1  ;;  %37775 = vmatprep.mubr.msk.f32.mxu1 %vm41345_vm0, %v41346_v1  ;;  %v42494_v5 = vand.u32 4294901760, %v10295_v50 }
 0xb28   :  { %37778 = vmatprep.subr.mxu0 %v41346_v1  ;;  %37808 = vmatprep.subr.mxu1 %v41346_v1  ;;  %v10853_v17 = vsub.f32 %v42479_v57, %v10852_v52 }
 0xb29   :  { %v10366_v8 = vsub.f32 %v10295_v50, %v42494_v5 }
 0xb2a   :  { %v10854_v45 = vand.u32 4294901760, %v10853_v17 }
 0xb2b   :  { %v10367_v48 = vand.u32 4294901760, %v10366_v8 }
 0xb2d   :  { %37746 = vmatmul.mubr.f32.vlgmr.msra.gmra.mrb[22].mxu0 %v42406_v60  ;;  %37776 = vmatmul.mubr.f32.vlgmr.msra.gmra.mrb[22].mxu1 %v42378_v23  ;;  %v10368_v27 = vsub.f32 %v10366_v8, %v10367_v48  ;;  %v11674_v23 = vpop.permute.xlu1 %11673  ;;  %v11222_v60 = vpop.permute.xlu0 %11221 }
 0xb2e   :  { %37779 = vmatpush3.msra.mxu0 %v42469_v2  ;;  %37809 = vmatpush3.xpose.msra.mxu1 %v42472_v40  ;;  %v11677_v56 = vsel %vm50_vm1, %v11674_v23, 0  ;;  %v11225_v58 = vsel %vm50_vm1, %v11222_v60, 0 }
 0xb2f   :  { %37780 = vmatprep.mubr.msk.f32.mxu0 %vm41345_vm0, %v41346_v1  ;;  %37783 = vmatprep.subr.mxu0 %v41346_v1  ;;  %v10369_v31 = vand.u32 4294901760, %v10368_v27  ;;  %v42546_v53 = vand.u32 4294901760, %v11677_v56  ;;  %v42551_v34 = vand.u32 4294901760, %v11225_v58 }
 0xb30   :  { %37810 = vmatprep.mubr.msk.f32.mxu1 %vm41345_vm0, %v41346_v1  ;;  %37813 = vmatprep.subr.mxu1 %v41346_v1 }
 0xb31   :  { %37781 = vmatmul.mubr.f32.vlgmr.msra.gmra.mrb[24].mxu0 %v10369_v31  ;;  %37811 = vmatmul.mubr.f32.vlgmr.msra.gmra.mrb[24].mxu1 %v10843_v14  ;;  %v11676_v55 = vpop.permute.xlu1 %11675  ;;  %v42562_v54 = vsub.f32 %v11677_v56, %v42546_v53  ;;  %v42565_v63 = vsub.f32 %v11225_v58, %v42551_v34 }
 0xb32   :  { %37784 = vmatpush3.msra.mxu0 %v10380_v44  ;;  %37814 = vmatpush3.xpose.msra.mxu1 %v10854_v45  ;;  %v11679_v59 = vsel %vm50_vm1, %v11676_v55, 0 }
 0xb33   :  { %37785 = vmatprep.mubr.msk.f32.mxu0 %vm41345_vm0, %v41346_v1  ;;  %37788 = vmatprep.subr.mxu0 %v41346_v1  ;;  %v42553_v24 = vand.u32 4294901760, %v11679_v59  ;;  %v11749_v37 = vand.u32 4294901760, %v42562_v54  ;;  %v11306_v49 = vand.u32 4294901760, %v42565_v63 }
 0xb34   :  { %37815 = vmatprep.mubr.msk.f32.mxu1 %vm41345_vm0, %v41346_v1  ;;  %37818 = vmatprep.subr.mxu1 %v41346_v1 }
 0xb35   :  { %v42568_v3 = vsub.f32 %v11679_v59, %v42553_v24  ;;  %v11750_v32 = vsub.f32 %v42562_v54, %v11749_v37  ;;  %v12582_v50 = vpop.permute.xlu1 %12581 }
 0xb37   :  { %v11760_v43 = vand.u32 4294901760, %v42568_v3  ;;  %v11751_v36 = vand.u32 4294901760, %v11750_v32 }
 0xb39   :  { %37786 = vmatmul.mubr.f32.vlgmr.msra.gmra.mrb[24].mxu0 %v42494_v5  ;;  %37816 = vmatmul.mubr.f32.vlgmr.msra.gmra.mrb[24].mxu1 %v42461_v6  ;;  %v11761_v39 = vsub.f32 %v42568_v3, %v11760_v43 }
 0xb3a   :  { %37789 = vmatpush3.msra.mxu0 %v42482_v22  ;;  %37819 = vmatpush3.xpose.msra.mxu1 %v42479_v57 }
 0xb3b   :  { %37790 = vmatprep.mubr.msk.f32.mxu0 %vm41345_vm0, %v41346_v1  ;;  %37793 = vmatprep.subr.mxu0 %v41346_v1  ;;  %v11762_v22 = vand.u32 4294901760, %v11761_v39 }
 0xb3c   :  { %37820 = vmatprep.mubr.msk.f32.mxu1 %vm41345_vm0, %v41346_v1  ;;  %37823 = vmatprep.subr.mxu1 %v41346_v1 }
 0xb41   :  { %37791 = vmatmul.mubr.f32.vlgmr.msra.gmra.mrb[24].mxu0 %v10366_v8  ;;  %37821 = vmatmul.mubr.f32.vlgmr.msra.gmra.mrb[24].mxu1 %v42475_v42 }
 0xb42   :  { %37794 = vmatpush3.msra.mxu0 %v42469_v2  ;;  %37824 = vmatpush3.xpose.msra.mxu1 %v42472_v40 }
 0xb43   :  { %37795 = vmatprep.mubr.msk.f32.mxu0 %vm41345_vm0, %v41346_v1  ;;  %37798 = vmatprep.subr.mxu0 %v41346_v1 }
 0xb44   :  { %37825 = vmatprep.mubr.msk.f32.mxu1 %vm41345_vm0, %v41346_v1  ;;  %37828 = vmatprep.subr.mxu1 %v41346_v1 }
 0xb49   :  { %37796 = vmatmul.mubr.f32.vlgmr.msra.gmra.mrb[24].mxu0 %v10367_v48  ;;  %37826 = vmatmul.mubr.f32.vlgmr.msra.gmra.mrb[24].mxu1 %v10841_v51 }
 0xb4a   :  { %37799 = vmatpush3.msra.mxu0 %v10378_v7  ;;  %37829 = vmatpush3.xpose.msra.mxu1 %v10852_v52  ;;  %v12585_v7 = vsel %vm50_vm1, %v12582_v50, 0 }
 0xb4b   :  { %37800 = vmatprep.mubr.msk.f32.mxu0 %vm41345_vm0, %v41346_v1  ;;  %37803 = vmatprep.subr.mxu0 %v41346_v1  ;;  %v42632_v17 = vand.u32 4294901760, %v12585_v7 }
 0xb4c   :  { %37830 = vmatprep.mubr.msk.f32.mxu1 %vm41345_vm0, %v41346_v1  ;;  %37833 = vmatprep.subr.mxu1 %v41346_v1 }
 0xb4d   :  { %v42648_v14 = vsub.f32 %v12585_v7, %v42632_v17 }
 0xb4f   :  { %v12657_v56 = vand.u32 4294901760, %v42648_v14 }
 0xb50   :  { %v42570_v29 = vpop.f32.mrb[16].mxu1 }
 0xb51   :  { %v37597_v12 = vpop.f32.mrb[17].mxu1  ;;  %37801 = vmatmul.mubr.f32.vlgmr.msra.gmra.mrb[24].mxu0 %v42494_v5  ;;  %37831 = vmatmul.mubr.f32.vlgmr.msra.gmra.mrb[24].mxu1 %v42461_v6 }
 0xb52   :  { %37804 = vmatpush3.msra.mxu0 %v42469_v2  ;;  %37834 = vmatpush3.xpose.msra.mxu1 %v42472_v40  ;;  %v11296_v2 = vsub.f32 %v42559_v41, %v11295_v11  ;;  %v11307_v40 = vsub.f32 %v42565_v63, %v11306_v49 }
 0xb53   :  { %37805 = vmatprep.mubr.msk.f32.mxu0 %vm41345_vm0, %v41346_v1  ;;  %37835 = vmatprep.mubr.msk.f32.mxu1 %vm41345_vm0, %v41346_v1 }
 0xb54   :  { %37838 = vmatprep.subr.mxu0 %v41346_v1  ;;  %37868 = vmatprep.subr.mxu1 %v41346_v1  ;;  %v11297_v42 = vand.u32 4294901760, %v11296_v2  ;;  %v11308_v57 = vand.u32 4294901760, %v11307_v40 }
 0xb59   :  { %37806 = vmatmul.mubr.f32.vlgmr.msra.gmra.mrb[24].mxu0 %v42494_v5  ;;  %37836 = vmatmul.mubr.f32.vlgmr.msra.gmra.mrb[24].mxu1 %v42461_v6  ;;  %v12128_v6 = vpop.permute.xlu0 %12127  ;;  %v12584_v5 = vpop.permute.xlu1 %12583 }
 0xb5a   :  { %37839 = vmatpush3.xpose.msra.mxu0 %v42551_v34  ;;  %37869 = vmatpush3.xpose.msra.mxu1 %v42553_v24  ;;  %v12131_v52 = vsel %vm50_vm1, %v12128_v6, 0  ;;  %v12587_v20 = vsel %vm50_vm1, %v12584_v5, 0 }
 0xb5b   :  { %37840 = vmatprep.mubr.msk.f32.mxu0 %vm41345_vm0, %v41346_v1  ;;  %37843 = vmatprep.subr.mxu0 %v41346_v1  ;;  %v42630_v48 = vand.u32 4294901760, %v12131_v52  ;;  %v42639_v27 = vand.u32 4294901760, %v12587_v20 }
 0xb5c   :  { %37870 = vmatprep.mubr.msk.f32.mxu1 %vm41345_vm0, %v41346_v1  ;;  %37873 = vmatprep.subr.mxu1 %v41346_v1 }
 0xb5d   :  { %37841 = vmatmul.mubr.f32.vlgmr.msra.gmra.mrb[26].mxu0 %v11297_v42  ;;  %37871 = vmatmul.mubr.f32.vlgmr.msra.gmra.mrb[26].mxu1 %v11751_v36  ;;  %v12130_v51 = vpop.permute.xlu0 %12129  ;;  %v42645_v31 = vsub.f32 %v12131_v52, %v42630_v48  ;;  %v42654_v45 = vsub.f32 %v12587_v20, %v42639_v27  ;;  %v13490_v12 = vpop.permute.xlu1 %13489 }
 0xb5e   :  { %37844 = vmatpush3.xpose.msra.mxu0 %v11308_v57  ;;  %37874 = vmatpush3.xpose.msra.mxu1 %v11762_v22  ;;  %v12133_v8 = vsel %vm50_vm1, %v12130_v51, 0 }
 0xb5f   :  { %37845 = vmatprep.mubr.msk.f32.mxu0 %vm41345_vm0, %v41346_v1  ;;  %37848 = vmatprep.subr.mxu0 %v41346_v1  ;;  %v42637_v19 = vand.u32 4294901760, %v12133_v8  ;;  %v12203_v25 = vand.u32 4294901760, %v42645_v31  ;;  %v12668_v59 = vand.u32 4294901760, %v42654_v45 }
 0xb60   :  { %37875 = vmatprep.mubr.msk.f32.mxu1 %vm41345_vm0, %v41346_v1  ;;  %37878 = vmatprep.subr.mxu1 %v41346_v1 }
 0xb61   :  { %v42651_v44 = vsub.f32 %v12133_v8, %v42637_v19 }
 0xb63   :  { %v12214_v58 = vand.u32 4294901760, %v42651_v44 }
 0xb65   :  { %37846 = vmatmul.mubr.f32.vlgmr.msra.gmra.mrb[26].mxu0 %v42544_v16  ;;  %37876 = vmatmul.mubr.f32.vlgmr.msra.gmra.mrb[26].mxu1 %v42546_v53 }
 0xb66   :  { %37849 = vmatpush3.xpose.msra.mxu0 %v42565_v63  ;;  %37879 = vmatpush3.xpose.msra.mxu1 %v42568_v3 }
 0xb67   :  { %37850 = vmatprep.mubr.msk.f32.mxu0 %vm41345_vm0, %v41346_v1  ;;  %37853 = vmatprep.subr.mxu0 %v41346_v1 }
 0xb68   :  { %37880 = vmatprep.mubr.msk.f32.mxu1 %vm41345_vm0, %v41346_v1  ;;  %37883 = vmatprep.subr.mxu1 %v41346_v1 }
 0xb6d   :  { %37851 = vmatmul.mubr.f32.vlgmr.msra.gmra.mrb[26].mxu0 %v42559_v41  ;;  %37881 = vmatmul.mubr.f32.vlgmr.msra.gmra.mrb[26].mxu1 %v42562_v54  ;;  %v12215_v41 = vsub.f32 %v42651_v44, %v12214_v58  ;;  %v12669_v54 = vsub.f32 %v42654_v45, %v12668_v59 }
 0xb6e   :  { %37854 = vmatpush3.xpose.msra.mxu0 %v42551_v34  ;;  %37884 = vmatpush3.xpose.msra.mxu1 %v42553_v24 }
 0xb6f   :  { %37855 = vmatprep.mubr.msk.f32.mxu0 %vm41345_vm0, %v41346_v1  ;;  %37858 = vmatprep.subr.mxu0 %v41346_v1 }
 0xb70   :  { %37885 = vmatprep.mubr.msk.f32.mxu1 %vm41345_vm0, %v41346_v1  ;;  %37888 = vmatprep.subr.mxu1 %v41346_v1 }
 0xb75   :  { %37856 = vmatmul.mubr.f32.vlgmr.msra.gmra.mrb[26].mxu0 %v11295_v11  ;;  %37886 = vmatmul.mubr.f32.vlgmr.msra.gmra.mrb[26].mxu1 %v11749_v37  ;;  %v13492_v37 = vpop.permute.xlu1 %13491 }
 0xb76   :  { %37859 = vmatpush3.xpose.msra.mxu0 %v11306_v49  ;;  %37889 = vmatpush3.xpose.msra.mxu1 %v11760_v43  ;;  %v13493_v43 = vsel %vm50_vm1, %v13490_v12, 0  ;;  %v13495_v32 = vsel %vm50_vm1, %v13492_v37, 0 }
 0xb77   :  { %37860 = vmatprep.mubr.msk.f32.mxu0 %vm41345_vm0, %v41346_v1  ;;  %37863 = vmatprep.subr.mxu0 %v41346_v1  ;;  %v42718_v39 = vand.u32 4294901760, %v13493_v43  ;;  %v42725_v36 = vand.u32 4294901760, %v13495_v32 }
 0xb78   :  { %37890 = vmatprep.mubr.msk.f32.mxu1 %vm41345_vm0, %v41346_v1  ;;  %37893 = vmatprep.subr.mxu1 %v41346_v1 }
 0xb79   :  { %v13564_v22 = vsub.f32 %v13493_v43, %v42718_v39  ;;  %v13575_v50 = vsub.f32 %v13495_v32, %v42725_v36 }
 0xb7b   :  { %v13565_v7 = vand.u32 4294901760, %v13564_v22  ;;  %v13576_v20 = vand.u32 4294901760, %v13575_v50 }
 0xb7c   :  { %v8035_v23 = vpop.f32.mrb[18].mxu0 }
 0xb7d   :  { %v10753_v60 = vcombine.low %v42570_v29, %v8035_v23  ;;  %v37627_v55 = vpop.f32.mrb[19].mxu0  ;;  %37861 = vmatmul.mubr.f32.vlgmr.msra.gmra.mrb[26].mxu0 %v42544_v16  ;;  %37891 = vmatmul.mubr.f32.vlgmr.msra.gmra.mrb[26].mxu1 %v42546_v53  ;;  %v12216_v29 = vand.u32 4294901760, %v12215_v41 }
 0xb7e   :  { %37864 = vmatpush3.xpose.msra.mxu0 %v42551_v34  ;;  %37894 = vmatpush3.xpose.msra.mxu1 %v42553_v24  ;;  %v12204_v34 = vsub.f32 %v42645_v31, %v12203_v25  ;;  %v12658_v24 = vsub.f32 %v42648_v14, %v12657_v56 }
 0xb7f   :  { %10761 = vst.msk [vmem:[#allocation3] sm:$0xff] %vm50_vm1, %v10753_v60  ;;  %37865 = vmatprep.mubr.msk.f32.mxu0 %vm41345_vm0, %v41346_v1  ;;  %37895 = vmatprep.mubr.msk.f32.mxu1 %vm41345_vm0, %v41346_v1 }
 0xb80   :  { %37898 = vmatprep.subr.mxu0 %v41346_v1  ;;  %37928 = vmatprep.subr.mxu1 %v41346_v1  ;;  %v12205_v63 = vand.u32 4294901760, %v12204_v34  ;;  %v12659_v3 = vand.u32 4294901760, %v12658_v24 }
 0xb85   :  { %37866 = vmatmul.mubr.f32.vlgmr.msra.gmra.mrb[26].mxu0 %v42544_v16  ;;  %37896 = vmatmul.mubr.f32.vlgmr.msra.gmra.mrb[26].mxu1 %v42546_v53  ;;  %v12670_v16 = vand.u32 4294901760, %v12669_v54  ;;  %v13036_v53 = vpop.permute.xlu0 %13035 }
 0xb86   :  { %37899 = vmatpush3.xpose.msra.mxu0 %v42637_v19  ;;  %37929 = vmatpush3.xpose.msra.mxu1 %v42639_v27  ;;  %v13039_v49 = vsel %vm50_vm1, %v13036_v53, 0 }
 0xb87   :  { %37900 = vmatprep.mubr.msk.f32.mxu0 %vm41345_vm0, %v41346_v1  ;;  %37903 = vmatprep.subr.mxu0 %v41346_v1  ;;  %v42716_v40 = vand.u32 4294901760, %v13039_v49 }
 0xb88   :  { %37930 = vmatprep.mubr.msk.f32.mxu1 %vm41345_vm0, %v41346_v1  ;;  %37933 = vmatprep.subr.mxu1 %v41346_v1 }
 0xb89   :  { %37901 = vmatmul.mubr.f32.vlgmr.msra.gmra.mrb[28].mxu0 %v12205_v63  ;;  %37931 = vmatmul.mubr.f32.vlgmr.msra.gmra.mrb[28].mxu1 %v12659_v3  ;;  %v13038_v11 = vpop.permute.xlu0 %13037  ;;  %v13110_v57 = vsub.f32 %v13039_v49, %v42716_v40 }
 0xb8a   :  { %37904 = vmatpush3.xpose.msra.mxu0 %v12216_v29  ;;  %37934 = vmatpush3.xpose.msra.mxu1 %v12670_v16  ;;  %v13041_v2 = vsel %vm50_vm1, %v13038_v11, 0 }
 0xb8b   :  { %37905 = vmatprep.mubr.msk.f32.mxu0 %vm41345_vm0, %v41346_v1  ;;  %37908 = vmatprep.subr.mxu0 %v41346_v1  ;;  %v42723_v42 = vand.u32 4294901760, %v13041_v2  ;;  %v13111_v52 = vand.u32 4294901760, %v13110_v57 }
 0xb8c   :  { %37935 = vmatprep.mubr.msk.f32.mxu1 %vm41345_vm0, %v41346_v1  ;;  %37938 = vmatprep.subr.mxu1 %v41346_v1 }
 0xb8d   :  { %v13121_v6 = vsub.f32 %v13041_v2, %v42723_v42 }
 0xb8f   :  { %v13122_v8 = vand.u32 4294901760, %v13121_v6 }
 0xb91   :  { %37906 = vmatmul.mubr.f32.vlgmr.msra.gmra.mrb[28].mxu0 %v42630_v48  ;;  %37936 = vmatmul.mubr.f32.vlgmr.msra.gmra.mrb[28].mxu1 %v42632_v17 }
 0xb92   :  { %37909 = vmatpush3.xpose.msra.mxu0 %v42651_v44  ;;  %37939 = vmatpush3.xpose.msra.mxu1 %v42654_v45  ;;  %v13123_v44 = vsub.f32 %v13121_v6, %v13122_v8 }
 0xb93   :  { %37910 = vmatprep.mubr.msk.f32.mxu0 %vm41345_vm0, %v41346_v1  ;;  %37913 = vmatprep.subr.mxu0 %v41346_v1 }
 0xb94   :  { %37940 = vmatprep.mubr.msk.f32.mxu1 %vm41345_vm0, %v41346_v1  ;;  %37943 = vmatprep.subr.mxu1 %v41346_v1  ;;  %v13124_v23 = vand.u32 4294901760, %v13123_v44 }
 0xb99   :  { %37911 = vmatmul.mubr.f32.vlgmr.msra.gmra.mrb[28].mxu0 %v42645_v31  ;;  %37941 = vmatmul.mubr.f32.vlgmr.msra.gmra.mrb[28].mxu1 %v42648_v14  ;;  %v13112_v31 = vsub.f32 %v13110_v57, %v13111_v52  ;;  %v13566_v14 = vsub.f32 %v13564_v22, %v13565_v7 }
 0xb9a   :  { %37914 = vmatpush3.xpose.msra.mxu0 %v42637_v19  ;;  %37944 = vmatpush3.xpose.msra.mxu1 %v42639_v27 }
 0xb9b   :  { %37915 = vmatprep.mubr.msk.f32.mxu0 %vm41345_vm0, %v41346_v1  ;;  %37918 = vmatprep.subr.mxu0 %v41346_v1  ;;  %v13567_v45 = vand.u32 4294901760, %v13566_v14 }
 0xb9c   :  { %37945 = vmatprep.mubr.msk.f32.mxu1 %vm41345_vm0, %v41346_v1  ;;  %37948 = vmatprep.subr.mxu1 %v41346_v1 }
 0xba1   :  { %37916 = vmatmul.mubr.f32.vlgmr.msra.gmra.mrb[28].mxu0 %v12203_v25  ;;  %37946 = vmatmul.mubr.f32.vlgmr.msra.gmra.mrb[28].mxu1 %v12657_v56 }
 0xba2   :  { %37919 = vmatpush3.xpose.msra.mxu0 %v12214_v58  ;;  %37949 = vmatpush3.xpose.msra.mxu1 %v12668_v59 }
 0xba3   :  { %37920 = vmatprep.mubr.msk.f32.mxu0 %vm41345_vm0, %v41346_v1  ;;  %37923 = vmatprep.subr.mxu0 %v41346_v1 }
 0xba4   :  { %37950 = vmatprep.mubr.msk.f32.mxu1 %vm41345_vm0, %v41346_v1  ;;  %37953 = vmatprep.subr.mxu1 %v41346_v1 }
 0xba8   :  { %v42734_v51 = vpop.f32.mrb[18].mxu1 }
 0xba9   :  { %v37657_v5 = vpop.f32.mrb[19].mxu1  ;;  %37921 = vmatmul.mubr.f32.vlgmr.msra.gmra.mrb[28].mxu0 %v42630_v48  ;;  %37951 = vmatmul.mubr.f32.vlgmr.msra.gmra.mrb[28].mxu1 %v42632_v17 }
 0xbaa   :  { %37924 = vmatpush3.xpose.msra.mxu0 %v42637_v19  ;;  %37954 = vmatpush3.xpose.msra.mxu1 %v42639_v27  ;;  %v13577_v19 = vsub.f32 %v13575_v50, %v13576_v20  ;;  %v13113_v27 = vand.u32 4294901760, %v13112_v31 }
 0xbab   :  { %37925 = vmatprep.mubr.msk.f32.mxu0 %vm41345_vm0, %v41346_v1  ;;  %37955 = vmatprep.mubr.msk.f32.mxu1 %vm41345_vm0, %v41346_v1 }
 0xbac   :  { %37958 = vmatprep.subr.mxu0 %v41346_v1  ;;  %37988 = vmatprep.subr.mxu1 %v41346_v1 }
 0xbb1   :  { %37926 = vmatmul.mubr.f32.vlgmr.msra.gmra.mrb[28].mxu0 %v42630_v48  ;;  %37956 = vmatmul.mubr.f32.vlgmr.msra.gmra.mrb[28].mxu1 %v42632_v17  ;;  %v13578_v48 = vand.u32 4294901760, %v13577_v19  ;;  %v13944_v17 = vpop.permute.xlu0 %13943 }
 0xbb2   :  { %37959 = vmatpush3.xpose.msra.mxu0 %v42723_v42  ;;  %37989 = vmatpush3.xpose.msra.mxu1 %v42725_v36  ;;  %v13947_v55 = vsel %vm50_vm1, %v13944_v17, 0 }
 0xbb3   :  { %37960 = vmatprep.mubr.msk.f32.mxu0 %vm41345_vm0, %v41346_v1  ;;  %37963 = vmatprep.subr.mxu0 %v41346_v1  ;;  %v14017_v56 = vand.u32 4294901760, %v13947_v55 }
 0xbb4   :  { %37990 = vmatprep.mubr.msk.f32.mxu1 %vm41345_vm0, %v41346_v1  ;;  %37993 = vmatprep.subr.mxu1 %v41346_v1 }
 0xbb5   :  { %37961 = vmatmul.mubr.f32.vlgmr.msra.gmra.mrb[30].mxu0 %v13113_v27  ;;  %37991 = vmatmul.mubr.f32.vlgmr.msra.gmra.mrb[30].mxu1 %v13567_v45  ;;  %v13946_v60 = vpop.permute.xlu0 %13945  ;;  %v14018_v59 = vsub.f32 %v13947_v55, %v14017_v56 }
 0xbb6   :  { %37964 = vmatpush3.xpose.msra.mxu0 %v13124_v23  ;;  %37994 = vmatpush3.xpose.msra.mxu1 %v13578_v48  ;;  %v13949_v25 = vsel %vm50_vm1, %v13946_v60, 0 }
 0xbb7   :  { %37965 = vmatprep.mubr.msk.f32.mxu0 %vm41345_vm0, %v41346_v1  ;;  %37968 = vmatprep.subr.mxu0 %v41346_v1  ;;  %v13952_v58 = vand.u32 4294901760, %v13949_v25  ;;  %v14019_v29 = vand.u32 4294901760, %v14018_v59 }
 0xbb8   :  { %37995 = vmatprep.mubr.msk.f32.mxu1 %vm41345_vm0, %v41346_v1  ;;  %37998 = vmatprep.subr.mxu1 %v41346_v1 }
 0xbb9   :  { %v14029_v34 = vsub.f32 %v13949_v25, %v13952_v58  ;;  %v14020_v53 = vsub.f32 %v14018_v59, %v14019_v29 }
 0xbbb   :  { %v14030_v16 = vand.u32 4294901760, %v14029_v34  ;;  %v14021_v11 = vand.u32 4294901760, %v14020_v53 }
 0xbbd   :  { %37966 = vmatmul.mubr.f32.vlgmr.msra.gmra.mrb[30].mxu0 %v42716_v40  ;;  %37996 = vmatmul.mubr.f32.vlgmr.msra.gmra.mrb[30].mxu1 %v42718_v39  ;;  %v14031_v12 = vsub.f32 %v14029_v34, %v14030_v16 }
 0xbbe   :  { %37969 = vmatpush3.xpose.msra.mxu0 %v13121_v6  ;;  %37999 = vmatpush3.xpose.msra.mxu1 %v13575_v50  ;;  %v42824_v50 = vld [vmem:[#allocation4 + $0x1b8] sm:$0xf] }
 0xbbf   :  { %37970 = vmatprep.mubr.msk.f32.mxu0 %vm41345_vm0, %v41346_v1  ;;  %37973 = vmatprep.subr.mxu0 %v41346_v1  ;;  %v14032_v37 = vand.u32 4294901760, %v14031_v12 }
 0xbc0   :  { %38000 = vmatprep.mubr.msk.f32.mxu1 %vm41345_vm0, %v41346_v1  ;;  %38003 = vmatprep.subr.mxu1 %v41346_v1 }
 0xbc5   :  { %37971 = vmatmul.mubr.f32.vlgmr.msra.gmra.mrb[30].mxu0 %v13110_v57  ;;  %38001 = vmatmul.mubr.f32.vlgmr.msra.gmra.mrb[30].mxu1 %v13564_v22 }
 0xbc6   :  { %37974 = vmatpush3.xpose.msra.mxu0 %v42723_v42  ;;  %38004 = vmatpush3.xpose.msra.mxu1 %v42725_v36 }
 0xbc7   :  { %37975 = vmatprep.mubr.msk.f32.mxu0 %vm41345_vm0, %v41346_v1  ;;  %37978 = vmatprep.subr.mxu0 %v41346_v1 }
 0xbc8   :  { %38005 = vmatprep.mubr.msk.f32.mxu1 %vm41345_vm0, %v41346_v1  ;;  %38008 = vmatprep.subr.mxu1 %v41346_v1 }
 0xbcd   :  { %37976 = vmatmul.mubr.f32.vlgmr.msra.gmra.mrb[30].mxu0 %v13111_v52  ;;  %38006 = vmatmul.mubr.f32.vlgmr.msra.gmra.mrb[30].mxu1 %v13565_v7 }
 0xbce   :  { %37979 = vmatpush3.xpose.msra.mxu0 %v13122_v8  ;;  %38009 = vmatpush3.xpose.msra.mxu1 %v13576_v20 }
 0xbcf   :  { %37980 = vmatprep.mubr.msk.f32.mxu0 %vm41345_vm0, %v41346_v1  ;;  %37983 = vmatprep.subr.mxu0 %v41346_v1 }
 0xbd0   :  { %38010 = vmatprep.mubr.msk.f32.mxu1 %vm41345_vm0, %v41346_v1  ;;  %38013 = vmatprep.subr.mxu1 %v41346_v1 }
 0xbd4   :  { %v8937_v24 = vpop.f32.mrb[20].mxu0  ;;  %v9388_v41 = vpop.f32.mrb[20].mxu1 }
 0xbd5   :  { %v10754_v54 = vcombine.low %v42734_v51, %v8937_v24  ;;  %v37687_v63 = vpop.f32.mrb[21].mxu0  ;;  %v37717_v3 = vpop.f32.mrb[21].mxu1  ;;  %37981 = vmatmul.mubr.f32.vlgmr.msra.gmra.mrb[30].mxu0 %v42716_v40  ;;  %38011 = vmatmul.mubr.f32.vlgmr.msra.gmra.mrb[30].mxu1 %v42718_v39 }
 0xbd6   :  { %37984 = vmatpush3.xpose.msra.mxu0 %v42723_v42  ;;  %38014 = vmatpush3.xpose.msra.mxu1 %v42725_v36 }
 0xbd7   :  { %10762 = vst.msk [vmem:[#allocation3 + $0x8] sm:$0xff] %vm50_vm1, %v10754_v54  ;;  %37985 = vmatprep.mubr.msk.f32.mxu0 %vm41345_vm0, %v41346_v1  ;;  %38015 = vmatprep.mubr.msk.f32.mxu1 %vm41345_vm0, %v41346_v1 }
 0xbd8   :  { %38018 = vmatprep.subr.mxu0 %v41346_v1  ;;  %38048 = vmatprep.subr.mxu1 %v41346_v1 }
 0xbdd   :  { %37986 = vmatmul.mubr.f32.vlgmr.msra.gmra.mrb[30].mxu0 %v42716_v40  ;;  %38016 = vmatmul.mubr.f32.vlgmr.msra.gmra.mrb[30].mxu1 %v42718_v39 }
 0xbde   :  { %38019 = vmatpush3.xpose.msra.mxu0 %v13952_v58  ;;  %38020 = vmatprep.mubr.msk.f32.mxu0 %vm41345_vm0, %v41346_v1 }
 0xbdf   :  { %38023 = vmatprep.subr.mxu0 %v41346_v1  ;;  %38050 = vmatprep.mubr.msk.f32.mxu1 %vm41345_vm0, %v41346_v1 }
 0xbe1   :  { %38021 = vmatmul.mubr.f32.vlgmr.msra.gmra.mrb[32].mxu0 %v14021_v11 }
 0xbe2   :  { %38024 = vmatpush3.xpose.msra.mxu0 %v14032_v37  ;;  %38025 = vmatprep.mubr.msk.f32.mxu0 %vm41345_vm0, %v41346_v1 }
 0xbe3   :  { %38028 = vmatprep.subr.mxu0 %v41346_v1 }
 0xbe9   :  { %38026 = vmatmul.mubr.f32.vlgmr.msra.gmra.mrb[32].mxu0 %v14017_v56 }
 0xbea   :  { %38029 = vmatpush3.xpose.msra.mxu0 %v14029_v34  ;;  %38030 = vmatprep.mubr.msk.f32.mxu0 %vm41345_vm0, %v41346_v1 }
 0xbeb   :  { %38033 = vmatprep.subr.mxu0 %v41346_v1 }
 0xbf1   :  { %38031 = vmatmul.mubr.f32.vlgmr.msra.gmra.mrb[32].mxu0 %v14018_v59 }
 0xbf2   :  { %38034 = vmatpush3.xpose.msra.mxu0 %v13952_v58  ;;  %38035 = vmatprep.mubr.msk.f32.mxu0 %vm41345_vm0, %v41346_v1 }
 0xbf3   :  { %38038 = vmatprep.subr.mxu0 %v41346_v1 }
 0xbf9   :  { %38036 = vmatmul.mubr.f32.vlgmr.msra.gmra.mrb[32].mxu0 %v14019_v29 }
 0xbfa   :  { %38039 = vmatpush3.xpose.msra.mxu0 %v14030_v16  ;;  %38040 = vmatprep.mubr.msk.f32.mxu0 %vm41345_vm0, %v41346_v1 }
 0xbfb   :  { %38043 = vmatprep.subr.mxu0 %v41346_v1 }
 0xc00   :  { %v9839_v49 = vpop.f32.mrb[22].mxu0  ;;  %v10290_v43 = vpop.f32.mrb[22].mxu1 }
 0xc01   :  { %v10755_v2 = vcombine.low %v9388_v41, %v9839_v49  ;;  %v37747_v32 = vpop.f32.mrb[23].mxu0  ;;  %v37777_v40 = vpop.f32.mrb[23].mxu1  ;;  %38041 = vmatmul.mubr.f32.vlgmr.msra.gmra.mrb[32].mxu0 %v14017_v56 }
 0xc02   :  { %38044 = vmatpush3.xpose.msra.mxu0 %v13952_v58  ;;  %38045 = vmatprep.mubr.msk.f32.mxu0 %vm41345_vm0, %v41346_v1 }
 0xc03   :  { %10763 = vst.msk [vmem:[#allocation3 + $0x10] sm:$0xff] %vm50_vm1, %v10755_v2  ;;  %38078 = vmatprep.subr.mxu0 %v41346_v1 }
 0xc09   :  { %38046 = vmatmul.mubr.f32.vlgmr.msra.gmra.mrb[32].mxu0 %v14017_v56 }
 0xc0a   :  { %38080 = vmatprep.mubr.msk.f32.mxu0 %vm41345_vm0, %v41346_v1 }
 0xc2c   :  { %v10741_v39 = vpop.f32.mrb[24].mxu0  ;;  %v11215_v42 = vpop.f32.mrb[24].mxu1 }
 0xc2d   :  { %v10756_v36 = vcombine.low %v10290_v43, %v10741_v39  ;;  %v14397_v57 = vmul.f32 0.31622776, %v11215_v42  ;;  %v37807_v22 = vpop.f32.mrb[25].mxu0  ;;  %v37837_v6 = vpop.f32.mrb[25].mxu1 }
 0xc2f   :  { %10764 = vst.msk [vmem:[#allocation3 + $0x18] sm:$0xff] %vm50_vm1, %v10756_v36  ;;  %v14405_v51 = vadd.f32 %v42824_v50, %v14397_v57 }
 0xc31   :  { %v14413_v5 = vsel %vm7046_vm8, %v14405_v51, -inf }
 0xc32   :  { %14414 = vmax.xlane.f32.xlu1 %v14413_v5 }
 0xc58   :  { %v11669_v52 = vpop.f32.mrb[26].mxu0  ;;  %v12123_v7 = vpop.f32.mrb[26].mxu1 }
 0xc59   :  { %v14398_v8 = vmul.f32 0.31622776, %v11669_v52  ;;  %v14399_v20 = vmul.f32 0.31622776, %v12123_v7  ;;  %v37867_v31 = vpop.f32.mrb[27].mxu0  ;;  %v37897_v14 = vpop.f32.mrb[27].mxu1 }
 0xc5b   :  { %v14406_v44 = vadd.f32 %v42824_v50, %v14398_v8  ;;  %v14407_v27 = vadd.f32 %v42824_v50, %v14399_v20 }
 0xc5d   :  { %v14416_v19 = vsel %vm7046_vm8, %v14406_v44, -inf  ;;  %v14419_v45 = vsel %vm7046_vm8, %v14407_v27, -inf }
 0xc5e   :  { %14417 = vmax.xlane.f32.xlu0 %v14416_v19 }
 0xc62   :  { %14420 = vmax.xlane.f32.xlu0 %v14419_v45 }
 0xc84   :  { %v12577_v23 = vpop.f32.mrb[28].mxu0  ;;  %v13031_v48 = vpop.f32.mrb[28].mxu1 }
 0xc85   :  { %v14400_v17 = vmul.f32 0.31622776, %v12577_v23  ;;  %v14401_v60 = vmul.f32 0.31622776, %v13031_v48  ;;  %v37927_v55 = vpop.f32.mrb[29].mxu0  ;;  %v37957_v25 = vpop.f32.mrb[29].mxu1 }
 0xc87   :  { %v42833_v56 = vadd.f32 %v42824_v50, %v14401_v60  ;;  %v14408_v58 = vadd.f32 %v42824_v50, %v14400_v17 }
 0xc89   :  { %v14425_v59 = vsel %vm7046_vm8, %v42833_v56, -inf  ;;  %v14422_v34 = vsel %vm7046_vm8, %v14408_v58, -inf }
 0xc8a   :  { %14426 = vmax.xlane.f32.xlu0 %v14425_v59  ;;  %14423 = vmax.xlane.f32.xlu1 %v14422_v34 }
 0xcb0   :  { %v13485_v24 = vpop.f32.mrb[30].mxu0  ;;  %v13939_v41 = vpop.f32.mrb[30].mxu1 }
 0xcb1   :  { %v14402_v54 = vmul.f32 0.31622776, %v13485_v24  ;;  %v37987_v63 = vpop.f32.mrb[31].mxu0  ;;  %v38017_v3 = vpop.f32.mrb[31].mxu1 }
 0xcb3   :  { %v14410_v29 = vadd.f32 %v42824_v50, %v14402_v54 }
 0xcb5   :  { %v14428_v16 = vsel %vm7046_vm8, %v14410_v29, -inf }
 0xcb6   :  { %14429 = vmax.xlane.f32.xlu1 %v14428_v16 }
 0xcbf   :  { %v14415_v53 = vpop.xlane.xlu1 %14414 }
 0xcc0   :  { %v14437_v12 = vsub.f32 %v14405_v51, %v14415_v53 }
 0xcc2   :  { %v14445_v11 = vmul.f32 1.442695, %v14437_v12 }
 0xcc4   :  { %41163 = vpow2.f32 %v14445_v11 }
 0xcce   :  { %v41164_v37 = vpop.eup %41163 }
 0xccf   :  { %v14461_v49 = vsel %vm7046_vm8, %v41164_v37, 0.0 }
 0xcd0   :  { %14462 = vadd.xlane.f32.xlu0 %v14461_v49 }
 0xcdc   :  { %v14393_v43 = vpop.f32.mrb[32].mxu0 }
 0xcdd   :  { %v38047_v2 = vpop.f32.mrb[33].mxu0  ;;  %v14404_v51 = vmul.f32 0.31622776, %v14393_v43 }
 0xcdf   :  { %v42849_v5 = vadd.f32 %v42824_v50, %v14404_v51 }
 0xce1   :  { %v14434_v52 = vsel %vm7046_vm8, %v42849_v5, -inf }
 0xce6   :  { %14501 = vrot.lane.b32.xlu0 %v42034_v46, %s41348_s15 }
 0xceb   :  { %v14418_v32 = vpop.xlane.xlu0 %14417 }
 0xcec   :  { %v14438_v40 = vsub.f32 %v14406_v44, %v14418_v32  ;;  %v14403_v44 = vmul.f32 0.31622776, %v13939_v41 }
 0xcee   :  { %v14447_v39 = vmul.f32 1.442695, %v14438_v40  ;;  %v42862_v19 = vadd.f32 %v42824_v50, %v14403_v44 }
 0xcef   :  { %v14421_v42 = vpop.xlane.xlu0 %14420 }
 0xcf0   :  { %41165 = vpow2.f32 %v14447_v39  ;;  %v14439_v36 = vsub.f32 %v14407_v27, %v14421_v42  ;;  %v14431_v27 = vsel %vm7046_vm8, %v42862_v19, -inf }
 0xcf2   :  { %v14449_v57 = vmul.f32 1.442695, %v14439_v36 }
 0xcf4   :  { %41167 = vpow2.f32 %v14449_v57 }
 0xcfa   :  { %v42844_v22 = vpop.eup %41165 }
 0xcfb   :  { %v14464_v6 = vsel %vm7046_vm8, %v42844_v22, 0.0 }
 0xcfc   :  { %14465 = vadd.xlane.f32.xlu1 %v14464_v6 }
 0xcfe   :  { %v42853_v7 = vpop.eup %41167 }
 0xcff   :  { %v14467_v8 = vsel %vm7046_vm8, %v42853_v7, 0.0 }
 0xd05   :  { %14435 = vmax.xlane.f32.xlu0 %v14434_v52 }
 0xd09   :  { %14468 = vadd.xlane.f32.xlu0 %v14467_v8 }
 0xd0d   :  { %14954 = vrot.lane.b32.xlu1 %v42139_v33, %s41348_s15 }
 0xd17   :  { %v14424_v20 = vpop.xlane.xlu1 %14423  ;;  %v14427_v55 = vpop.xlane.xlu0 %14426 }
 0xd18   :  { %v14440_v31 = vsub.f32 %v14408_v58, %v14424_v20  ;;  %v14441_v58 = vsub.f32 %v42833_v56, %v14427_v55 }
 0xd1a   :  { %v14451_v14 = vmul.f32 1.442695, %v14440_v31  ;;  %v14453_v59 = vmul.f32 1.442695, %v14441_v58 }
 0xd1c   :  { %41169 = vpow2.f32 %v14451_v14 }
 0xd1f   :  { %15407 = vrot.lane.b32.xlu0 %v41868_v21, %s41348_s15 }
 0xd26   :  { %v42866_v45 = vpop.eup %41169 }
 0xd27   :  { %v14470_v23 = vsel %vm7046_vm8, %v42866_v45, 0.0 }
 0xd31   :  { %14432 = vmax.xlane.f32.xlu1 %v14431_v27 }
 0xd35   :  { %14471 = vadd.xlane.f32.xlu1 %v14470_v23 }
 0xd43   :  { %v14430_v48 = vpop.xlane.xlu1 %14429 }
 0xd44   :  { %v14442_v17 = vsub.f32 %v14410_v29, %v14430_v48 }
 0xd46   :  { %v14455_v60 = vmul.f32 1.442695, %v14442_v17  ;;  %15860 = vrot.lane.b32.xlu1 %v42273_v47, %s41348_s15 }
 0xd48   :  { %41171 = vpow2.f32 %v14455_v60 }
 0xd49   :  { %41173 = vpow2.f32 %v14453_v59 }
 0xd52   :  { %v42872_v50 = vpop.eup %41171 }
 0xd53   :  { %v14476_v25 = vsel %vm7046_vm8, %v42872_v50, 0.0  ;;  %v42878_v63 = vpop.eup %41173 }
 0xd54   :  { %14477 = vadd.xlane.f32.xlu0 %v14476_v25  ;;  %v14473_v56 = vsel %vm7046_vm8, %v42878_v63, 0.0 }
 0xd5d   :  { %v14463_v34 = vpop.xlane.xlu0 %14462 }
 0xd5e   :  { %41175 = vrcp.f32 %v14463_v34 }
 0xd61   :  { %v14502_v24 = vpop.permute.xlu0 %14501 }
 0xd62   :  { %v14506_v41 = vsel %vm7139_vm7, %v14502_v24, 0 }
 0xd63   :  { %v14509_v54 = vand.u32 4294901760, %v14506_v41 }
 0xd65   :  { %38049 = vmatpush3.msra.mxu1 %v14509_v54  ;;  %v14586_v16 = vsub.f32 %v14506_v41, %v14509_v54 }
 0xd66   :  { %38053 = vmatprep.subr.mxu1 %v41346_v1 }
 0xd67   :  { %v14587_v11 = vand.u32 4294901760, %v14586_v16 }
 0xd68   :  { %v41176_v3 = vpop.eup %41175 }
 0xd69   :  { %v14493_v29 = vmul.f32 %v41176_v3, %v41164_v37  ;;  %v14588_v2 = vsub.f32 %v14586_v16, %v14587_v11 }
 0xd6a   :  { %14474 = vadd.xlane.f32.xlu1 %v14473_v56  ;;  %16313 = vrot.lane.b32.xlu0 %v41881_v4, %s41348_s15 }
 0xd6b   :  { %v14504_v53 = vsel %vm7135_vm9, %v14493_v29, 0  ;;  %v14589_v39 = vand.u32 4294901760, %v14588_v2 }
 0xd6c   :  { %v14574_v12 = vand.u32 4294901760, %v14504_v53 }
 0xd6e   :  { %v14575_v49 = vsub.f32 %v14504_v53, %v14574_v12 }
 0xd70   :  { %v14576_v43 = vand.u32 4294901760, %v14575_v49 }
 0xd72   :  { %v14577_v32 = vsub.f32 %v14575_v49, %v14576_v43 }
 0xd74   :  { %v14578_v40 = vand.u32 4294901760, %v14577_v32 }
 0xd76   :  { %38051 = vmatmul.mubr.f32.vlgmr.msra.gmra.mrb[32].mxu1 %v14578_v40 }
 0xd77   :  { %38054 = vmatpush3.msra.mxu1 %v14589_v39  ;;  %38055 = vmatprep.mubr.msk.f32.mxu1 %vm41345_vm0, %v41346_v1 }
 0xd78   :  { %38058 = vmatprep.subr.mxu1 %v41346_v1 }
 0xd7b   :  { %16766 = vrot.lane.b32.xlu1 %v42368_v62, %s41348_s15 }
 0xd7e   :  { %38056 = vmatmul.mubr.f32.vlgmr.msra.gmra.mrb[32].mxu1 %v14574_v12 }
 0xd7f   :  { %38059 = vmatpush3.msra.mxu1 %v14586_v16  ;;  %38060 = vmatprep.mubr.msk.f32.mxu1 %vm41345_vm0, %v41346_v1 }
 0xd80   :  { %38063 = vmatprep.subr.mxu1 %v41346_v1 }
 0xd86   :  { %38061 = vmatmul.mubr.f32.vlgmr.msra.gmra.mrb[32].mxu1 %v14575_v49 }
 0xd87   :  { %38064 = vmatpush3.msra.mxu1 %v14509_v54  ;;  %38065 = vmatprep.mubr.msk.f32.mxu1 %vm41345_vm0, %v41346_v1 }
 0xd88   :  { %38068 = vmatprep.subr.mxu1 %v41346_v1 }
 0xd89   :  { %v14466_v37 = vpop.xlane.xlu1 %14465 }
 0xd8a   :  { %41177 = vrcp.f32 %v14466_v37 }
 0xd8d   :  { %v14955_v42 = vpop.permute.xlu1 %14954 }
 0xd8e   :  { %v14959_v36 = vsel %vm7139_vm7, %v14955_v42, 0  ;;  %38066 = vmatmul.mubr.f32.vlgmr.msra.gmra.mrb[32].mxu1 %v14576_v43 }
 0xd8f   :  { %v42898_v57 = vand.u32 4294901760, %v14959_v36  ;;  %38069 = vmatpush3.msra.mxu1 %v14587_v11  ;;  %38070 = vmatprep.mubr.msk.f32.mxu1 %vm41345_vm0, %v41346_v1 }
 0xd90   :  { %38073 = vmatprep.subr.mxu1 %v41346_v1 }
 0xd91   :  { %38079 = vmatpush3.msra.mxu0 %v42898_v57  ;;  %v15039_v20 = vsub.f32 %v14959_v36, %v42898_v57 }
 0xd92   :  { %v14436_v6 = vpop.xlane.xlu0 %14435  ;;  %38083 = vmatprep.subr.mxu0 %v41346_v1 }
 0xd93   :  { %v14444_v51 = vsub.f32 %v42849_v5, %v14436_v6  ;;  %v15040_v5 = vand.u32 4294901760, %v15039_v20 }
 0xd94   :  { %v41178_v52 = vpop.eup %41177 }
 0xd95   :  { %v14494_v8 = vmul.f32 %v41178_v52, %v42844_v22  ;;  %v14459_v31 = vmul.f32 1.442695, %v14444_v51  ;;  %v15041_v55 = vsub.f32 %v15039_v20, %v15040_v5 }
 0xd96   :  { %38071 = vmatmul.mubr.f32.vlgmr.msra.gmra.mrb[32].mxu1 %v14574_v12  ;;  %v14469_v14 = vpop.xlane.xlu0 %14468 }
 0xd97   :  { %41179 = vpow2.f32 %v14459_v31  ;;  %38074 = vmatpush3.msra.mxu1 %v14509_v54  ;;  %38075 = vmatprep.mubr.msk.f32.mxu1 %vm41345_vm0, %v41346_v1  ;;  %v14957_v44 = vsel %vm7135_vm9, %v14494_v8, 0  ;;  %v15042_v34 = vand.u32 4294901760, %v15041_v55 }
 0xd98   :  { %41181 = vrcp.f32 %v14469_v14  ;;  %38108 = vmatprep.subr.mxu1 %v41346_v1  ;;  %v42912_v27 = vand.u32 4294901760, %v14957_v44 }
 0xd9a   :  { %v15408_v23 = vpop.permute.xlu0 %15407  ;;  %v15028_v22 = vsub.f32 %v14957_v44, %v42912_v27 }
 0xd9b   :  { %v15412_v48 = vsel %vm7139_vm7, %v15408_v23, 0 }
 0xd9c   :  { %v42916_v17 = vand.u32 4294901760, %v15412_v48  ;;  %v15029_v60 = vand.u32 4294901760, %v15028_v22 }
 0xd9e   :  { %38076 = vmatmul.mubr.f32.vlgmr.msra.gmra.mrb[32].mxu1 %v14574_v12  ;;  %v15030_v25 = vsub.f32 %v15028_v22, %v15029_v60  ;;  %v15492_v3 = vsub.f32 %v15412_v48, %v42916_v17 }
 0xd9f   :  { %38109 = vmatpush3.msra.mxu1 %v42916_v17  ;;  %38110 = vmatprep.mubr.msk.f32.mxu1 %vm41345_vm0, %v41346_v1 }
 0xda0   :  { %v15031_v58 = vand.u32 4294901760, %v15030_v25  ;;  %38113 = vmatprep.subr.mxu1 %v41346_v1  ;;  %v15493_v56 = vand.u32 4294901760, %v15492_v3 }
 0xda1   :  { %v42922_v59 = vpop.eup %41179 }
 0xda2   :  { %v41182_v24 = vpop.eup %41181  ;;  %38081 = vmatmul.mubr.f32.vlgmr.msra.gmra.mrb[34].mxu0 %v15031_v58  ;;  %v14482_v41 = vsel %vm7046_vm8, %v42922_v59, 0.0 }
 0xda3   :  { %v14495_v54 = vmul.f32 %v41182_v24, %v42853_v7  ;;  %38084 = vmatpush3.msra.mxu0 %v15042_v34  ;;  %14483 = vadd.xlane.f32.xlu0 %v14482_v41  ;;  %v15494_v7 = vsub.f32 %v15492_v3, %v15493_v56 }
 0xda4   :  { %38085 = vmatprep.mubr.msk.f32.mxu0 %vm41345_vm0, %v41346_v1  ;;  %38088 = vmatprep.subr.mxu0 %v41346_v1 }
 0xda5   :  { %v15410_v29 = vsel %vm7135_vm9, %v14495_v54, 0  ;;  %v15495_v43 = vand.u32 4294901760, %v15494_v7 }
 0xda6   :  { %v42932_v16 = vand.u32 4294901760, %v15410_v29 }
 0xda8   :  { %v15481_v53 = vsub.f32 %v15410_v29, %v42932_v16 }
 0xdaa   :  { %38086 = vmatmul.mubr.f32.vlgmr.msra.gmra.mrb[34].mxu0 %v42912_v27  ;;  %v15482_v12 = vand.u32 4294901760, %v15481_v53 }
 0xdab   :  { %38089 = vmatpush3.msra.mxu0 %v15039_v20  ;;  %38090 = vmatprep.mubr.msk.f32.mxu0 %vm41345_vm0, %v41346_v1 }
 0xdac   :  { %v15483_v11 = vsub.f32 %v15481_v53, %v15482_v12  ;;  %38093 = vmatprep.subr.mxu0 %v41346_v1 }
 0xdae   :  { %v15484_v49 = vand.u32 4294901760, %v15483_v11 }
 0xdb0   :  { %38111 = vmatmul.mubr.f32.vlgmr.msra.gmra.mrb[34].mxu1 %v15484_v49 }
 0xdb1   :  { %38114 = vmatpush3.msra.mxu1 %v15495_v43  ;;  %38115 = vmatprep.mubr.msk.f32.mxu1 %vm41345_vm0, %v41346_v1 }
 0xdb2   :  { %38091 = vmatmul.mubr.f32.vlgmr.msra.gmra.mrb[34].mxu0 %v15028_v22  ;;  %38118 = vmatprep.subr.mxu1 %v41346_v1 }
 0xdb3   :  { %38094 = vmatpush3.msra.mxu0 %v42898_v57  ;;  %38095 = vmatprep.mubr.msk.f32.mxu0 %vm41345_vm0, %v41346_v1 }
 0xdb4   :  { %38098 = vmatprep.subr.mxu0 %v41346_v1 }
 0xdb8   :  { %38116 = vmatmul.mubr.f32.vlgmr.msra.gmra.mrb[34].mxu1 %v42932_v16 }
 0xdb9   :  { %38119 = vmatpush3.msra.mxu1 %v15492_v3  ;;  %17219 = vrot.lane.b32.xlu0 %v41894_v61, %s41348_s15 }
 0xdba   :  { %38096 = vmatmul.mubr.f32.vlgmr.msra.gmra.mrb[34].mxu0 %v15029_v60  ;;  %38120 = vmatprep.mubr.msk.f32.mxu1 %vm41345_vm0, %v41346_v1 }
 0xdbb   :  { %38099 = vmatpush3.msra.mxu0 %v15040_v5  ;;  %38123 = vmatprep.subr.mxu1 %v41346_v1 }
 0xdbc   :  { %38100 = vmatprep.mubr.msk.f32.mxu0 %vm41345_vm0, %v41346_v1  ;;  %38103 = vmatprep.subr.mxu0 %v41346_v1 }
 0xdbd   :  { %18608 = vrot.lane.b32.xlu0 %v41859_v15, %s41353_s21 }
 0xdbe   :  { %v14433_v2 = vpop.xlane.xlu1 %14432 }
 0xdbf   :  { %v14443_v32 = vsub.f32 %v42862_v19, %v14433_v2 }
 0xdc0   :  { %38121 = vmatmul.mubr.f32.vlgmr.msra.gmra.mrb[34].mxu1 %v15481_v53 }
 0xdc1   :  { %v14457_v40 = vmul.f32 1.442695, %v14443_v32  ;;  %38124 = vmatpush3.msra.mxu1 %v42916_v17  ;;  %18610 = vrot.lane.b32.xlu0 %v41859_v15, %s41349_s16 }
 0xdc2   :  { %38101 = vmatmul.mubr.f32.vlgmr.msra.gmra.mrb[34].mxu0 %v42912_v27  ;;  %v14472_v39 = vpop.xlane.xlu1 %14471  ;;  %38125 = vmatprep.mubr.msk.f32.mxu1 %vm41345_vm0, %v41346_v1 }
 0xdc3   :  { %41183 = vpow2.f32 %v14457_v40  ;;  %38104 = vmatpush3.msra.mxu0 %v42898_v57  ;;  %38128 = vmatprep.subr.mxu1 %v41346_v1 }
 0xdc4   :  { %41185 = vrcp.f32 %v14472_v39  ;;  %38105 = vmatprep.mubr.msk.f32.mxu0 %vm41345_vm0, %v41346_v1  ;;  %38138 = vmatprep.subr.mxu0 %v41346_v1 }
 0xdc5   :  { %19516 = vrot.lane.b32.xlu0 %v41874_v26, %s41353_s21 }
 0xdc6   :  { %v15861_v19 = vpop.permute.xlu1 %15860 }
 0xdc7   :  { %v15865_v37 = vsel %vm7139_vm7, %v15861_v19, 0 }
 0xdc8   :  { %v42972_v42 = vand.u32 4294901760, %v15865_v37  ;;  %38126 = vmatmul.mubr.f32.vlgmr.msra.gmra.mrb[34].mxu1 %v15482_v12 }
 0xdc9   :  { %38129 = vmatpush3.msra.mxu1 %v15493_v56  ;;  %19518 = vrot.lane.b32.xlu0 %v41874_v26, %s41349_s16 }
 0xdca   :  { %38106 = vmatmul.mubr.f32.vlgmr.msra.gmra.mrb[34].mxu0 %v42912_v27  ;;  %38130 = vmatprep.mubr.msk.f32.mxu1 %vm41345_vm0, %v41346_v1  ;;  %v15945_v52 = vsub.f32 %v15865_v37, %v42972_v42 }
 0xdcb   :  { %38139 = vmatpush3.msra.mxu0 %v42972_v42  ;;  %38133 = vmatprep.subr.mxu1 %v41346_v1 }
 0xdcc   :  { %38140 = vmatprep.mubr.msk.f32.mxu0 %vm41345_vm0, %v41346_v1  ;;  %38143 = vmatprep.subr.mxu0 %v41346_v1 }
 0xdcd   :  { %v42984_v36 = vpop.eup %41183  ;;  %20424 = vrot.lane.b32.xlu0 %v41887_v30, %s41353_s21 }
 0xdce   :  { %v41186_v57 = vpop.eup %41185  ;;  %v14479_v6 = vsel %vm7046_vm8, %v42984_v36, 0.0 }
 0xdcf   :  { %v14496_v51 = vmul.f32 %v41186_v57, %v42866_v45  ;;  %14480 = vadd.xlane.f32.xlu1 %v14479_v6  ;;  %v15946_v45 = vand.u32 4294901760, %v15945_v52 }
 0xdd0   :  { %38131 = vmatmul.mubr.f32.vlgmr.msra.gmra.mrb[34].mxu1 %v42932_v16 }
 0xdd1   :  { %38134 = vmatpush3.msra.mxu1 %v42916_v17  ;;  %20426 = vrot.lane.b32.xlu0 %v41887_v30, %s41349_s16  ;;  %v15863_v8 = vsel %vm7135_vm9, %v14496_v51, 0  ;;  %v15947_v44 = vsub.f32 %v15945_v52, %v15946_v45 }
 0xdd2   :  { %38135 = vmatprep.mubr.msk.f32.mxu1 %vm41345_vm0, %v41346_v1  ;;  %v42999_v20 = vand.u32 4294901760, %v15863_v8  ;;  %38168 = vmatprep.subr.mxu1 %v41346_v1 }
 0xdd3   :  { %v15948_v23 = vand.u32 4294901760, %v15947_v44 }
 0xdd4   :  { %v15934_v31 = vsub.f32 %v15863_v8, %v42999_v20 }
 0xdd5   :  { %21332 = vrot.lane.b32.xlu0 %v41900_v13, %s41353_s21 }
 0xdd6   :  { %v15935_v14 = vand.u32 4294901760, %v15934_v31 }
 0xdd8   :  { %38136 = vmatmul.mubr.f32.vlgmr.msra.gmra.mrb[34].mxu1 %v42932_v16  ;;  %v15936_v27 = vsub.f32 %v15934_v31, %v15935_v14 }
 0xdd9   :  { %21334 = vrot.lane.b32.xlu0 %v41900_v13, %s41349_s16  ;;  %38170 = vmatprep.mubr.msk.f32.mxu1 %vm41345_vm0, %v41346_v1 }
 0xdda   :  { %v15937_v5 = vand.u32 4294901760, %v15936_v27 }
 0xddc   :  { %38141 = vmatmul.mubr.f32.vlgmr.msra.gmra.mrb[36].mxu0 %v15937_v5 }
 0xddd   :  { %38144 = vmatpush3.msra.mxu0 %v15948_v23  ;;  %38145 = vmatprep.mubr.msk.f32.mxu0 %vm41345_vm0, %v41346_v1 }
 0xdde   :  { %38148 = vmatprep.subr.mxu0 %v41346_v1 }
 0xde0   :  { %17672 = vrot.lane.b32.xlu1 %v42454_v0, %s41348_s15 }
 0xde1   :  { %v14478_v22 = vpop.xlane.xlu0 %14477 }
 0xde2   :  { %41187 = vrcp.f32 %v14478_v22 }
 0xde4   :  { %38146 = vmatmul.mubr.f32.vlgmr.msra.gmra.mrb[36].mxu0 %v42999_v20  ;;  %18154 = vrot.lane.b32.xlu1 %v41851_v10, %s41353_s21 }
 0xde5   :  { %38149 = vmatpush3.msra.mxu0 %v15945_v52  ;;  %v16314_v48 = vpop.permute.xlu0 %16313  ;;  %38150 = vmatprep.mubr.msk.f32.mxu0 %vm41345_vm0, %v41346_v1 }
 0xde6   :  { %v16318_v17 = vsel %vm7139_vm7, %v16314_v48, 0  ;;  %38153 = vmatprep.subr.mxu0 %v41346_v1 }
 0xde7   :  { %v43022_v60 = vand.u32 4294901760, %v16318_v17 }
 0xde8   :  { %18156 = vrot.lane.b32.xlu1 %v41851_v10, %s41349_s16 }
 0xde9   :  { %38169 = vmatpush3.msra.mxu1 %v43022_v60  ;;  %v16398_v7 = vsub.f32 %v16318_v17, %v43022_v60 }
 0xdea   :  { %38173 = vmatprep.subr.mxu1 %v41346_v1 }
 0xdeb   :  { %v16399_v39 = vand.u32 4294901760, %v16398_v7 }
 0xdec   :  { %v41188_v55 = vpop.eup %41187  ;;  %38151 = vmatmul.mubr.f32.vlgmr.msra.gmra.mrb[36].mxu0 %v15934_v31  ;;  %19062 = vrot.lane.b32.xlu1 %v41863_v18, %s41353_s21 }
 0xded   :  { %38154 = vmatpush3.msra.mxu0 %v42972_v42  ;;  %38155 = vmatprep.mubr.msk.f32.mxu0 %vm41345_vm0, %v41346_v1  ;;  %v14498_v25 = vmul.f32 %v41188_v55, %v42872_v50  ;;  %v16400_v37 = vsub.f32 %v16398_v7, %v16399_v39 }
 0xdee   :  { %38158 = vmatprep.subr.mxu0 %v41346_v1 }
 0xdef   :  { %v16769_v58 = vsel %vm7135_vm9, %v14498_v25, 0  ;;  %v16401_v6 = vand.u32 4294901760, %v16400_v37 }
 0xdf0   :  { %19064 = vrot.lane.b32.xlu1 %v41863_v18, %s41349_s16  ;;  %v43043_v34 = vand.u32 4294901760, %v16769_v58 }
 0xdf2   :  { %v16840_v50 = vsub.f32 %v16769_v58, %v43043_v34 }
 0xdf4   :  { %38156 = vmatmul.mubr.f32.vlgmr.msra.gmra.mrb[36].mxu0 %v15935_v14  ;;  %19970 = vrot.lane.b32.xlu1 %v41876_v28, %s41353_s21  ;;  %v16841_v29 = vand.u32 4294901760, %v16840_v50 }
 0xdf5   :  { %38159 = vmatpush3.msra.mxu0 %v15946_v45  ;;  %38160 = vmatprep.mubr.msk.f32.mxu0 %vm41345_vm0, %v41346_v1 }
 0xdf6   :  { %38163 = vmatprep.subr.mxu0 %v41346_v1  ;;  %v16842_v12 = vsub.f32 %v16840_v50, %v16841_v29 }
 0xdf7   :  { %v14475_v24 = vpop.xlane.xlu1 %14474 }
 0xdf8   :  { %41189 = vrcp.f32 %v14475_v24  ;;  %19972 = vrot.lane.b32.xlu1 %v41876_v28, %s41349_s16  ;;  %v16843_v32 = vand.u32 4294901760, %v16842_v12 }
 0xdfb   :  { %v16767_v41 = vpop.permute.xlu1 %16766 }
 0xdfc   :  { %38161 = vmatmul.mubr.f32.vlgmr.msra.gmra.mrb[36].mxu0 %v42999_v20  ;;  %v16771_v54 = vsel %vm7139_vm7, %v16767_v41, 0  ;;  %20878 = vrot.lane.b32.xlu1 %v41889_v35, %s41353_s21 }
 0xdfd   :  { %38164 = vmatpush3.msra.mxu0 %v42972_v42  ;;  %v16774_v3 = vand.u32 4294901760, %v16771_v54  ;;  %38165 = vmatprep.mubr.msk.f32.mxu0 %vm41345_vm0, %v41346_v1 }
 0xdfe   :  { %38198 = vmatprep.subr.mxu0 %v41346_v1 }
 0xdff   :  { %v16851_v16 = vsub.f32 %v16771_v54, %v16774_v3 }
 0xe00   :  { %20880 = vrot.lane.b32.xlu1 %v41889_v35, %s41349_s16 }
 0xe01   :  { %v16852_v56 = vand.u32 4294901760, %v16851_v16 }
 0xe02   :  { %v41190_v53 = vpop.eup %41189 }
 0xe03   :  { %v14497_v11 = vmul.f32 %v41190_v53, %v42878_v63  ;;  %v16853_v49 = vsub.f32 %v16851_v16, %v16852_v56 }
 0xe04   :  { %38166 = vmatmul.mubr.f32.vlgmr.msra.gmra.mrb[36].mxu0 %v42999_v20 }
 0xe05   :  { %38199 = vmatpush3.msra.mxu0 %v16774_v3  ;;  %38200 = vmatprep.mubr.msk.f32.mxu0 %vm41345_vm0, %v41346_v1  ;;  %v16854_v43 = vand.u32 4294901760, %v16853_v49  ;;  %v16316_v2 = vsel %vm7135_vm9, %v14497_v11, 0 }
 0xe06   :  { %38203 = vmatprep.subr.mxu0 %v41346_v1  ;;  %v16386_v40 = vand.u32 4294901760, %v16316_v2 }
 0xe08   :  { %38201 = vmatmul.mubr.f32.vlgmr.msra.gmra.mrb[38].mxu0 %v16843_v32  ;;  %v16387_v19 = vsub.f32 %v16316_v2, %v16386_v40 }
 0xe09   :  { %38204 = vmatpush3.msra.mxu0 %v16854_v43  ;;  %38205 = vmatprep.mubr.msk.f32.mxu0 %vm41345_vm0, %v41346_v1 }
 0xe0a   :  { %38208 = vmatprep.subr.mxu0 %v41346_v1  ;;  %v16388_v63 = vand.u32 4294901760, %v16387_v19 }
 0xe0c   :  { %v16389_v42 = vsub.f32 %v16387_v19, %v16388_v63 }
 0xe0e   :  { %v16390_v57 = vand.u32 4294901760, %v16389_v42 }
 0xe10   :  { %38206 = vmatmul.mubr.f32.vlgmr.msra.gmra.mrb[38].mxu0 %v43043_v34  ;;  %38171 = vmatmul.mubr.f32.vlgmr.msra.gmra.mrb[36].mxu1 %v16390_v57 }
 0xe11   :  { %38209 = vmatpush3.msra.mxu0 %v16851_v16  ;;  %38174 = vmatpush3.msra.mxu1 %v16401_v6 }
 0xe12   :  { %38210 = vmatprep.mubr.msk.f32.mxu0 %vm41345_vm0, %v41346_v1  ;;  %38213 = vmatprep.subr.mxu0 %v41346_v1 }
 0xe13   :  { %38175 = vmatprep.mubr.msk.f32.mxu1 %vm41345_vm0, %v41346_v1  ;;  %38178 = vmatprep.subr.mxu1 %v41346_v1 }
 0xe18   :  { %38211 = vmatmul.mubr.f32.vlgmr.msra.gmra.mrb[38].mxu0 %v16840_v50  ;;  %38176 = vmatmul.mubr.f32.vlgmr.msra.gmra.mrb[36].mxu1 %v16386_v40 }
 0xe19   :  { %38214 = vmatpush3.msra.mxu0 %v16774_v3  ;;  %38179 = vmatpush3.msra.mxu1 %v16398_v7 }
 0xe1a   :  { %38215 = vmatprep.mubr.msk.f32.mxu0 %vm41345_vm0, %v41346_v1  ;;  %38218 = vmatprep.subr.mxu0 %v41346_v1 }
 0xe1b   :  { %38180 = vmatprep.mubr.msk.f32.mxu1 %vm41345_vm0, %v41346_v1  ;;  %38183 = vmatprep.subr.mxu1 %v41346_v1 }
 0xe20   :  { %38216 = vmatmul.mubr.f32.vlgmr.msra.gmra.mrb[38].mxu0 %v16841_v29  ;;  %38181 = vmatmul.mubr.f32.vlgmr.msra.gmra.mrb[36].mxu1 %v16387_v19 }
 0xe21   :  { %38219 = vmatpush3.msra.mxu0 %v16852_v56  ;;  %38184 = vmatpush3.msra.mxu1 %v43022_v60 }
 0xe22   :  { %38220 = vmatprep.mubr.msk.f32.mxu0 %vm41345_vm0, %v41346_v1  ;;  %38223 = vmatprep.subr.mxu0 %v41346_v1 }
 0xe23   :  { %38185 = vmatprep.mubr.msk.f32.mxu1 %vm41345_vm0, %v41346_v1  ;;  %38188 = vmatprep.subr.mxu1 %v41346_v1 }
 0xe28   :  { %38221 = vmatmul.mubr.f32.vlgmr.msra.gmra.mrb[38].mxu0 %v43043_v34  ;;  %38186 = vmatmul.mubr.f32.vlgmr.msra.gmra.mrb[36].mxu1 %v16388_v63 }
 0xe29   :  { %38224 = vmatpush3.msra.mxu0 %v16774_v3  ;;  %38189 = vmatpush3.msra.mxu1 %v16399_v39 }
 0xe2a   :  { %38225 = vmatprep.mubr.msk.f32.mxu0 %vm41345_vm0, %v41346_v1  ;;  %38190 = vmatprep.mubr.msk.f32.mxu1 %vm41345_vm0, %v41346_v1 }
 0xe2b   :  { %38193 = vmatprep.subr.mxu1 %v41346_v1  ;;  %38258 = vmatprep.subr.mxu0 %v41346_v1 }
 0xe30   :  { %38226 = vmatmul.mubr.f32.vlgmr.msra.gmra.mrb[38].mxu0 %v43043_v34  ;;  %38191 = vmatmul.mubr.f32.vlgmr.msra.gmra.mrb[36].mxu1 %v16386_v40  ;;  %v14484_v51 = vpop.xlane.xlu0 %14483 }
 0xe31   :  { %38194 = vmatpush3.msra.mxu1 %v43022_v60  ;;  %38195 = vmatprep.mubr.msk.f32.mxu1 %vm41345_vm0, %v41346_v1  ;;  %41191 = vrcp.f32 %v14484_v51 }
 0xe32   :  { %38228 = vmatprep.subr.mxu1 %v41346_v1  ;;  %38260 = vmatprep.mubr.msk.f32.mxu0 %vm41345_vm0, %v41346_v1 }
 0xe34   :  { %v17220_v52 = vpop.permute.xlu0 %17219 }
 0xe35   :  { %v17224_v8 = vsel %vm7139_vm7, %v17220_v52, 0 }
 0xe36   :  { %v43103_v20 = vand.u32 4294901760, %v17224_v8 }
 0xe38   :  { %38196 = vmatmul.mubr.f32.vlgmr.msra.gmra.mrb[36].mxu1 %v16386_v40  ;;  %v43119_v34 = vsub.f32 %v17224_v8, %v43103_v20  ;;  %v18609_v49 = vpop.permute.xlu0 %18608 }
 0xe39   :  { %38229 = vmatpush3.msra.mxu1 %v43103_v20  ;;  %38230 = vmatprep.mubr.msk.f32.mxu1 %vm41345_vm0, %v41346_v1  ;;  %v18612_v32 = vsel %vm50_vm1, %v18609_v49, 0 }
 0xe3a   :  { %38233 = vmatprep.subr.mxu1 %v41346_v1  ;;  %v17305_v29 = vand.u32 4294901760, %v43119_v34  ;;  %v43145_v39 = vand.u32 4294901760, %v18612_v32 }
 0xe3b   :  { %v41192_v45 = vpop.eup %41191 }
 0xe3c   :  { %v14500_v31 = vmul.f32 %v41192_v45, %v42922_v59  ;;  %v17306_v56 = vsub.f32 %v43119_v34, %v17305_v29  ;;  %v18611_v2 = vpop.permute.xlu0 %18610  ;;  %v43156_v63 = vsub.f32 %v18612_v32, %v43145_v39 }
 0xe3d   :  { %v18614_v40 = vsel %vm50_vm1, %v18611_v2, 0 }
 0xe3e   :  { %v17675_v14 = vsel %vm7135_vm9, %v14500_v31, 0  ;;  %v17307_v43 = vand.u32 4294901760, %v17306_v56  ;;  %v43150_v19 = vand.u32 4294901760, %v18614_v40  ;;  %v18684_v57 = vand.u32 4294901760, %v43156_v63 }
 0xe3f   :  { %v43111_v44 = vand.u32 4294901760, %v17675_v14 }
 0xe40   :  { %v43159_v37 = vsub.f32 %v18614_v40, %v43150_v19  ;;  %v18685_v52 = vsub.f32 %v43156_v63, %v18684_v57 }
 0xe41   :  { %v17746_v27 = vsub.f32 %v17675_v14, %v43111_v44 }
 0xe42   :  { %v18695_v6 = vand.u32 4294901760, %v43159_v37 }
 0xe43   :  { %v17747_v5 = vand.u32 4294901760, %v17746_v27 }
 0xe44   :  { %v18696_v8 = vsub.f32 %v43159_v37, %v18695_v6 }
 0xe45   :  { %v17748_v22 = vsub.f32 %v17746_v27, %v17747_v5 }
 0xe47   :  { %v17749_v55 = vand.u32 4294901760, %v17748_v22 }
 0xe5c   :  { %v14481_v23 = vpop.xlane.xlu1 %14480 }
 0xe5d   :  { %41193 = vrcp.f32 %v14481_v23  ;;  %v18697_v23 = vand.u32 4294901760, %v18696_v8 }
 0xe60   :  { %v17673_v48 = vpop.permute.xlu1 %17672 }
 0xe61   :  { %v17677_v17 = vsel %vm7139_vm7, %v17673_v48, 0 }
 0xe62   :  { %v17680_v60 = vand.u32 4294901760, %v17677_v17 }
 0xe64   :  { %v17757_v25 = vsub.f32 %v17677_v17, %v17680_v60  ;;  %38259 = vmatpush3.msra.mxu0 %v17680_v60  ;;  %v18155_v42 = vpop.permute.xlu1 %18154 }
 0xe65   :  { %38261 = vmatmul.mubr.f32.vlgmr.msra.gmra.mrb[40].mxu0 %v17749_v55  ;;  %38263 = vmatprep.subr.mxu0 %v41346_v1  ;;  %v18158_v45 = vsel %vm50_vm1, %v18155_v42, 0 }
 0xe66   :  { %v17758_v59 = vand.u32 4294901760, %v17757_v25  ;;  %38265 = vmatprep.mubr.msk.f32.mxu0 %vm41345_vm0, %v41346_v1  ;;  %v43177_v14 = vand.u32 4294901760, %v18158_v45 }
 0xe67   :  { %v41194_v58 = vpop.eup %41193 }
 0xe68   :  { %v14499_v24 = vmul.f32 %v41194_v58, %v42984_v36  ;;  %v17759_v50 = vsub.f32 %v17757_v25, %v17758_v59  ;;  %v18157_v51 = vpop.permute.xlu1 %18156 }
 0xe69   :  { %v18160_v31 = vsel %vm50_vm1, %v18157_v51, 0 }
 0xe6a   :  { %v17760_v41 = vand.u32 4294901760, %v17759_v50  ;;  %v17222_v54 = vsel %vm7135_vm9, %v14499_v24, 0 }
 0xe6b   :  { %v43123_v3 = vand.u32 4294901760, %v17222_v54 }
 0xe6c   :  { %38264 = vmatpush3.msra.mxu0 %v17760_v41 }
 0xe6d   :  { %38266 = vmatmul.mubr.f32.vlgmr.msra.gmra.mrb[40].mxu0 %v43111_v44  ;;  %38268 = vmatprep.subr.mxu0 %v41346_v1  ;;  %v17293_v16 = vsub.f32 %v17222_v54, %v43123_v3 }
 0xe6e   :  { %38269 = vmatpush3.msra.mxu0 %v17757_v25  ;;  %38270 = vmatprep.mubr.msk.f32.mxu0 %vm41345_vm0, %v41346_v1 }
 0xe6f   :  { %38273 = vmatprep.subr.mxu0 %v41346_v1  ;;  %v17294_v36 = vand.u32 4294901760, %v17293_v16 }
 0xe71   :  { %v43133_v53 = vpop.f32.mrb[32].mxu1  ;;  %v17295_v12 = vsub.f32 %v17293_v16, %v17294_v36 }
 0xe72   :  { %v38077_v7 = vpop.f32.mrb[33].mxu1 }
 0xe73   :  { %v17296_v11 = vand.u32 4294901760, %v17295_v12  ;;  %v19063_v7 = vpop.permute.xlu1 %19062 }
 0xe74   :  { %v19066_v40 = vsel %vm50_vm1, %v19063_v7, 0 }
 0xe75   :  { %38231 = vmatmul.mubr.f32.vlgmr.msra.gmra.mrb[38].mxu1 %v17296_v11  ;;  %38271 = vmatmul.mubr.f32.vlgmr.msra.gmra.mrb[40].mxu0 %v17746_v27  ;;  %v18686_v27 = vand.u32 4294901760, %v18685_v52 }
 0xe76   :  { %38234 = vmatpush3.msra.mxu1 %v17307_v43  ;;  %38274 = vmatpush3.msra.mxu0 %v17680_v60 }
 0xe77   :  { %38235 = vmatprep.mubr.msk.f32.mxu1 %vm41345_vm0, %v41346_v1  ;;  %38238 = vmatprep.subr.mxu1 %v41346_v1  ;;  %v19065_v43 = vpop.permute.xlu1 %19064 }
 0xe78   :  { %38275 = vmatprep.mubr.msk.f32.mxu0 %vm41345_vm0, %v41346_v1  ;;  %38278 = vmatprep.subr.mxu0 %v41346_v1 }
 0xe7d   :  { %38236 = vmatmul.mubr.f32.vlgmr.msra.gmra.mrb[38].mxu1 %v43123_v3  ;;  %38276 = vmatmul.mubr.f32.vlgmr.msra.gmra.mrb[40].mxu0 %v17747_v5  ;;  %v43182_v5 = vand.u32 4294901760, %v18160_v31 }
 0xe7e   :  { %38239 = vmatpush3.msra.mxu1 %v43119_v34  ;;  %38279 = vmatpush3.msra.mxu0 %v17758_v59  ;;  %v19517_v34 = vpop.permute.xlu0 %19516 }
 0xe7f   :  { %38240 = vmatprep.mubr.msk.f32.mxu1 %vm41345_vm0, %v41346_v1  ;;  %38243 = vmatprep.subr.mxu1 %v41346_v1  ;;  %v43194_v22 = vsub.f32 %v18160_v31, %v43182_v5  ;;  %v19520_v41 = vsel %vm50_vm1, %v19517_v34, 0  ;;  %v19971_v34 = vpop.permute.xlu1 %19970 }
 0xe80   :  { %38280 = vmatprep.mubr.msk.f32.mxu0 %vm41345_vm0, %v41346_v1  ;;  %38283 = vmatprep.subr.mxu0 %v41346_v1 }
 0xe81   :  { %v18241_v17 = vand.u32 4294901760, %v43194_v22 }
 0xe82   :  { %v19519_v50 = vpop.permute.xlu0 %19518 }
 0xe83   :  { %v19522_v54 = vsel %vm50_vm1, %v19519_v50, 0 }
 0xe85   :  { %38241 = vmatmul.mubr.f32.vlgmr.msra.gmra.mrb[38].mxu1 %v17293_v16  ;;  %38281 = vmatmul.mubr.f32.vlgmr.msra.gmra.mrb[40].mxu0 %v43111_v44  ;;  %v43238_v16 = vand.u32 4294901760, %v19522_v54 }
 0xe86   :  { %38244 = vmatpush3.msra.mxu1 %v43103_v20  ;;  %38284 = vmatpush3.msra.mxu0 %v17680_v60 }
 0xe87   :  { %38245 = vmatprep.mubr.msk.f32.mxu1 %vm41345_vm0, %v41346_v1  ;;  %38248 = vmatprep.subr.mxu1 %v41346_v1  ;;  %v43247_v12 = vsub.f32 %v19522_v54, %v43238_v16 }
 0xe88   :  { %38285 = vmatprep.mubr.msk.f32.mxu0 %vm41345_vm0, %v41346_v1  ;;  %38318 = vmatprep.subr.mxu0 %v41346_v1 }
 0xe89   :  { %v19603_v49 = vand.u32 4294901760, %v43247_v12 }
 0xe8b   :  { %v19604_v32 = vsub.f32 %v43247_v12, %v19603_v49 }
 0xe8d   :  { %38246 = vmatmul.mubr.f32.vlgmr.msra.gmra.mrb[38].mxu1 %v17294_v36  ;;  %38286 = vmatmul.mubr.f32.vlgmr.msra.gmra.mrb[40].mxu0 %v43111_v44  ;;  %v43190_v44 = vsub.f32 %v18158_v45, %v43177_v14 }
 0xe8e   :  { %38249 = vmatpush3.msra.mxu1 %v17305_v29  ;;  %38319 = vmatpush3.xpose.msra.mxu0 %v43150_v19 }
 0xe8f   :  { %38320 = vmatprep.mubr.msk.f32.mxu0 %vm41345_vm0, %v41346_v1  ;;  %38323 = vmatprep.subr.mxu0 %v41346_v1  ;;  %v18230_v48 = vand.u32 4294901760, %v43190_v44 }
 0xe90   :  { %38250 = vmatprep.mubr.msk.f32.mxu1 %vm41345_vm0, %v41346_v1  ;;  %38253 = vmatprep.subr.mxu1 %v41346_v1 }
 0xe91   :  { %38321 = vmatmul.mubr.f32.vlgmr.msra.gmra.mrb[42].mxu0 %v18686_v27  ;;  %v18231_v60 = vsub.f32 %v43190_v44, %v18230_v48  ;;  %v20425_v27 = vpop.permute.xlu0 %20424 }
 0xe92   :  { %38324 = vmatpush3.xpose.msra.mxu0 %v18697_v23  ;;  %38325 = vmatprep.mubr.msk.f32.mxu0 %vm41345_vm0, %v41346_v1  ;;  %v20428_v23 = vsel %vm50_vm1, %v20425_v27, 0 }
 0xe93   :  { %38328 = vmatprep.subr.mxu0 %v41346_v1  ;;  %v18232_v58 = vand.u32 4294901760, %v18231_v60 }
 0xe95   :  { %38251 = vmatmul.mubr.f32.vlgmr.msra.gmra.mrb[38].mxu1 %v43123_v3 }
 0xe96   :  { %38254 = vmatpush3.msra.mxu1 %v43103_v20  ;;  %38255 = vmatprep.mubr.msk.f32.mxu1 %vm41345_vm0, %v41346_v1  ;;  %v18242_v20 = vsub.f32 %v43194_v22, %v18241_v17 }
 0xe97   :  { %38288 = vmatprep.subr.mxu1 %v41346_v1 }
 0xe98   :  { %v18243_v24 = vand.u32 4294901760, %v18242_v20 }
 0xe99   :  { %38326 = vmatmul.mubr.f32.vlgmr.msra.gmra.mrb[42].mxu0 %v43145_v39 }
 0xe9a   :  { %38329 = vmatpush3.xpose.msra.mxu0 %v43159_v37  ;;  %38330 = vmatprep.mubr.msk.f32.mxu0 %vm41345_vm0, %v41346_v1 }
 0xe9b   :  { %38333 = vmatprep.subr.mxu0 %v41346_v1 }
 0xe9d   :  { %v43210_v55 = vpop.f32.mrb[34].mxu0  ;;  %38256 = vmatmul.mubr.f32.vlgmr.msra.gmra.mrb[38].mxu1 %v43123_v3  ;;  %v43231_v3 = vand.u32 4294901760, %v19520_v41 }
 0xe9e   :  { %v18133_v25 = vcombine.low %v43133_v53, %v43210_v55  ;;  %38289 = vmatpush3.xpose.msra.mxu1 %v43182_v5  ;;  %v38107_v59 = vpop.f32.mrb[35].mxu0  ;;  %38290 = vmatprep.mubr.msk.f32.mxu1 %vm41345_vm0, %v41346_v1 }
 0xe9f   :  { %38293 = vmatprep.subr.mxu1 %v41346_v1  ;;  %v43244_v56 = vsub.f32 %v19520_v41, %v43231_v3  ;;  %v19973_v41 = vpop.permute.xlu1 %19972 }
 0xea1   :  { %38291 = vmatmul.mubr.f32.vlgmr.msra.gmra.mrb[40].mxu1 %v18232_v58  ;;  %38331 = vmatmul.mubr.f32.vlgmr.msra.gmra.mrb[42].mxu0 %v43156_v63  ;;  %v19592_v11 = vand.u32 4294901760, %v43244_v56  ;;  %v43267_v63 = vand.u32 4294901760, %v19066_v40 }
 0xea2   :  { %38294 = vmatpush3.xpose.msra.mxu1 %v18243_v24  ;;  %38334 = vmatpush3.xpose.msra.mxu0 %v43150_v19 }
 0xea3   :  { %38295 = vmatprep.mubr.msk.f32.mxu1 %vm41345_vm0, %v41346_v1  ;;  %38298 = vmatprep.subr.mxu1 %v41346_v1  ;;  %v19593_v2 = vsub.f32 %v43244_v56, %v19592_v11 }
 0xea4   :  { %38335 = vmatprep.mubr.msk.f32.mxu0 %vm41345_vm0, %v41346_v1  ;;  %38338 = vmatprep.subr.mxu0 %v41346_v1 }
 0xea5   :  { %v19594_v37 = vand.u32 4294901760, %v19593_v2 }
 0xea9   :  { %38296 = vmatmul.mubr.f32.vlgmr.msra.gmra.mrb[40].mxu1 %v43177_v14  ;;  %38336 = vmatmul.mubr.f32.vlgmr.msra.gmra.mrb[42].mxu0 %v18684_v57  ;;  %v19605_v57 = vand.u32 4294901760, %v19604_v32 }
 0xeaa   :  { %38299 = vmatpush3.xpose.msra.mxu1 %v43194_v22  ;;  %38339 = vmatpush3.xpose.msra.mxu0 %v18695_v6  ;;  %v43317_v22 = vand.u32 4294901760, %v20428_v23 }
 0xeab   :  { %v43233_v29 = vpop.f32.mrb[34].mxu1  ;;  %38300 = vmatprep.mubr.msk.f32.mxu1 %vm41345_vm0, %v41346_v1  ;;  %38303 = vmatprep.subr.mxu1 %v41346_v1 }
 0xeac   :  { %v38137_v36 = vpop.f32.mrb[35].mxu1  ;;  %38340 = vmatprep.mubr.msk.f32.mxu0 %vm41345_vm0, %v41346_v1  ;;  %38343 = vmatprep.subr.mxu0 %v41346_v1  ;;  %v43332_v59 = vsub.f32 %v20428_v23, %v43317_v22 }
 0xeae   :  { %v20500_v24 = vand.u32 4294901760, %v43332_v59 }
 0xeb0   :  { %v20501_v54 = vsub.f32 %v43332_v59, %v20500_v24 }
 0xeb1   :  { %38301 = vmatmul.mubr.f32.vlgmr.msra.gmra.mrb[40].mxu1 %v43190_v44  ;;  %38341 = vmatmul.mubr.f32.vlgmr.msra.gmra.mrb[42].mxu0 %v43145_v39 }
 0xeb2   :  { %38304 = vmatpush3.xpose.msra.mxu1 %v43182_v5  ;;  %38344 = vmatpush3.xpose.msra.mxu0 %v43150_v19  ;;  %v19068_v19 = vsel %vm50_vm1, %v19065_v43, 0  ;;  %v20502_v7 = vand.u32 4294901760, %v20501_v54 }
 0xeb3   :  { %38305 = vmatprep.mubr.msk.f32.mxu1 %vm41345_vm0, %v41346_v1  ;;  %38308 = vmatprep.subr.mxu1 %v41346_v1  ;;  %v43272_v42 = vand.u32 4294901760, %v19068_v19 }
 0xeb4   :  { %38345 = vmatprep.mubr.msk.f32.mxu0 %vm41345_vm0, %v41346_v1  ;;  %38378 = vmatprep.subr.mxu0 %v41346_v1 }
 0xeb5   :  { %v43284_v6 = vsub.f32 %v19068_v19, %v43272_v42 }
 0xeb7   :  { %v19149_v52 = vand.u32 4294901760, %v43284_v6 }
 0xeb9   :  { %38306 = vmatmul.mubr.f32.vlgmr.msra.gmra.mrb[40].mxu1 %v18230_v48  ;;  %38346 = vmatmul.mubr.f32.vlgmr.msra.gmra.mrb[42].mxu0 %v43145_v39  ;;  %v43280_v39 = vsub.f32 %v19066_v40, %v43267_v63  ;;  %v19150_v45 = vsub.f32 %v43284_v6, %v19149_v52 }
 0xeba   :  { %38309 = vmatpush3.xpose.msra.mxu1 %v18241_v17  ;;  %38379 = vmatpush3.xpose.msra.mxu0 %v43238_v16 }
 0xebb   :  { %38380 = vmatprep.mubr.msk.f32.mxu0 %vm41345_vm0, %v41346_v1  ;;  %38383 = vmatprep.subr.mxu0 %v41346_v1  ;;  %v19138_v51 = vand.u32 4294901760, %v43280_v39 }
 0xebc   :  { %38310 = vmatprep.mubr.msk.f32.mxu1 %vm41345_vm0, %v41346_v1  ;;  %38313 = vmatprep.subr.mxu1 %v41346_v1 }
 0xebd   :  { %38381 = vmatmul.mubr.f32.vlgmr.msra.gmra.mrb[44].mxu0 %v19594_v37  ;;  %v19139_v8 = vsub.f32 %v43280_v39, %v19138_v51 }
 0xebe   :  { %38384 = vmatpush3.xpose.msra.mxu0 %v19605_v57  ;;  %38385 = vmatprep.mubr.msk.f32.mxu0 %vm41345_vm0, %v41346_v1 }
 0xebf   :  { %38388 = vmatprep.subr.mxu0 %v41346_v1  ;;  %v19140_v31 = vand.u32 4294901760, %v19139_v8 }
 0xec1   :  { %38311 = vmatmul.mubr.f32.vlgmr.msra.gmra.mrb[40].mxu1 %v43177_v14 }
 0xec2   :  { %38314 = vmatpush3.xpose.msra.mxu1 %v43182_v5  ;;  %38315 = vmatprep.mubr.msk.f32.mxu1 %vm41345_vm0, %v41346_v1  ;;  %v19151_v5 = vand.u32 4294901760, %v19150_v45 }
 0xec3   :  { %38348 = vmatprep.subr.mxu1 %v41346_v1 }
 0xec5   :  { %38386 = vmatmul.mubr.f32.vlgmr.msra.gmra.mrb[44].mxu0 %v43231_v3 }
 0xec6   :  { %38389 = vmatpush3.xpose.msra.mxu0 %v43247_v12  ;;  %38390 = vmatprep.mubr.msk.f32.mxu0 %vm41345_vm0, %v41346_v1 }
 0xec7   :  { %38393 = vmatprep.subr.mxu0 %v41346_v1 }
 0xec9   :  { %38316 = vmatmul.mubr.f32.vlgmr.msra.gmra.mrb[40].mxu1 %v43177_v14  ;;  %v20427_v14 = vpop.permute.xlu0 %20426 }
 0xeca   :  { %38349 = vmatpush3.xpose.msra.mxu1 %v43272_v42  ;;  %38350 = vmatprep.mubr.msk.f32.mxu1 %vm41345_vm0, %v41346_v1  ;;  %v20430_v44 = vsel %vm50_vm1, %v20427_v14, 0 }
 0xecb   :  { %38353 = vmatprep.subr.mxu1 %v41346_v1  ;;  %v43324_v17 = vand.u32 4294901760, %v20430_v44 }
 0xecd   :  { %38351 = vmatmul.mubr.f32.vlgmr.msra.gmra.mrb[42].mxu1 %v19140_v31  ;;  %38391 = vmatmul.mubr.f32.vlgmr.msra.gmra.mrb[44].mxu0 %v43244_v56  ;;  %v43335_v58 = vsub.f32 %v20430_v44, %v43324_v17  ;;  %v19976_v56 = vsel %vm50_vm1, %v19973_v41, 0 }
 0xece   :  { %38354 = vmatpush3.xpose.msra.mxu1 %v19151_v5  ;;  %38394 = vmatpush3.xpose.msra.mxu0 %v43238_v16  ;;  %v20879_v5 = vpop.permute.xlu1 %20878 }
 0xecf   :  { %38355 = vmatprep.mubr.msk.f32.mxu1 %vm41345_vm0, %v41346_v1  ;;  %38358 = vmatprep.subr.mxu1 %v41346_v1  ;;  %v20511_v50 = vand.u32 4294901760, %v43335_v58 }
 0xed0   :  { %38395 = vmatprep.mubr.msk.f32.mxu0 %vm41345_vm0, %v41346_v1  ;;  %38398 = vmatprep.subr.mxu0 %v41346_v1 }
 0xed1   :  { %v20512_v36 = vsub.f32 %v43335_v58, %v20511_v50 }
 0xed5   :  { %38356 = vmatmul.mubr.f32.vlgmr.msra.gmra.mrb[42].mxu1 %v43267_v63  ;;  %38396 = vmatmul.mubr.f32.vlgmr.msra.gmra.mrb[44].mxu0 %v19592_v11  ;;  %v43360_v11 = vand.u32 4294901760, %v19976_v56 }
 0xed6   :  { %38359 = vmatpush3.xpose.msra.mxu1 %v43284_v6  ;;  %38399 = vmatpush3.xpose.msra.mxu0 %v19603_v49  ;;  %v20513_v49 = vand.u32 4294901760, %v20512_v36 }
 0xed7   :  { %v43319_v48 = vpop.f32.mrb[36].mxu0  ;;  %38360 = vmatprep.mubr.msk.f32.mxu1 %vm41345_vm0, %v41346_v1  ;;  %38363 = vmatprep.subr.mxu1 %v41346_v1  ;;  %v43372_v43 = vsub.f32 %v19976_v56, %v43360_v11 }
 0xed8   :  { %v18134_v60 = vcombine.low %v43233_v29, %v43319_v48  ;;  %v38167_v20 = vpop.f32.mrb[37].mxu0  ;;  %38400 = vmatprep.mubr.msk.f32.mxu0 %vm41345_vm0, %v41346_v1  ;;  %38403 = vmatprep.subr.mxu0 %v41346_v1 }
 0xed9   :  { %v20057_v32 = vand.u32 4294901760, %v43372_v43 }
 0xedb   :  { %v20058_v19 = vsub.f32 %v43372_v43, %v20057_v32 }
 0xedd   :  { %38361 = vmatmul.mubr.f32.vlgmr.msra.gmra.mrb[42].mxu1 %v43280_v39  ;;  %38401 = vmatmul.mubr.f32.vlgmr.msra.gmra.mrb[44].mxu0 %v43231_v3  ;;  %v20059_v57 = vand.u32 4294901760, %v20058_v19 }
 0xede   :  { %38364 = vmatpush3.xpose.msra.mxu1 %v43272_v42  ;;  %38404 = vmatpush3.xpose.msra.mxu0 %v43238_v16  ;;  %v19974_v16 = vsel %vm50_vm1, %v19971_v34, 0 }
 0xedf   :  { %38365 = vmatprep.mubr.msk.f32.mxu1 %vm41345_vm0, %v41346_v1  ;;  %38368 = vmatprep.subr.mxu1 %v41346_v1  ;;  %v43355_v12 = vand.u32 4294901760, %v19974_v16 }
 0xee0   :  { %38405 = vmatprep.mubr.msk.f32.mxu0 %vm41345_vm0, %v41346_v1  ;;  %38438 = vmatprep.subr.mxu0 %v41346_v1 }
 0xee5   :  { %38366 = vmatmul.mubr.f32.vlgmr.msra.gmra.mrb[42].mxu1 %v19138_v51  ;;  %38406 = vmatmul.mubr.f32.vlgmr.msra.gmra.mrb[44].mxu0 %v43231_v3  ;;  %v43368_v3 = vsub.f32 %v19974_v16, %v43355_v12 }
 0xee6   :  { %38369 = vmatpush3.xpose.msra.mxu1 %v19149_v52  ;;  %38439 = vmatpush3.xpose.msra.mxu0 %v43324_v17 }
 0xee7   :  { %38440 = vmatprep.mubr.msk.f32.mxu0 %vm41345_vm0, %v41346_v1  ;;  %38443 = vmatprep.subr.mxu0 %v41346_v1  ;;  %v20046_v2 = vand.u32 4294901760, %v43368_v3 }
 0xee8   :  { %38370 = vmatprep.mubr.msk.f32.mxu1 %vm41345_vm0, %v41346_v1  ;;  %38373 = vmatprep.subr.mxu1 %v41346_v1 }
 0xee9   :  { %38441 = vmatmul.mubr.f32.vlgmr.msra.gmra.mrb[46].mxu0 %v20502_v7  ;;  %v20047_v40 = vsub.f32 %v43368_v3, %v20046_v2 }
 0xeea   :  { %38444 = vmatpush3.xpose.msra.mxu0 %v20513_v49  ;;  %38445 = vmatprep.mubr.msk.f32.mxu0 %vm41345_vm0, %v41346_v1 }
 0xeeb   :  { %38448 = vmatprep.subr.mxu0 %v41346_v1  ;;  %v20048_v37 = vand.u32 4294901760, %v20047_v40 }
 0xeed   :  { %38371 = vmatmul.mubr.f32.vlgmr.msra.gmra.mrb[42].mxu1 %v43267_v63 }
 0xeee   :  { %38374 = vmatpush3.xpose.msra.mxu1 %v43272_v42  ;;  %38375 = vmatprep.mubr.msk.f32.mxu1 %vm41345_vm0, %v41346_v1  ;;  %v21333_v42 = vpop.permute.xlu0 %21332 }
 0xeef   :  { %38408 = vmatprep.subr.mxu1 %v41346_v1  ;;  %v21336_v39 = vsel %vm50_vm1, %v21333_v42, 0 }
 0xef0   :  { %v43405_v51 = vand.u32 4294901760, %v21336_v39 }
 0xef1   :  { %38446 = vmatmul.mubr.f32.vlgmr.msra.gmra.mrb[46].mxu0 %v43317_v22 }
 0xef2   :  { %38449 = vmatpush3.xpose.msra.mxu0 %v43335_v58  ;;  %38450 = vmatprep.mubr.msk.f32.mxu0 %vm41345_vm0, %v41346_v1  ;;  %v43418_v31 = vsub.f32 %v21336_v39, %v43405_v51  ;;  %v43513_v39 = vld [vmem:[#allocation4 + $0x1b8] sm:$0xf] }
 0xef3   :  { %38453 = vmatprep.subr.mxu0 %v41346_v1 }
 0xef4   :  { %v21408_v14 = vand.u32 4294901760, %v43418_v31 }
 0xef5   :  { %38376 = vmatmul.mubr.f32.vlgmr.msra.gmra.mrb[42].mxu1 %v43267_v63  ;;  %v21335_v63 = vpop.permute.xlu0 %21334 }
 0xef6   :  { %38409 = vmatpush3.xpose.msra.mxu1 %v43360_v11  ;;  %38410 = vmatprep.mubr.msk.f32.mxu1 %vm41345_vm0, %v41346_v1  ;;  %v21338_v6 = vsel %vm50_vm1, %v21335_v63, 0  ;;  %v21409_v58 = vsub.f32 %v43418_v31, %v21408_v14 }
 0xef7   :  { %38413 = vmatprep.subr.mxu1 %v41346_v1  ;;  %v43412_v8 = vand.u32 4294901760, %v21338_v6 }
 0xef8   :  { %v21410_v54 = vand.u32 4294901760, %v21409_v58 }
 0xef9   :  { %38411 = vmatmul.mubr.f32.vlgmr.msra.gmra.mrb[44].mxu1 %v20048_v37  ;;  %38451 = vmatmul.mubr.f32.vlgmr.msra.gmra.mrb[46].mxu0 %v43332_v59  ;;  %v43421_v27 = vsub.f32 %v21338_v6, %v43412_v8 }
 0xefa   :  { %38414 = vmatpush3.xpose.msra.mxu1 %v20059_v57  ;;  %38454 = vmatpush3.xpose.msra.mxu0 %v43324_v17 }
 0xefb   :  { %38415 = vmatprep.mubr.msk.f32.mxu1 %vm41345_vm0, %v41346_v1  ;;  %38418 = vmatprep.subr.mxu1 %v41346_v1  ;;  %v21419_v44 = vand.u32 4294901760, %v43421_v27 }
 0xefc   :  { %38455 = vmatprep.mubr.msk.f32.mxu0 %vm41345_vm0, %v41346_v1  ;;  %38458 = vmatprep.subr.mxu0 %v41346_v1 }
 0xefd   :  { %v21420_v34 = vsub.f32 %v43421_v27, %v21419_v44 }
 0xeff   :  { %v21421_v36 = vand.u32 4294901760, %v21420_v34 }
 0xf01   :  { %38416 = vmatmul.mubr.f32.vlgmr.msra.gmra.mrb[44].mxu1 %v43355_v12  ;;  %38456 = vmatmul.mubr.f32.vlgmr.msra.gmra.mrb[46].mxu0 %v20500_v24  ;;  %v20882_v24 = vsel %vm50_vm1, %v20879_v5, 0 }
 0xf02   :  { %38419 = vmatpush3.xpose.msra.mxu1 %v43372_v43  ;;  %38459 = vmatpush3.xpose.msra.mxu0 %v20511_v50  ;;  %v43445_v41 = vand.u32 4294901760, %v20882_v24 }
 0xf03   :  { %v43407_v52 = vpop.f32.mrb[38].mxu0  ;;  %38420 = vmatprep.mubr.msk.f32.mxu1 %vm41345_vm0, %v41346_v1  ;;  %38423 = vmatprep.subr.mxu1 %v41346_v1 }
 0xf04   :  { %v38227_v45 = vpop.f32.mrb[39].mxu0  ;;  %38460 = vmatprep.mubr.msk.f32.mxu0 %vm41345_vm0, %v41346_v1  ;;  %38463 = vmatprep.subr.mxu0 %v41346_v1 }
 0xf09   :  { %38421 = vmatmul.mubr.f32.vlgmr.msra.gmra.mrb[44].mxu1 %v43368_v3  ;;  %38461 = vmatmul.mubr.f32.vlgmr.msra.gmra.mrb[46].mxu0 %v43317_v22 }
 0xf0a   :  { %38424 = vmatpush3.xpose.msra.mxu1 %v43360_v11  ;;  %38464 = vmatpush3.xpose.msra.mxu0 %v43324_v17  ;;  %v20881_v17 = vpop.permute.xlu1 %20880 }
 0xf0b   :  { %v43428_v23 = vpop.f32.mrb[36].mxu1  ;;  %38425 = vmatprep.mubr.msk.f32.mxu1 %vm41345_vm0, %v41346_v1  ;;  %38428 = vmatprep.subr.mxu1 %v41346_v1  ;;  %v20884_v50 = vsel %vm50_vm1, %v20881_v17, 0 }
 0xf0c   :  { %v18135_v20 = vcombine.low %v43428_v23, %v43407_v52  ;;  %v38197_v59 = vpop.f32.mrb[37].mxu1  ;;  %38465 = vmatprep.mubr.msk.f32.mxu0 %vm41345_vm0, %v41346_v1  ;;  %38498 = vmatprep.subr.mxu0 %v41346_v1  ;;  %v20887_v16 = vand.u32 4294901760, %v20884_v50  ;;  %v44579_v23 = vld [vmem:[#allocation4 + $0xa8] sm:$0xff] }
 0xf0e   :  { %v20964_v56 = vsub.f32 %v20884_v50, %v20887_v16 }
 0xf10   :  { %v20965_v49 = vand.u32 4294901760, %v20964_v56 }
 0xf11   :  { %38426 = vmatmul.mubr.f32.vlgmr.msra.gmra.mrb[44].mxu1 %v20046_v2  ;;  %38466 = vmatmul.mubr.f32.vlgmr.msra.gmra.mrb[46].mxu0 %v43317_v22  ;;  %v20953_v22 = vsub.f32 %v20882_v24, %v43445_v41 }
 0xf12   :  { %38429 = vmatpush3.xpose.msra.mxu1 %v20057_v32  ;;  %38499 = vmatpush3.xpose.msra.mxu0 %v43412_v8  ;;  %v20966_v43 = vsub.f32 %v20964_v56, %v20965_v49 }
 0xf13   :  { %38500 = vmatprep.mubr.msk.f32.mxu0 %vm41345_vm0, %v41346_v1  ;;  %38503 = vmatprep.subr.mxu0 %v41346_v1  ;;  %v20954_v7 = vand.u32 4294901760, %v20953_v22 }
 0xf14   :  { %38430 = vmatprep.mubr.msk.f32.mxu1 %vm41345_vm0, %v41346_v1  ;;  %38433 = vmatprep.subr.mxu1 %v41346_v1  ;;  %v20967_v2 = vand.u32 4294901760, %v20966_v43 }
 0xf15   :  { %38501 = vmatmul.mubr.f32.vlgmr.msra.gmra.mrb[48].mxu0 %v21410_v54  ;;  %v20955_v3 = vsub.f32 %v20953_v22, %v20954_v7 }
 0xf16   :  { %38504 = vmatpush3.xpose.msra.mxu0 %v21421_v36  ;;  %38505 = vmatprep.mubr.msk.f32.mxu0 %vm41345_vm0, %v41346_v1 }
 0xf17   :  { %38508 = vmatprep.subr.mxu0 %v41346_v1 }
 0xf19   :  { %38431 = vmatmul.mubr.f32.vlgmr.msra.gmra.mrb[44].mxu1 %v43355_v12 }
 0xf1a   :  { %38434 = vmatpush3.xpose.msra.mxu1 %v43360_v11  ;;  %38435 = vmatprep.mubr.msk.f32.mxu1 %vm41345_vm0, %v41346_v1  ;;  %v20956_v11 = vand.u32 4294901760, %v20955_v3 }
 0xf1b   :  { %38468 = vmatprep.subr.mxu1 %v41346_v1 }
 0xf1d   :  { %38506 = vmatmul.mubr.f32.vlgmr.msra.gmra.mrb[48].mxu0 %v43405_v51 }
 0xf1e   :  { %38509 = vmatpush3.xpose.msra.mxu0 %v43421_v27  ;;  %38510 = vmatprep.mubr.msk.f32.mxu0 %vm41345_vm0, %v41346_v1 }
 0xf1f   :  { %38513 = vmatprep.subr.mxu0 %v41346_v1 }
 0xf21   :  { %38436 = vmatmul.mubr.f32.vlgmr.msra.gmra.mrb[44].mxu1 %v43355_v12 }
 0xf22   :  { %38469 = vmatpush3.xpose.msra.mxu1 %v20887_v16  ;;  %38470 = vmatprep.mubr.msk.f32.mxu1 %vm41345_vm0, %v41346_v1 }
 0xf23   :  { %38473 = vmatprep.subr.mxu1 %v41346_v1 }
 0xf25   :  { %38471 = vmatmul.mubr.f32.vlgmr.msra.gmra.mrb[46].mxu1 %v20956_v11  ;;  %38511 = vmatmul.mubr.f32.vlgmr.msra.gmra.mrb[48].mxu0 %v43418_v31 }
 0xf26   :  { %38474 = vmatpush3.xpose.msra.mxu1 %v20967_v2  ;;  %38514 = vmatpush3.xpose.msra.mxu0 %v43412_v8 }
 0xf27   :  { %38475 = vmatprep.mubr.msk.f32.mxu1 %vm41345_vm0, %v41346_v1  ;;  %38478 = vmatprep.subr.mxu1 %v41346_v1 }
 0xf28   :  { %38515 = vmatprep.mubr.msk.f32.mxu0 %vm41345_vm0, %v41346_v1  ;;  %38518 = vmatprep.subr.mxu0 %v41346_v1 }
 0xf2d   :  { %38476 = vmatmul.mubr.f32.vlgmr.msra.gmra.mrb[46].mxu1 %v43445_v41  ;;  %38516 = vmatmul.mubr.f32.vlgmr.msra.gmra.mrb[48].mxu0 %v21408_v14 }
 0xf2e   :  { %38479 = vmatpush3.xpose.msra.mxu1 %v20964_v56  ;;  %38519 = vmatpush3.xpose.msra.mxu0 %v21419_v44 }
 0xf2f   :  { %38480 = vmatprep.mubr.msk.f32.mxu1 %vm41345_vm0, %v41346_v1  ;;  %38483 = vmatprep.subr.mxu1 %v41346_v1 }
 0xf30   :  { %38520 = vmatprep.mubr.msk.f32.mxu0 %vm41345_vm0, %v41346_v1  ;;  %38523 = vmatprep.subr.mxu0 %v41346_v1 }
 0xf35   :  { %38481 = vmatmul.mubr.f32.vlgmr.msra.gmra.mrb[46].mxu1 %v20953_v22  ;;  %38521 = vmatmul.mubr.f32.vlgmr.msra.gmra.mrb[48].mxu0 %v43405_v51 }
 0xf36   :  { %38484 = vmatpush3.xpose.msra.mxu1 %v20887_v16  ;;  %38524 = vmatpush3.xpose.msra.mxu0 %v43412_v8 }
 0xf37   :  { %38485 = vmatprep.mubr.msk.f32.mxu1 %vm41345_vm0, %v41346_v1  ;;  %38488 = vmatprep.subr.mxu1 %v41346_v1 }
 0xf38   :  { %38525 = vmatprep.mubr.msk.f32.mxu0 %vm41345_vm0, %v41346_v1  ;;  %38558 = vmatprep.subr.mxu0 %v41346_v1 }
 0xf3d   :  { %38486 = vmatmul.mubr.f32.vlgmr.msra.gmra.mrb[46].mxu1 %v20954_v7  ;;  %38526 = vmatmul.mubr.f32.vlgmr.msra.gmra.mrb[48].mxu0 %v43405_v51 }
 0xf3e   :  { %38489 = vmatpush3.xpose.msra.mxu1 %v20965_v49  ;;  %38490 = vmatprep.mubr.msk.f32.mxu1 %vm41345_vm0, %v41346_v1 }
 0xf3f   :  { %38493 = vmatprep.subr.mxu1 %v41346_v1  ;;  %38560 = vmatprep.mubr.msk.f32.mxu0 %vm41345_vm0, %v41346_v1 }
 0xf45   :  { %38491 = vmatmul.mubr.f32.vlgmr.msra.gmra.mrb[46].mxu1 %v43445_v41 }
 0xf46   :  { %38494 = vmatpush3.xpose.msra.mxu1 %v20887_v16  ;;  %38495 = vmatprep.mubr.msk.f32.mxu1 %vm41345_vm0, %v41346_v1 }
 0xf47   :  { %38528 = vmatprep.subr.mxu1 %v41346_v1 }
 0xf4d   :  { %38496 = vmatmul.mubr.f32.vlgmr.msra.gmra.mrb[46].mxu1 %v43445_v41 }
 0xf4e   :  { %38530 = vmatprep.mubr.msk.f32.mxu1 %vm41345_vm0, %v41346_v1 }
 0xf60   :  { %v43507_v12 = vpop.f32.mrb[40].mxu0 }
 0xf61   :  { %v38287_v32 = vpop.f32.mrb[41].mxu0 }
 0xf70   :  { %v43509_v40 = vpop.f32.mrb[38].mxu1 }
 0xf71   :  { %v18136_v19 = vcombine.low %v43509_v40, %v43507_v12  ;;  %v38257_v37 = vpop.f32.mrb[39].mxu1 }
 0xf8c   :  { %v19058_v42 = vpop.f32.mrb[42].mxu0 }
 0xf8d   :  { %v21787_v57 = vmul.f32 0.31622776, %v19058_v42  ;;  %v38347_v63 = vpop.f32.mrb[43].mxu0 }
 0xf8f   :  { %v21795_v6 = vadd.f32 %v43513_v39, %v21787_v57 }
 0xf91   :  { %v21805_v51 = vsel %vm7046_vm8, %v21795_v6, -inf }
 0xf92   :  { %21806 = vmax.xlane.f32.xlu0 %v21805_v51 }
 0xf9c   :  { %v18604_v8 = vpop.f32.mrb[40].mxu1 }
 0xf9d   :  { %v21786_v45 = vmul.f32 0.31622776, %v18604_v8  ;;  %v38317_v31 = vpop.f32.mrb[41].mxu1 }
 0xf9f   :  { %v21794_v27 = vadd.f32 %v43513_v39, %v21786_v45 }
 0xfa1   :  { %v21802_v5 = vsel %vm7046_vm8, %v21794_v27, -inf }
 0xfa2   :  { %21803 = vmax.xlane.f32.xlu1 %v21802_v5 }
 0xfb8   :  { %v19966_v14 = vpop.f32.mrb[44].mxu0 }
 0xfb9   :  { %v21789_v44 = vmul.f32 0.31622776, %v19966_v14  ;;  %v38407_v59 = vpop.f32.mrb[45].mxu0 }
 0xfbb   :  { %v21797_v17 = vadd.f32 %v43513_v39, %v21789_v44 }
 0xfbd   :  { %v21811_v58 = vsel %vm7046_vm8, %v21797_v17, -inf }
 0xfbe   :  { %21812 = vmax.xlane.f32.xlu1 %v21811_v58 }
 0xfc8   :  { %v19512_v34 = vpop.f32.mrb[42].mxu1 }
 0xfc9   :  { %v21788_v24 = vmul.f32 0.31622776, %v19512_v34  ;;  %v38377_v50 = vpop.f32.mrb[43].mxu1 }
 0xfcb   :  { %v21796_v41 = vadd.f32 %v43513_v39, %v21788_v24 }
 0xfcd   :  { %v21808_v54 = vsel %vm7046_vm8, %v21796_v41, -inf }
 0xfce   :  { %21809 = vmax.xlane.f32.xlu0 %v21808_v54 }
 0xfe4   :  { %v20874_v36 = vpop.f32.mrb[46].mxu0 }
 0xfe5   :  { %v21791_v16 = vmul.f32 0.31622776, %v20874_v36  ;;  %v38467_v22 = vpop.f32.mrb[47].mxu0 }
 0xfe7   :  { %v21799_v56 = vadd.f32 %v43513_v39, %v21791_v16 }
 0xfe9   :  { %v21817_v7 = vsel %vm7046_vm8, %v21799_v56, -inf }
 0xfea   :  { %21818 = vmax.xlane.f32.xlu1 %v21817_v7 }
 0xff4   :  { %v20420_v49 = vpop.f32.mrb[44].mxu1 }
 0xff5   :  { %v21790_v3 = vmul.f32 0.31622776, %v20420_v49  ;;  %v38437_v43 = vpop.f32.mrb[45].mxu1 }
 0xff7   :  { %v21798_v11 = vadd.f32 %v43513_v39, %v21790_v3 }
 0xff9   :  { %v21814_v2 = vsel %vm7046_vm8, %v21798_v11, -inf }
 0xffa   :  { %21815 = vmax.xlane.f32.xlu0 %v21814_v2 }
0x1010   :  { %v21782_v32 = vpop.f32.mrb[48].mxu0 }
0x1011   :  { %v38527_v37 = vpop.f32.mrb[49].mxu0  ;;  %v21793_v49 = vmul.f32 0.31622776, %v21782_v32 }
0x1013   :  { %v43546_v3 = vadd.f32 %v43513_v39, %v21793_v49 }
0x1015   :  { %v21823_v43 = vsel %vm7046_vm8, %v43546_v3, -inf }
0x101f   :  { %v21807_v42 = vpop.xlane.xlu0 %21806 }
0x1020   :  { %v21827_v57 = vsub.f32 %v21795_v6, %v21807_v42  ;;  %v21328_v63 = vpop.f32.mrb[46].mxu1 }
0x1021   :  { %v38497_v51 = vpop.f32.mrb[47].mxu1 }
0x1022   :  { %v21836_v8 = vmul.f32 1.442695, %v21827_v57 }
0x1024   :  { %41195 = vpow2.f32 %v21836_v8 }
0x102e   :  { %v41196_v45 = vpop.eup %41195 }
0x102f   :  { %v21804_v31 = vpop.xlane.xlu1 %21803  ;;  %v21853_v5 = vsel %vm7046_vm8, %v41196_v45, 0.0 }
0x1030   :  { %v21826_v14 = vsub.f32 %v21794_v27, %v21804_v31  ;;  %21854 = vadd.xlane.f32.xlu1 %v21853_v5  ;;  %v21792_v27 = vmul.f32 0.31622776, %v21328_v63 }
0x1032   :  { %v21834_v44 = vmul.f32 1.442695, %v21826_v14  ;;  %v43537_v54 = vadd.f32 %v43513_v39, %v21792_v27 }
0x1034   :  { %41197 = vpow2.f32 %v21834_v44  ;;  %v21820_v16 = vsel %vm7046_vm8, %v43537_v54, -inf }
0x103e   :  { %v43528_v59 = vpop.eup %41197 }
0x103f   :  { %v21850_v58 = vsel %vm7046_vm8, %v43528_v59, 0.0 }
0x1040   :  { %21851 = vadd.xlane.f32.xlu0 %v21850_v58 }
0x1041   :  { %22343 = vrot.lane.b32.xlu1 %v42139_v33, %s41353_s21 }
0x104b   :  { %v21813_v6 = vpop.xlane.xlu1 %21812 }
0x104c   :  { %v21829_v34 = vsub.f32 %v21797_v17, %v21813_v6 }
0x104e   :  { %v21840_v24 = vmul.f32 1.442695, %v21829_v34 }
0x1050   :  { %41199 = vpow2.f32 %v21840_v24 }
0x1056   :  { %21890 = vrot.lane.b32.xlu0 %v42034_v46, %s41353_s21 }
0x105a   :  { %v43541_v22 = vpop.eup %41199 }
0x105b   :  { %v21810_v50 = vpop.xlane.xlu0 %21809  ;;  %v21859_v17 = vsel %vm7046_vm8, %v43541_v22, 0.0 }
0x105c   :  { %v21828_v36 = vsub.f32 %v21796_v41, %v21810_v50 }
0x105e   :  { %v21838_v7 = vmul.f32 1.442695, %v21828_v36 }
0x1060   :  { %41201 = vpow2.f32 %v21838_v7 }
0x1065   :  { %21821 = vmax.xlane.f32.xlu1 %v21820_v16 }
0x1069   :  { %21860 = vadd.xlane.f32.xlu1 %v21859_v17 }
0x106a   :  { %v43550_v41 = vpop.eup %41201 }
0x106b   :  { %v21856_v2 = vsel %vm7046_vm8, %v43550_v41, 0.0 }
0x1075   :  { %21824 = vmax.xlane.f32.xlu0 %v21823_v43 }
0x1077   :  { %v21819_v39 = vpop.xlane.xlu1 %21818 }
0x1078   :  { %v21831_v32 = vsub.f32 %v21799_v56, %v21819_v39 }
0x1079   :  { %21857 = vadd.xlane.f32.xlu0 %v21856_v2 }
0x107a   :  { %23249 = vrot.lane.b32.xlu1 %v42273_v47, %s41353_s21  ;;  %v21844_v51 = vmul.f32 1.442695, %v21831_v32 }
0x1087   :  { %v21816_v37 = vpop.xlane.xlu0 %21815 }
0x1088   :  { %v21830_v42 = vsub.f32 %v21798_v11, %v21816_v37 }
0x108a   :  { %v21842_v57 = vmul.f32 1.442695, %v21830_v42 }
0x108c   :  { %41203 = vpow2.f32 %v21842_v57 }
0x108d   :  { %41205 = vpow2.f32 %v21844_v51 }
0x108f   :  { %22796 = vrot.lane.b32.xlu0 %v41868_v21, %s41353_s21 }
0x1096   :  { %v43558_v63 = vpop.eup %41203 }
0x1097   :  { %v21862_v8 = vsel %vm7046_vm8, %v43558_v63, 0.0  ;;  %v43562_v31 = vpop.eup %41205 }
0x1098   :  { %v21865_v11 = vsel %vm7046_vm8, %v43562_v31, 0.0 }
0x109e   :  { %21863 = vadd.xlane.f32.xlu1 %v21862_v8 }
0x10ae   :  { %21866 = vadd.xlane.f32.xlu0 %v21865_v11 }
0x10af   :  { %24155 = vrot.lane.b32.xlu1 %v42368_v62, %s41353_s21 }
0x10bd   :  { %v21855_v5 = vpop.xlane.xlu1 %21854 }
0x10be   :  { %41207 = vrcp.f32 %v21855_v5 }
0x10c1   :  { %v22344_v56 = vpop.permute.xlu1 %22343 }
0x10c2   :  { %v22348_v14 = vsel %vm7139_vm7, %v22344_v56, 0 }
0x10c3   :  { %v43569_v44 = vand.u32 4294901760, %v22348_v14 }
0x10c4   :  { %23702 = vrot.lane.b32.xlu0 %v41881_v4, %s41353_s21 }
0x10c5   :  { %38559 = vmatpush3.msra.mxu0 %v43569_v44  ;;  %v22428_v34 = vsub.f32 %v22348_v14, %v43569_v44 }
0x10c6   :  { %38563 = vmatprep.subr.mxu0 %v41346_v1 }
0x10c7   :  { %v22429_v50 = vand.u32 4294901760, %v22428_v34 }
0x10c8   :  { %v41208_v58 = vpop.eup %41207 }
0x10c9   :  { %v21883_v6 = vmul.f32 %v41208_v58, %v41196_v45  ;;  %v22430_v17 = vsub.f32 %v22428_v34, %v22429_v50 }
0x10cb   :  { %v22346_v24 = vsel %vm7135_vm9, %v21883_v6, 0  ;;  %v22431_v42 = vand.u32 4294901760, %v22430_v17 }
0x10cc   :  { %v43577_v27 = vand.u32 4294901760, %v22346_v24 }
0x10cd   :  { %v21852_v36 = vpop.xlane.xlu0 %21851 }
0x10ce   :  { %41209 = vrcp.f32 %v21852_v36  ;;  %v22417_v16 = vsub.f32 %v22346_v24, %v43577_v27 }
0x10d0   :  { %v22418_v7 = vand.u32 4294901760, %v22417_v16 }
0x10d1   :  { %v21891_v49 = vpop.permute.xlu0 %21890 }
0x10d2   :  { %v21895_v43 = vsel %vm7139_vm7, %v21891_v49, 0  ;;  %v22419_v2 = vsub.f32 %v22417_v16, %v22418_v7 }
0x10d3   :  { %v43581_v37 = vand.u32 4294901760, %v21895_v43 }
0x10d4   :  { %v22420_v45 = vand.u32 4294901760, %v22419_v2 }
0x10d5   :  { %38529 = vmatpush3.msra.mxu1 %v43581_v37  ;;  %v21975_v32 = vsub.f32 %v21895_v43, %v43581_v37 }
0x10d6   :  { %38561 = vmatmul.mubr.f32.vlgmr.msra.gmra.mrb[50].mxu0 %v22420_v45  ;;  %38533 = vmatprep.subr.mxu1 %v41346_v1 }
0x10d7   :  { %38564 = vmatpush3.msra.mxu0 %v22431_v42  ;;  %38565 = vmatprep.mubr.msk.f32.mxu0 %vm41345_vm0, %v41346_v1  ;;  %v21976_v11 = vand.u32 4294901760, %v21975_v32 }
0x10d8   :  { %v41210_v57 = vpop.eup %41209  ;;  %38568 = vmatprep.subr.mxu0 %v41346_v1 }
0x10d9   :  { %v21882_v39 = vmul.f32 %v41210_v57, %v43528_v59  ;;  %v21977_v14 = vsub.f32 %v21975_v32, %v21976_v11 }
0x10db   :  { %v21893_v51 = vsel %vm7135_vm9, %v21882_v39, 0  ;;  %v21978_v6 = vand.u32 4294901760, %v21977_v14 }
0x10dc   :  { %v43591_v8 = vand.u32 4294901760, %v21893_v51 }
0x10de   :  { %38566 = vmatmul.mubr.f32.vlgmr.msra.gmra.mrb[50].mxu0 %v43577_v27  ;;  %v21964_v5 = vsub.f32 %v21893_v51, %v43591_v8 }
0x10df   :  { %38569 = vmatpush3.msra.mxu0 %v22428_v34  ;;  %38570 = vmatprep.mubr.msk.f32.mxu0 %vm41345_vm0, %v41346_v1 }
0x10e0   :  { %38573 = vmatprep.subr.mxu0 %v41346_v1  ;;  %v21965_v56 = vand.u32 4294901760, %v21964_v5 }
0x10e2   :  { %v21966_v59 = vsub.f32 %v21964_v5, %v21965_v56 }
0x10e4   :  { %v21967_v58 = vand.u32 4294901760, %v21966_v59 }
0x10e6   :  { %38531 = vmatmul.mubr.f32.vlgmr.msra.gmra.mrb[48].mxu1 %v21967_v58  ;;  %38571 = vmatmul.mubr.f32.vlgmr.msra.gmra.mrb[50].mxu0 %v22417_v16 }
0x10e7   :  { %38534 = vmatpush3.msra.mxu1 %v21978_v6  ;;  %38574 = vmatpush3.msra.mxu0 %v43569_v44 }
0x10e8   :  { %38535 = vmatprep.mubr.msk.f32.mxu1 %vm41345_vm0, %v41346_v1  ;;  %38538 = vmatprep.subr.mxu1 %v41346_v1 }
0x10e9   :  { %38575 = vmatprep.mubr.msk.f32.mxu0 %vm41345_vm0, %v41346_v1  ;;  %38578 = vmatprep.subr.mxu0 %v41346_v1 }
0x10ee   :  { %38536 = vmatmul.mubr.f32.vlgmr.msra.gmra.mrb[48].mxu1 %v43591_v8  ;;  %38576 = vmatmul.mubr.f32.vlgmr.msra.gmra.mrb[50].mxu0 %v22418_v7 }
0x10ef   :  { %38539 = vmatpush3.msra.mxu1 %v21975_v32  ;;  %38579 = vmatpush3.msra.mxu0 %v22429_v50 }
0x10f0   :  { %38540 = vmatprep.mubr.msk.f32.mxu1 %vm41345_vm0, %v41346_v1  ;;  %38543 = vmatprep.subr.mxu1 %v41346_v1 }
0x10f1   :  { %38580 = vmatprep.mubr.msk.f32.mxu0 %vm41345_vm0, %v41346_v1  ;;  %38583 = vmatprep.subr.mxu0 %v41346_v1 }
0x10f2   :  { %v21822_v34 = vpop.xlane.xlu1 %21821 }
0x10f3   :  { %v21832_v24 = vsub.f32 %v43537_v54, %v21822_v34 }
0x10f5   :  { %v21846_v36 = vmul.f32 1.442695, %v21832_v24 }
0x10f6   :  { %38541 = vmatmul.mubr.f32.vlgmr.msra.gmra.mrb[48].mxu1 %v21964_v5  ;;  %38581 = vmatmul.mubr.f32.vlgmr.msra.gmra.mrb[50].mxu0 %v43577_v27  ;;  %v21861_v16 = vpop.xlane.xlu1 %21860 }
0x10f7   :  { %41211 = vpow2.f32 %v21846_v36  ;;  %38544 = vmatpush3.msra.mxu1 %v43581_v37  ;;  %38584 = vmatpush3.msra.mxu0 %v43569_v44 }
0x10f8   :  { %41213 = vrcp.f32 %v21861_v16  ;;  %38545 = vmatprep.mubr.msk.f32.mxu1 %vm41345_vm0, %v41346_v1  ;;  %38548 = vmatprep.subr.mxu1 %v41346_v1 }
0x10f9   :  { %38585 = vmatprep.mubr.msk.f32.mxu0 %vm41345_vm0, %v41346_v1  ;;  %38618 = vmatprep.subr.mxu0 %v41346_v1 }
0x10fa   :  { %v23250_v54 = vpop.permute.xlu1 %23249 }
0x10fb   :  { %v23254_v50 = vsel %vm7139_vm7, %v23250_v54, 0 }
0x10fc   :  { %v43623_v7 = vand.u32 4294901760, %v23254_v50 }
0x10fe   :  { %38546 = vmatmul.mubr.f32.vlgmr.msra.gmra.mrb[48].mxu1 %v21965_v56  ;;  %38586 = vmatmul.mubr.f32.vlgmr.msra.gmra.mrb[50].mxu0 %v43577_v27  ;;  %v43639_v2 = vsub.f32 %v23254_v50, %v43623_v7 }
0x10ff   :  { %38549 = vmatpush3.msra.mxu1 %v21976_v11  ;;  %38619 = vmatpush3.msra.mxu0 %v43623_v7 }
0x1100   :  { %38550 = vmatprep.mubr.msk.f32.mxu1 %vm41345_vm0, %v41346_v1  ;;  %38553 = vmatprep.subr.mxu1 %v41346_v1  ;;  %v23335_v51 = vand.u32 4294901760, %v43639_v2 }
0x1101   :  { %v43630_v44 = vpop.eup %41211  ;;  %38620 = vmatprep.mubr.msk.f32.mxu0 %vm41345_vm0, %v41346_v1  ;;  %38623 = vmatprep.subr.mxu0 %v41346_v1 }
0x1102   :  { %v41214_v17 = vpop.eup %41213  ;;  %v21825_v49 = vpop.xlane.xlu0 %21824  ;;  %v21868_v27 = vsel %vm7046_vm8, %v43630_v44, 0.0  ;;  %v23336_v5 = vsub.f32 %v43639_v2, %v23335_v51 }
0x1103   :  { %v21885_v43 = vmul.f32 %v41214_v17, %v43541_v22  ;;  %v21833_v45 = vsub.f32 %v43546_v3, %v21825_v49  ;;  %21869 = vadd.xlane.f32.xlu1 %v21868_v27 }
0x1104   :  { %v23337_v58 = vand.u32 4294901760, %v23336_v5 }
0x1105   :  { %v21848_v42 = vmul.f32 1.442695, %v21833_v45  ;;  %v23252_v57 = vsel %vm7135_vm9, %v21885_v43, 0 }
0x1106   :  { %38551 = vmatmul.mubr.f32.vlgmr.msra.gmra.mrb[48].mxu1 %v43591_v8  ;;  %v21858_v39 = vpop.xlane.xlu0 %21857  ;;  %v43644_v32 = vand.u32 4294901760, %v23252_v57 }
0x1107   :  { %41215 = vpow2.f32 %v21848_v42  ;;  %38554 = vmatpush3.msra.mxu1 %v43581_v37  ;;  %38555 = vmatprep.mubr.msk.f32.mxu1 %vm41345_vm0, %v41346_v1 }
0x1108   :  { %41217 = vrcp.f32 %v21858_v39  ;;  %38588 = vmatprep.subr.mxu1 %v41346_v1  ;;  %v23323_v22 = vsub.f32 %v23252_v57, %v43644_v32 }
0x110a   :  { %v22797_v3 = vpop.permute.xlu0 %22796  ;;  %v23324_v11 = vand.u32 4294901760, %v23323_v22 }
0x110b   :  { %v22801_v56 = vsel %vm7139_vm7, %v22797_v3, 0 }
0x110c   :  { %v43654_v14 = vand.u32 4294901760, %v22801_v56  ;;  %v23325_v59 = vsub.f32 %v23323_v22, %v23324_v11 }
0x110e   :  { %38556 = vmatmul.mubr.f32.vlgmr.msra.gmra.mrb[48].mxu1 %v43591_v8  ;;  %v23326_v37 = vand.u32 4294901760, %v23325_v59  ;;  %v22881_v36 = vsub.f32 %v22801_v56, %v43654_v14 }
0x110f   :  { %38589 = vmatpush3.msra.mxu1 %v43654_v14  ;;  %38590 = vmatprep.mubr.msk.f32.mxu1 %vm41345_vm0, %v41346_v1 }
0x1110   :  { %38621 = vmatmul.mubr.f32.vlgmr.msra.gmra.mrb[52].mxu0 %v23326_v37  ;;  %38593 = vmatprep.subr.mxu1 %v41346_v1  ;;  %v22882_v50 = vand.u32 4294901760, %v22881_v36 }
0x1111   :  { %v43661_v6 = vpop.eup %41215  ;;  %38624 = vmatpush3.msra.mxu0 %v23337_v58  ;;  %38625 = vmatprep.mubr.msk.f32.mxu0 %vm41345_vm0, %v41346_v1 }
0x1112   :  { %v41218_v34 = vpop.eup %41217  ;;  %v21871_v8 = vsel %vm7046_vm8, %v43661_v6, 0.0  ;;  %38628 = vmatprep.subr.mxu0 %v41346_v1  ;;  %v22883_v49 = vsub.f32 %v22881_v36, %v22882_v50 }
0x1113   :  { %v21884_v24 = vmul.f32 %v41218_v34, %v43550_v41  ;;  %21872 = vadd.xlane.f32.xlu0 %v21871_v8 }
0x1114   :  { %25061 = vrot.lane.b32.xlu1 %v42454_v0, %s41353_s21  ;;  %v22884_v45 = vand.u32 4294901760, %v22883_v49 }
0x1115   :  { %v22799_v16 = vsel %vm7135_vm9, %v21884_v24, 0 }
0x1116   :  { %v43673_v54 = vand.u32 4294901760, %v22799_v16 }
0x1118   :  { %38626 = vmatmul.mubr.f32.vlgmr.msra.gmra.mrb[52].mxu0 %v43644_v32  ;;  %25543 = vrot.lane.b32.xlu1 %v41851_v10, %s41354_s22  ;;  %v22870_v17 = vsub.f32 %v22799_v16, %v43673_v54 }
0x1119   :  { %38629 = vmatpush3.msra.mxu0 %v43639_v2  ;;  %38630 = vmatprep.mubr.msk.f32.mxu0 %vm41345_vm0, %v41346_v1 }
0x111a   :  { %38633 = vmatprep.subr.mxu0 %v41346_v1  ;;  %v22871_v41 = vand.u32 4294901760, %v22870_v17 }
0x111c   :  { %25545 = vrot.lane.b32.xlu1 %v41851_v10, %s41343_s9  ;;  %v22872_v27 = vsub.f32 %v22870_v17, %v22871_v41 }
0x111e   :  { %v22873_v43 = vand.u32 4294901760, %v22872_v27 }
0x1120   :  { %38591 = vmatmul.mubr.f32.vlgmr.msra.gmra.mrb[50].mxu1 %v22873_v43  ;;  %38631 = vmatmul.mubr.f32.vlgmr.msra.gmra.mrb[52].mxu0 %v23323_v22 }
0x1121   :  { %38594 = vmatpush3.msra.mxu1 %v22884_v45  ;;  %38634 = vmatpush3.msra.mxu0 %v43623_v7 }
0x1122   :  { %26451 = vrot.lane.b32.xlu1 %v41863_v18, %s41354_s22  ;;  %38595 = vmatprep.mubr.msk.f32.mxu1 %vm41345_vm0, %v41346_v1 }
0x1123   :  { %38598 = vmatprep.subr.mxu1 %v41346_v1  ;;  %38635 = vmatprep.mubr.msk.f32.mxu0 %vm41345_vm0, %v41346_v1 }
0x1124   :  { %38638 = vmatprep.subr.mxu0 %v41346_v1 }
0x1126   :  { %26453 = vrot.lane.b32.xlu1 %v41863_v18, %s41343_s9 }
0x1128   :  { %38596 = vmatmul.mubr.f32.vlgmr.msra.gmra.mrb[50].mxu1 %v43673_v54  ;;  %38636 = vmatmul.mubr.f32.vlgmr.msra.gmra.mrb[52].mxu0 %v23324_v11 }
0x1129   :  { %38599 = vmatpush3.msra.mxu1 %v22881_v36  ;;  %38639 = vmatpush3.msra.mxu0 %v23335_v51 }
0x112a   :  { %27359 = vrot.lane.b32.xlu1 %v41876_v28, %s41354_s22  ;;  %24608 = vrot.lane.b32.xlu0 %v41894_v61, %s41353_s21 }
0x112b   :  { %v21864_v10 = vpop.xlane.xlu1 %21863  ;;  %38600 = vmatprep.mubr.msk.f32.mxu1 %vm41345_vm0, %v41346_v1  ;;  %38603 = vmatprep.subr.mxu1 %v41346_v1 }
0x112c   :  { %41219 = vrcp.f32 %v21864_v10  ;;  %38640 = vmatprep.mubr.msk.f32.mxu0 %vm41345_vm0, %v41346_v1  ;;  %38643 = vmatprep.subr.mxu0 %v41346_v1 }
0x112e   :  { %27361 = vrot.lane.b32.xlu1 %v41876_v28, %s41343_s9  ;;  %25997 = vrot.lane.b32.xlu0 %v41859_v15, %s41354_s22 }
0x112f   :  { %v24156_v18 = vpop.permute.xlu1 %24155 }
0x1130   :  { %38641 = vmatmul.mubr.f32.vlgmr.msra.gmra.mrb[52].mxu0 %v43644_v32  ;;  %38601 = vmatmul.mubr.f32.vlgmr.msra.gmra.mrb[50].mxu1 %v22870_v17  ;;  %v24160_v28 = vsel %vm7139_vm7, %v24156_v18, 0 }
0x1131   :  { %38644 = vmatpush3.msra.mxu0 %v43623_v7  ;;  %38604 = vmatpush3.msra.mxu1 %v43654_v14  ;;  %v43730_v2 = vand.u32 4294901760, %v24160_v28 }
0x1132   :  { %28267 = vrot.lane.b32.xlu1 %v41889_v35, %s41354_s22  ;;  %25999 = vrot.lane.b32.xlu0 %v41859_v15, %s41343_s9 }
0x1133   :  { %38605 = vmatprep.mubr.msk.f32.mxu1 %vm41345_vm0, %v41346_v1  ;;  %38608 = vmatprep.subr.mxu1 %v41346_v1  ;;  %v24240_v56 = vsub.f32 %v24160_v28, %v43730_v2 }
0x1134   :  { %38645 = vmatprep.mubr.msk.f32.mxu0 %vm41345_vm0, %v41346_v1  ;;  %38678 = vmatprep.subr.mxu0 %v41346_v1 }
0x1135   :  { %v24241_v8 = vand.u32 4294901760, %v24240_v56 }
0x1136   :  { %v41220_v7 = vpop.eup %41219  ;;  %28269 = vrot.lane.b32.xlu1 %v41889_v35, %s41343_s9  ;;  %26905 = vrot.lane.b32.xlu0 %v41874_v26, %s41354_s22 }
0x1137   :  { %v21886_v15 = vmul.f32 %v41220_v7, %v43558_v63  ;;  %v24242_v36 = vsub.f32 %v24240_v56, %v24241_v8 }
0x1138   :  { %38606 = vmatmul.mubr.f32.vlgmr.msra.gmra.mrb[50].mxu1 %v22871_v41  ;;  %38646 = vmatmul.mubr.f32.vlgmr.msra.gmra.mrb[52].mxu0 %v43644_v32 }
0x1139   :  { %38609 = vmatpush3.msra.mxu1 %v22882_v50  ;;  %38679 = vmatpush3.msra.mxu0 %v43730_v2  ;;  %v23705_v42 = vsel %vm7135_vm9, %v21886_v15, 0  ;;  %v24243_v50 = vand.u32 4294901760, %v24242_v36 }
0x113a   :  { %26907 = vrot.lane.b32.xlu0 %v41874_v26, %s41343_s9  ;;  %38610 = vmatprep.mubr.msk.f32.mxu1 %vm41345_vm0, %v41346_v1  ;;  %v43739_v35 = vand.u32 4294901760, %v23705_v42 }
0x113b   :  { %v21867_v57 = vpop.xlane.xlu0 %21866  ;;  %38613 = vmatprep.subr.mxu1 %v41346_v1  ;;  %38680 = vmatprep.mubr.msk.f32.mxu0 %vm41345_vm0, %v41346_v1 }
0x113c   :  { %41221 = vrcp.f32 %v21867_v57  ;;  %38683 = vmatprep.subr.mxu0 %v41346_v1  ;;  %v23776_v63 = vsub.f32 %v23705_v42, %v43739_v35 }
0x113e   :  { %27813 = vrot.lane.b32.xlu0 %v41887_v30, %s41354_s22  ;;  %v23777_v51 = vand.u32 4294901760, %v23776_v63 }
0x113f   :  { %v23703_v26 = vpop.permute.xlu0 %23702 }
0x1140   :  { %38611 = vmatmul.mubr.f32.vlgmr.msra.gmra.mrb[50].mxu1 %v43673_v54  ;;  %v23707_v39 = vsel %vm7139_vm7, %v23703_v26, 0  ;;  %v23778_v5 = vsub.f32 %v23776_v63, %v23777_v51 }
0x1141   :  { %38614 = vmatpush3.msra.mxu1 %v43654_v14  ;;  %v23710_v32 = vand.u32 4294901760, %v23707_v39  ;;  %38615 = vmatprep.mubr.msk.f32.mxu1 %vm41345_vm0, %v41346_v1 }
0x1142   :  { %27815 = vrot.lane.b32.xlu0 %v41887_v30, %s41343_s9  ;;  %38648 = vmatprep.subr.mxu1 %v41346_v1  ;;  %v23779_v58 = vand.u32 4294901760, %v23778_v5 }
0x1143   :  { %v23787_v22 = vsub.f32 %v23707_v39, %v23710_v32 }
0x1145   :  { %v23788_v3 = vand.u32 4294901760, %v23787_v22 }
0x1146   :  { %v41222_v11 = vpop.eup %41221  ;;  %28721 = vrot.lane.b32.xlu0 %v41900_v13, %s41354_s22 }
0x1147   :  { %v21887_v14 = vmul.f32 %v41222_v11, %v43562_v31  ;;  %v23789_v59 = vsub.f32 %v23787_v22, %v23788_v3 }
0x1148   :  { %38616 = vmatmul.mubr.f32.vlgmr.msra.gmra.mrb[50].mxu1 %v43673_v54 }
0x1149   :  { %v23790_v37 = vand.u32 4294901760, %v23789_v59  ;;  %38649 = vmatpush3.msra.mxu1 %v23710_v32  ;;  %38650 = vmatprep.mubr.msk.f32.mxu1 %vm41345_vm0, %v41346_v1  ;;  %v24158_v30 = vsel %vm7135_vm9, %v21887_v14, 0 }
0x114a   :  { %28723 = vrot.lane.b32.xlu0 %v41900_v13, %s41343_s9  ;;  %38653 = vmatprep.subr.mxu1 %v41346_v1  ;;  %v24228_v34 = vand.u32 4294901760, %v24158_v30 }
0x114c   :  { %38651 = vmatmul.mubr.f32.vlgmr.msra.gmra.mrb[52].mxu1 %v23779_v58  ;;  %v24229_v31 = vsub.f32 %v24158_v30, %v24228_v34 }
0x114d   :  { %38654 = vmatpush3.msra.mxu1 %v23790_v37  ;;  %38655 = vmatprep.mubr.msk.f32.mxu1 %vm41345_vm0, %v41346_v1 }
0x114e   :  { %38658 = vmatprep.subr.mxu1 %v41346_v1  ;;  %v24230_v24 = vand.u32 4294901760, %v24229_v31 }
0x1150   :  { %v24231_v16 = vsub.f32 %v24229_v31, %v24230_v24 }
0x1152   :  { %v24232_v54 = vand.u32 4294901760, %v24231_v16 }
0x1154   :  { %38656 = vmatmul.mubr.f32.vlgmr.msra.gmra.mrb[52].mxu1 %v43739_v35  ;;  %38681 = vmatmul.mubr.f32.vlgmr.msra.gmra.mrb[54].mxu0 %v24232_v54 }
0x1155   :  { %38659 = vmatpush3.msra.mxu1 %v23787_v22  ;;  %38684 = vmatpush3.msra.mxu0 %v24243_v50 }
0x1156   :  { %38660 = vmatprep.mubr.msk.f32.mxu1 %vm41345_vm0, %v41346_v1  ;;  %38663 = vmatprep.subr.mxu1 %v41346_v1 }
0x1157   :  { %38685 = vmatprep.mubr.msk.f32.mxu0 %vm41345_vm0, %v41346_v1  ;;  %38688 = vmatprep.subr.mxu0 %v41346_v1 }
0x115c   :  { %38661 = vmatmul.mubr.f32.vlgmr.msra.gmra.mrb[52].mxu1 %v23776_v63  ;;  %38686 = vmatmul.mubr.f32.vlgmr.msra.gmra.mrb[54].mxu0 %v24228_v34 }
0x115d   :  { %38664 = vmatpush3.msra.mxu1 %v23710_v32  ;;  %38689 = vmatpush3.msra.mxu0 %v24240_v56 }
0x115e   :  { %38665 = vmatprep.mubr.msk.f32.mxu1 %vm41345_vm0, %v41346_v1  ;;  %38668 = vmatprep.subr.mxu1 %v41346_v1 }
0x115f   :  { %38690 = vmatprep.mubr.msk.f32.mxu0 %vm41345_vm0, %v41346_v1  ;;  %38693 = vmatprep.subr.mxu0 %v41346_v1 }
0x1164   :  { %38666 = vmatmul.mubr.f32.vlgmr.msra.gmra.mrb[52].mxu1 %v23777_v51  ;;  %38691 = vmatmul.mubr.f32.vlgmr.msra.gmra.mrb[54].mxu0 %v24229_v31 }
0x1165   :  { %38669 = vmatpush3.msra.mxu1 %v23788_v3  ;;  %38694 = vmatpush3.msra.mxu0 %v43730_v2 }
0x1166   :  { %38670 = vmatprep.mubr.msk.f32.mxu1 %vm41345_vm0, %v41346_v1  ;;  %38673 = vmatprep.subr.mxu1 %v41346_v1 }
0x1167   :  { %38695 = vmatprep.mubr.msk.f32.mxu0 %vm41345_vm0, %v41346_v1  ;;  %38698 = vmatprep.subr.mxu0 %v41346_v1 }
0x116c   :  { %38671 = vmatmul.mubr.f32.vlgmr.msra.gmra.mrb[52].mxu1 %v43739_v35  ;;  %38696 = vmatmul.mubr.f32.vlgmr.msra.gmra.mrb[54].mxu0 %v24230_v24 }
0x116d   :  { %38674 = vmatpush3.msra.mxu1 %v23710_v32  ;;  %38699 = vmatpush3.msra.mxu0 %v24241_v8 }
0x116e   :  { %38675 = vmatprep.mubr.msk.f32.mxu1 %vm41345_vm0, %v41346_v1  ;;  %38700 = vmatprep.mubr.msk.f32.mxu0 %vm41345_vm0, %v41346_v1 }
0x116f   :  { %38703 = vmatprep.subr.mxu0 %v41346_v1  ;;  %38708 = vmatprep.subr.mxu1 %v41346_v1 }
0x1174   :  { %38676 = vmatmul.mubr.f32.vlgmr.msra.gmra.mrb[52].mxu1 %v43739_v35  ;;  %38701 = vmatmul.mubr.f32.vlgmr.msra.gmra.mrb[54].mxu0 %v24228_v34 }
0x1175   :  { %38704 = vmatpush3.msra.mxu0 %v43730_v2  ;;  %38705 = vmatprep.mubr.msk.f32.mxu0 %vm41345_vm0, %v41346_v1 }
0x1176   :  { %38738 = vmatprep.subr.mxu0 %v41346_v1  ;;  %38710 = vmatprep.mubr.msk.f32.mxu1 %vm41345_vm0, %v41346_v1 }
0x117c   :  { %38706 = vmatmul.mubr.f32.vlgmr.msra.gmra.mrb[54].mxu0 %v24228_v34 }
0x117d   :  { %38740 = vmatprep.mubr.msk.f32.mxu0 %vm41345_vm0, %v41346_v1 }
0x1190   :  { %v21870_v13 = vpop.xlane.xlu1 %21869 }
0x1191   :  { %41223 = vrcp.f32 %v21870_v13 }
0x1194   :  { %v25062_v17 = vpop.permute.xlu1 %25061 }
0x1195   :  { %v25066_v41 = vsel %vm7139_vm7, %v25062_v17, 0 }
0x1196   :  { %v43807_v49 = vand.u32 4294901760, %v25066_v41 }
0x1198   :  { %38739 = vmatpush3.msra.mxu0 %v43807_v49  ;;  %v43822_v51 = vsub.f32 %v25066_v41, %v43807_v49  ;;  %v25544_v37 = vpop.permute.xlu1 %25543 }
0x1199   :  { %38743 = vmatprep.subr.mxu0 %v41346_v1  ;;  %v25547_v8 = vsel %vm50_vm1, %v25544_v37, 0 }
0x119a   :  { %v25147_v5 = vand.u32 4294901760, %v43822_v51  ;;  %v43845_v24 = vand.u32 4294901760, %v25547_v8 }
0x119b   :  { %v41224_v27 = vpop.eup %41223 }
0x119c   :  { %v21888_v43 = vmul.f32 %v41224_v27, %v43630_v44  ;;  %v25148_v14 = vsub.f32 %v43822_v51, %v25147_v5  ;;  %v25546_v34 = vpop.permute.xlu1 %25545  ;;  %v43856_v16 = vsub.f32 %v25547_v8, %v43845_v24 }
0x119d   :  { %v25549_v31 = vsel %vm50_vm1, %v25546_v34, 0 }
0x119e   :  { %v24611_v45 = vsel %vm7135_vm9, %v21888_v43, 0  ;;  %v25149_v58 = vand.u32 4294901760, %v25148_v14  ;;  %v43849_v36 = vand.u32 4294901760, %v25549_v31  ;;  %v25619_v13 = vand.u32 4294901760, %v43856_v16 }
0x119f   :  { %v43813_v10 = vand.u32 4294901760, %v24611_v45 }
0x11a0   :  { %v21873_v18 = vpop.xlane.xlu0 %21872  ;;  %v43859_v54 = vsub.f32 %v25549_v31, %v43849_v36  ;;  %v25620_v41 = vsub.f32 %v43856_v16, %v25619_v13 }
0x11a1   :  { %41225 = vrcp.f32 %v21873_v18  ;;  %v24682_v28 = vsub.f32 %v24611_v45, %v43813_v10 }
0x11a2   :  { %v25630_v17 = vand.u32 4294901760, %v43859_v54 }
0x11a3   :  { %v24683_v7 = vand.u32 4294901760, %v24682_v28 }
0x11a4   :  { %v24609_v15 = vpop.permute.xlu0 %24608  ;;  %v25631_v27 = vsub.f32 %v43859_v54, %v25630_v17 }
0x11a5   :  { %v24613_v2 = vsel %vm7139_vm7, %v24609_v15, 0  ;;  %v24684_v42 = vsub.f32 %v24682_v28, %v24683_v7 }
0x11a6   :  { %v24616_v35 = vand.u32 4294901760, %v24613_v2 }
0x11a7   :  { %v24685_v57 = vand.u32 4294901760, %v24684_v42 }
0x11a8   :  { %v24693_v63 = vsub.f32 %v24613_v2, %v24616_v35  ;;  %38709 = vmatpush3.msra.mxu1 %v24616_v35  ;;  %v25998_v50 = vpop.permute.xlu0 %25997  ;;  %v25632_v2 = vand.u32 4294901760, %v25631_v27 }
0x11a9   :  { %38711 = vmatmul.mubr.f32.vlgmr.msra.gmra.mrb[54].mxu1 %v24685_v57  ;;  %38713 = vmatprep.subr.mxu1 %v41346_v1  ;;  %v26001_v18 = vsel %vm50_vm1, %v25998_v50, 0 }
0x11aa   :  { %v24694_v44 = vand.u32 4294901760, %v24693_v63  ;;  %38715 = vmatprep.mubr.msk.f32.mxu1 %vm41345_vm0, %v41346_v1 }
0x11ab   :  { %v41226_v26 = vpop.eup %41225 }
0x11ac   :  { %v21889_v39 = vmul.f32 %v41226_v26, %v43661_v6  ;;  %v24695_v32 = vsub.f32 %v24693_v63, %v24694_v44  ;;  %v26000_v43 = vpop.permute.xlu0 %25999 }
0x11ad   :  { %v26003_v15 = vsel %vm50_vm1, %v26000_v43, 0 }
0x11ae   :  { %v24696_v22 = vand.u32 4294901760, %v24695_v32  ;;  %v25064_v3 = vsel %vm7135_vm9, %v21889_v39, 0  ;;  %v43889_v42 = vand.u32 4294901760, %v26003_v15 }
0x11af   :  { %v43825_v11 = vand.u32 4294901760, %v25064_v3 }
0x11b0   :  { %38714 = vmatpush3.msra.mxu1 %v24696_v22  ;;  %v43898_v57 = vsub.f32 %v26003_v15, %v43889_v42  ;;  %v26452_v22 = vpop.permute.xlu1 %26451 }
0x11b1   :  { %38716 = vmatmul.mubr.f32.vlgmr.msra.gmra.mrb[54].mxu1 %v43813_v10  ;;  %38718 = vmatprep.subr.mxu1 %v41346_v1  ;;  %v25135_v6 = vsub.f32 %v25064_v3, %v43825_v11 }
0x11b2   :  { %38719 = vmatpush3.msra.mxu1 %v24693_v63  ;;  %38720 = vmatprep.mubr.msk.f32.mxu1 %vm41345_vm0, %v41346_v1 }
0x11b3   :  { %38723 = vmatprep.subr.mxu1 %v41346_v1  ;;  %v25136_v56 = vand.u32 4294901760, %v25135_v6 }
0x11b5   :  { %v25137_v59 = vsub.f32 %v25135_v6, %v25136_v56 }
0x11b7   :  { %v25138_v30 = vand.u32 4294901760, %v25137_v59 }
0x11b9   :  { %38721 = vmatmul.mubr.f32.vlgmr.msra.gmra.mrb[54].mxu1 %v24682_v28  ;;  %38741 = vmatmul.mubr.f32.vlgmr.msra.gmra.mrb[56].mxu0 %v25138_v30 }
0x11ba   :  { %38724 = vmatpush3.msra.mxu1 %v24616_v35  ;;  %38725 = vmatprep.mubr.msk.f32.mxu1 %vm41345_vm0, %v41346_v1 }
0x11bb   :  { %38728 = vmatprep.subr.mxu1 %v41346_v1  ;;  %38744 = vmatpush3.msra.mxu0 %v25149_v58  ;;  %v26906_v58 = vpop.permute.xlu0 %26905 }
0x11bc   :  { %38745 = vmatprep.mubr.msk.f32.mxu0 %vm41345_vm0, %v41346_v1  ;;  %38748 = vmatprep.subr.mxu0 %v41346_v1 }
0x11c1   :  { %38726 = vmatmul.mubr.f32.vlgmr.msra.gmra.mrb[54].mxu1 %v24683_v7  ;;  %38746 = vmatmul.mubr.f32.vlgmr.msra.gmra.mrb[56].mxu0 %v43825_v11  ;;  %v25621_v7 = vand.u32 4294901760, %v25620_v41 }
0x11c2   :  { %38729 = vmatpush3.msra.mxu1 %v24694_v44  ;;  %38730 = vmatprep.mubr.msk.f32.mxu1 %vm41345_vm0, %v41346_v1  ;;  %v26084_v44 = vand.u32 4294901760, %v43898_v57 }
0x11c3   :  { %38733 = vmatprep.subr.mxu1 %v41346_v1  ;;  %38749 = vmatpush3.msra.mxu0 %v43822_v51 }
0x11c4   :  { %38750 = vmatprep.mubr.msk.f32.mxu0 %vm41345_vm0, %v41346_v1  ;;  %38753 = vmatprep.subr.mxu0 %v41346_v1  ;;  %v26085_v39 = vsub.f32 %v43898_v57, %v26084_v44 }
0x11c9   :  { %38731 = vmatmul.mubr.f32.vlgmr.msra.gmra.mrb[54].mxu1 %v43813_v10  ;;  %38751 = vmatmul.mubr.f32.vlgmr.msra.gmra.mrb[56].mxu0 %v25135_v6  ;;  %v26455_v6 = vsel %vm50_vm1, %v26452_v22, 0 }
0x11ca   :  { %38734 = vmatpush3.msra.mxu1 %v24616_v35  ;;  %38735 = vmatprep.mubr.msk.f32.mxu1 %vm41345_vm0, %v41346_v1  ;;  %v43937_v14 = vand.u32 4294901760, %v26455_v6 }
0x11cb   :  { %38768 = vmatprep.subr.mxu1 %v41346_v1  ;;  %38754 = vmatpush3.msra.mxu0 %v43807_v49 }
0x11cc   :  { %38755 = vmatprep.mubr.msk.f32.mxu0 %vm41345_vm0, %v41346_v1  ;;  %38758 = vmatprep.subr.mxu0 %v41346_v1  ;;  %v43948_v37 = vsub.f32 %v26455_v6, %v43937_v14 }
0x11ce   :  { %v26527_v34 = vand.u32 4294901760, %v43948_v37 }
0x11d0   :  { %v26528_v31 = vsub.f32 %v43948_v37, %v26527_v34 }
0x11d1   :  { %v43875_v45 = vpop.f32.mrb[50].mxu0  ;;  %38736 = vmatmul.mubr.f32.vlgmr.msra.gmra.mrb[54].mxu1 %v43813_v10  ;;  %38756 = vmatmul.mubr.f32.vlgmr.msra.gmra.mrb[56].mxu0 %v25136_v56  ;;  %v43886_v10 = vand.u32 4294901760, %v26001_v18 }
0x11d2   :  { %38769 = vmatpush3.xpose.msra.mxu1 %v43849_v36  ;;  %v38587_v28 = vpop.f32.mrb[51].mxu0  ;;  %38770 = vmatprep.mubr.msk.f32.mxu1 %vm41345_vm0, %v41346_v1  ;;  %v26529_v50 = vand.u32 4294901760, %v26528_v31 }
0x11d3   :  { %38773 = vmatprep.subr.mxu1 %v41346_v1  ;;  %38759 = vmatpush3.msra.mxu0 %v25147_v5  ;;  %v43895_v35 = vsub.f32 %v26001_v18, %v43886_v10  ;;  %v26086_v5 = vand.u32 4294901760, %v26085_v39 }
0x11d4   :  { %38760 = vmatprep.mubr.msk.f32.mxu0 %vm41345_vm0, %v41346_v1  ;;  %38763 = vmatprep.subr.mxu0 %v41346_v1 }
0x11d5   :  { %38771 = vmatmul.mubr.f32.vlgmr.msra.gmra.mrb[56].mxu1 %v25621_v7  ;;  %v26073_v63 = vand.u32 4294901760, %v43895_v35 }
0x11d6   :  { %38774 = vmatpush3.xpose.msra.mxu1 %v25632_v2  ;;  %38775 = vmatprep.mubr.msk.f32.mxu1 %vm41345_vm0, %v41346_v1 }
0x11d7   :  { %38778 = vmatprep.subr.mxu1 %v41346_v1 }
0x11d9   :  { %38761 = vmatmul.mubr.f32.vlgmr.msra.gmra.mrb[56].mxu0 %v43825_v11 }
0x11da   :  { %38764 = vmatpush3.msra.mxu0 %v43807_v49  ;;  %38765 = vmatprep.mubr.msk.f32.mxu0 %vm41345_vm0, %v41346_v1  ;;  %v26074_v49 = vsub.f32 %v43895_v35, %v26073_v63 }
0x11db   :  { %38798 = vmatprep.subr.mxu0 %v41346_v1 }
0x11dc   :  { %v26075_v3 = vand.u32 4294901760, %v26074_v49 }
0x11dd   :  { %38776 = vmatmul.mubr.f32.vlgmr.msra.gmra.mrb[56].mxu1 %v43845_v24 }
0x11de   :  { %38779 = vmatpush3.xpose.msra.mxu1 %v43859_v54  ;;  %38780 = vmatprep.mubr.msk.f32.mxu1 %vm41345_vm0, %v41346_v1  ;;  %v26909_v54 = vsel %vm50_vm1, %v26906_v58, 0 }
0x11df   :  { %38783 = vmatprep.subr.mxu1 %v41346_v1  ;;  %v43976_v41 = vand.u32 4294901760, %v26909_v54 }
0x11e1   :  { %v43913_v26 = vpop.f32.mrb[48].mxu1  ;;  %38766 = vmatmul.mubr.f32.vlgmr.msra.gmra.mrb[56].mxu0 %v43825_v11  ;;  %v26454_v11 = vpop.permute.xlu1 %26453  ;;  %v43985_v27 = vsub.f32 %v26909_v54, %v43976_v41 }
0x11e2   :  { %v25522_v32 = vcombine.low %v43913_v26, %v43875_v45  ;;  %v38557_v51 = vpop.f32.mrb[49].mxu1  ;;  %38799 = vmatpush3.xpose.msra.mxu0 %v43889_v42  ;;  %38800 = vmatprep.mubr.msk.f32.mxu0 %vm41345_vm0, %v41346_v1  ;;  %v26457_v56 = vsel %vm50_vm1, %v26454_v11, 0 }
0x11e3   :  { %38803 = vmatprep.subr.mxu0 %v41346_v1  ;;  %v43941_v59 = vand.u32 4294901760, %v26457_v56  ;;  %v26981_v18 = vand.u32 4294901760, %v43985_v27 }
0x11e5   :  { %38781 = vmatmul.mubr.f32.vlgmr.msra.gmra.mrb[56].mxu1 %v43856_v16  ;;  %38801 = vmatmul.mubr.f32.vlgmr.msra.gmra.mrb[58].mxu0 %v26075_v3  ;;  %v43951_v30 = vsub.f32 %v26457_v56, %v43941_v59  ;;  %v26908_v16 = vpop.permute.xlu0 %26907  ;;  %v26982_v2 = vsub.f32 %v43985_v27, %v26981_v18 }
0x11e6   :  { %38784 = vmatpush3.xpose.msra.mxu1 %v43849_v36  ;;  %38785 = vmatprep.mubr.msk.f32.mxu1 %vm41345_vm0, %v41346_v1 }
0x11e7   :  { %38788 = vmatprep.subr.mxu1 %v41346_v1  ;;  %38804 = vmatpush3.xpose.msra.mxu0 %v26086_v5  ;;  %v26538_v8 = vand.u32 4294901760, %v43951_v30 }
0x11e8   :  { %38805 = vmatprep.mubr.msk.f32.mxu0 %vm41345_vm0, %v41346_v1  ;;  %38808 = vmatprep.subr.mxu0 %v41346_v1 }
0x11e9   :  { %v27814_v56 = vpop.permute.xlu0 %27813 }
0x11ed   :  { %38786 = vmatmul.mubr.f32.vlgmr.msra.gmra.mrb[56].mxu1 %v25619_v13  ;;  %38806 = vmatmul.mubr.f32.vlgmr.msra.gmra.mrb[58].mxu0 %v43886_v10  ;;  %v26911_v13 = vsel %vm50_vm1, %v26908_v16, 0 }
0x11ee   :  { %38789 = vmatpush3.xpose.msra.mxu1 %v25630_v17  ;;  %38790 = vmatprep.mubr.msk.f32.mxu1 %vm41345_vm0, %v41346_v1 }
0x11ef   :  { %38793 = vmatprep.subr.mxu1 %v41346_v1  ;;  %38809 = vmatpush3.xpose.msra.mxu0 %v43898_v57  ;;  %v26983_v57 = vand.u32 4294901760, %v26982_v2 }
0x11f0   :  { %38810 = vmatprep.mubr.msk.f32.mxu0 %vm41345_vm0, %v41346_v1  ;;  %38813 = vmatprep.subr.mxu0 %v41346_v1 }
0x11f5   :  { %38791 = vmatmul.mubr.f32.vlgmr.msra.gmra.mrb[56].mxu1 %v43845_v24  ;;  %38811 = vmatmul.mubr.f32.vlgmr.msra.gmra.mrb[58].mxu0 %v43895_v35  ;;  %v27360_v35 = vpop.permute.xlu1 %27359 }
0x11f6   :  { %38794 = vmatpush3.xpose.msra.mxu1 %v43849_v36  ;;  %38795 = vmatprep.mubr.msk.f32.mxu1 %vm41345_vm0, %v41346_v1  ;;  %v26539_v36 = vsub.f32 %v43951_v30, %v26538_v8 }
0x11f7   :  { %38828 = vmatprep.subr.mxu1 %v41346_v1  ;;  %38814 = vmatpush3.xpose.msra.mxu0 %v43889_v42 }
0x11f8   :  { %38815 = vmatprep.mubr.msk.f32.mxu0 %vm41345_vm0, %v41346_v1  ;;  %38818 = vmatprep.subr.mxu0 %v41346_v1  ;;  %v26540_v17 = vand.u32 4294901760, %v26539_v36 }
0x11fd   :  { %38796 = vmatmul.mubr.f32.vlgmr.msra.gmra.mrb[56].mxu1 %v43845_v24  ;;  %38816 = vmatmul.mubr.f32.vlgmr.msra.gmra.mrb[58].mxu0 %v26073_v63  ;;  %v43979_v24 = vand.u32 4294901760, %v26911_v13 }
0x11fe   :  { %38829 = vmatpush3.xpose.msra.mxu1 %v43941_v59  ;;  %38830 = vmatprep.mubr.msk.f32.mxu1 %vm41345_vm0, %v41346_v1 }
0x11ff   :  { %38833 = vmatprep.subr.mxu1 %v41346_v1  ;;  %38819 = vmatpush3.xpose.msra.mxu0 %v26084_v44  ;;  %v43988_v43 = vsub.f32 %v26911_v13, %v43979_v24  ;;  %v27363_v44 = vsel %vm50_vm1, %v27360_v35, 0 }
0x1200   :  { %38820 = vmatprep.mubr.msk.f32.mxu0 %vm41345_vm0, %v41346_v1  ;;  %38823 = vmatprep.subr.mxu0 %v41346_v1  ;;  %v44027_v39 = vand.u32 4294901760, %v27363_v44 }
0x1201   :  { %38831 = vmatmul.mubr.f32.vlgmr.msra.gmra.mrb[58].mxu1 %v26529_v50  ;;  %v26992_v28 = vand.u32 4294901760, %v43988_v43 }
0x1202   :  { %38834 = vmatpush3.xpose.msra.mxu1 %v26540_v17  ;;  %38835 = vmatprep.mubr.msk.f32.mxu1 %vm41345_vm0, %v41346_v1  ;;  %v44042_v11 = vsub.f32 %v27363_v44, %v44027_v39 }
0x1203   :  { %38838 = vmatprep.subr.mxu1 %v41346_v1 }
0x1205   :  { %38821 = vmatmul.mubr.f32.vlgmr.msra.gmra.mrb[58].mxu0 %v43886_v10 }
0x1206   :  { %38824 = vmatpush3.xpose.msra.mxu0 %v43889_v42  ;;  %38825 = vmatprep.mubr.msk.f32.mxu0 %vm41345_vm0, %v41346_v1  ;;  %v26993_v42 = vsub.f32 %v43988_v43, %v26992_v28 }
0x1207   :  { %38858 = vmatprep.subr.mxu0 %v41346_v1 }
0x1208   :  { %v26994_v63 = vand.u32 4294901760, %v26993_v42 }
0x1209   :  { %38836 = vmatmul.mubr.f32.vlgmr.msra.gmra.mrb[58].mxu1 %v43937_v14 }
0x120a   :  { %38839 = vmatpush3.xpose.msra.mxu1 %v43951_v30  ;;  %38840 = vmatprep.mubr.msk.f32.mxu1 %vm41345_vm0, %v41346_v1 }
0x120b   :  { %v44001_v7 = vpop.f32.mrb[52].mxu0  ;;  %38843 = vmatprep.subr.mxu1 %v41346_v1 }
0x120c   :  { %v38647_v15 = vpop.f32.mrb[53].mxu0 }
0x120d   :  { %38826 = vmatmul.mubr.f32.vlgmr.msra.gmra.mrb[58].mxu0 %v43886_v10  ;;  %v27362_v10 = vpop.permute.xlu1 %27361 }
0x120e   :  { %38859 = vmatpush3.xpose.msra.mxu0 %v43979_v24  ;;  %38860 = vmatprep.mubr.msk.f32.mxu0 %vm41345_vm0, %v41346_v1  ;;  %v27365_v49 = vsel %vm50_vm1, %v27362_v10, 0 }
0x120f   :  { %38863 = vmatprep.subr.mxu0 %v41346_v1  ;;  %v44033_v22 = vand.u32 4294901760, %v27365_v49 }
0x1211   :  { %38841 = vmatmul.mubr.f32.vlgmr.msra.gmra.mrb[58].mxu1 %v43948_v37  ;;  %38861 = vmatmul.mubr.f32.vlgmr.msra.gmra.mrb[60].mxu0 %v26983_v57  ;;  %v44045_v6 = vsub.f32 %v27365_v49, %v44033_v22  ;;  %v27435_v37 = vand.u32 4294901760, %v44042_v11 }
0x1212   :  { %38844 = vmatpush3.xpose.msra.mxu1 %v43941_v59  ;;  %38845 = vmatprep.mubr.msk.f32.mxu1 %vm41345_vm0, %v41346_v1 }
0x1213   :  { %38848 = vmatprep.subr.mxu1 %v41346_v1  ;;  %38864 = vmatpush3.xpose.msra.mxu0 %v26994_v63  ;;  %v27446_v30 = vand.u32 4294901760, %v44045_v6 }
0x1214   :  { %38865 = vmatprep.mubr.msk.f32.mxu0 %vm41345_vm0, %v41346_v1  ;;  %38868 = vmatprep.subr.mxu0 %v41346_v1 }
0x1215   :  { %v27447_v58 = vsub.f32 %v44045_v6, %v27446_v30 }
0x1217   :  { %v27448_v16 = vand.u32 4294901760, %v27447_v58 }
0x1219   :  { %38846 = vmatmul.mubr.f32.vlgmr.msra.gmra.mrb[58].mxu1 %v26527_v34  ;;  %38866 = vmatmul.mubr.f32.vlgmr.msra.gmra.mrb[60].mxu0 %v43976_v41  ;;  %v27816_v34 = vpop.permute.xlu0 %27815 }
0x121a   :  { %38849 = vmatpush3.xpose.msra.mxu1 %v26538_v8  ;;  %38850 = vmatprep.mubr.msk.f32.mxu1 %vm41345_vm0, %v41346_v1  ;;  %v27817_v8 = vsel %vm50_vm1, %v27814_v56, 0  ;;  %v27819_v36 = vsel %vm50_vm1, %v27816_v34, 0 }
0x121b   :  { %v44030_v51 = vpop.f32.mrb[50].mxu1  ;;  %38853 = vmatprep.subr.mxu1 %v41346_v1  ;;  %38869 = vmatpush3.xpose.msra.mxu0 %v43988_v43  ;;  %v44077_v54 = vand.u32 4294901760, %v27819_v36 }
0x121c   :  { %v25523_v3 = vcombine.low %v44030_v51, %v44001_v7  ;;  %v38617_v5 = vpop.f32.mrb[51].mxu1  ;;  %38870 = vmatprep.mubr.msk.f32.mxu0 %vm41345_vm0, %v41346_v1  ;;  %38873 = vmatprep.subr.mxu0 %v41346_v1 }
0x121d   :  { %v44086_v13 = vsub.f32 %v27819_v36, %v44077_v54  ;;  %v28722_v5 = vpop.permute.xlu0 %28721 }
0x121e   :  { %v28725_v34 = vsel %vm50_vm1, %v28722_v5, 0 }
0x1221   :  { %38851 = vmatmul.mubr.f32.vlgmr.msra.gmra.mrb[58].mxu1 %v43937_v14  ;;  %38871 = vmatmul.mubr.f32.vlgmr.msra.gmra.mrb[60].mxu0 %v43985_v27  ;;  %v27900_v27 = vand.u32 4294901760, %v44086_v13  ;;  %v28724_v58 = vpop.permute.xlu0 %28723 }
0x1222   :  { %38854 = vmatpush3.xpose.msra.mxu1 %v43941_v59  ;;  %38855 = vmatprep.mubr.msk.f32.mxu1 %vm41345_vm0, %v41346_v1  ;;  %v27436_v59 = vsub.f32 %v44042_v11, %v27435_v37 }
0x1223   :  { %38888 = vmatprep.subr.mxu1 %v41346_v1  ;;  %38874 = vmatpush3.xpose.msra.mxu0 %v43979_v24  ;;  %v27901_v43 = vsub.f32 %v44086_v13, %v27900_v27 }
0x1224   :  { %38875 = vmatprep.mubr.msk.f32.mxu0 %vm41345_vm0, %v41346_v1  ;;  %38878 = vmatprep.subr.mxu0 %v41346_v1  ;;  %v27437_v31 = vand.u32 4294901760, %v27436_v59 }
0x1225   :  { %v27902_v15 = vand.u32 4294901760, %v27901_v43 }
0x1229   :  { %38856 = vmatmul.mubr.f32.vlgmr.msra.gmra.mrb[58].mxu1 %v43937_v14  ;;  %38876 = vmatmul.mubr.f32.vlgmr.msra.gmra.mrb[60].mxu0 %v26981_v18  ;;  %v44074_v14 = vand.u32 4294901760, %v27817_v8  ;;  %v28268_v18 = vpop.permute.xlu1 %28267 }
0x122a   :  { %38889 = vmatpush3.xpose.msra.mxu1 %v44033_v22  ;;  %38890 = vmatprep.mubr.msk.f32.mxu1 %vm41345_vm0, %v41346_v1  ;;  %v28271_v2 = vsel %vm50_vm1, %v28268_v18, 0 }
0x122b   :  { %38893 = vmatprep.subr.mxu1 %v41346_v1  ;;  %38879 = vmatpush3.xpose.msra.mxu0 %v26992_v28  ;;  %v44083_v50 = vsub.f32 %v27817_v8, %v44074_v14  ;;  %v44123_v35 = vand.u32 4294901760, %v28271_v2 }
0x122c   :  { %38880 = vmatprep.mubr.msk.f32.mxu0 %vm41345_vm0, %v41346_v1  ;;  %38883 = vmatprep.subr.mxu0 %v41346_v1 }
0x122d   :  { %38891 = vmatmul.mubr.f32.vlgmr.msra.gmra.mrb[60].mxu1 %v27437_v31  ;;  %v27889_v17 = vand.u32 4294901760, %v44083_v50  ;;  %v44136_v44 = vsub.f32 %v28271_v2, %v44123_v35  ;;  %v28727_v31 = vsel %vm50_vm1, %v28724_v58, 0 }
0x122e   :  { %38894 = vmatpush3.xpose.msra.mxu1 %v27448_v16  ;;  %38895 = vmatprep.mubr.msk.f32.mxu1 %vm41345_vm0, %v41346_v1  ;;  %v28730_v16 = vand.u32 4294901760, %v28727_v31 }
0x122f   :  { %38898 = vmatprep.subr.mxu1 %v41346_v1 }
0x1231   :  { %38881 = vmatmul.mubr.f32.vlgmr.msra.gmra.mrb[60].mxu0 %v43976_v41 }
0x1232   :  { %38884 = vmatpush3.xpose.msra.mxu0 %v43979_v24  ;;  %38885 = vmatprep.mubr.msk.f32.mxu0 %vm41345_vm0, %v41346_v1  ;;  %v27890_v24 = vsub.f32 %v44083_v50, %v27889_v17 }
0x1233   :  { %38918 = vmatprep.subr.mxu0 %v41346_v1 }
0x1234   :  { %v27891_v28 = vand.u32 4294901760, %v27890_v24 }
0x1235   :  { %38896 = vmatmul.mubr.f32.vlgmr.msra.gmra.mrb[60].mxu1 %v44027_v39 }
0x1236   :  { %38899 = vmatpush3.xpose.msra.mxu1 %v44045_v6  ;;  %38900 = vmatprep.mubr.msk.f32.mxu1 %vm41345_vm0, %v41346_v1 }
0x1237   :  { %38903 = vmatprep.subr.mxu1 %v41346_v1 }
0x1239   :  { %38886 = vmatmul.mubr.f32.vlgmr.msra.gmra.mrb[60].mxu0 %v43976_v41  ;;  %v28270_v41 = vpop.permute.xlu1 %28269 }
0x123a   :  { %38919 = vmatpush3.xpose.msra.mxu0 %v44077_v54  ;;  %38920 = vmatprep.mubr.msk.f32.mxu0 %vm41345_vm0, %v41346_v1  ;;  %v28273_v42 = vsel %vm50_vm1, %v28270_v41, 0  ;;  %vm35902_vm1 = vcmask 1045509  }
0x123b   :  { %38923 = vmatprep.subr.mxu0 %v41346_v1  ;;  %v44129_v63 = vand.u32 4294901760, %v28273_v42 }
0x123d   :  { %38901 = vmatmul.mubr.f32.vlgmr.msra.gmra.mrb[60].mxu1 %v44042_v11  ;;  %38921 = vmatmul.mubr.f32.vlgmr.msra.gmra.mrb[62].mxu0 %v27891_v28  ;;  %v44139_v49 = vsub.f32 %v28273_v42, %v44129_v63  ;;  %v28343_v11 = vand.u32 4294901760, %v44136_v44 }
0x123e   :  { %38904 = vmatpush3.xpose.msra.mxu1 %v44033_v22  ;;  %38905 = vmatprep.mubr.msk.f32.mxu1 %vm41345_vm0, %v41346_v1 }
0x123f   :  { %38908 = vmatprep.subr.mxu1 %v41346_v1  ;;  %38924 = vmatpush3.xpose.msra.mxu0 %v27902_v15  ;;  %v28354_v56 = vand.u32 4294901760, %v44139_v49 }
0x1240   :  { %38925 = vmatprep.mubr.msk.f32.mxu0 %vm41345_vm0, %v41346_v1  ;;  %38928 = vmatprep.subr.mxu0 %v41346_v1 }
0x1241   :  { %v28355_v59 = vsub.f32 %v44139_v49, %v28354_v56 }
0x1243   :  { %v28356_v36 = vand.u32 4294901760, %v28355_v59 }
0x1245   :  { %38906 = vmatmul.mubr.f32.vlgmr.msra.gmra.mrb[60].mxu1 %v27435_v37  ;;  %38926 = vmatmul.mubr.f32.vlgmr.msra.gmra.mrb[62].mxu0 %v44074_v14 }
0x1246   :  { %38909 = vmatpush3.xpose.msra.mxu1 %v27446_v30  ;;  %38910 = vmatprep.mubr.msk.f32.mxu1 %vm41345_vm0, %v41346_v1 }
0x1247   :  { %v44126_v57 = vpop.f32.mrb[52].mxu1  ;;  %38913 = vmatprep.subr.mxu1 %v41346_v1  ;;  %38929 = vmatpush3.xpose.msra.mxu0 %v44086_v13 }
0x1248   :  { %v38677_v10 = vpop.f32.mrb[53].mxu1  ;;  %38930 = vmatprep.mubr.msk.f32.mxu0 %vm41345_vm0, %v41346_v1  ;;  %38933 = vmatprep.subr.mxu0 %v41346_v1 }
0x1249   :  { %v44229_v10 = vld [vmem:[#allocation4 + $0x1b8] sm:$0xf] }
0x124d   :  { %38911 = vmatmul.mubr.f32.vlgmr.msra.gmra.mrb[60].mxu1 %v44027_v39  ;;  %38931 = vmatmul.mubr.f32.vlgmr.msra.gmra.mrb[62].mxu0 %v44083_v50 }
0x124e   :  { %38914 = vmatpush3.xpose.msra.mxu1 %v44033_v22  ;;  %38915 = vmatprep.mubr.msk.f32.mxu1 %vm41345_vm0, %v41346_v1  ;;  %v28344_v22 = vsub.f32 %v44136_v44, %v28343_v11 }
0x124f   :  { %v44147_v6 = vpop.f32.mrb[54].mxu0  ;;  %38948 = vmatprep.subr.mxu1 %v41346_v1  ;;  %38934 = vmatpush3.xpose.msra.mxu0 %v44077_v54 }
0x1250   :  { %v25524_v37 = vcombine.low %v44126_v57, %v44147_v6  ;;  %v38707_v30 = vpop.f32.mrb[55].mxu0  ;;  %38935 = vmatprep.mubr.msk.f32.mxu0 %vm41345_vm0, %v41346_v1  ;;  %38938 = vmatprep.subr.mxu0 %v41346_v1  ;;  %v28345_v8 = vand.u32 4294901760, %v28344_v22  ;;  %v32968_v57 = vand.u32 4294901760, %v44579_v23 }
0x1255   :  { %38916 = vmatmul.mubr.f32.vlgmr.msra.gmra.mrb[60].mxu1 %v44027_v39  ;;  %38936 = vmatmul.mubr.f32.vlgmr.msra.gmra.mrb[62].mxu0 %v27889_v17  ;;  %v28795_v39 = vand.u32 4294901760, %v28725_v34  ;;  %v28807_v17 = vsub.f32 %v28727_v31, %v28730_v16 }
0x1256   :  { %38949 = vmatpush3.xpose.msra.mxu1 %v44129_v63  ;;  %38950 = vmatprep.mubr.msk.f32.mxu1 %vm41345_vm0, %v41346_v1 }
0x1257   :  { %38953 = vmatprep.subr.mxu1 %v41346_v1  ;;  %38939 = vmatpush3.xpose.msra.mxu0 %v27900_v27  ;;  %v28796_v50 = vsub.f32 %v28725_v34, %v28795_v39  ;;  %v28808_v27 = vand.u32 4294901760, %v28807_v17 }
0x1258   :  { %38940 = vmatprep.mubr.msk.f32.mxu0 %vm41345_vm0, %v41346_v1  ;;  %38943 = vmatprep.subr.mxu0 %v41346_v1 }
0x1259   :  { %38951 = vmatmul.mubr.f32.vlgmr.msra.gmra.mrb[62].mxu1 %v28345_v8  ;;  %v28797_v13 = vand.u32 4294901760, %v28796_v50  ;;  %v28809_v43 = vsub.f32 %v28807_v17, %v28808_v27 }
0x125a   :  { %38954 = vmatpush3.xpose.msra.mxu1 %v28356_v36  ;;  %38955 = vmatprep.mubr.msk.f32.mxu1 %vm41345_vm0, %v41346_v1 }
0x125b   :  { %38958 = vmatprep.subr.mxu1 %v41346_v1  ;;  %v28798_v24 = vsub.f32 %v28796_v50, %v28797_v13  ;;  %v28810_v18 = vand.u32 4294901760, %v28809_v43 }
0x125d   :  { %38941 = vmatmul.mubr.f32.vlgmr.msra.gmra.mrb[62].mxu0 %v44074_v14 }
0x125e   :  { %38944 = vmatpush3.xpose.msra.mxu0 %v44077_v54  ;;  %38945 = vmatprep.mubr.msk.f32.mxu0 %vm41345_vm0, %v41346_v1  ;;  %v28799_v54 = vand.u32 4294901760, %v28798_v24 }
0x125f   :  { %38978 = vmatprep.subr.mxu0 %v41346_v1 }
0x1261   :  { %38956 = vmatmul.mubr.f32.vlgmr.msra.gmra.mrb[62].mxu1 %v44123_v35 }
0x1262   :  { %38959 = vmatpush3.xpose.msra.mxu1 %v44139_v49  ;;  %38960 = vmatprep.mubr.msk.f32.mxu1 %vm41345_vm0, %v41346_v1 }
0x1263   :  { %38963 = vmatprep.subr.mxu1 %v41346_v1 }
0x1265   :  { %38946 = vmatmul.mubr.f32.vlgmr.msra.gmra.mrb[62].mxu0 %v44074_v14 }
0x1266   :  { %38979 = vmatpush3.xpose.msra.mxu0 %v28730_v16  ;;  %38980 = vmatprep.mubr.msk.f32.mxu0 %vm41345_vm0, %v41346_v1 }
0x1267   :  { %38983 = vmatprep.subr.mxu0 %v41346_v1 }
0x1269   :  { %38961 = vmatmul.mubr.f32.vlgmr.msra.gmra.mrb[62].mxu1 %v44136_v44  ;;  %38981 = vmatmul.mubr.f32.vlgmr.msra.gmra.mrb[64].mxu0 %v28799_v54 }
0x126a   :  { %38964 = vmatpush3.xpose.msra.mxu1 %v44129_v63  ;;  %38965 = vmatprep.mubr.msk.f32.mxu1 %vm41345_vm0, %v41346_v1 }
0x126b   :  { %38968 = vmatprep.subr.mxu1 %v41346_v1  ;;  %38984 = vmatpush3.xpose.msra.mxu0 %v28810_v18 }
0x126c   :  { %38985 = vmatprep.mubr.msk.f32.mxu0 %vm41345_vm0, %v41346_v1  ;;  %38988 = vmatprep.subr.mxu0 %v41346_v1 }
0x1271   :  { %38966 = vmatmul.mubr.f32.vlgmr.msra.gmra.mrb[62].mxu1 %v28343_v11  ;;  %38986 = vmatmul.mubr.f32.vlgmr.msra.gmra.mrb[64].mxu0 %v28795_v39 }
0x1272   :  { %38969 = vmatpush3.xpose.msra.mxu1 %v28354_v56  ;;  %38970 = vmatprep.mubr.msk.f32.mxu1 %vm41345_vm0, %v41346_v1 }
0x1273   :  { %38973 = vmatprep.subr.mxu1 %v41346_v1  ;;  %38989 = vmatpush3.xpose.msra.mxu0 %v28807_v17 }
0x1274   :  { %38990 = vmatprep.mubr.msk.f32.mxu0 %vm41345_vm0, %v41346_v1  ;;  %38993 = vmatprep.subr.mxu0 %v41346_v1 }
0x1279   :  { %38971 = vmatmul.mubr.f32.vlgmr.msra.gmra.mrb[62].mxu1 %v44123_v35  ;;  %38991 = vmatmul.mubr.f32.vlgmr.msra.gmra.mrb[64].mxu0 %v28796_v50 }
0x127a   :  { %38974 = vmatpush3.xpose.msra.mxu1 %v44129_v63  ;;  %38975 = vmatprep.mubr.msk.f32.mxu1 %vm41345_vm0, %v41346_v1 }
0x127b   :  { %39008 = vmatprep.subr.mxu1 %v41346_v1  ;;  %38994 = vmatpush3.xpose.msra.mxu0 %v28730_v16 }
0x127c   :  { %38995 = vmatprep.mubr.msk.f32.mxu0 %vm41345_vm0, %v41346_v1  ;;  %38998 = vmatprep.subr.mxu0 %v41346_v1 }
0x1281   :  { %38976 = vmatmul.mubr.f32.vlgmr.msra.gmra.mrb[62].mxu1 %v44123_v35  ;;  %38996 = vmatmul.mubr.f32.vlgmr.msra.gmra.mrb[64].mxu0 %v28797_v13 }
0x1282   :  { %39010 = vmatprep.mubr.msk.f32.mxu1 %vm41345_vm0, %v41346_v1  ;;  %38999 = vmatpush3.xpose.msra.mxu0 %v28808_v27 }
0x1283   :  { %39000 = vmatprep.mubr.msk.f32.mxu0 %vm41345_vm0, %v41346_v1  ;;  %39003 = vmatprep.subr.mxu0 %v41346_v1 }
0x1289   :  { %39001 = vmatmul.mubr.f32.vlgmr.msra.gmra.mrb[64].mxu0 %v28795_v39 }
0x128a   :  { %39004 = vmatpush3.xpose.msra.mxu0 %v28730_v16  ;;  %39005 = vmatprep.mubr.msk.f32.mxu0 %vm41345_vm0, %v41346_v1 }
0x128b   :  { %39038 = vmatprep.subr.mxu0 %v41346_v1 }
0x1291   :  { %39006 = vmatmul.mubr.f32.vlgmr.msra.gmra.mrb[64].mxu0 %v28795_v39 }
0x1292   :  { %39040 = vmatprep.mubr.msk.f32.mxu0 %vm41345_vm0, %v41346_v1 }
0x12a4   :  { %v44223_v14 = vpop.f32.mrb[54].mxu1 }
0x12a5   :  { %v38737_v28 = vpop.f32.mrb[55].mxu1 }
0x12b4   :  { %v44225_v15 = vpop.f32.mrb[56].mxu0 }
0x12b5   :  { %v25525_v41 = vcombine.low %v44223_v14, %v44225_v15  ;;  %v38767_v2 = vpop.f32.mrb[57].mxu0 }
0x12d0   :  { %v25993_v42 = vpop.f32.mrb[56].mxu1 }
0x12d1   :  { %v29175_v35 = vmul.f32 0.31622776, %v25993_v42  ;;  %v38797_v63 = vpop.f32.mrb[57].mxu1 }
0x12d3   :  { %v29183_v44 = vadd.f32 %v44229_v10, %v29175_v35 }
0x12d5   :  { %v29191_v49 = vsel %vm7046_vm8, %v29183_v44, -inf }
0x12d6   :  { %29192 = vmax.xlane.f32.xlu1 %v29191_v49 }
0x12e0   :  { %v26447_v5 = vpop.f32.mrb[58].mxu0 }
0x12e1   :  { %v29176_v11 = vmul.f32 0.31622776, %v26447_v5  ;;  %v38827_v56 = vpop.f32.mrb[59].mxu0 }
0x12e3   :  { %v29184_v30 = vadd.f32 %v44229_v10, %v29176_v11 }
0x12e5   :  { %v29194_v22 = vsel %vm7046_vm8, %v29184_v30, -inf }
0x12e6   :  { %29195 = vmax.xlane.f32.xlu0 %v29194_v22 }
0x12fc   :  { %v26901_v59 = vpop.f32.mrb[58].mxu1 }
0x12fd   :  { %v29177_v58 = vmul.f32 0.31622776, %v26901_v59  ;;  %v38857_v34 = vpop.f32.mrb[59].mxu1 }
0x12ff   :  { %v29185_v8 = vadd.f32 %v44229_v10, %v29177_v58 }
0x1301   :  { %v29197_v31 = vsel %vm7046_vm8, %v29185_v8, -inf }
0x1302   :  { %29198 = vmax.xlane.f32.xlu0 %v29197_v31 }
0x130c   :  { %v27355_v36 = vpop.f32.mrb[60].mxu0 }
0x130d   :  { %v29178_v39 = vmul.f32 0.31622776, %v27355_v36  ;;  %v38887_v16 = vpop.f32.mrb[61].mxu0 }
0x130f   :  { %v29186_v50 = vadd.f32 %v44229_v10, %v29178_v39 }
0x1311   :  { %v29200_v17 = vsel %vm7046_vm8, %v29186_v50, -inf }
0x1312   :  { %29201 = vmax.xlane.f32.xlu1 %v29200_v17 }
0x1328   :  { %v27809_v13 = vpop.f32.mrb[60].mxu1 }
0x1329   :  { %v29179_v27 = vmul.f32 0.31622776, %v27809_v13  ;;  %v38917_v24 = vpop.f32.mrb[61].mxu1 }
0x132b   :  { %v29187_v43 = vadd.f32 %v44229_v10, %v29179_v27 }
0x132d   :  { %v29203_v54 = vsel %vm7046_vm8, %v29187_v43, -inf }
0x132e   :  { %29204 = vmax.xlane.f32.xlu0 %v29203_v54 }
0x1338   :  { %v28263_v18 = vpop.f32.mrb[62].mxu0 }
0x1339   :  { %v29180_v28 = vmul.f32 0.31622776, %v28263_v18  ;;  %v38947_v2 = vpop.f32.mrb[63].mxu0 }
0x133b   :  { %v29188_v42 = vadd.f32 %v44229_v10, %v29180_v28 }
0x133d   :  { %v29206_v35 = vsel %vm7046_vm8, %v29188_v42, -inf }
0x133e   :  { %29207 = vmax.xlane.f32.xlu1 %v29206_v35 }
0x1354   :  { %v28717_v63 = vpop.f32.mrb[62].mxu1 }
0x1355   :  { %v38977_v49 = vpop.f32.mrb[63].mxu1 }
0x1363   :  { %v29193_v5 = vpop.xlane.xlu1 %29192 }
0x1364   :  { %v29215_v11 = vsub.f32 %v29183_v44, %v29193_v5  ;;  %v29171_v22 = vpop.f32.mrb[64].mxu0 }
0x1365   :  { %v39007_v59 = vpop.f32.mrb[65].mxu0  ;;  %v29182_v24 = vmul.f32 0.31622776, %v29171_v22 }
0x1366   :  { %v29223_v56 = vmul.f32 1.442695, %v29215_v11 }
0x1368   :  { %41227 = vpow2.f32 %v29223_v56 }
0x1372   :  { %v41228_v58 = vpop.eup %41227 }
0x1373   :  { %v29239_v34 = vsel %vm7046_vm8, %v41228_v58, 0.0  ;;  %v29196_v31 = vpop.xlane.xlu0 %29195 }
0x1374   :  { %29240 = vadd.xlane.f32.xlu0 %v29239_v34  ;;  %v29216_v36 = vsub.f32 %v29184_v30, %v29196_v31  ;;  %v44253_v30 = vadd.f32 %v44229_v10, %v29182_v24 }
0x1376   :  { %v29225_v39 = vmul.f32 1.442695, %v29216_v36  ;;  %v29212_v18 = vsel %vm7046_vm8, %v44253_v30, -inf }
0x1378   :  { %41229 = vpow2.f32 %v29225_v39 }
0x1382   :  { %v44244_v16 = vpop.eup %41229 }
0x1383   :  { %v29242_v17 = vsel %vm7046_vm8, %v44244_v16, 0.0 }
0x1384   :  { %29243 = vadd.xlane.f32.xlu1 %v29242_v17 }
0x138a   :  { %29279 = vrot.lane.b32.xlu0 %v42034_v46, %s41354_s22 }
0x138f   :  { %v29199_v44 = vpop.xlane.xlu0 %29198 }
0x1390   :  { %v29217_v13 = vsub.f32 %v29185_v8, %v29199_v44 }
0x1392   :  { %v29227_v27 = vmul.f32 1.442695, %v29217_v13 }
0x1394   :  { %41231 = vpow2.f32 %v29227_v27 }
0x1395   :  { %29732 = vrot.lane.b32.xlu1 %v42139_v33, %s41354_s22  ;;  %v29181_v33 = vmul.f32 0.31622776, %v28717_v63 }
0x1397   :  { %v44262_v35 = vadd.f32 %v44229_v10, %v29181_v33 }
0x1399   :  { %v29209_v49 = vsel %vm7046_vm8, %v44262_v35, -inf }
0x139e   :  { %v44257_v28 = vpop.eup %41231 }
0x139f   :  { %v29202_v54 = vpop.xlane.xlu1 %29201  ;;  %v29245_v46 = vsel %vm7046_vm8, %v44257_v28, 0.0 }
0x13a0   :  { %v29218_v2 = vsub.f32 %v29186_v50, %v29202_v54 }
0x13a2   :  { %v29229_v8 = vmul.f32 1.442695, %v29218_v2 }
0x13a4   :  { %41233 = vpow2.f32 %v29229_v8 }
0x13a9   :  { %29213 = vmax.xlane.f32.xlu0 %v29212_v18 }
0x13ad   :  { %29246 = vadd.xlane.f32.xlu0 %v29245_v46 }
0x13ae   :  { %v44266_v5 = vpop.eup %41233 }
0x13af   :  { %v29248_v50 = vsel %vm7046_vm8, %v44266_v5, 0.0 }
0x13b9   :  { %29210 = vmax.xlane.f32.xlu1 %v29209_v49 }
0x13bb   :  { %v29205_v10 = vpop.xlane.xlu0 %29204 }
0x13bc   :  { %v29219_v59 = vsub.f32 %v29187_v43, %v29205_v10 }
0x13bd   :  { %29249 = vadd.xlane.f32.xlu1 %v29248_v50 }
0x13be   :  { %v29231_v31 = vmul.f32 1.442695, %v29219_v59 }
0x13c3   :  { %30185 = vrot.lane.b32.xlu0 %v41868_v21, %s41354_s22 }
0x13cb   :  { %v29208_v11 = vpop.xlane.xlu1 %29207 }
0x13cc   :  { %v29220_v56 = vsub.f32 %v29188_v42, %v29208_v11 }
0x13ce   :  { %v29233_v22 = vmul.f32 1.442695, %v29220_v56  ;;  %30638 = vrot.lane.b32.xlu1 %v42273_v47, %s41354_s22 }
0x13d0   :  { %41235 = vpow2.f32 %v29233_v22 }
0x13d1   :  { %41237 = vpow2.f32 %v29231_v31 }
0x13da   :  { %v44274_v63 = vpop.eup %41235 }
0x13db   :  { %v29254_v34 = vsel %vm7046_vm8, %v44274_v63, 0.0  ;;  %v44278_v36 = vpop.eup %41237 }
0x13dc   :  { %v29251_v21 = vsel %vm7046_vm8, %v44278_v36, 0.0 }
0x13e2   :  { %29255 = vadd.xlane.f32.xlu0 %v29254_v34 }
0x13f2   :  { %29252 = vadd.xlane.f32.xlu1 %v29251_v21 }
0x13f8   :  { %31091 = vrot.lane.b32.xlu0 %v41881_v4, %s41354_s22 }
0x1401   :  { %v29241_v47 = vpop.xlane.xlu0 %29240 }
0x1402   :  { %41239 = vrcp.f32 %v29241_v47 }
0x1403   :  { %31544 = vrot.lane.b32.xlu1 %v42368_v62, %s41354_s22 }
0x1405   :  { %v29280_v43 = vpop.permute.xlu0 %29279 }
0x1406   :  { %v29284_v42 = vsel %vm7139_vm7, %v29280_v43, 0 }
0x1407   :  { %v44287_v39 = vand.u32 4294901760, %v29284_v42 }
0x1409   :  { %39009 = vmatpush3.msra.mxu1 %v44287_v39  ;;  %v29364_v13 = vsub.f32 %v29284_v42, %v44287_v39 }
0x140a   :  { %39013 = vmatprep.subr.mxu1 %v41346_v1 }
0x140b   :  { %v29365_v24 = vand.u32 4294901760, %v29364_v13 }
0x140c   :  { %v41240_v17 = vpop.eup %41239 }
0x140d   :  { %v29271_v44 = vmul.f32 %v41240_v17, %v41228_v58  ;;  %v29366_v2 = vsub.f32 %v29364_v13, %v29365_v24 }
0x140f   :  { %v29282_v4 = vsel %vm7135_vm9, %v29271_v44, 0  ;;  %v29367_v50 = vand.u32 4294901760, %v29366_v2 }
0x1410   :  { %v44293_v27 = vand.u32 4294901760, %v29282_v4 }
0x1411   :  { %v29244_v54 = vpop.xlane.xlu1 %29243 }
0x1412   :  { %v29353_v62 = vsub.f32 %v29282_v4, %v44293_v27  ;;  %41241 = vrcp.f32 %v29244_v54 }
0x1414   :  { %v29354_v18 = vand.u32 4294901760, %v29353_v62 }
0x1415   :  { %v29733_v8 = vpop.permute.xlu1 %29732 }
0x1416   :  { %v29355_v46 = vsub.f32 %v29353_v62, %v29354_v18  ;;  %v29737_v33 = vsel %vm7139_vm7, %v29733_v8, 0 }
0x1417   :  { %v44297_v58 = vand.u32 4294901760, %v29737_v33 }
0x1418   :  { %v29356_v49 = vand.u32 4294901760, %v29355_v46 }
0x1419   :  { %39039 = vmatpush3.msra.mxu0 %v44297_v58  ;;  %v29817_v22 = vsub.f32 %v29737_v33, %v44297_v58 }
0x141a   :  { %39011 = vmatmul.mubr.f32.vlgmr.msra.gmra.mrb[64].mxu1 %v29356_v49  ;;  %39043 = vmatprep.subr.mxu0 %v41346_v1 }
0x141b   :  { %39014 = vmatpush3.msra.mxu1 %v29367_v50  ;;  %39015 = vmatprep.mubr.msk.f32.mxu1 %vm41345_vm0, %v41346_v1  ;;  %v29818_v34 = vand.u32 4294901760, %v29817_v22 }
0x141c   :  { %39018 = vmatprep.subr.mxu1 %v41346_v1  ;;  %v41242_v11 = vpop.eup %41241 }
0x141d   :  { %v29272_v56 = vmul.f32 %v41242_v11, %v44244_v16  ;;  %v29819_v47 = vsub.f32 %v29817_v22, %v29818_v34 }
0x141f   :  { %v29735_v10 = vsel %vm7135_vm9, %v29272_v56, 0  ;;  %v29820_v42 = vand.u32 4294901760, %v29819_v47 }
0x1420   :  { %v44308_v59 = vand.u32 4294901760, %v29735_v10 }
0x1422   :  { %39016 = vmatmul.mubr.f32.vlgmr.msra.gmra.mrb[64].mxu1 %v44293_v27  ;;  %v29806_v31 = vsub.f32 %v29735_v10, %v44308_v59 }
0x1423   :  { %39019 = vmatpush3.msra.mxu1 %v29364_v13  ;;  %39020 = vmatprep.mubr.msk.f32.mxu1 %vm41345_vm0, %v41346_v1 }
0x1424   :  { %39023 = vmatprep.subr.mxu1 %v41346_v1  ;;  %v29807_v21 = vand.u32 4294901760, %v29806_v31 }
0x1426   :  { %v29808_v16 = vsub.f32 %v29806_v31, %v29807_v21 }
0x1428   :  { %v29809_v43 = vand.u32 4294901760, %v29808_v16 }
0x142a   :  { %39021 = vmatmul.mubr.f32.vlgmr.msra.gmra.mrb[64].mxu1 %v29353_v62  ;;  %39041 = vmatmul.mubr.f32.vlgmr.msra.gmra.mrb[66].mxu0 %v29809_v43 }
0x142b   :  { %39024 = vmatpush3.msra.mxu1 %v44287_v39  ;;  %39025 = vmatprep.mubr.msk.f32.mxu1 %vm41345_vm0, %v41346_v1 }
0x142c   :  { %39028 = vmatprep.subr.mxu1 %v41346_v1  ;;  %39044 = vmatpush3.msra.mxu0 %v29820_v42 }
0x142d   :  { %39045 = vmatprep.mubr.msk.f32.mxu0 %vm41345_vm0, %v41346_v1  ;;  %39048 = vmatprep.subr.mxu0 %v41346_v1 }
0x1432   :  { %39026 = vmatmul.mubr.f32.vlgmr.msra.gmra.mrb[64].mxu1 %v29354_v18  ;;  %39046 = vmatmul.mubr.f32.vlgmr.msra.gmra.mrb[66].mxu0 %v44308_v59 }
0x1433   :  { %39029 = vmatpush3.msra.mxu1 %v29365_v24  ;;  %39030 = vmatprep.mubr.msk.f32.mxu1 %vm41345_vm0, %v41346_v1 }
0x1434   :  { %39033 = vmatprep.subr.mxu1 %v41346_v1  ;;  %39049 = vmatpush3.msra.mxu0 %v29817_v22 }
0x1435   :  { %39050 = vmatprep.mubr.msk.f32.mxu0 %vm41345_vm0, %v41346_v1  ;;  %39053 = vmatprep.subr.mxu0 %v41346_v1 }
0x1436   :  { %v29214_v17 = vpop.xlane.xlu0 %29213 }
0x1437   :  { %v29222_v44 = vsub.f32 %v44253_v30, %v29214_v17 }
0x1439   :  { %v29237_v13 = vmul.f32 1.442695, %v29222_v44 }
0x143a   :  { %39031 = vmatmul.mubr.f32.vlgmr.msra.gmra.mrb[64].mxu1 %v44293_v27  ;;  %v29247_v4 = vpop.xlane.xlu0 %29246  ;;  %39051 = vmatmul.mubr.f32.vlgmr.msra.gmra.mrb[66].mxu0 %v29806_v31 }
0x143b   :  { %41243 = vpow2.f32 %v29237_v13  ;;  %39034 = vmatpush3.msra.mxu1 %v44287_v39  ;;  %39035 = vmatprep.mubr.msk.f32.mxu1 %vm41345_vm0, %v41346_v1 }
0x143c   :  { %41245 = vrcp.f32 %v29247_v4  ;;  %39068 = vmatprep.subr.mxu1 %v41346_v1  ;;  %39054 = vmatpush3.msra.mxu0 %v44297_v58 }
0x143d   :  { %39055 = vmatprep.mubr.msk.f32.mxu0 %vm41345_vm0, %v41346_v1  ;;  %39058 = vmatprep.subr.mxu0 %v41346_v1 }
0x143e   :  { %v30186_v30 = vpop.permute.xlu0 %30185 }
0x143f   :  { %v30190_v24 = vsel %vm7139_vm7, %v30186_v30, 0 }
0x1440   :  { %v44339_v62 = vand.u32 4294901760, %v30190_v24 }
0x1442   :  { %39036 = vmatmul.mubr.f32.vlgmr.msra.gmra.mrb[64].mxu1 %v44293_v27  ;;  %39056 = vmatmul.mubr.f32.vlgmr.msra.gmra.mrb[66].mxu0 %v29807_v21  ;;  %v44355_v2 = vsub.f32 %v30190_v24, %v44339_v62 }
0x1443   :  { %39069 = vmatpush3.msra.mxu1 %v44339_v62  ;;  %39070 = vmatprep.mubr.msk.f32.mxu1 %vm41345_vm0, %v41346_v1 }
0x1444   :  { %39073 = vmatprep.subr.mxu1 %v41346_v1  ;;  %39059 = vmatpush3.msra.mxu0 %v29818_v34  ;;  %v30271_v50 = vand.u32 4294901760, %v44355_v2 }
0x1445   :  { %v44346_v39 = vpop.eup %41243  ;;  %39060 = vmatprep.mubr.msk.f32.mxu0 %vm41345_vm0, %v41346_v1  ;;  %39063 = vmatprep.subr.mxu0 %v41346_v1 }
0x1446   :  { %v41246_v54 = vpop.eup %41245  ;;  %v29260_v18 = vsel %vm7046_vm8, %v44346_v39, 0.0  ;;  %v29211_v46 = vpop.xlane.xlu1 %29210 }
0x1447   :  { %v29273_v27 = vmul.f32 %v41246_v54, %v44257_v28  ;;  %29261 = vadd.xlane.f32.xlu0 %v29260_v18  ;;  %v29221_v8 = vsub.f32 %v44262_v35, %v29211_v46  ;;  %v30272_v35 = vsub.f32 %v44355_v2, %v30271_v50 }
0x1449   :  { %v30188_v33 = vsel %vm7135_vm9, %v29273_v27, 0  ;;  %v29235_v11 = vmul.f32 1.442695, %v29221_v8  ;;  %v30273_v16 = vand.u32 4294901760, %v30272_v35 }
0x144a   :  { %v44359_v49 = vand.u32 4294901760, %v30188_v33  ;;  %39061 = vmatmul.mubr.f32.vlgmr.msra.gmra.mrb[66].mxu0 %v44308_v59  ;;  %v29250_v56 = vpop.xlane.xlu1 %29249 }
0x144b   :  { %41247 = vpow2.f32 %v29235_v11  ;;  %39064 = vmatpush3.msra.mxu0 %v44297_v58  ;;  %39065 = vmatprep.mubr.msk.f32.mxu0 %vm41345_vm0, %v41346_v1 }
0x144c   :  { %v30259_v22 = vsub.f32 %v30188_v33, %v44359_v49  ;;  %41249 = vrcp.f32 %v29250_v56  ;;  %39098 = vmatprep.subr.mxu0 %v41346_v1 }
0x144e   :  { %v30260_v28 = vand.u32 4294901760, %v30259_v22  ;;  %v30639_v10 = vpop.permute.xlu1 %30638 }
0x144f   :  { %v30643_v31 = vsel %vm7139_vm7, %v30639_v10, 0 }
0x1450   :  { %v30261_v34 = vsub.f32 %v30259_v22, %v30260_v28  ;;  %v44370_v21 = vand.u32 4294901760, %v30643_v31 }
0x1452   :  { %v30262_v47 = vand.u32 4294901760, %v30261_v34  ;;  %39066 = vmatmul.mubr.f32.vlgmr.msra.gmra.mrb[66].mxu0 %v44308_v59  ;;  %v30723_v17 = vsub.f32 %v30643_v31, %v44370_v21 }
0x1453   :  { %39099 = vmatpush3.msra.mxu0 %v44370_v21  ;;  %39100 = vmatprep.mubr.msk.f32.mxu0 %vm41345_vm0, %v41346_v1 }
0x1454   :  { %39071 = vmatmul.mubr.f32.vlgmr.msra.gmra.mrb[66].mxu1 %v30262_v47  ;;  %39103 = vmatprep.subr.mxu0 %v41346_v1  ;;  %v30724_v4 = vand.u32 4294901760, %v30723_v17 }
0x1455   :  { %39074 = vmatpush3.msra.mxu1 %v30273_v16  ;;  %39075 = vmatprep.mubr.msk.f32.mxu1 %vm41345_vm0, %v41346_v1  ;;  %v44377_v58 = vpop.eup %41247 }
0x1456   :  { %39078 = vmatprep.subr.mxu1 %v41346_v1  ;;  %v41250_v43 = vpop.eup %41249  ;;  %v29257_v59 = vsel %vm7046_vm8, %v44377_v58, 0.0  ;;  %v30725_v24 = vsub.f32 %v30723_v17, %v30724_v4 }
0x1457   :  { %v29274_v42 = vmul.f32 %v41250_v43, %v44266_v5  ;;  %29258 = vadd.xlane.f32.xlu1 %v29257_v59 }
0x1458   :  { %v30726_v27 = vand.u32 4294901760, %v30725_v24 }
0x1459   :  { %v30641_v44 = vsel %vm7135_vm9, %v29274_v42, 0 }
0x145a   :  { %v44388_v13 = vand.u32 4294901760, %v30641_v44 }
0x145c   :  { %39076 = vmatmul.mubr.f32.vlgmr.msra.gmra.mrb[66].mxu1 %v44359_v49  ;;  %v30712_v5 = vsub.f32 %v30641_v44, %v44388_v13 }
0x145d   :  { %39079 = vmatpush3.msra.mxu1 %v44355_v2  ;;  %31997 = vrot.lane.b32.xlu0 %v41894_v61, %s41354_s22 }
0x145e   :  { %39080 = vmatprep.mubr.msk.f32.mxu1 %vm41345_vm0, %v41346_v1  ;;  %39083 = vmatprep.subr.mxu1 %v41346_v1  ;;  %v30713_v30 = vand.u32 4294901760, %v30712_v5 }
0x1460   :  { %v30714_v54 = vsub.f32 %v30712_v5, %v30713_v30 }
0x1461   :  { %18139 = vrot.lane.b32.xlu0 %v18134_v60, %s41343_s9 }
0x1462   :  { %v30715_v18 = vand.u32 4294901760, %v30714_v54 }
0x1464   :  { %39081 = vmatmul.mubr.f32.vlgmr.msra.gmra.mrb[66].mxu1 %v30259_v22  ;;  %39101 = vmatmul.mubr.f32.vlgmr.msra.gmra.mrb[68].mxu0 %v30715_v18 }
0x1465   :  { %39084 = vmatpush3.msra.mxu1 %v44339_v62  ;;  %25528 = vrot.lane.b32.xlu0 %v25523_v3, %s41349_s16 }
0x1466   :  { %39085 = vmatprep.mubr.msk.f32.mxu1 %vm41345_vm0, %v41346_v1  ;;  %39104 = vmatpush3.msra.mxu0 %v30726_v27 }
0x1467   :  { %39088 = vmatprep.subr.mxu1 %v41346_v1  ;;  %39105 = vmatprep.mubr.msk.f32.mxu0 %vm41345_vm0, %v41346_v1 }
0x1468   :  { %39108 = vmatprep.subr.mxu0 %v41346_v1  ;;  %32450 = vrot.lane.b32.xlu1 %v42454_v0, %s41354_s22 }
0x146c   :  { %39086 = vmatmul.mubr.f32.vlgmr.msra.gmra.mrb[66].mxu1 %v30260_v28  ;;  %39106 = vmatmul.mubr.f32.vlgmr.msra.gmra.mrb[68].mxu0 %v44388_v13 }
0x146d   :  { %39089 = vmatpush3.msra.mxu1 %v30271_v50  ;;  %39090 = vmatprep.mubr.msk.f32.mxu1 %vm41345_vm0, %v41346_v1 }
0x146e   :  { %18137 = vrot.lane.b32.xlu1 %v18133_v25, %s41343_s9  ;;  %39109 = vmatpush3.msra.mxu0 %v30723_v17 }
0x146f   :  { %v29256_v61 = vpop.xlane.xlu0 %29255  ;;  %39093 = vmatprep.subr.mxu1 %v41346_v1  ;;  %39110 = vmatprep.mubr.msk.f32.mxu0 %vm41345_vm0, %v41346_v1 }
0x1470   :  { %41251 = vrcp.f32 %v29256_v61  ;;  %39113 = vmatprep.subr.mxu0 %v41346_v1 }
0x1472   :  { %25526 = vrot.lane.b32.xlu1 %v25522_v32, %s41349_s16 }
0x1473   :  { %v31092_v0 = vpop.permute.xlu0 %31091 }
0x1474   :  { %39091 = vmatmul.mubr.f32.vlgmr.msra.gmra.mrb[66].mxu1 %v44359_v49  ;;  %39111 = vmatmul.mubr.f32.vlgmr.msra.gmra.mrb[68].mxu0 %v30712_v5  ;;  %v31096_v53 = vsel %vm7139_vm7, %v31092_v0, 0 }
0x1475   :  { %39094 = vmatpush3.msra.mxu1 %v44339_v62  ;;  %39095 = vmatprep.mubr.msk.f32.mxu1 %vm41345_vm0, %v41346_v1  ;;  %v44440_v29 = vand.u32 4294901760, %v31096_v53 }
0x1476   :  { %39128 = vmatprep.subr.mxu1 %v41346_v1  ;;  %39114 = vmatpush3.msra.mxu0 %v44370_v21 }
0x1477   :  { %39115 = vmatprep.mubr.msk.f32.mxu0 %vm41345_vm0, %v41346_v1  ;;  %39118 = vmatprep.subr.mxu0 %v41346_v1  ;;  %v31176_v8 = vsub.f32 %v31096_v53, %v44440_v29 }
0x1479   :  { %v31177_v28 = vand.u32 4294901760, %v31176_v8 }
0x147a   :  { %v41252_v55 = vpop.eup %41251 }
0x147b   :  { %v29276_v25 = vmul.f32 %v41252_v55, %v44274_v63  ;;  %v31178_v10 = vsub.f32 %v31176_v8, %v31177_v28 }
0x147c   :  { %39096 = vmatmul.mubr.f32.vlgmr.msra.gmra.mrb[66].mxu1 %v44359_v49  ;;  %39116 = vmatmul.mubr.f32.vlgmr.msra.gmra.mrb[68].mxu0 %v30713_v30 }
0x147d   :  { %39129 = vmatpush3.msra.mxu1 %v44440_v29  ;;  %v31547_v48 = vsel %vm7135_vm9, %v29276_v25, 0  ;;  %39130 = vmatprep.mubr.msk.f32.mxu1 %vm41345_vm0, %v41346_v1 }
0x147e   :  { %39133 = vmatprep.subr.mxu1 %v41346_v1  ;;  %39119 = vmatpush3.msra.mxu0 %v30724_v4  ;;  %v44451_v60 = vand.u32 4294901760, %v31547_v48 }
0x147f   :  { %39120 = vmatprep.mubr.msk.f32.mxu0 %vm41345_vm0, %v41346_v1  ;;  %39123 = vmatprep.subr.mxu0 %v41346_v1  ;;  %v29253_v45 = vpop.xlane.xlu1 %29252 }
0x1480   :  { %41253 = vrcp.f32 %v29253_v45  ;;  %v31618_v26 = vsub.f32 %v31547_v48, %v44451_v60 }
0x1482   :  { %v31619_v3 = vand.u32 4294901760, %v31618_v26 }
0x1483   :  { %v31545_v32 = vpop.permute.xlu1 %31544 }
0x1484   :  { %39121 = vmatmul.mubr.f32.vlgmr.msra.gmra.mrb[68].mxu0 %v44388_v13  ;;  %v31549_v7 = vsel %vm7139_vm7, %v31545_v32, 0  ;;  %v31620_v46 = vsub.f32 %v31618_v26, %v31619_v3 }
0x1485   :  { %39124 = vmatpush3.msra.mxu0 %v44370_v21  ;;  %v31552_v51 = vand.u32 4294901760, %v31549_v7  ;;  %39125 = vmatprep.mubr.msk.f32.mxu0 %vm41345_vm0, %v41346_v1  ;;  %v31179_v21 = vand.u32 4294901760, %v31178_v10 }
0x1486   :  { %39158 = vmatprep.subr.mxu0 %v41346_v1  ;;  %v31621_v56 = vand.u32 4294901760, %v31620_v46 }
0x1487   :  { %v31629_v63 = vsub.f32 %v31549_v7, %v31552_v51 }
0x1489   :  { %v31630_v62 = vand.u32 4294901760, %v31629_v63 }
0x148a   :  { %v41254_v2 = vpop.eup %41253 }
0x148b   :  { %v29275_v33 = vmul.f32 %v41254_v2, %v44278_v36  ;;  %v31631_v49 = vsub.f32 %v31629_v63, %v31630_v62 }
0x148c   :  { %39126 = vmatmul.mubr.f32.vlgmr.msra.gmra.mrb[68].mxu0 %v44388_v13 }
0x148d   :  { %v31632_v50 = vand.u32 4294901760, %v31631_v49  ;;  %39159 = vmatpush3.msra.mxu0 %v31552_v51  ;;  %39160 = vmatprep.mubr.msk.f32.mxu0 %vm41345_vm0, %v41346_v1  ;;  %v31094_v11 = vsel %vm7135_vm9, %v29275_v33, 0 }
0x148e   :  { %39163 = vmatprep.subr.mxu0 %v41346_v1  ;;  %v31164_v22 = vand.u32 4294901760, %v31094_v11 }
0x1490   :  { %39161 = vmatmul.mubr.f32.vlgmr.msra.gmra.mrb[70].mxu0 %v31621_v56  ;;  %v31165_v35 = vsub.f32 %v31094_v11, %v31164_v22 }
0x1491   :  { %39164 = vmatpush3.msra.mxu0 %v31632_v50  ;;  %39165 = vmatprep.mubr.msk.f32.mxu0 %vm41345_vm0, %v41346_v1 }
0x1492   :  { %39168 = vmatprep.subr.mxu0 %v41346_v1  ;;  %v31166_v36 = vand.u32 4294901760, %v31165_v35 }
0x1494   :  { %v31167_v34 = vsub.f32 %v31165_v35, %v31166_v36 }
0x1496   :  { %v31168_v31 = vand.u32 4294901760, %v31167_v34  ;;  %v44593_v34 = vld [vmem:[#allocation4 + $0xb8] sm:$0xff] }
0x1498   :  { %39166 = vmatmul.mubr.f32.vlgmr.msra.gmra.mrb[70].mxu0 %v44451_v60  ;;  %39131 = vmatmul.mubr.f32.vlgmr.msra.gmra.mrb[68].mxu1 %v31168_v31  ;;  %v44595_v31 = vld [vmem:[#allocation4 + $0xc0] sm:$0xff] }
0x1499   :  { %39169 = vmatpush3.msra.mxu0 %v31629_v63  ;;  %39134 = vmatpush3.msra.mxu1 %v31179_v21  ;;  %v44597_v21 = vld [vmem:[#allocation4 + $0xc8] sm:$0xff] }
0x149a   :  { %39170 = vmatprep.mubr.msk.f32.mxu0 %vm41345_vm0, %v41346_v1  ;;  %39173 = vmatprep.subr.mxu0 %v41346_v1 }
0x149b   :  { %39135 = vmatprep.mubr.msk.f32.mxu1 %vm41345_vm0, %v41346_v1  ;;  %39138 = vmatprep.subr.mxu1 %v41346_v1 }
0x14a0   :  { %39171 = vmatmul.mubr.f32.vlgmr.msra.gmra.mrb[70].mxu0 %v31618_v26  ;;  %39136 = vmatmul.mubr.f32.vlgmr.msra.gmra.mrb[68].mxu1 %v31164_v22 }
0x14a1   :  { %39174 = vmatpush3.msra.mxu0 %v31552_v51  ;;  %39139 = vmatpush3.msra.mxu1 %v31176_v8 }
0x14a2   :  { %39175 = vmatprep.mubr.msk.f32.mxu0 %vm41345_vm0, %v41346_v1  ;;  %39178 = vmatprep.subr.mxu0 %v41346_v1 }
0x14a3   :  { %39140 = vmatprep.mubr.msk.f32.mxu1 %vm41345_vm0, %v41346_v1  ;;  %39143 = vmatprep.subr.mxu1 %v41346_v1 }
0x14a8   :  { %39176 = vmatmul.mubr.f32.vlgmr.msra.gmra.mrb[70].mxu0 %v31619_v3  ;;  %39141 = vmatmul.mubr.f32.vlgmr.msra.gmra.mrb[68].mxu1 %v31165_v35  ;;  %v44567_v35 = vld [vmem:[#allocation4 + $0x98] sm:$0xff] }
0x14a9   :  { %39179 = vmatpush3.msra.mxu0 %v31630_v62  ;;  %39144 = vmatpush3.msra.mxu1 %v44440_v29 }
0x14aa   :  { %39180 = vmatprep.mubr.msk.f32.mxu0 %vm41345_vm0, %v41346_v1  ;;  %39183 = vmatprep.subr.mxu0 %v41346_v1 }
0x14ab   :  { %39145 = vmatprep.mubr.msk.f32.mxu1 %vm41345_vm0, %v41346_v1  ;;  %39148 = vmatprep.subr.mxu1 %v41346_v1 }
0x14b0   :  { %39181 = vmatmul.mubr.f32.vlgmr.msra.gmra.mrb[70].mxu0 %v44451_v60  ;;  %39146 = vmatmul.mubr.f32.vlgmr.msra.gmra.mrb[68].mxu1 %v31166_v36  ;;  %v32962_v36 = vand.u32 4294901760, %v44567_v35 }
0x14b1   :  { %39184 = vmatpush3.msra.mxu0 %v31552_v51  ;;  %39149 = vmatpush3.msra.mxu1 %v31177_v28 }
0x14b2   :  { %39185 = vmatprep.mubr.msk.f32.mxu0 %vm41345_vm0, %v41346_v1  ;;  %39150 = vmatprep.mubr.msk.f32.mxu1 %vm41345_vm0, %v41346_v1 }
0x14b3   :  { %39153 = vmatprep.subr.mxu1 %v41346_v1  ;;  %39218 = vmatprep.subr.mxu0 %v41346_v1 }
0x14b8   :  { %39186 = vmatmul.mubr.f32.vlgmr.msra.gmra.mrb[70].mxu0 %v44451_v60  ;;  %39151 = vmatmul.mubr.f32.vlgmr.msra.gmra.mrb[68].mxu1 %v31164_v22 }
0x14b9   :  { %39154 = vmatpush3.msra.mxu1 %v44440_v29  ;;  %39155 = vmatprep.mubr.msk.f32.mxu1 %vm41345_vm0, %v41346_v1 }
0x14ba   :  { %39188 = vmatprep.subr.mxu1 %v41346_v1  ;;  %39220 = vmatprep.mubr.msk.f32.mxu0 %vm41345_vm0, %v41346_v1 }
0x14c0   :  { %39156 = vmatmul.mubr.f32.vlgmr.msra.gmra.mrb[68].mxu1 %v31164_v22 }
0x14c1   :  { %39190 = vmatprep.mubr.msk.f32.mxu1 %vm41345_vm0, %v41346_v1 }
0x14d4   :  { %v29262_v47 = vpop.xlane.xlu0 %29261 }
0x14d5   :  { %41255 = vrcp.f32 %v29262_v47  ;;  %v32974_v47 = vand.u32 4294901760, %v44593_v34 }
0x14d8   :  { %v31998_v16 = vpop.permute.xlu0 %31997 }
0x14d9   :  { %v32002_v43 = vsel %vm7139_vm7, %v31998_v16, 0  ;;  %v32977_v16 = vand.u32 4294901760, %v44595_v31 }
0x14da   :  { %v44507_v59 = vand.u32 4294901760, %v32002_v43 }
0x14dc   :  { %39189 = vmatpush3.msra.mxu1 %v44507_v59  ;;  %v18140_v42 = vpop.permute.xlu0 %18139  ;;  %v32082_v48 = vsub.f32 %v32002_v43, %v44507_v59  ;;  %v32943_v43 = vld [vmem:[#allocation4 + $0xd0] sm:$0xff] }
0x14dd   :  { %18151 = vst.msk [vmem:[#allocation3 + $0x8] sm:$0xff] %vm18149_vm10, %v18140_v42  ;;  %39193 = vmatprep.subr.mxu1 %v41346_v1 }
0x14de   :  { %v32083_v3 = vand.u32 4294901760, %v32082_v48 }
0x14df   :  { %v41256_v17 = vpop.eup %41255 }
0x14e0   :  { %v29278_v44 = vmul.f32 %v41256_v17, %v44346_v39  ;;  %v25529_v13 = vpop.permute.xlu0 %25528  ;;  %v32084_v62 = vsub.f32 %v32082_v48, %v32083_v3  ;;  %v32983_v17 = vand.u32 4294901760, %v32943_v43 }
0x14e1   :  { %25540 = vst.msk [vmem:[#allocation3 + $0x8] sm:$0xff] %vm25538_vm11, %v25529_v13 }
0x14e2   :  { %v32453_v4 = vsel %vm7135_vm9, %v29278_v44, 0  ;;  %v32085_v8 = vand.u32 4294901760, %v32084_v62 }
0x14e3   :  { %v44515_v5 = vand.u32 4294901760, %v32453_v4 }
0x14e4   :  { %v29259_v24 = vpop.xlane.xlu1 %29258 }
0x14e5   :  { %v32524_v30 = vsub.f32 %v32453_v4, %v44515_v5  ;;  %41257 = vrcp.f32 %v29259_v24  ;;  %v44604_v4 = vpack.c.bf16 %v32977_v16, %v32974_v47 }
0x14e7   :  { %v32525_v54 = vand.u32 4294901760, %v32524_v30 }
0x14e8   :  { %v32451_v27 = vpop.permute.xlu1 %32450 }
0x14e9   :  { %v32526_v18 = vsub.f32 %v32524_v30, %v32525_v54  ;;  %v32455_v61 = vsel %vm7139_vm7, %v32451_v27, 0 }
0x14ea   :  { %v32458_v53 = vand.u32 4294901760, %v32455_v61 }
0x14eb   :  { %v32527_v0 = vand.u32 4294901760, %v32526_v18 }
0x14ec   :  { %v32535_v55 = vsub.f32 %v32455_v61, %v32458_v53  ;;  %v18138_v39 = vpop.permute.xlu1 %18137  ;;  %39219 = vmatpush3.msra.mxu0 %v32458_v53 }
0x14ed   :  { %18150 = vst.msk [vmem:[#allocation3] sm:$0xff] %vm18149_vm10, %v18138_v39  ;;  %39221 = vmatmul.mubr.f32.vlgmr.msra.gmra.mrb[72].mxu0 %v32527_v0  ;;  %39223 = vmatprep.subr.mxu0 %v41346_v1 }
0x14ee   :  { %v32536_v25 = vand.u32 4294901760, %v32535_v55  ;;  %39225 = vmatprep.mubr.msk.f32.mxu0 %vm41345_vm0, %v41346_v1 }
0x14ef   :  { %v41258_v29 = vpop.eup %41257 }
0x14f0   :  { %v29277_v60 = vmul.f32 %v41258_v29, %v44377_v58  ;;  %v32537_v45 = vsub.f32 %v32535_v55, %v32536_v25  ;;  %v25527_v26 = vpop.permute.xlu1 %25526 }
0x14f1   :  { %25539 = vst.msk [vmem:[#allocation3] sm:$0xff] %vm25538_vm11, %v25527_v26 }
0x14f2   :  { %v32538_v32 = vand.u32 4294901760, %v32537_v45  ;;  %v32000_v7 = vsel %vm7135_vm9, %v29277_v60, 0 }
0x14f3   :  { %v32070_v51 = vand.u32 4294901760, %v32000_v7 }
0x14f4   :  { %39224 = vmatpush3.msra.mxu0 %v32538_v32 }
0x14f5   :  { %39226 = vmatmul.mubr.f32.vlgmr.msra.gmra.mrb[72].mxu0 %v44515_v5  ;;  %39228 = vmatprep.subr.mxu0 %v41346_v1  ;;  %v32071_v63 = vsub.f32 %v32000_v7, %v32070_v51 }
0x14f6   :  { %39229 = vmatpush3.msra.mxu0 %v32535_v55  ;;  %39230 = vmatprep.mubr.msk.f32.mxu0 %vm41345_vm0, %v41346_v1 }
0x14f7   :  { %39233 = vmatprep.subr.mxu0 %v41346_v1  ;;  %v32072_v58 = vand.u32 4294901760, %v32071_v63 }
0x14f9   :  { %v32073_v2 = vsub.f32 %v32071_v63, %v32072_v58 }
0x14fb   :  { %v32074_v46 = vand.u32 4294901760, %v32073_v2  ;;  %v44661_v2 = vsub.f32 %v44579_v23, %v32968_v57 }
0x14fd   :  { %39191 = vmatmul.mubr.f32.vlgmr.msra.gmra.mrb[70].mxu1 %v32074_v46  ;;  %39231 = vmatmul.mubr.f32.vlgmr.msra.gmra.mrb[72].mxu0 %v32524_v30 }
0x14fe   :  { %39194 = vmatpush3.msra.mxu1 %v32085_v8  ;;  %39234 = vmatpush3.msra.mxu0 %v32458_v53  ;;  %v33104_v8 = vsub.f32 %v44593_v34, %v32974_v47 }
0x14ff   :  { %39195 = vmatprep.mubr.msk.f32.mxu1 %vm41345_vm0, %v41346_v1  ;;  %39198 = vmatprep.subr.mxu1 %v41346_v1 }
0x1500   :  { %39235 = vmatprep.mubr.msk.f32.mxu0 %vm41345_vm0, %v41346_v1  ;;  %39238 = vmatprep.subr.mxu0 %v41346_v1 }
0x1505   :  { %39196 = vmatmul.mubr.f32.vlgmr.msra.gmra.mrb[70].mxu1 %v32070_v51  ;;  %39236 = vmatmul.mubr.f32.vlgmr.msra.gmra.mrb[72].mxu0 %v32525_v54 }
0x1506   :  { %39199 = vmatpush3.msra.mxu1 %v32082_v48  ;;  %39239 = vmatpush3.msra.mxu0 %v32536_v25 }
0x1507   :  { %39200 = vmatprep.mubr.msk.f32.mxu1 %vm41345_vm0, %v41346_v1  ;;  %39203 = vmatprep.subr.mxu1 %v41346_v1 }
0x1508   :  { %39240 = vmatprep.mubr.msk.f32.mxu0 %vm41345_vm0, %v41346_v1  ;;  %39243 = vmatprep.subr.mxu0 %v41346_v1 }
0x150d   :  { %39201 = vmatmul.mubr.f32.vlgmr.msra.gmra.mrb[70].mxu1 %v32071_v63  ;;  %39241 = vmatmul.mubr.f32.vlgmr.msra.gmra.mrb[72].mxu0 %v44515_v5 }
0x150e   :  { %39204 = vmatpush3.msra.mxu1 %v44507_v59  ;;  %39244 = vmatpush3.msra.mxu0 %v32458_v53 }
0x150f   :  { %39205 = vmatprep.mubr.msk.f32.mxu1 %vm41345_vm0, %v41346_v1  ;;  %39208 = vmatprep.subr.mxu1 %v41346_v1 }
0x1510   :  { %39245 = vmatprep.mubr.msk.f32.mxu0 %vm41345_vm0, %v41346_v1 }
0x1515   :  { %v29728_v33 = vpop.f32.mrb[64].mxu1  ;;  %39206 = vmatmul.mubr.f32.vlgmr.msra.gmra.mrb[70].mxu1 %v32072_v58  ;;  %39246 = vmatmul.mubr.f32.vlgmr.msra.gmra.mrb[72].mxu0 %v44515_v5  ;;  %v44651_v58 = vsub.f32 %v44567_v35, %v32962_v36  ;;  %v33105_v35 = vand.u32 4294901760, %v33104_v8 }
0x1516   :  { %v39037_v49 = vpop.f32.mrb[65].mxu1  ;;  %39209 = vmatpush3.msra.mxu1 %v32083_v3  ;;  %39210 = vmatprep.mubr.msk.f32.mxu1 %vm41345_vm0, %v41346_v1 }
0x1517   :  { %39213 = vmatprep.subr.mxu1 %v41346_v1  ;;  %v33106_v34 = vsub.f32 %v33104_v8, %v33105_v35 }
0x151d   :  { %39211 = vmatmul.mubr.f32.vlgmr.msra.gmra.mrb[70].mxu1 %v32070_v51 }
0x151e   :  { %39214 = vmatpush3.msra.mxu1 %v44507_v59  ;;  %39215 = vmatprep.mubr.msk.f32.mxu1 %vm41345_vm0, %v41346_v1  ;;  %v44569_v1 = vld [vmem:[#allocation4 + $0xa0] sm:$0xff]  ;;  %v32980_v59 = vand.u32 4294901760, %v44597_v21  ;;  %vm35900_vm0 = vcmask 1044484  }
0x151f   :  { %v32965_v10 = vand.u32 4294901760, %v44569_v1 }
0x1520   :  { %v44606_v5 = vpack.c.bf16 %v32983_v17, %v32980_v59  ;;  %v33118_v49 = vsub.f32 %v44597_v21, %v32980_v59 }
0x1521   :  { %v44577_v52 = vpack.c.bf16 %v32965_v10, %v32962_v36  ;;  %v44656_v62 = vsub.f32 %v44569_v1, %v32965_v10 }
0x1522   :  { %v33119_v36 = vand.u32 4294901760, %v33118_v49 }
0x1523   :  { %39933 = vmatprep.subr.bf16.mxu1 %v44577_v52 }
0x1524   :  { %v33120_v59 = vsub.f32 %v33118_v49, %v33119_v36 }
0x1525   :  { %v30181_v50 = vpop.f32.mrb[66].mxu0  ;;  %39216 = vmatmul.mubr.f32.vlgmr.msra.gmra.mrb[70].mxu1 %v32070_v51 }
0x1526   :  { %v32911_v11 = vcombine.low %v29728_v33, %v30181_v50  ;;  %v39067_v56 = vpop.f32.mrb[67].mxu0  ;;  %39935 = vmatpush3.bf16.msra.mxu1 %v44577_v52  ;;  %v33111_v33 = vsub.f32 %v44595_v31, %v32977_v16  ;;  %v33125_v50 = vsub.f32 %v32943_v43, %v32983_v17 }
0x1527   :  { %v33084_v56 = vand.u32 4294901760, %v44656_v62 }
0x1528   :  { %32915 = vrot.lane.b32.xlu1 %v32911_v11, %s41352_s20  ;;  %v33077_v11 = vand.u32 4294901760, %v44651_v58  ;;  %v33112_v1 = vand.u32 4294901760, %v33111_v33  ;;  %v33126_v10 = vand.u32 4294901760, %v33125_v50 }
0x152a   :  { %v33078_v23 = vsub.f32 %v44651_v58, %v33077_v11  ;;  %v33113_v31 = vsub.f32 %v33111_v33, %v33112_v1 }
0x152c   :  { %18141 = vrot.lane.b32.xlu1 %v18135_v20, %s41343_s9  ;;  %v44581_v20 = vld [vmem:[#allocation4 + $0xb0] sm:$0xff]  ;;  %v33079_v21 = vand.u32 4294901760, %v33078_v23 }
0x152d   :  { %v32971_v6 = vand.u32 4294901760, %v44581_v20 }
0x152f   :  { %v33097_v46 = vsub.f32 %v44581_v20, %v32971_v6  ;;  %v33085_v20 = vsub.f32 %v44656_v62, %v33084_v56 }
0x1530   :  { %25530 = vrot.lane.b32.xlu1 %v25524_v37, %s41349_s16  ;;  %v44591_v37 = vpack.c.bf16 %v32971_v6, %v32968_v57 }
0x1531   :  { %v33086_v47 = vand.u32 4294901760, %v33085_v20 }
0x1532   :  { %39937 = vmatprep.subr.bf16.mxu1 %v44591_v37 }
0x1533   :  { %39939 = vmatpush3.bf16.msra.mxu1 %v44591_v37  ;;  %v39948_v17 = vpack.c.bf16 %v33086_v47, %v33079_v21 }
0x1534   :  { %39941 = vmatprep.subr.bf16.mxu1 %v44604_v4 }
0x1537   :  { %39943 = vmatpush3.bf16.msra.mxu1 %v44604_v4 }
0x1538   :  { %39945 = vmatprep.subr.bf16.mxu1 %v44606_v5 }
0x153b   :  { %39947 = vmatpush3.bf16.msra.mxu1 %v44606_v5 }
0x153c   :  { %39949 = vmatprep.subr.bf16.mxu1 %v39948_v17 }
0x154f   :  { %v30634_v22 = vpop.f32.mrb[66].mxu1 }
0x1550   :  { %v39097_v28 = vpop.f32.mrb[67].mxu1 }
0x1551   :  { %v33098_v28 = vand.u32 4294901760, %v33097_v46 }
0x1553   :  { %v33099_v6 = vsub.f32 %v33097_v46, %v33098_v28 }
0x1555   :  { %v33100_v43 = vand.u32 4294901760, %v33099_v6 }
0x155f   :  { %v31087_v42 = vpop.f32.mrb[68].mxu0 }
0x1560   :  { %v32912_v44 = vcombine.low %v30634_v22, %v31087_v42  ;;  %v39127_v13 = vpop.f32.mrb[69].mxu0  ;;  %v33091_v22 = vand.u32 4294901760, %v44661_v2  ;;  %v33127_v42 = vsub.f32 %v33125_v50, %v33126_v10 }
0x1561   :  { %v33107_v13 = vand.u32 4294901760, %v33106_v34 }
0x1562   :  { %32917 = vrot.lane.b32.xlu0 %v32912_v44, %s41352_s20  ;;  %v33092_v57 = vsub.f32 %v44661_v2, %v33091_v22 }
0x1564   :  { %v33093_v16 = vand.u32 4294901760, %v33092_v57 }
0x1566   :  { %18143 = vrot.lane.b32.xlu0 %v18136_v19, %s41343_s9  ;;  %v39952_v44 = vpack.c.bf16 %v33100_v43, %v33093_v16  ;;  %v44721_v43 = vld [vmem:[#allocation4 + $0x1c0] ss:$0 sm:$0xff] }
0x156a   :  { %25532 = vrot.lane.b32.xlu0 %v25525_v41, %s41349_s16 }
0x158b   :  { %v31993_v30 = vpop.f32.mrb[70].mxu0 }
0x158c   :  { %v39187_v24 = vpop.f32.mrb[71].mxu0 }
0x1593   :  { %v31540_v54 = vpop.f32.mrb[68].mxu1 }
0x1594   :  { %v32913_v18 = vcombine.low %v31540_v54, %v31993_v30  ;;  %v39157_v27 = vpop.f32.mrb[69].mxu1  ;;  %v33114_v30 = vand.u32 4294901760, %v33113_v31 }
0x1596   :  { %32919 = vrot.lane.b32.xlu1 %v32913_v18, %s41352_s20  ;;  %v39956_v27 = vpack.c.bf16 %v33114_v30, %v33107_v13 }
0x159a   :  { %v32916_v61 = vpop.permute.xlu1 %32915 }
0x159b   :  { %32928 = vst.msk [vmem:[#allocation3] sm:$0xff] %vm32927_vm12, %v32916_v61  ;;  %v33121_v61 = vand.u32 4294901760, %v33120_v59 }
0x159e   :  { %v18142_v12 = vpop.permute.xlu1 %18141 }
0x159f   :  { %18152 = vst.msk [vmem:[#allocation3 + $0x10] sm:$0xff] %vm18149_vm10, %v18142_v12  ;;  %v33128_v12 = vand.u32 4294901760, %v33127_v42 }
0x15a2   :  { %v25531_v40 = vpop.permute.xlu1 %25530  ;;  %v32932_v19 = vld [vmem:[#allocation3] sm:$0xff] }
0x15a3   :  { %25541 = vst.msk [vmem:[#allocation3 + $0x10] sm:$0xff] %vm25538_vm11, %v25531_v40  ;;  %v32950_v14 = vsel %vm2590_vm6, %v32932_v19, 0  ;;  %v39960_v40 = vpack.c.bf16 %v33128_v12, %v33121_v61  ;;  %v39964_v19 = vpack.c.bf16 %v44656_v62, %v44651_v58  ;;  %v40000_v58 = vpack.c.bf16 %v33098_v28, %v33091_v22 }
0x15a4   :  { %v44626_v15 = vand.u32 4294901760, %v32950_v14  ;;  %v40004_v62 = vpack.c.bf16 %v33112_v1, %v33105_v35  ;;  %v41288_v1 = vld [vmem:[#allocation2 + $0x18] sm:$0xff] }
0x15a6   :  { %v44629_v41 = vsub.f32 %v32950_v14, %v44626_v15  ;;  %v39968_v14 = vpack.c.bf16 %v33097_v46, %v44661_v2  ;;  %v40008_v2 = vpack.c.bf16 %v33126_v10, %v33119_v36  ;;  %v41289_v10 = vld [vmem:[#allocation2 + $0x10] sm:$0xff] }
0x15a8   :  { %v33036_v0 = vand.u32 4294901760, %v44629_v41 }
0x15aa   :  { %v33037_v53 = vsub.f32 %v44629_v41, %v33036_v0 }
0x15ac   :  { %v33038_v55 = vand.u32 4294901760, %v33037_v53 }
0x15ae   :  { %39264 = vmatprep.mubr.f32.mxu1 %v33038_v55  ;;  %v39972_v55 = vpack.c.bf16 %v33111_v33, %v33104_v8 }
0x15d4   :  { %v32918_v39 = vpop.permute.xlu0 %32917 }
0x15d5   :  { %32929 = vst.msk [vmem:[#allocation3 + $0x8] sm:$0xff] %vm32927_vm12, %v32918_v39  ;;  %v39976_v39 = vpack.c.bf16 %v33125_v50, %v33118_v49 }
0x15d8   :  { %v18144_v25 = vpop.permute.xlu0 %18143 }
0x15d9   :  { %18153 = vst.msk [vmem:[#allocation3 + $0x18] sm:$0xff] %vm18149_vm10, %v18144_v25 }
0x15dc   :  { %v25533_v29 = vpop.permute.xlu0 %25532  ;;  %v32933_v48 = vld [vmem:[#allocation3 + $0x8] sm:$0xff] }
0x15dd   :  { %25542 = vst.msk [vmem:[#allocation3 + $0x18] sm:$0xff] %vm25538_vm11, %v25533_v29  ;;  %v32953_v60 = vsel %vm2590_vm6, %v32933_v48, 0 }
0x15de   :  { %v44639_v45 = vand.u32 4294901760, %v32953_v60 }
0x15e0   :  { %v44642_v26 = vsub.f32 %v32953_v60, %v44639_v45 }
0x15e2   :  { %v33046_v32 = vand.u32 4294901760, %v44642_v26 }
0x15e4   :  { %v33047_v7 = vsub.f32 %v44642_v26, %v33046_v32 }
0x15e6   :  { %v33048_v51 = vand.u32 4294901760, %v33047_v7 }
0x15e8   :  { %39265 = vmatmul.mubr.f32.vlgmr.msra.gmra.mrb[72].mxu1 %v33048_v51  ;;  %v32899_v3 = vpop.f32.mrb[72].mxu0 }
0x15e9   :  { %v39247_v63 = vpop.f32.mrb[73].mxu0  ;;  %39951 = vmatpush3.bf16.msra.mxu1 %v39948_v17 }
0x15ea   :  { %39953 = vmatprep.subr.bf16.mxu1 %v39952_v44  ;;  %v39996_v63 = vpack.c.bf16 %v33084_v56, %v33077_v11  ;;  %v41287_v11 = vld [vmem:[#allocation2] sm:$0xff] }
0x15ed   :  { %39955 = vmatpush3.bf16.msra.mxu1 %v39952_v44 }
0x15ee   :  { %39957 = vmatprep.subr.bf16.mxu1 %v39956_v27 }
0x15f1   :  { %39959 = vmatpush3.bf16.msra.mxu1 %v39956_v27 }
0x15f2   :  { %39961 = vmatprep.subr.bf16.mxu1 %v39960_v40 }
0x15f5   :  { %39963 = vmatpush3.bf16.msra.mxu1 %v39960_v40 }
0x15f6   :  { %39965 = vmatprep.subr.bf16.mxu1 %v39964_v19 }
0x15f8   :  { %v32446_v24 = vpop.f32.mrb[70].mxu1 }
0x15f9   :  { %v32914_v54 = vcombine.low %v32446_v24, %v32899_v3  ;;  %v39217_v18 = vpop.f32.mrb[71].mxu1 }
0x15fb   :  { %32921 = vrot.lane.b32.xlu0 %v32914_v54, %s41352_s20 }
0x1608   :  { %v32920_v53 = vpop.permute.xlu1 %32919 }
0x1609   :  { %32930 = vst.msk [vmem:[#allocation3 + $0x10] sm:$0xff] %vm32927_vm12, %v32920_v53 }
0x1610   :  { %v32934_v25 = vld [vmem:[#allocation3 + $0x10] sm:$0xff] }
0x1611   :  { %v32956_v29 = vsel %vm2590_vm6, %v32934_v25, 0 }
0x1612   :  { %v44681_v48 = vand.u32 4294901760, %v32956_v29 }
0x1614   :  { %v33055_v60 = vsub.f32 %v32956_v29, %v44681_v48 }
0x1616   :  { %v33056_v7 = vand.u32 4294901760, %v33055_v60 }
0x1618   :  { %v33057_v51 = vsub.f32 %v33055_v60, %v33056_v7 }
0x161a   :  { %v33058_v3 = vand.u32 4294901760, %v33057_v51 }
0x161c   :  { %39267 = vmatprep.mubr.f32.mxu1 %v33058_v3 }
0x166d   :  { %v32922_v46 = vpop.permute.xlu0 %32921 }
0x166e   :  { %32931 = vst.msk [vmem:[#allocation3 + $0x18] sm:$0xff] %vm32927_vm12, %v32922_v46  ;;  %v33713_v46 = vld [vmem:[#allocation4 + $0xf8] sm:$0xff] }
0x1675   :  { %v32935_v8 = vld [vmem:[#allocation3 + $0x18] sm:$0xff] }
0x1676   :  { %v32959_v33 = vsel %vm2590_vm6, %v32935_v8, 0  ;;  %v33714_v8 = vld [vmem:[#allocation4 + $0x100] sm:$0xff] }
0x1677   :  { %v33064_v49 = vand.u32 4294901760, %v32959_v33 }
0x1679   :  { %v33065_v50 = vsub.f32 %v32959_v33, %v33064_v49 }
0x167b   :  { %v33066_v23 = vand.u32 4294901760, %v33065_v50 }
0x167d   :  { %v33067_v20 = vsub.f32 %v33065_v50, %v33066_v23 }
0x167f   :  { %v33068_v57 = vand.u32 4294901760, %v33067_v20  ;;  %v33716_v20 = vld [vmem:[#allocation4 + $0x110] sm:$0xff] }
0x1681   :  { %39268 = vmatmul.mubr.f32.gmra.mrb[74].mxu1 %v33068_v57  ;;  %v33717_v57 = vld [vmem:[#allocation4 + $0x118] sm:$0xff] }
0x1682   :  { %39286 = vmatprep.mubr.f32.mxu1 %v44626_v15 }
0x1685   :  { %39287 = vmatmul.mubr.f32.vlgmr.msra.gmra.mrb[72].mxu1 %v44639_v45 }
0x1686   :  { %39967 = vmatpush3.bf16.msra.mxu1 %v39964_v19  ;;  %39289 = vmatprep.mubr.f32.mxu1 %v44681_v48 }
0x1687   :  { %39969 = vmatprep.subr.bf16.mxu1 %v39968_v14 }
0x1689   :  { %39290 = vmatmul.mubr.f32.gmra.mrb[74].mxu1 %v33064_v49 }
0x168a   :  { %39971 = vmatpush3.bf16.msra.mxu1 %v39968_v14  ;;  %39308 = vmatprep.mubr.f32.mxu1 %v44629_v41 }
0x168b   :  { %39973 = vmatprep.subr.bf16.mxu1 %v39972_v55 }
0x168e   :  { %39975 = vmatpush3.bf16.msra.mxu1 %v39972_v55 }
0x168f   :  { %39977 = vmatprep.subr.bf16.mxu1 %v39976_v39 }
0x1692   :  { %39979 = vmatpush3.bf16.msra.mxu1 %v39976_v39 }
0x1693   :  { %39981 = vmatprep.subr.bf16.mxu1 %v44577_v52 }
0x1695   :  { %39309 = vmatmul.mubr.f32.vlgmr.msra.gmra.mrb[72].mxu1 %v44642_v26 }
0x1696   :  { %39311 = vmatprep.mubr.f32.mxu1 %v33055_v60  ;;  %39983 = vmatpush3.bf16.msra.mxu1 %v44577_v52  ;;  %v33710_v60 = vld [vmem:[#allocation4 + $0xe0] sm:$0xff] }
0x1697   :  { %39985 = vmatprep.subr.bf16.mxu1 %v44591_v37  ;;  %v33736_v51 = vand.u32 4294901760, %v33710_v60 }
0x1699   :  { %39312 = vmatmul.mubr.f32.gmra.mrb[74].mxu1 %v33065_v50  ;;  %v33715_v50 = vld [vmem:[#allocation4 + $0x108] sm:$0xff] }
0x169a   :  { %39987 = vmatpush3.bf16.msra.mxu1 %v44591_v37  ;;  %39330 = vmatprep.mubr.f32.mxu1 %v33036_v0 }
0x169b   :  { %39989 = vmatprep.subr.bf16.mxu1 %v44604_v4 }
0x169e   :  { %39991 = vmatpush3.bf16.msra.mxu1 %v44604_v4 }
0x169f   :  { %39993 = vmatprep.subr.bf16.mxu1 %v44606_v5 }
0x16a2   :  { %39995 = vmatpush3.bf16.msra.mxu1 %v44606_v5 }
0x16a3   :  { %39997 = vmatprep.subr.bf16.mxu1 %v39996_v63 }
0x16a5   :  { %39331 = vmatmul.mubr.f32.vlgmr.msra.gmra.mrb[72].mxu1 %v33046_v32  ;;  %v41286_v32 = vld [vmem:[#allocation2 + $0x8] sm:$0xff] }
0x16a6   :  { %39333 = vmatprep.mubr.f32.mxu1 %v33056_v7  ;;  %39999 = vmatpush3.bf16.msra.mxu1 %v39996_v63  ;;  %v33711_v7 = vld [vmem:[#allocation4 + $0xe8] sm:$0xff] }
0x16a7   :  { %40001 = vmatprep.subr.bf16.mxu1 %v40000_v58  ;;  %v33739_v3 = vand.u32 4294901760, %v33711_v7 }
0x16a9   :  { %39334 = vmatmul.mubr.f32.gmra.mrb[74].mxu1 %v33066_v23  ;;  %v44747_v63 = vpack.c.bf16 %v33739_v3, %v33736_v51  ;;  %v33748_v23 = vand.u32 4294901760, %v33714_v8 }
0x16aa   :  { %40003 = vmatpush3.bf16.msra.mxu1 %v40000_v58  ;;  %39352 = vmatprep.mubr.f32.mxu1 %v44626_v15  ;;  %v44749_v58 = vsub.f32 %v33710_v60, %v33736_v51 }
0x16ab   :  { %40005 = vmatprep.subr.bf16.mxu1 %v40004_v62 }
0x16ae   :  { %40007 = vmatpush3.bf16.msra.mxu1 %v40004_v62  ;;  %v44751_v62 = vsub.f32 %v33711_v7, %v33739_v3 }
0x16af   :  { %40009 = vmatprep.subr.bf16.mxu1 %v40008_v2 }
0x16b2   :  { %40011 = vmatpush3.bf16.msra.mxu1 %v40008_v2  ;;  %v33712_v2 = vld [vmem:[#allocation4 + $0xf0] sm:$0xff] }
0x16b3   :  { %40013 = vmatprep.subr.bf16.mxu1 %v44577_v52  ;;  %v33742_v33 = vand.u32 4294901760, %v33712_v2 }
0x16b5   :  { %39353 = vmatmul.mubr.f32.vlgmr.msra.gmra.mrb[72].mxu1 %v44639_v45 }
0x16b6   :  { %39355 = vmatprep.mubr.f32.mxu1 %v44681_v48  ;;  %40015 = vmatpush3.bf16.msra.mxu1 %v44577_v52  ;;  %v35933_v52 = vld [vmem:[#allocation4 + $0xd8] ss:$0 sm:$0xff] }
0x16b7   :  { %40017 = vmatprep.subr.bf16.mxu1 %v44591_v37 }
0x16b9   :  { %39356 = vmatmul.mubr.f32.gmra.mrb[74].mxu1 %v33064_v49 }
0x16ba   :  { %40019 = vmatpush3.bf16.msra.mxu1 %v44591_v37  ;;  %39374 = vmatprep.mubr.f32.mxu1 %v44626_v15 }
0x16bb   :  { %40021 = vmatprep.subr.bf16.mxu1 %v44604_v4 }
0x16be   :  { %40023 = vmatpush3.bf16.msra.mxu1 %v44604_v4 }
0x16bf   :  { %40025 = vmatprep.subr.bf16.mxu1 %v44606_v5 }
0x16c2   :  { %40027 = vmatpush3.bf16.msra.mxu1 %v44606_v5 }
0x16c3   :  { %40029 = vmatprep.subr.bf16.mxu1 %v44747_v63 }
0x16c5   :  { %39375 = vmatmul.mubr.f32.vlgmr.msra.gmra.mrb[72].mxu1 %v44639_v45 }
0x16c6   :  { %39377 = vmatprep.mubr.f32.mxu1 %v44681_v48  ;;  %40031 = vmatpush3.bf16.msra.mxu1 %v44747_v63 }
0x16c9   :  { %39378 = vmatmul.mubr.f32.gmra.mrb[74].mxu1 %v33064_v49  ;;  %v33745_v49 = vand.u32 4294901760, %v33713_v46 }
0x1798   :  { %v39376_v41 = vpop.f32.mrb[72].mxu1 }
0x1799   :  { %v40281_v0 = vadd.f32 %v39376_v41, %v35933_v52  ;;  %v33605_v26 = vpop.f32.mrb[73].mxu1  ;;  %v33751_v41 = vand.u32 4294901760, %v33715_v50 }
0x179a   :  { %v40282_v37 = vadd.f32 %v35933_v52, %v33605_v26  ;;  %v33757_v26 = vand.u32 4294901760, %v33717_v57 }
0x179b   :  { %v33629_v15 = vadd.f32 %v41286_v32, %v40281_v0  ;;  %v33754_v0 = vand.u32 4294901760, %v33716_v20  ;;  %v33864_v32 = vsub.f32 %v33712_v2, %v33742_v33 }
0x179c   :  { %v33628_v56 = vadd.f32 %v41287_v11, %v40282_v37  ;;  %v39379_v22 = vpop.f32.mrb[74].mxu1  ;;  %v44756_v37 = vpack.c.bf16 %v33745_v49, %v33742_v33  ;;  %v33878_v11 = vsub.f32 %v33714_v8, %v33748_v23 }
0x179d   :  { %v40283_v4 = vadd.f32 %v39379_v22, %v35933_v52  ;;  %v33617_v28 = vpop.f32.mrb[75].mxu1  ;;  %v33635_v35 = vsel %vm2590_vm6, %v33629_v15, 0.0  ;;  %v33885_v22 = vsub.f32 %v33715_v50, %v33751_v41 }
0x179e   :  { %v40284_v5 = vadd.f32 %v35933_v52, %v33617_v28  ;;  %33636 = vadd.xlane.f32.xlu0 %v33635_v35  ;;  %v33632_v45 = vsel %vm2590_vm6, %v33628_v56, 0.0  ;;  %v40060_v52 = vpack.c.bf16 %v44751_v62, %v44749_v58  ;;  %40033 = vmatprep.subr.bf16.mxu1 %v44756_v37  ;;  %v33892_v35 = vsub.f32 %v33716_v20, %v33754_v0 }
0x179f   :  { %v33631_v36 = vadd.f32 %v41288_v1, %v40283_v4  ;;  %33633 = vadd.xlane.f32.xlu1 %v33632_v45  ;;  %v40068_v28 = vpack.c.bf16 %v33885_v22, %v33878_v11  ;;  %40035 = vmatpush3.bf16.msra.mxu1 %v44756_v37  ;;  %v44763_v45 = vpack.c.bf16 %v33757_v26, %v33754_v0 }
0x17a0   :  { %v33630_v6 = vadd.f32 %v41289_v10, %v40284_v5  ;;  %40061 = vmatprep.subr.bf16.mxu0 %v40060_v52  ;;  %v33899_v5 = vsub.f32 %v33717_v57, %v33757_v26  ;;  %v33858_v10 = vand.u32 4294901760, %v44751_v62 }
0x17a1   :  { %v33641_v34 = vsel %vm2590_vm6, %v33631_v36, 0.0  ;;  %40063 = vmatpush3.bf16.msra.mxu0 %v40060_v52 }
0x17a2   :  { %v33638_v31 = vsel %vm2590_vm6, %v33630_v6, 0.0  ;;  %v40072_v1 = vpack.c.bf16 %v33899_v5, %v33892_v35 }
0x17a3   :  { %33639 = vadd.xlane.f32.xlu0 %v33638_v31  ;;  %33642 = vadd.xlane.f32.xlu1 %v33641_v34  ;;  %v33859_v34 = vsub.f32 %v44751_v62, %v33858_v10 }
0x182b   :  { %v33637_v21 = vpop.xlane.xlu0 %33636 }
0x182c   :  { %v33645_v47 = vmul.f32 0.025, %v33637_v21  ;;  %v33634_v16 = vpop.xlane.xlu1 %33633  ;;  %v33860_v21 = vand.u32 4294901760, %v33859_v34 }
0x182d   :  { %v33644_v59 = vmul.f32 0.025, %v33634_v16 }
0x182e   :  { %v33649_v42 = vsub.f32 %v33629_v15, %v33645_v47  ;;  %v33871_v15 = vsub.f32 %v33713_v46, %v33745_v49  ;;  %v33865_v47 = vand.u32 4294901760, %v33864_v32 }
0x182f   :  { %v33648_v17 = vsub.f32 %v33628_v56, %v33644_v59  ;;  %v44759_v56 = vpack.c.bf16 %v33751_v41, %v33748_v23 }
0x1830   :  { %v44724_v44 = vmul.f32 %v44721_v43, %v33649_v42  ;;  %v33640_v13 = vpop.xlane.xlu0 %33639  ;;  %v33643_v30 = vpop.xlane.xlu1 %33642  ;;  %v40064_v4 = vpack.c.bf16 %v33871_v15, %v33864_v32  ;;  %v33872_v16 = vand.u32 4294901760, %v33871_v15  ;;  %v33866_v42 = vsub.f32 %v33864_v32, %v33865_v47 }
0x1831   :  { %v44727_v24 = vmul.f32 %v44721_v43, %v33648_v17  ;;  %v33646_v54 = vmul.f32 0.025, %v33640_v13  ;;  %v33647_v18 = vmul.f32 0.025, %v33643_v30  ;;  %40037 = vmatprep.subr.bf16.mxu1 %v44759_v56 }
0x1832   :  { %v33661_v27 = vmul.f32 %v44724_v44, %v44724_v44  ;;  %40065 = vmatprep.subr.bf16.mxu0 %v40064_v4  ;;  %40039 = vmatpush3.bf16.msra.mxu1 %v44759_v56  ;;  %v33873_v17 = vsub.f32 %v33871_v15, %v33872_v16  ;;  %v33867_v13 = vand.u32 4294901760, %v33866_v42  ;;  %v44783_v7 = vpack.c.bf16 %v33872_v16, %v33865_v47  ;;  %v35935_v15 = vld [vmem:[#allocation4 + $0x150] ss:$0 sm:$0xff] }
0x1833   :  { %v33650_v61 = vsub.f32 %v33630_v6, %v33646_v54  ;;  %v33651_v12 = vsub.f32 %v33631_v36, %v33647_v18  ;;  %v33660_v40 = vmul.f32 %v44727_v24, %v44727_v24  ;;  %40067 = vmatpush3.bf16.msra.mxu0 %v40064_v4  ;;  %40041 = vmatprep.subr.bf16.mxu1 %v44763_v45  ;;  %v33851_v36 = vand.u32 4294901760, %v44749_v58 }
0x1834   :  { %v33667_v19 = vsel %vm2590_vm6, %v33661_v27, 0.0  ;;  %40069 = vmatprep.subr.bf16.mxu0 %v40068_v28  ;;  %v33874_v30 = vand.u32 4294901760, %v33873_v17  ;;  %v33879_v54 = vand.u32 4294901760, %v33878_v11  ;;  %v33886_v18 = vand.u32 4294901760, %v33885_v22 }
0x1835   :  { %v44735_v14 = vmul.f32 %v44721_v43, %v33650_v61  ;;  %v44738_v53 = vmul.f32 %v44721_v43, %v33651_v12  ;;  %33668 = vadd.xlane.f32.xlu1 %v33667_v19  ;;  %v33664_v55 = vsel %vm2590_vm6, %v33660_v40, 0.0  ;;  %v33852_v6 = vsub.f32 %v44749_v58, %v33851_v36 }
0x1836   :  { %33665 = vadd.xlane.f32.xlu0 %v33664_v55  ;;  %40043 = vmatpush3.bf16.msra.mxu1 %v44763_v45  ;;  %v44777_v27 = vpack.c.bf16 %v33874_v30, %v33867_v13  ;;  %v33880_v61 = vsub.f32 %v33878_v11, %v33879_v54  ;;  %v33887_v12 = vsub.f32 %v33885_v22, %v33886_v18 }
0x1837   :  { %v33662_v39 = vmul.f32 %v44735_v14, %v44735_v14  ;;  %v33663_v25 = vmul.f32 %v44738_v53, %v44738_v53  ;;  %40071 = vmatpush3.bf16.msra.mxu0 %v40068_v28  ;;  %v33853_v31 = vand.u32 4294901760, %v33852_v6  ;;  %v44779_v40 = vpack.c.bf16 %v33858_v10, %v33851_v36  ;;  %v35936_v28 = vld [vmem:[#allocation4 + $0x158] ss:$0 sm:$0xff] }
0x1838   :  { %40073 = vmatprep.subr.bf16.mxu0 %v40072_v1  ;;  %v33881_v19 = vand.u32 4294901760, %v33880_v61  ;;  %v33888_v55 = vand.u32 4294901760, %v33887_v12  ;;  %v44787_v62 = vpack.c.bf16 %v33886_v18, %v33879_v54 }
0x1839   :  { %v33670_v29 = vsel %vm2590_vm6, %v33662_v39, 0.0  ;;  %v33673_v48 = vsel %vm2590_vm6, %v33663_v25, 0.0  ;;  %v44774_v59 = vpack.c.bf16 %v33860_v21, %v33853_v31  ;;  %v33893_v39 = vand.u32 4294901760, %v33892_v35 }
0x183a   :  { %33671 = vadd.xlane.f32.xlu0 %v33670_v29  ;;  %33674 = vadd.xlane.f32.xlu1 %v33673_v48  ;;  %v33900_v25 = vand.u32 4294901760, %v33899_v5  ;;  %v44781_v29 = vpack.c.bf16 %v33888_v55, %v33881_v19 }
0x183b   :  { %40075 = vmatpush3.bf16.msra.mxu0 %v40072_v1  ;;  %40045 = vmatprep.subr.bf16.mxu1 %v44774_v59  ;;  %v33894_v48 = vsub.f32 %v33892_v35, %v33893_v39 }
0x183c   :  { %40077 = vmatprep.subr.bf16.mxu0 %v44747_v63  ;;  %v33901_v60 = vsub.f32 %v33899_v5, %v33900_v25  ;;  %v44789_v2 = vpack.c.bf16 %v33900_v25, %v33893_v39 }
0x183d   :  { %v33895_v51 = vand.u32 4294901760, %v33894_v48 }
0x183e   :  { %v33902_v3 = vand.u32 4294901760, %v33901_v60 }
0x1840   :  { %v44785_v58 = vpack.c.bf16 %v33902_v3, %v33895_v51 }
0x18c2   :  { %v33669_v46 = vpop.xlane.xlu1 %33668 }
0x18c3   :  { %v33677_v8 = vmul.f32 0.025, %v33669_v46  ;;  %v33666_v33 = vpop.xlane.xlu0 %33665 }
0x18c4   :  { %v33676_v49 = vmul.f32 0.025, %v33666_v33 }
0x18c5   :  { %v33681_v50 = vadd.f32 1e-05, %v33677_v8 }
0x18c6   :  { %v33680_v23 = vadd.f32 1e-05, %v33676_v49 }
0x18c7   :  { %41259 = vrsqrt.f32 %v33681_v50  ;;  %v33672_v20 = vpop.xlane.xlu0 %33671  ;;  %v33675_v57 = vpop.xlane.xlu1 %33674 }
0x18c8   :  { %41261 = vrsqrt.f32 %v33680_v23  ;;  %v33678_v52 = vmul.f32 0.025, %v33672_v20  ;;  %v33679_v41 = vmul.f32 0.025, %v33675_v57 }
0x18ca   :  { %v33682_v0 = vadd.f32 1e-05, %v33678_v52  ;;  %v33683_v26 = vadd.f32 1e-05, %v33679_v41 }
0x18cc   :  { %41263 = vrsqrt.f32 %v33682_v0 }
0x18cd   :  { %41265 = vrsqrt.f32 %v33683_v26 }
0x18d1   :  { %v41260_v32 = vpop.eup %41259 }
0x18d2   :  { %v41262_v11 = vpop.eup %41261  ;;  %v33689_v22 = vmul.f32 %v41260_v32, %v44724_v44 }
0x18d3   :  { %v33688_v4 = vmul.f32 %v41262_v11, %v44727_v24 }
0x18d4   :  { %v33698_v35 = vmul.f32 %v35935_v15, %v33689_v22 }
0x18d5   :  { %v33697_v5 = vmul.f32 %v35935_v15, %v33688_v4 }
0x18d6   :  { %v41264_v1 = vpop.eup %41263  ;;  %v44793_v36 = vadd.f32 %v35936_v28, %v33698_v35 }
0x18d7   :  { %v41266_v10 = vpop.eup %41265  ;;  %v44795_v6 = vadd.f32 %v35936_v28, %v33697_v5  ;;  %v33690_v34 = vmul.f32 %v41264_v1, %v44735_v14 }
0x18d8   :  { %v33727_v31 = vsel %vm2590_vm6, %v44793_v36, 0  ;;  %v33691_v21 = vmul.f32 %v41266_v10, %v44738_v53 }
0x18d9   :  { %v33724_v44 = vsel %vm2590_vm6, %v44795_v6, 0  ;;  %v44803_v24 = vand.u32 4294901760, %v33727_v31  ;;  %v33699_v47 = vmul.f32 %v35935_v15, %v33690_v34 }
0x18da   :  { %v44805_v16 = vand.u32 4294901760, %v33724_v44  ;;  %v33700_v42 = vmul.f32 %v35935_v15, %v33691_v21 }
0x18db   :  { %v33819_v17 = vsub.f32 %v33727_v31, %v44803_v24  ;;  %v44808_v13 = vadd.f32 %v35936_v28, %v33699_v47 }
0x18dc   :  { %v33809_v14 = vsub.f32 %v33724_v44, %v44805_v16  ;;  %v44811_v30 = vadd.f32 %v35936_v28, %v33700_v42  ;;  %v35937_v42 = vld [vmem:[#allocation4 + $0x120] ss:$0 sm:$0xff] }
0x18dd   :  { %v33820_v54 = vand.u32 4294901760, %v33819_v17  ;;  %v33730_v53 = vsel %vm2590_vm6, %v44808_v13, 0 }
0x18de   :  { %39440 = vmatprep.mubr.f32.mxu0 %v33809_v14  ;;  %v44815_v18 = vand.u32 4294901760, %v33730_v53  ;;  %v33733_v61 = vsel %vm2590_vm6, %v44811_v30, 0  ;;  %v33810_v12 = vand.u32 4294901760, %v33809_v14 }
0x18df   :  { %v33821_v19 = vsub.f32 %v33819_v17, %v33820_v54  ;;  %39441 = vmatmul.mubr.f32.vlgmr.msra.gmra.mrb[74].mxu0 %v33819_v17  ;;  %v33838_v55 = vand.u32 4294901760, %v33733_v61 }
0x18e0   :  { %40079 = vmatpush3.bf16.msra.mxu0 %v44747_v63  ;;  %v33829_v39 = vsub.f32 %v33730_v53, %v44815_v18  ;;  %v33811_v25 = vsub.f32 %v33809_v14, %v33810_v12 }
0x18e1   :  { %40081 = vmatprep.subr.bf16.mxu0 %v44756_v37  ;;  %v33839_v48 = vsub.f32 %v33733_v61, %v33838_v55  ;;  %v33822_v3 = vand.u32 4294901760, %v33821_v19 }
0x18e2   :  { %39443 = vmatprep.mubr.f32.mxu0 %v33829_v39  ;;  %v33812_v60 = vand.u32 4294901760, %v33811_v25  ;;  %v33830_v51 = vand.u32 4294901760, %v33829_v39 }
0x18e3   :  { %39444 = vmatmul.mubr.f32.gmra.mrb[76].mxu0 %v33839_v48  ;;  %v33840_v46 = vand.u32 4294901760, %v33839_v48 }
0x18e4   :  { %40083 = vmatpush3.bf16.msra.mxu0 %v44756_v37  ;;  %39396 = vmatprep.mubr.f32.mxu1 %v33812_v60  ;;  %v33831_v8 = vsub.f32 %v33829_v39, %v33830_v51 }
0x18e5   :  { %39462 = vmatprep.mubr.f32.mxu0 %v33810_v12  ;;  %39397 = vmatmul.mubr.f32.vlgmr.msra.gmra.mrb[76].mxu1 %v33822_v3  ;;  %v33841_v33 = vsub.f32 %v33839_v48, %v33840_v46 }
0x18e6   :  { %40047 = vmatpush3.bf16.msra.mxu1 %v44774_v59  ;;  %40085 = vmatprep.subr.bf16.mxu0 %v44759_v56  ;;  %v33832_v49 = vand.u32 4294901760, %v33831_v8  ;;  %v34422_v59 = vld [vmem:[#allocation4 + $0x130] sm:$0xff] }
0x18e7   :  { %40049 = vmatprep.subr.bf16.mxu1 %v44777_v27  ;;  %v33842_v50 = vand.u32 4294901760, %v33841_v33 }
0x18e8   :  { %40087 = vmatpush3.bf16.msra.mxu0 %v44759_v56  ;;  %39399 = vmatprep.mubr.f32.mxu1 %v33832_v49 }
0x18e9   :  { %39400 = vmatmul.mubr.f32.gmra.mrb[78].mxu1 %v33842_v50  ;;  %40089 = vmatprep.subr.bf16.mxu0 %v44763_v45 }
0x18ea   :  { %40051 = vmatpush3.bf16.msra.mxu1 %v44777_v27  ;;  %39418 = vmatprep.mubr.f32.mxu1 %v44805_v16 }
0x18eb   :  { %40053 = vmatprep.subr.bf16.mxu1 %v44781_v29 }
0x18ec   :  { %40091 = vmatpush3.bf16.msra.mxu0 %v44763_v45 }
0x18ed   :  { %40093 = vmatprep.subr.bf16.mxu0 %v44779_v40 }
0x18ee   :  { %40055 = vmatpush3.bf16.msra.mxu1 %v44781_v29  ;;  %v34424_v29 = vld [vmem:[#allocation4 + $0x140] sm:$0xff] }
0x18ef   :  { %39463 = vmatmul.mubr.f32.vlgmr.msra.gmra.mrb[74].mxu0 %v33820_v54  ;;  %40057 = vmatprep.subr.bf16.mxu1 %v44785_v58 }
0x18f0   :  { %39465 = vmatprep.mubr.f32.mxu0 %v33830_v51  ;;  %40095 = vmatpush3.bf16.msra.mxu0 %v44779_v40  ;;  %v34446_v40 = vand.u32 4294901760, %v34422_v59 }
0x18f1   :  { %40097 = vmatprep.subr.bf16.mxu0 %v44783_v7 }
0x18f2   :  { %40059 = vmatpush3.bf16.msra.mxu1 %v44785_v58  ;;  %v34452_v58 = vand.u32 4294901760, %v34424_v29 }
0x18f3   :  { %39466 = vmatmul.mubr.f32.gmra.mrb[76].mxu0 %v33840_v46 }
0x18f4   :  { %40099 = vmatpush3.bf16.msra.mxu0 %v44783_v7  ;;  %39484 = vmatprep.mubr.f32.mxu0 %v44805_v16  ;;  %v34574_v0 = vsub.f32 %v34424_v29, %v34452_v58 }
0x18f5   :  { %39419 = vmatmul.mubr.f32.vlgmr.msra.gmra.mrb[76].mxu1 %v44803_v24  ;;  %40101 = vmatprep.subr.bf16.mxu0 %v44787_v62 }
0x18f6   :  { %39421 = vmatprep.mubr.f32.mxu1 %v44815_v18  ;;  %v34575_v11 = vand.u32 4294901760, %v34574_v0 }
0x18f8   :  { %40103 = vmatpush3.bf16.msra.mxu0 %v44787_v62  ;;  %v34576_v28 = vsub.f32 %v34574_v0, %v34575_v11 }
0x18f9   :  { %39422 = vmatmul.mubr.f32.gmra.mrb[78].mxu1 %v33838_v55  ;;  %40105 = vmatprep.subr.bf16.mxu0 %v44789_v2 }
0x18fa   :  { %v34577_v5 = vand.u32 4294901760, %v34576_v28 }
0x18fc   :  { %40107 = vmatpush3.bf16.msra.mxu0 %v44789_v2  ;;  %v34560_v2 = vsub.f32 %v34422_v59, %v34446_v40 }
0x18fd   :  { %40109 = vmatprep.subr.bf16.mxu0 %v44747_v63 }
0x18fe   :  { %v34561_v20 = vand.u32 4294901760, %v34560_v2 }
0x18ff   :  { %39485 = vmatmul.mubr.f32.vlgmr.msra.gmra.mrb[74].mxu0 %v44803_v24 }
0x1900   :  { %39487 = vmatprep.mubr.f32.mxu0 %v44815_v18  ;;  %40111 = vmatpush3.bf16.msra.mxu0 %v44747_v63  ;;  %v34421_v63 = vld [vmem:[#allocation4 + $0x128] sm:$0xff]  ;;  %v34562_v52 = vsub.f32 %v34560_v2, %v34561_v20 }
0x1901   :  { %40113 = vmatprep.subr.bf16.mxu0 %v44756_v37  ;;  %v34443_v27 = vand.u32 4294901760, %v34421_v63 }
0x1902   :  { %v34563_v32 = vand.u32 4294901760, %v34562_v52 }
0x1903   :  { %39488 = vmatmul.mubr.f32.gmra.mrb[76].mxu0 %v33838_v55  ;;  %v44859_v62 = vpack.c.bf16 %v34446_v40, %v34443_v27 }
0x1904   :  { %40115 = vmatpush3.bf16.msra.mxu0 %v44756_v37  ;;  %39506 = vmatprep.mubr.f32.mxu0 %v44805_v16  ;;  %v34423_v37 = vld [vmem:[#allocation4 + $0x138] sm:$0xff] }
0x1905   :  { %40117 = vmatprep.subr.bf16.mxu0 %v44759_v56  ;;  %v34449_v7 = vand.u32 4294901760, %v34423_v37  ;;  %40125 = vmatprep.subr.bf16.mxu1 %v44859_v62 }
0x1906   :  { %40127 = vmatpush3.bf16.msra.mxu1 %v44859_v62 }
0x1907   :  { %v44861_v23 = vpack.c.bf16 %v34452_v58, %v34449_v7  ;;  %v34567_v41 = vsub.f32 %v34423_v37, %v34449_v7 }
0x1908   :  { %40119 = vmatpush3.bf16.msra.mxu0 %v44759_v56  ;;  %v34553_v56 = vsub.f32 %v34421_v63, %v34443_v27 }
0x1909   :  { %40121 = vmatprep.subr.bf16.mxu0 %v44763_v45  ;;  %40129 = vmatprep.subr.bf16.mxu1 %v44861_v23  ;;  %v34568_v15 = vand.u32 4294901760, %v34567_v41  ;;  %v44874_v34 = vpack.c.bf16 %v34574_v0, %v34567_v41 }
0x190a   :  { %40131 = vmatpush3.bf16.msra.mxu1 %v44861_v23  ;;  %v44870_v1 = vpack.c.bf16 %v34560_v2, %v34553_v56 }
0x190b   :  { %v34569_v4 = vsub.f32 %v34567_v41, %v34568_v15  ;;  %v44878_v21 = vpack.c.bf16 %v34575_v11, %v34568_v15 }
0x190c   :  { %40123 = vmatpush3.bf16.msra.mxu0 %v44763_v45  ;;  %v34554_v45 = vand.u32 4294901760, %v34553_v56 }
0x190d   :  { %v34570_v35 = vand.u32 4294901760, %v34569_v4 }
0x190e   :  { %v34555_v57 = vsub.f32 %v34553_v56, %v34554_v45  ;;  %v44876_v31 = vpack.c.bf16 %v34561_v20, %v34554_v45 }
0x190f   :  { %39507 = vmatmul.mubr.f32.vlgmr.msra.gmra.mrb[74].mxu0 %v44803_v24  ;;  %v44872_v10 = vpack.c.bf16 %v34577_v5, %v34570_v35 }
0x1910   :  { %39509 = vmatprep.mubr.f32.mxu0 %v44815_v18  ;;  %v34556_v26 = vand.u32 4294901760, %v34555_v57 }
0x1912   :  { %v44867_v22 = vpack.c.bf16 %v34563_v32, %v34556_v26 }
0x1913   :  { %39510 = vmatmul.mubr.f32.gmra.mrb[76].mxu0 %v33838_v55 }
0x1914   :  { %40133 = vmatprep.subr.bf16.mxu1 %v44867_v22 }
0x19c8   :  { %v39420_v44 = vpop.f32.mrb[76].mxu1 }
0x19c9   :  { %v33955_v24 = vpop.f32.mrb[77].mxu1  ;;  %v40285_v17 = vadd.f32 %v39420_v44, %v35937_v42 }
0x19ca   :  { %v40287_v14 = vadd.f32 %v35937_v42, %v33955_v24 }
0x19cc   :  { %v39423_v47 = vpop.f32.mrb[78].mxu1 }
0x19cd   :  { %v33967_v16 = vpop.f32.mrb[79].mxu1  ;;  %v40289_v12 = vadd.f32 %v39423_v47, %v35937_v42 }
0x19ce   :  { %v40291_v55 = vadd.f32 %v35937_v42, %v33967_v16 }
0x19e2   :  { %v39508_v54 = vpop.f32.mrb[74].mxu0 }
0x19e3   :  { %v40286_v53 = vadd.f32 %v40285_v17, %v39508_v54  ;;  %v34379_v18 = vpop.f32.mrb[75].mxu0 }
0x19e4   :  { %v40288_v61 = vadd.f32 %v40287_v14, %v34379_v18 }
0x19e5   :  { %v34406_v19 = vmul.f32 0.70710677, %v40286_v53  ;;  %v34402_v49 = vmul.f32 0.5, %v40286_v53 }
0x19e6   :  { %v34405_v39 = vmul.f32 0.70710677, %v40288_v61  ;;  %v39511_v25 = vpop.f32.mrb[76].mxu0  ;;  %v34401_v63 = vmul.f32 0.5, %v40288_v61 }
0x19e7   :  { %41267 = verf.f32 %v34406_v19  ;;  %v40290_v48 = vadd.f32 %v40289_v12, %v39511_v25  ;;  %v34391_v60 = vpop.f32.mrb[77].mxu0 }
0x19e8   :  { %41269 = verf.f32 %v34405_v39  ;;  %v40292_v51 = vadd.f32 %v40291_v55, %v34391_v60 }
0x19e9   :  { %v34408_v3 = vmul.f32 0.70710677, %v40290_v48  ;;  %v34404_v58 = vmul.f32 0.5, %v40290_v48 }
0x19ea   :  { %v34407_v46 = vmul.f32 0.70710677, %v40292_v51  ;;  %v34403_v20 = vmul.f32 0.5, %v40292_v51 }
0x19eb   :  { %41271 = verf.f32 %v34408_v3 }
0x19ec   :  { %41273 = verf.f32 %v34407_v46 }
0x19f1   :  { %v41268_v8 = vpop.eup %41267 }
0x19f2   :  { %v41270_v33 = vpop.eup %41269  ;;  %v34414_v50 = vadd.f32 1.0, %v41268_v8 }
0x19f3   :  { %v34413_v59 = vadd.f32 1.0, %v41270_v33 }
0x19f4   :  { %v34418_v27 = vmul.f32 %v34414_v50, %v34402_v49 }
0x19f5   :  { %v41272_v40 = vpop.eup %41271  ;;  %v34417_v37 = vmul.f32 %v34413_v59, %v34401_v63 }
0x19f6   :  { %v41274_v29 = vpop.eup %41273  ;;  %v34434_v7 = vsel %vm523_vm2, %v34418_v27, 0  ;;  %v34416_v56 = vadd.f32 1.0, %v41272_v40 }
0x19f7   :  { %v44881_v2 = vand.u32 4294901760, %v34434_v7  ;;  %v34431_v45 = vsel %vm523_vm2, %v34417_v37, 0  ;;  %v34415_v57 = vadd.f32 1.0, %v41274_v29 }
0x19f8   :  { %v34511_v52 = vand.u32 4294901760, %v34431_v45  ;;  %v34420_v41 = vmul.f32 %v34416_v56, %v34404_v58 }
0x19f9   :  { %v34522_v0 = vsub.f32 %v34434_v7, %v44881_v2  ;;  %v34419_v26 = vmul.f32 %v34415_v57, %v34403_v20 }
0x19fa   :  { %v34512_v32 = vsub.f32 %v34431_v45, %v34511_v52  ;;  %v34440_v15 = vsel %vm523_vm2, %v34420_v41, 0 }
0x19fb   :  { %v34523_v11 = vand.u32 4294901760, %v34522_v0  ;;  %v34541_v4 = vand.u32 4294901760, %v34440_v15  ;;  %v34437_v28 = vsel %vm523_vm2, %v34419_v26, 0  ;;  %v35134_v26 = vld [vmem:[#allocation4 + $0x170] sm:$0xff]  ;;  %vm35904_vm2 = vcmask 1046534  }
0x19fc   :  { %v34531_v35 = vand.u32 4294901760, %v34437_v28  ;;  %v34513_v5 = vand.u32 4294901760, %v34512_v32 }
0x19fd   :  { %v34524_v44 = vsub.f32 %v34522_v0, %v34523_v11  ;;  %v34542_v24 = vsub.f32 %v34440_v15, %v34541_v4 }
0x19fe   :  { %v34532_v47 = vsub.f32 %v34437_v28, %v34531_v35  ;;  %v34514_v16 = vsub.f32 %v34512_v32, %v34513_v5  ;;  %v35138_v28 = vld [vmem:[#allocation4 + $0x190] sm:$0xff] }
0x19ff   :  { %v34543_v42 = vand.u32 4294901760, %v34542_v24  ;;  %v34525_v54 = vand.u32 4294901760, %v34524_v44  ;;  %v35139_v44 = vld [vmem:[#allocation4 + $0x198] sm:$0xff] }
0x1a00   :  { %v34515_v17 = vand.u32 4294901760, %v34514_v16  ;;  %v34533_v14 = vand.u32 4294901760, %v34532_v47  ;;  %v35175_v16 = vand.u32 4294901760, %v35139_v44 }
0x1a01   :  { %v34544_v53 = vsub.f32 %v34542_v24, %v34543_v42 }
0x1a02   :  { %39520 = vmatprep.mubr.f32.mxu1 %v34515_v17  ;;  %v34534_v18 = vsub.f32 %v34532_v47, %v34533_v14  ;;  %v35140_v17 = vld [vmem:[#allocation4 + $0x1a0] sm:$0xff] }
0x1a03   :  { %39521 = vmatmul.mubr.f32.vlgmr.msra.gmra.mrb[80].mxu1 %v34525_v54  ;;  %v34545_v12 = vand.u32 4294901760, %v34544_v53  ;;  %v35178_v53 = vand.u32 4294901760, %v35140_v17 }
0x1a04   :  { %40135 = vmatpush3.bf16.msra.mxu1 %v44867_v22  ;;  %v34535_v61 = vand.u32 4294901760, %v34534_v18  ;;  %v35938_v22 = vld [vmem:[#allocation4 + $0x148] ss:$0 sm:$0xff] }
0x1a05   :  { %40137 = vmatprep.subr.bf16.mxu1 %v44872_v10 }
0x1a06   :  { %39523 = vmatprep.mubr.f32.mxu1 %v34535_v61 }
0x1a07   :  { %39524 = vmatmul.mubr.f32.gmra.mrb[82].mxu1 %v34545_v12 }
0x1a08   :  { %40139 = vmatpush3.bf16.msra.mxu1 %v44872_v10  ;;  %39534 = vmatprep.mubr.f32.mxu1 %v34511_v52 }
0x1a09   :  { %40141 = vmatprep.subr.bf16.mxu1 %v44870_v1 }
0x1a0b   :  { %39535 = vmatmul.mubr.f32.vlgmr.msra.gmra.mrb[80].mxu1 %v44881_v2 }
0x1a0c   :  { %39537 = vmatprep.mubr.f32.mxu1 %v34531_v35  ;;  %40143 = vmatpush3.bf16.msra.mxu1 %v44870_v1 }
0x1a0d   :  { %40145 = vmatprep.subr.bf16.mxu1 %v44874_v34 }
0x1a0f   :  { %39538 = vmatmul.mubr.f32.gmra.mrb[82].mxu1 %v34541_v4 }
0x1a10   :  { %40147 = vmatpush3.bf16.msra.mxu1 %v44874_v34  ;;  %39548 = vmatprep.mubr.f32.mxu1 %v34512_v32  ;;  %v35135_v32 = vld [vmem:[#allocation4 + $0x178] sm:$0xff] }
0x1a11   :  { %40149 = vmatprep.subr.bf16.mxu1 %v44859_v62  ;;  %v35163_v15 = vand.u32 4294901760, %v35135_v32 }
0x1a13   :  { %39549 = vmatmul.mubr.f32.vlgmr.msra.gmra.mrb[80].mxu1 %v34522_v0 }
0x1a14   :  { %39551 = vmatprep.mubr.f32.mxu1 %v34532_v47  ;;  %40151 = vmatpush3.bf16.msra.mxu1 %v44859_v62  ;;  %v35172_v47 = vand.u32 4294901760, %v35138_v28 }
0x1a15   :  { %40153 = vmatprep.subr.bf16.mxu1 %v44861_v23 }
0x1a16   :  { %v44948_v54 = vpack.c.bf16 %v35175_v16, %v35172_v47 }
0x1a17   :  { %39552 = vmatmul.mubr.f32.gmra.mrb[82].mxu1 %v34542_v24 }
0x1a18   :  { %40155 = vmatpush3.bf16.msra.mxu1 %v44861_v23  ;;  %39562 = vmatprep.mubr.f32.mxu1 %v34513_v5 }
0x1a19   :  { %40157 = vmatprep.subr.bf16.mxu1 %v44876_v31 }
0x1a1b   :  { %39563 = vmatmul.mubr.f32.vlgmr.msra.gmra.mrb[80].mxu1 %v34523_v11  ;;  %v35136_v11 = vld [vmem:[#allocation4 + $0x180] sm:$0xff] }
0x1a1c   :  { %39565 = vmatprep.mubr.f32.mxu1 %v34533_v14  ;;  %40159 = vmatpush3.bf16.msra.mxu1 %v44876_v31  ;;  %v35141_v14 = vld [vmem:[#allocation4 + $0x1a8] sm:$0xff] }
0x1a1d   :  { %40161 = vmatprep.subr.bf16.mxu1 %v44878_v21  ;;  %v35181_v18 = vand.u32 4294901760, %v35141_v14 }
0x1a1f   :  { %39566 = vmatmul.mubr.f32.gmra.mrb[82].mxu1 %v34543_v42  ;;  %v44952_v61 = vpack.c.bf16 %v35181_v18, %v35178_v53 }
0x1a20   :  { %40163 = vmatpush3.bf16.msra.mxu1 %v44878_v21  ;;  %39576 = vmatprep.mubr.f32.mxu1 %v34511_v52 }
0x1a21   :  { %40165 = vmatprep.subr.bf16.mxu1 %v44859_v62 }
0x1a23   :  { %39577 = vmatmul.mubr.f32.vlgmr.msra.gmra.mrb[80].mxu1 %v44881_v2 }
0x1a24   :  { %39579 = vmatprep.mubr.f32.mxu1 %v34531_v35  ;;  %40167 = vmatpush3.bf16.msra.mxu1 %v44859_v62 }
0x1a25   :  { %40169 = vmatprep.subr.bf16.mxu1 %v44861_v23 }
0x1a27   :  { %39580 = vmatmul.mubr.f32.gmra.mrb[82].mxu1 %v34541_v4 }
0x1a28   :  { %40171 = vmatpush3.bf16.msra.mxu1 %v44861_v23  ;;  %39590 = vmatprep.mubr.f32.mxu1 %v34511_v52 }
0x1a2b   :  { %39591 = vmatmul.mubr.f32.vlgmr.msra.gmra.mrb[80].mxu1 %v44881_v2 }
0x1a2c   :  { %39593 = vmatprep.mubr.f32.mxu1 %v34531_v35  ;;  %v35166_v35 = vand.u32 4294901760, %v35136_v11 }
0x1a2f   :  { %39594 = vmatmul.mubr.f32.gmra.mrb[82].mxu1 %v34541_v4  ;;  %v35137_v4 = vld [vmem:[#allocation4 + $0x188] sm:$0xff] }
0x1a30   :  { %v35169_v5 = vand.u32 4294901760, %v35137_v4 }
0x1a32   :  { %v44943_v42 = vpack.c.bf16 %v35169_v5, %v35166_v35 }
0x1afe   :  { %v39592_v1 = vpop.f32.mrb[80].mxu1 }
0x1aff   :  { %v40293_v10 = vadd.f32 %v39592_v1, %v35938_v22  ;;  %v35034_v34 = vpop.f32.mrb[81].mxu1 }
0x1b00   :  { %v40294_v31 = vadd.f32 %v35938_v22, %v35034_v34 }
0x1b01   :  { %v35057_v21 = vadd.f32 %v40293_v10, %v44793_v36 }
0x1b02   :  { %v35056_v19 = vadd.f32 %v40294_v31, %v44795_v6  ;;  %v39595_v62 = vpop.f32.mrb[82].mxu1 }
0x1b03   :  { %v40295_v55 = vadd.f32 %v39595_v62, %v35938_v22  ;;  %v35046_v39 = vpop.f32.mrb[83].mxu1  ;;  %v35063_v25 = vsel %vm2590_vm6, %v35057_v21, 0.0 }
0x1b04   :  { %v40296_v23 = vadd.f32 %v35938_v22, %v35046_v39  ;;  %35064 = vadd.xlane.f32.xlu1 %v35063_v25  ;;  %v35060_v48 = vsel %vm2590_vm6, %v35056_v19, 0.0  ;;  %v35281_v22 = vsub.f32 %v35135_v32, %v35163_v15 }
0x1b05   :  { %v35059_v60 = vadd.f32 %v40295_v55, %v44811_v30  ;;  %35061 = vadd.xlane.f32.xlu0 %v35060_v48 }
0x1b06   :  { %v35058_v51 = vadd.f32 %v40296_v23, %v44808_v13  ;;  %v35282_v10 = vand.u32 4294901760, %v35281_v22 }
0x1b07   :  { %v35069_v3 = vsel %vm2590_vm6, %v35059_v60, 0.0 }
0x1b08   :  { %35070 = vadd.xlane.f32.xlu1 %v35069_v3  ;;  %v35066_v36 = vsel %vm2590_vm6, %v35058_v51, 0.0  ;;  %v35283_v31 = vsub.f32 %v35281_v22, %v35282_v10  ;;  %v35309_v3 = vsub.f32 %v35139_v44, %v35175_v16 }
0x1b09   :  { %35067 = vadd.xlane.f32.xlu0 %v35066_v36 }
0x1b0a   :  { %v35284_v55 = vand.u32 4294901760, %v35283_v31 }
0x1b91   :  { %v35065_v6 = vpop.xlane.xlu1 %35064 }
0x1b92   :  { %v35073_v46 = vmul.f32 0.025, %v35065_v6  ;;  %v35062_v8 = vpop.xlane.xlu0 %35061 }
0x1b93   :  { %v35072_v33 = vmul.f32 0.025, %v35062_v8  ;;  %v35310_v8 = vand.u32 4294901760, %v35309_v3 }
0x1b94   :  { %v35077_v49 = vsub.f32 %v35057_v21, %v35073_v46  ;;  %v35288_v21 = vsub.f32 %v35136_v11, %v35166_v35 }
0x1b95   :  { %v35076_v50 = vsub.f32 %v35056_v19, %v35072_v33  ;;  %v35071_v63 = vpop.xlane.xlu1 %35070  ;;  %v35295_v19 = vsub.f32 %v35137_v4, %v35169_v5 }
0x1b96   :  { %v44918_v59 = vmul.f32 %v44721_v43, %v35077_v49  ;;  %v35075_v30 = vmul.f32 0.025, %v35071_v63  ;;  %v35068_v27 = vpop.xlane.xlu0 %35067  ;;  %v35289_v39 = vand.u32 4294901760, %v35288_v21  ;;  %v35323_v63 = vsub.f32 %v35141_v14, %v35181_v18 }
0x1b97   :  { %v44921_v13 = vmul.f32 %v44721_v43, %v35076_v50  ;;  %v35074_v40 = vmul.f32 0.025, %v35068_v27  ;;  %v35296_v25 = vand.u32 4294901760, %v35295_v19  ;;  %v35316_v50 = vsub.f32 %v35140_v17, %v35178_v53 }
0x1b98   :  { %v35079_v37 = vsub.f32 %v35059_v60, %v35075_v30  ;;  %v35085_v29 = vmul.f32 %v44918_v59, %v44918_v59  ;;  %v35290_v48 = vsub.f32 %v35288_v21, %v35289_v39  ;;  %v35311_v30 = vsub.f32 %v35309_v3, %v35310_v8 }
0x1b99   :  { %v35078_v7 = vsub.f32 %v35058_v51, %v35074_v40  ;;  %v35084_v58 = vmul.f32 %v44921_v13, %v44921_v13  ;;  %v35297_v60 = vsub.f32 %v35295_v19, %v35296_v25  ;;  %v35302_v51 = vsub.f32 %v35138_v28, %v35172_v47 }
0x1b9a   :  { %v44928_v56 = vmul.f32 %v44721_v43, %v35079_v37  ;;  %v35091_v2 = vsel %vm2590_vm6, %v35085_v29, 0.0  ;;  %v35291_v36 = vand.u32 4294901760, %v35290_v48  ;;  %v35317_v40 = vand.u32 4294901760, %v35316_v50 }
0x1b9b   :  { %v44932_v45 = vmul.f32 %v44721_v43, %v35078_v7  ;;  %35092 = vadd.xlane.f32.xlu1 %v35091_v2  ;;  %v35088_v20 = vsel %vm2590_vm6, %v35084_v58, 0.0  ;;  %v35160_v43 = vand.u32 4294901760, %v35134_v26  ;;  %v35298_v6 = vand.u32 4294901760, %v35297_v60 }
0x1b9c   :  { %35089 = vadd.xlane.f32.xlu0 %v35088_v20  ;;  %v35087_v57 = vmul.f32 %v44928_v56, %v44928_v56  ;;  %v35303_v46 = vand.u32 4294901760, %v35302_v51  ;;  %v35324_v37 = vand.u32 4294901760, %v35323_v63  ;;  %v35312_v29 = vand.u32 4294901760, %v35311_v30 }
0x1b9d   :  { %v35086_v52 = vmul.f32 %v44932_v45, %v44932_v45  ;;  %v44941_v24 = vpack.c.bf16 %v35163_v15, %v35160_v43  ;;  %v35274_v12 = vsub.f32 %v35134_v26, %v35160_v43  ;;  %v44960_v33 = vpack.c.bf16 %v35298_v6, %v35291_v36 }
0x1b9e   :  { %v35097_v41 = vsel %vm2590_vm6, %v35087_v57, 0.0  ;;  %v35304_v49 = vsub.f32 %v35302_v51, %v35303_v46  ;;  %v35318_v7 = vsub.f32 %v35316_v50, %v35317_v40  ;;  %v35325_v58 = vsub.f32 %v35323_v63, %v35324_v37 }
0x1b9f   :  { %35098 = vadd.xlane.f32.xlu1 %v35097_v41  ;;  %v35094_v0 = vsel %vm2590_vm6, %v35086_v52, 0.0  ;;  %40173 = vmatprep.subr.bf16.mxu0 %v44941_v24  ;;  %v35275_v1 = vand.u32 4294901760, %v35274_v12  ;;  %v44966_v41 = vpack.c.bf16 %v35281_v22, %v35274_v12  ;;  %v44970_v26 = vpack.c.bf16 %v35309_v3, %v35302_v51 }
0x1ba0   :  { %35095 = vadd.xlane.f32.xlu0 %v35094_v0  ;;  %40175 = vmatpush3.bf16.msra.mxu0 %v44941_v24  ;;  %v35305_v27 = vand.u32 4294901760, %v35304_v49  ;;  %v35319_v20 = vand.u32 4294901760, %v35318_v7  ;;  %v35326_v57 = vand.u32 4294901760, %v35325_v58  ;;  %v44968_v0 = vpack.c.bf16 %v35295_v19, %v35288_v21  ;;  %v35940_v19 = vld [vmem:[#allocation4 + $0x168] ss:$0 sm:$0xff] }
0x1ba1   :  { %40177 = vmatprep.subr.bf16.mxu0 %v44943_v42  ;;  %v35276_v34 = vsub.f32 %v35274_v12, %v35275_v1  ;;  %v44972_v32 = vpack.c.bf16 %v35323_v63, %v35316_v50  ;;  %v44974_v43 = vpack.c.bf16 %v35282_v10, %v35275_v1  ;;  %v44976_v15 = vpack.c.bf16 %v35296_v25, %v35289_v39  ;;  %v35939_v10 = vld [vmem:[#allocation4 + $0x160] ss:$0 sm:$0xff] }
0x1ba2   :  { %v44962_v2 = vpack.c.bf16 %v35312_v29, %v35305_v27  ;;  %v44964_v52 = vpack.c.bf16 %v35326_v57, %v35319_v20  ;;  %v44978_v11 = vpack.c.bf16 %v35310_v8, %v35303_v46  ;;  %v44980_v4 = vpack.c.bf16 %v35324_v37, %v35317_v40 }
0x1ba3   :  { %v35277_v62 = vand.u32 4294901760, %v35276_v34 }
0x1ba4   :  { %40179 = vmatpush3.bf16.msra.mxu0 %v44943_v42 }
0x1ba5   :  { %40181 = vmatprep.subr.bf16.mxu0 %v44948_v54  ;;  %v44957_v23 = vpack.c.bf16 %v35284_v55, %v35277_v62 }
0x1ba8   :  { %40183 = vmatpush3.bf16.msra.mxu0 %v44948_v54 }
0x1ba9   :  { %40185 = vmatprep.subr.bf16.mxu0 %v44952_v61 }
0x1bac   :  { %40187 = vmatpush3.bf16.msra.mxu0 %v44952_v61 }
0x1bad   :  { %40189 = vmatprep.subr.bf16.mxu0 %v44957_v23 }
0x1c28   :  { %v35093_v28 = vpop.xlane.xlu1 %35092 }
0x1c29   :  { %v35101_v35 = vmul.f32 0.025, %v35093_v28  ;;  %v35090_v5 = vpop.xlane.xlu0 %35089 }
0x1c2a   :  { %v35100_v44 = vmul.f32 0.025, %v35090_v5 }
0x1c2b   :  { %v35105_v47 = vadd.f32 1e-05, %v35101_v35 }
0x1c2c   :  { %v35104_v16 = vadd.f32 1e-05, %v35100_v44  ;;  %v35099_v17 = vpop.xlane.xlu1 %35098 }
0x1c2d   :  { %41275 = vrsqrt.f32 %v35105_v47  ;;  %v35103_v14 = vmul.f32 0.025, %v35099_v17  ;;  %v35096_v53 = vpop.xlane.xlu0 %35095 }
0x1c2e   :  { %41277 = vrsqrt.f32 %v35104_v16  ;;  %v35102_v18 = vmul.f32 0.025, %v35096_v53 }
0x1c2f   :  { %v35107_v12 = vadd.f32 1e-05, %v35103_v14 }
0x1c30   :  { %v35106_v22 = vadd.f32 1e-05, %v35102_v18 }
0x1c31   :  { %41279 = vrsqrt.f32 %v35107_v12 }
0x1c32   :  { %41281 = vrsqrt.f32 %v35106_v22 }
0x1c37   :  { %v41276_v1 = vpop.eup %41275 }
0x1c38   :  { %v41278_v34 = vpop.eup %41277  ;;  %v35113_v31 = vmul.f32 %v41276_v1, %v44918_v59 }
0x1c39   :  { %v35112_v21 = vmul.f32 %v41278_v34, %v44921_v13 }
0x1c3a   :  { %v35122_v62 = vmul.f32 %v35939_v10, %v35113_v31 }
0x1c3b   :  { %v41280_v55 = vpop.eup %41279  ;;  %v35121_v39 = vmul.f32 %v35939_v10, %v35112_v21 }
0x1c3c   :  { %v41282_v25 = vpop.eup %41281  ;;  %v35115_v48 = vmul.f32 %v41280_v55, %v44928_v56  ;;  %v35131_v60 = vadd.f32 %v35940_v19, %v35122_v62 }
0x1c3d   :  { %v35114_v51 = vmul.f32 %v41282_v25, %v44932_v45  ;;  %v35130_v3 = vadd.f32 %v35940_v19, %v35121_v39 }
0x1c3e   :  { %v35151_v36 = vsel %vm2590_vm6, %v35131_v60, 0  ;;  %v35124_v6 = vmul.f32 %v35939_v10, %v35115_v48 }
0x1c3f   :  { %v35148_v46 = vsel %vm2590_vm6, %v35130_v3, 0  ;;  %v44988_v8 = vand.u32 4294901760, %v35151_v36  ;;  %v35123_v59 = vmul.f32 %v35939_v10, %v35114_v51 }
0x1c40   :  { %v44990_v13 = vand.u32 4294901760, %v35148_v46  ;;  %v35133_v49 = vadd.f32 %v35940_v19, %v35124_v6 }
0x1c41   :  { %v35243_v50 = vsub.f32 %v35151_v36, %v44988_v8  ;;  %v35132_v63 = vadd.f32 %v35940_v19, %v35123_v59 }
0x1c42   :  { %v35233_v56 = vsub.f32 %v35148_v46, %v44990_v13  ;;  %v35157_v30 = vsel %vm2590_vm6, %v35133_v49, 0 }
0x1c43   :  { %v35244_v45 = vand.u32 4294901760, %v35243_v50  ;;  %v35154_v27 = vsel %vm2590_vm6, %v35132_v63, 0  ;;  %v44996_v40 = vand.u32 4294901760, %v35157_v30  ;;  %vm35920_vm6 = vcmask 827136  }
0x1c44   :  { %v35234_v37 = vand.u32 4294901760, %v35233_v56  ;;  %v44998_v29 = vand.u32 4294901760, %v35154_v27 }
0x1c45   :  { %v35245_v7 = vsub.f32 %v35243_v50, %v35244_v45  ;;  %v35263_v58 = vsub.f32 %v35157_v30, %v44996_v40 }
0x1c46   :  { %v35235_v20 = vsub.f32 %v35233_v56, %v35234_v37  ;;  %v35253_v57 = vsub.f32 %v35154_v27, %v44998_v29 }
0x1c47   :  { %v35264_v28 = vand.u32 4294901760, %v35263_v58  ;;  %v35246_v44 = vand.u32 4294901760, %v35245_v7 }
0x1c48   :  { %v35236_v35 = vand.u32 4294901760, %v35235_v20  ;;  %v35254_v5 = vand.u32 4294901760, %v35253_v57 }
0x1c49   :  { %v35265_v47 = vsub.f32 %v35263_v58, %v35264_v28 }
0x1c4a   :  { %39612 = vmatprep.mubr.f32.mxu0 %v35236_v35  ;;  %v35255_v16 = vsub.f32 %v35253_v57, %v35254_v5 }
0x1c4b   :  { %39613 = vmatmul.mubr.f32.vlgmr.msra.gmra.mrb[78].mxu0 %v35246_v44  ;;  %v35266_v14 = vand.u32 4294901760, %v35265_v47 }
0x1c4c   :  { %40191 = vmatpush3.bf16.msra.mxu0 %v44957_v23  ;;  %v35256_v17 = vand.u32 4294901760, %v35255_v16 }
0x1c4d   :  { %40193 = vmatprep.subr.bf16.mxu0 %v44960_v33 }
0x1c4e   :  { %39615 = vmatprep.mubr.f32.mxu0 %v35256_v17 }
0x1c4f   :  { %39616 = vmatmul.mubr.f32.gmra.mrb[80].mxu0 %v35266_v14 }
0x1c50   :  { %40195 = vmatpush3.bf16.msra.mxu0 %v44960_v33  ;;  %39634 = vmatprep.mubr.f32.mxu0 %v44990_v13 }
0x1c51   :  { %40197 = vmatprep.subr.bf16.mxu0 %v44962_v2 }
0x1c54   :  { %40199 = vmatpush3.bf16.msra.mxu0 %v44962_v2 }
0x1c55   :  { %40201 = vmatprep.subr.bf16.mxu0 %v44964_v52 }
0x1c58   :  { %40203 = vmatpush3.bf16.msra.mxu0 %v44964_v52 }
0x1c59   :  { %40205 = vmatprep.subr.bf16.mxu0 %v44966_v41 }
0x1c5b   :  { %39635 = vmatmul.mubr.f32.vlgmr.msra.gmra.mrb[78].mxu0 %v44988_v8 }
0x1c5c   :  { %39637 = vmatprep.mubr.f32.mxu0 %v44998_v29  ;;  %40207 = vmatpush3.bf16.msra.mxu0 %v44966_v41 }
0x1c5d   :  { %40209 = vmatprep.subr.bf16.mxu0 %v44968_v0 }
0x1c5f   :  { %39638 = vmatmul.mubr.f32.gmra.mrb[80].mxu0 %v44996_v40 }
0x1c60   :  { %40211 = vmatpush3.bf16.msra.mxu0 %v44968_v0  ;;  %39656 = vmatprep.mubr.f32.mxu0 %v35233_v56 }
0x1c61   :  { %40213 = vmatprep.subr.bf16.mxu0 %v44970_v26 }
0x1c64   :  { %40215 = vmatpush3.bf16.msra.mxu0 %v44970_v26 }
0x1c65   :  { %40217 = vmatprep.subr.bf16.mxu0 %v44972_v32 }
0x1c68   :  { %40219 = vmatpush3.bf16.msra.mxu0 %v44972_v32 }
0x1c69   :  { %40221 = vmatprep.subr.bf16.mxu0 %v44941_v24 }
0x1c6b   :  { %39657 = vmatmul.mubr.f32.vlgmr.msra.gmra.mrb[78].mxu0 %v35243_v50 }
0x1c6c   :  { %39659 = vmatprep.mubr.f32.mxu0 %v35253_v57  ;;  %40223 = vmatpush3.bf16.msra.mxu0 %v44941_v24 }
0x1c6d   :  { %40225 = vmatprep.subr.bf16.mxu0 %v44943_v42 }
0x1c6f   :  { %39660 = vmatmul.mubr.f32.gmra.mrb[80].mxu0 %v35263_v58 }
0x1c70   :  { %40227 = vmatpush3.bf16.msra.mxu0 %v44943_v42  ;;  %39678 = vmatprep.mubr.f32.mxu0 %v35234_v37 }
0x1c71   :  { %40229 = vmatprep.subr.bf16.mxu0 %v44948_v54 }
0x1c74   :  { %40231 = vmatpush3.bf16.msra.mxu0 %v44948_v54 }
0x1c75   :  { %40233 = vmatprep.subr.bf16.mxu0 %v44952_v61 }
0x1c78   :  { %40235 = vmatpush3.bf16.msra.mxu0 %v44952_v61 }
0x1c79   :  { %40237 = vmatprep.subr.bf16.mxu0 %v44974_v43 }
0x1c7b   :  { %39679 = vmatmul.mubr.f32.vlgmr.msra.gmra.mrb[78].mxu0 %v35244_v45 }
0x1c7c   :  { %39681 = vmatprep.mubr.f32.mxu0 %v35254_v5  ;;  %40239 = vmatpush3.bf16.msra.mxu0 %v44974_v43 }
0x1c7d   :  { %40241 = vmatprep.subr.bf16.mxu0 %v44976_v15 }
0x1c7f   :  { %39682 = vmatmul.mubr.f32.gmra.mrb[80].mxu0 %v35264_v28 }
0x1c80   :  { %40243 = vmatpush3.bf16.msra.mxu0 %v44976_v15  ;;  %39700 = vmatprep.mubr.f32.mxu0 %v44990_v13 }
0x1c81   :  { %40245 = vmatprep.subr.bf16.mxu0 %v44978_v11 }
0x1c84   :  { %40247 = vmatpush3.bf16.msra.mxu0 %v44978_v11 }
0x1c85   :  { %40249 = vmatprep.subr.bf16.mxu0 %v44980_v4 }
0x1c88   :  { %40251 = vmatpush3.bf16.msra.mxu0 %v44980_v4  ;;  %v45078_v4 = vlaneseq }
0x1c89   :  { %40253 = vmatprep.subr.bf16.mxu0 %v44941_v24 }
0x1c8a   :  { %v35860_v53 = vand.u32 127, %v45078_v4 }
0x1c8b   :  { %39701 = vmatmul.mubr.f32.vlgmr.msra.gmra.mrb[78].mxu0 %v44988_v8 }
0x1c8c   :  { %39703 = vmatprep.mubr.f32.mxu0 %v44998_v29  ;;  %40255 = vmatpush3.bf16.msra.mxu0 %v44941_v24  ;;  %v41355_v24 = vmov 0   ;;  %v35861_v12 = vadd.s32 4294967264, %v35860_v53 }
0x1c8d   :  { %40257 = vmatprep.subr.bf16.mxu0 %v44943_v42  ;;  %41127 = vset.pattern.permute.xlu1 %v41355_v24 }
0x1c8e   :  { %41126 = vset.pattern.permute.xlu0 %v41355_v24  ;;  %v35864_v1 = vsub.s32 %v35861_v12, %v41694_v38 }
0x1c8f   :  { %39704 = vmatmul.mubr.f32.gmra.mrb[80].mxu0 %v44996_v40 }
0x1c90   :  { %40259 = vmatpush3.bf16.msra.mxu0 %v44943_v42  ;;  %39722 = vmatprep.mubr.f32.mxu0 %v44990_v13  ;;  %v35941_v42 = vld [vmem:[#allocation4 + $0x1b0] ss:$0 sm:$0xff] }
0x1c91   :  { %40261 = vmatprep.subr.bf16.mxu0 %v44948_v54 }
0x1c94   :  { %40263 = vmatpush3.bf16.msra.mxu0 %v44948_v54 }
0x1c95   :  { %40265 = vmatprep.subr.bf16.mxu0 %v44952_v61 }
0x1c98   :  { %40267 = vmatpush3.bf16.msra.mxu0 %v44952_v61 }
0x1c9b   :  { %39723 = vmatmul.mubr.f32.vlgmr.msra.gmra.mrb[78].mxu0 %v44988_v8 }
0x1c9c   :  { %39725 = vmatprep.mubr.f32.mxu0 %v44998_v29 }
0x1c9f   :  { %39726 = vmatmul.mubr.f32.gmra.mrb[80].mxu0 %v44996_v40 }
0x1d6e   :  { %v39724_v23 = vpop.f32.mrb[78].mxu0 }
0x1d6f   :  { %v40297_v33 = vadd.f32 %v39724_v23, %v35941_v42  ;;  %v35803_v2 = vpop.f32.mrb[79].mxu0 }
0x1d70   :  { %v40298_v52 = vadd.f32 %v35941_v42, %v35803_v2 }
0x1d71   :  { %35842 = vperm.xlu1 %41127, %v40297_v33   ;;  %v35830_v41 = vcombine.high %v40297_v33, %v40297_v33 }
0x1d72   :  { %v39727_v54 = vpop.f32.mrb[80].mxu0  ;;  %35836 = vperm.xlu0 %41126, %v40298_v52   ;;  %v35829_v61 = vcombine.high %v40298_v52, %v40298_v52 }
0x1d73   :  { %v35815_v0 = vpop.f32.mrb[81].mxu0  ;;  %v40299_v26 = vadd.f32 %v39727_v54, %v35941_v42 }
0x1d74   :  { %v40300_v32 = vadd.f32 %v35941_v42, %v35815_v0 }
0x1d75   :  { %35845 = vperm.xlu1 %41127, %v35830_v41   ;;  %v35832_v15 = vcombine.high %v40299_v26, %v40299_v26 }
0x1d76   :  { %35917 = vrot.lane.b32.xlu0 %v41467_v9, %s41356_s23  ;;  %v35831_v43 = vcombine.high %v40300_v32, %v40300_v32 }
0x1d79   :  { %35839 = vperm.xlu1 %41127, %v35829_v61  }
0x1d7d   :  { %35854 = vperm.xlu1 %41127, %v40299_v26  }
0x1d81   :  { %35848 = vperm.xlu1 %41127, %v40300_v32  }
0x1d85   :  { %35851 = vperm.xlu1 %41127, %v35831_v43  }
0x1d89   :  { %35857 = vperm.xlu1 %41127, %v35832_v15  }
0x1d8d   :  { %35912 = vrot.lane.b32.xlu1 %v41467_v9, %s41351_s19 }
0x1df0   :  { %v35843_v11 = vpop.permute.xlu1 %35842 }
0x1df1   :  { %v35837_v10 = vpop.permute.xlu0 %35836  ;;  %v35873_v62 = vrot.slane %v35843_v11, %v35864_v1 }
0x1df2   :  { %v35865_v21 = vrot.slane %v35837_v10, %v35864_v1 }
0x1df4   :  { %v35846_v18 = vpop.permute.xlu1 %35845 }
0x1df5   :  { %v35877_v25 = vrot.slane %v35846_v18, %v35864_v1  ;;  %v35918_v49 = vpop.permute.xlu0 %35917 }
0x1df8   :  { %v35840_v22 = vpop.permute.xlu1 %35839 }
0x1df9   :  { %v35869_v34 = vrot.slane %v35840_v22, %v35864_v1 }
0x1dfb   :  { %v35895_v19 = vsel %vm35894_vm13, %v35869_v34, %v35865_v21 }
0x1dfc   :  { %v35855_v31 = vpop.permute.xlu1 %35854  ;;  %v35897_v39 = vsel %vm35896_vm14, %v35873_v62, %v35895_v19 }
0x1dfd   :  { %v35899_v60 = vsel %vm35898_vm15, %v35877_v25, %v35897_v39  ;;  %v35889_v36 = vrot.slane %v35855_v31, %v35864_v1 }
0x1e00   :  { %v35849_v55 = vpop.permute.xlu1 %35848 }
0x1e01   :  { %v35881_v9 = vrot.slane %v35849_v55, %v35864_v1 }
0x1e03   :  { %v35901_v3 = vsel %vm35900_vm0, %v35881_v9, %v35899_v60 }
0x1e04   :  { %v35852_v48 = vpop.permute.xlu1 %35851 }
0x1e05   :  { %v35885_v51 = vrot.slane %v35852_v48, %v35864_v1 }
0x1e07   :  { %v35903_v38 = vsel %vm35902_vm1, %v35885_v51, %v35901_v3 }
0x1e08   :  { %v35858_v6 = vpop.permute.xlu1 %35857  ;;  %v35905_v8 = vsel %vm35904_vm2, %v35889_v36, %v35903_v38 }
0x1e09   :  { %v35893_v46 = vrot.slane %v35858_v6, %v35864_v1 }
0x1e0b   :  { %v35907_v59 = vsel %vm35906_vm3, %v35893_v46, %v35905_v8 }
0x1e0c   :  { %35910 = vst.msk [vmem:[%s45070_s3] sm:$0xff] %vm35909_vm4, %v35907_v59  ;;  %v35913_v13 = vpop.permute.xlu1 %35912 }
0x1e0d   :  { %35916 = vst.msk [vmem:[%s45070_s3] sm:$0xff] %vm35915_vm5, %v35913_v13 }
0x1e0e   :  { %35921 = vst.msk [vmem:[%s45070_s3] sm:$0xff] %vm35920_vm6, %v35918_v49 }
0x1e0f   :  { %35926 = vsyncpa [#allocation5], 1 }
0x1e10   :  { %35927 = vsyncpa [#allocation7], 1 }

</bundles_post_ra>
